<compile_context>
chip_gen: v7x
topology: tpu7x:2x2x1
jax: 0.10.0
libtpu: 0.0.40
codegen_flags: <defaults>
</compile_context>

<pallas_src>
import functools

import jax
import jax.numpy as jnp
from jax.experimental import pallas as pl
from jax.experimental.pallas import tpu as pltpu


def _round_up(x, m):
    return ((x + m - 1) // m) * m


# ---------------------------------------------------------------------------
# Pallas kernel 1: tiled matmul + bias + ReLU (used for every VGG conv layer)
# ---------------------------------------------------------------------------
def _matmul_bias_relu_kernel(x_ref, w_ref, b_ref, o_ref, acc_ref, *, apply_relu):
    k = pl.program_id(2)

    @pl.when(k == 0)
    def _():
        acc_ref[...] = jnp.zeros_like(acc_ref)

    acc_ref[...] += jnp.dot(x_ref[...], w_ref[...],
                            preferred_element_type=jnp.float32)

    @pl.when(k == pl.num_programs(2) - 1)
    def _():
        out = acc_ref[...] + b_ref[...].astype(jnp.float32)
        if apply_relu:
            out = jnp.maximum(out, 0.0)
        o_ref[...] = out.astype(o_ref.dtype)


def matmul_bias_relu(x, w, b, *, apply_relu=True, tm=128, tk=256, tn=128):
    """out = relu(x @ w + b); x:(M,K), w:(K,N), b:(N,). Pads M,K,N to tile multiples."""
    m, k = x.shape
    k2, n = w.shape
    assert k == k2 and b.shape == (n,)
    mp, kp, np_ = _round_up(m, tm), _round_up(k, tk), _round_up(n, tn)
    xp = jnp.pad(x, ((0, mp - m), (0, kp - k)))
    wp = jnp.pad(w, ((0, kp - k), (0, np_ - n)))
    bp = jnp.pad(b, (0, np_ - n)).reshape(1, np_)

    kernel = functools.partial(_matmul_bias_relu_kernel, apply_relu=apply_relu)
    out = pl.pallas_call(
        kernel,
        out_shape=jax.ShapeDtypeStruct((mp, np_), jnp.float32),
        grid_spec=pltpu.PrefetchScalarGridSpec(
            num_scalar_prefetch=0,
            grid=(mp // tm, np_ // tn, kp // tk),
            in_specs=[
                pl.BlockSpec((tm, tk), lambda i, j, kk: (i, kk)),
                pl.BlockSpec((tk, tn), lambda i, j, kk: (kk, j)),
                pl.BlockSpec((1, tn), lambda i, j, kk: (0, j)),
            ],
            out_specs=pl.BlockSpec((tm, tn), lambda i, j, kk: (i, j)),
            scratch_shapes=[pltpu.VMEM((tm, tn), jnp.float32)],
        ),
        compiler_params=pltpu.CompilerParams(
            dimension_semantics=("parallel", "parallel", "arbitrary"),
            vmem_limit_bytes=32 * 1024 * 1024),
    )(xp, wp, bp)
    return out[:m, :n]


# ---------------------------------------------------------------------------
# Pallas kernel 2: MSE reduction (F.mse_loss) — HBM-bandwidth bound
# ---------------------------------------------------------------------------
def _sqdiff_partial_kernel(x_ref, y_ref, o_ref):
    x = x_ref[...].astype(jnp.float32)
    y = y_ref[...].astype(jnp.float32)
    d = x - y
    s = jnp.sum(d * d)                       # partial sum for this tile
    o_ref[...] = jnp.full(o_ref.shape, s, dtype=jnp.float32)


def mse_loss_pallas(x, y, *, per_buffer_budget_bytes=2 * 1024 * 1024):
    """Mean of squared differences over all elements (== F.mse_loss)."""
    assert x.shape == y.shape
    n_elems = x.size
    rows = x.shape[0]
    feat = n_elems // rows
    xf = x.reshape(rows, feat)
    yf = y.reshape(rows, feat)

    # Large lane-dense tile: (rows, tl) with tl a multiple of 128, ~2 MiB per
    # f32 input tile => 2 inputs * 2 buffers * 2 MiB = 8 MiB, fits every gen.
    tl = per_buffer_budget_bytes // (4 * rows)
    tl = max(128, (tl // 128) * 128)
    tl = min(tl, _round_up(feat, 128))

    fp = _round_up(feat, tl)
    if fp != feat:  # zero-pad the tail; both operands padded identically -> diff = 0
        xf = jnp.pad(xf, ((0, 0), (0, fp - feat)))
        yf = jnp.pad(yf, ((0, 0), (0, fp - feat)))
    n_tiles = fp // tl

    partials = pl.pallas_call(
        _sqdiff_partial_kernel,
        out_shape=jax.ShapeDtypeStruct((1, n_tiles * 128), jnp.float32),
        grid_spec=pltpu.PrefetchScalarGridSpec(
            num_scalar_prefetch=0,
            grid=(n_tiles,),
            in_specs=[
                pl.BlockSpec((rows, tl), lambda j: (0, j)),
                pl.BlockSpec((rows, tl), lambda j: (0, j)),
            ],
            out_specs=pl.BlockSpec((1, 128), lambda j: (0, j)),
        ),
        compiler_params=pltpu.CompilerParams(
            dimension_semantics=("parallel",),     # no carried state -> megacore friendly
            vmem_limit_bytes=32 * 1024 * 1024),
    )(xf, yf)

    total = jnp.sum(partials.reshape(n_tiles, 128)[:, 0])
    return total / jnp.float32(n_elems)


# ---------------------------------------------------------------------------
# VGG16-features prefix (layers 0..15) — stand-in for the injected vgg_model
# ---------------------------------------------------------------------------
def init_vgg16_prefix_params(key):
    # TODO(synk): pretrained torchvision VGG16 weights cannot be loaded in-script
    # (no files / network); deterministic He-initialized weights stand in for the
    # injected `vgg_model`.
    cfg = [(3, 64), (64, 64), (64, 128), (128, 128), (128, 256), (256, 256), (256, 256)]
    params = []
    for cin, cout in cfg:
        key, wk = jax.random.split(key)
        scale = (2.0 / (9 * cin)) ** 0.5
        w = scale * jax.random.normal(wk, (3, 3, cin, cout), dtype=jnp.float32)  # HWIO
        b = jnp.zeros((cout,), dtype=jnp.float32)
        params.append((w, b))
    return params


def _im2col_3x3(x_nhwc):
    b, h, w, c = x_nhwc.shape
    xp = jnp.pad(x_nhwc, ((0, 0), (1, 1), (1, 1), (0, 0)))
    cols = [xp[:, dy:dy + h, dx:dx + w, :] for dy in range(3) for dx in range(3)]
    patches = jnp.stack(cols, axis=3)                 # (b, h, w, 9, c)
    return patches.reshape(b * h * w, 9 * c)


def _conv3x3_relu_pallas(x_nhwc, p):
    w, b = p
    bsz, h, ww, cin = x_nhwc.shape
    cout = w.shape[-1]
    patches = _im2col_3x3(x_nhwc)                     # (b*h*w, 9*cin)
    out = matmul_bias_relu(patches, w.reshape(9 * cin, cout), b, apply_relu=True)
    return out.reshape(bsz, h, ww, cout)


def _conv3x3_relu_ref(x_nhwc, p):
    w, b = p
    y = jax.lax.conv_general_dilated(
        x_nhwc, w, window_strides=(1, 1), padding="SAME",
        dimension_numbers=("NHWC", "HWIO", "NHWC"),
        precision=jax.lax.Precision.HIGHEST)
    return jnp.maximum(y + b, 0.0)


def _maxpool2x2(x_nhwc):
    # TODO(synk): the 2x2/stride-2 max-pool of the injected VGG backbone stays in
    # plain JAX (cheap layout op); all heavy compute runs in the Pallas kernels.
    b, h, w, c = x_nhwc.shape
    return jnp.max(x_nhwc.reshape(b, h // 2, 2, w // 2, 2, c), axis=(2, 4))


def _vgg16_prefix_features(params, x_nhwc, conv_fn):
    """Returns [relu1_2, relu2_2, relu3_3] (torchvision vgg16.features idx 3, 8, 15)."""
    h = conv_fn(x_nhwc, params[0])     # conv1_1 + relu   (idx 0,1)
    h = conv_fn(h, params[1])          # conv1_2 + relu   (idx 2,3)
    relu1_2 = h
    h = _maxpool2x2(h)                 # idx 4
    h = conv_fn(h, params[2])          # conv2_1 + relu   (idx 5,6)
    h = conv_fn(h, params[3])          # conv2_2 + relu   (idx 7,8)
    relu2_2 = h
    h = _maxpool2x2(h)                 # idx 9
    h = conv_fn(h, params[4])          # conv3_1 + relu   (idx 10,11)
    h = conv_fn(h, params[5])          # conv3_2 + relu   (idx 12,13)
    h = conv_fn(h, params[6])          # conv3_3 + relu   (idx 14,15)
    relu3_3 = h
    return [relu1_2, relu2_2, relu3_3]


# ---------------------------------------------------------------------------
# LossNetwork.forward
# ---------------------------------------------------------------------------
def loss_network_forward(params, pred_im, gt):
    """pred_im, gt: (B, 3, H, W) NCHW (PyTorch layout) -> scalar perceptual loss."""
    pred = jnp.transpose(pred_im, (0, 2, 3, 1))
    gtt = jnp.transpose(gt, (0, 2, 3, 1))
    pf = _vgg16_prefix_features(params, pred, _conv3x3_relu_pallas)
    gf = _vgg16_prefix_features(params, gtt, _conv3x3_relu_pallas)
    losses = [mse_loss_pallas(a, b) for a, b in zip(pf, gf)]
    return sum(losses) / len(losses)


def loss_network_ref(params, pred_im, gt):
    pred = jnp.transpose(pred_im, (0, 2, 3, 1))
    gtt = jnp.transpose(gt, (0, 2, 3, 1))
    pf = _vgg16_prefix_features(params, pred, _conv3x3_relu_ref)
    gf = _vgg16_prefix_features(params, gtt, _conv3x3_relu_ref)
    losses = [jnp.mean((a - b) ** 2) for a, b in zip(pf, gf)]
    return sum(losses) / len(losses)


if __name__ == "__main__":
    key = jax.random.PRNGKey(0)
    kw, k1, k2 = jax.random.split(key, 3)

    B, C, H, W = 2, 3, 16, 16                      # VGG expects 3-channel images
    pred_im = jax.random.uniform(k1, (B, C, H, W), dtype=jnp.float32)
    gt = jax.random.uniform(k2, (B, C, H, W), dtype=jnp.float32)
    params = init_vgg16_prefix_params(kw)

    loss = jax.block_until_ready(jax.jit(loss_network_forward)(params, pred_im, gt))
    ref = jax.block_until_ready(jax.jit(loss_network_ref)(params, pred_im, gt))

    assert jnp.isfinite(loss), loss
    assert jnp.allclose(loss, ref, rtol=2e-2, atol=1e-5), (loss, ref)

    print("KERNEL_OK")
</pallas_src>

<mosaic_0001>
module attributes {stable_mosaic.version = 11 : i64} {
  func.func @_matmul_bias_relu_kernel(%arg0: i32, %arg1: i32, %arg2: i32, %arg3: memref<128x256xf32, #tpu.memory_space<vmem>>, %arg4: memref<256x128xf32, #tpu.memory_space<vmem>>, %arg5: memref<1x128xf32, #tpu.memory_space<vmem>>, %arg6: memref<128x128xf32, #tpu.memory_space<vmem>>, %arg7: memref<128x128xf32, #tpu.memory_space<vmem>>) attributes {dimension_semantics = [#tpu.dimension_semantics<parallel>, #tpu.dimension_semantics<parallel>, #tpu.dimension_semantics<arbitrary>], iteration_bounds = array<i64: 4, 1, 1>, scalar_prefetch = 0 : i64, scratch_operands = 1 : i64, tpu.core_type = #tpu.core_type<tc>, window_params = [{transform_indices = @transform_0, window_bounds = array<i64: 128, 256>}, {transform_indices = @transform_1, window_bounds = array<i64: 256, 128>}, {transform_indices = @transform_2, window_bounds = array<i64: 1, 128>}, {transform_indices = @transform_3, window_bounds = array<i64: 128, 128>}]} {
    %c0_i32 = arith.constant 0 : i32
    %0 = arith.cmpi eq, %arg2, %c0_i32 : i32
    %1 = arith.extui %0 : i1 to i32
    %c0_i32_0 = arith.constant 0 : i32
    %2 = arith.cmpi ne, %1, %c0_i32_0 : i32
    scf.if %2 {
      %cst_10 = arith.constant 0.000000e+00 : f32
      %12 = vector.broadcast %cst_10 : f32 to vector<128x128xf32>
      %c0_11 = arith.constant 0 : index
      %c0_12 = arith.constant 0 : index
      %13 = vector.load %arg7[%c0_11, %c0_12] : memref<128x128xf32, #tpu.memory_space<vmem>>, vector<128x128xf32>
      tpu.vector_store %arg7[%c0_11, %c0_12], %12 {strides = array<i32>} : memref<128x128xf32, #tpu.memory_space<vmem>>, vector<128x128xf32>,
    } else {
    }
    %c0 = arith.constant 0 : index
    %c0_1 = arith.constant 0 : index
    %3 = vector.load %arg7[%c0, %c0_1] : memref<128x128xf32, #tpu.memory_space<vmem>>, vector<128x128xf32>
    %c0_2 = arith.constant 0 : index
    %c0_3 = arith.constant 0 : index
    %4 = vector.load %arg3[%c0_2, %c0_3] : memref<128x256xf32, #tpu.memory_space<vmem>>, vector<128x256xf32>
    %c0_4 = arith.constant 0 : index
    %c0_5 = arith.constant 0 : index
    %5 = vector.load %arg4[%c0_4, %c0_5] : memref<256x128xf32, #tpu.memory_space<vmem>>, vector<256x128xf32>
    %cst = arith.constant dense<0.000000e+00> : vector<128x128xf32>
    %6 = tpu.matmul %4, %5, %cst {dimension_numbers = #tpu.dot_dimension_numbers<[1], [0], [0], [1], [0, 0, 1, 1], [], []>} : vector<128x256xf32>, vector<256x128xf32>, vector<128x128xf32> -> vector<128x128xf32>
    %7 = arith.addf %3, %6 : vector<128x128xf32>
    %c0_6 = arith.constant 0 : index
    %c0_7 = arith.constant 0 : index
    %8 = vector.load %arg7[%c0_6, %c0_7] : memref<128x128xf32, #tpu.memory_space<vmem>>, vector<128x128xf32>
    tpu.vector_store %arg7[%c0_6, %c0_7], %7 {strides = array<i32>} : memref<128x128xf32, #tpu.memory_space<vmem>>, vector<128x128xf32>,
    %c0_i32_8 = arith.constant 0 : i32
    %9 = arith.cmpi eq, %arg2, %c0_i32_8 : i32
    %10 = arith.extui %9 : i1 to i32
    %c0_i32_9 = arith.constant 0 : i32
    %11 = arith.cmpi ne, %10, %c0_i32_9 : i32
    scf.if %11 {
      %c0_10 = arith.constant 0 : index
      %c0_11 = arith.constant 0 : index
      %12 = vector.load %arg7[%c0_10, %c0_11] : memref<128x128xf32, #tpu.memory_space<vmem>>, vector<128x128xf32>
      %c0_12 = arith.constant 0 : index
      %c0_13 = arith.constant 0 : index
      %13 = vector.load %arg5[%c0_12, %c0_13] : memref<1x128xf32, #tpu.memory_space<vmem>>, vector<1x128xf32>
      %14 = vector.broadcast %13 : vector<1x128xf32> to vector<128x128xf32>
      %15 = arith.addf %12, %14 : vector<128x128xf32>
      %cst_14 = arith.constant 0.000000e+00 : f32
      %16 = vector.broadcast %cst_14 : f32 to vector<128x128xf32>
      %17 = arith.maximumf %15, %16 : vector<128x128xf32>
      %c0_15 = arith.constant 0 : index
      %c0_16 = arith.constant 0 : index
      %18 = vector.load %arg6[%c0_15, %c0_16] : memref<128x128xf32, #tpu.memory_space<vmem>>, vector<128x128xf32>
      tpu.vector_store %arg6[%c0_15, %c0_16], %17 {strides = array<i32>} : memref<128x128xf32, #tpu.memory_space<vmem>>, vector<128x128xf32>,
    } else {
    }
    return
  }
  func.func @transform_0(%arg0: i32, %arg1: i32, %arg2: i32) -> (i32, i32) {
    %c0_i32 = arith.constant 0 : i32
    return %arg0, %arg2 : i32, i32
  }
  func.func @transform_1(%arg0: i32, %arg1: i32, %arg2: i32) -> (i32, i32) {
    %c0_i32 = arith.constant 0 : i32
    return %arg2, %arg1 : i32, i32
  }
  func.func @transform_2(%arg0: i32, %arg1: i32, %arg2: i32) -> (i32, i32) {
    %c0_i32 = arith.constant 0 : i32
    %c0_i32_0 = arith.constant 0 : i32
    return %c0_i32, %arg1 : i32, i32
  }
  func.func @transform_3(%arg0: i32, %arg1: i32, %arg2: i32) -> (i32, i32) {
    %c0_i32 = arith.constant 0 : i32
    return %arg0, %arg1 : i32, i32
  }
}

module attributes {stable_mosaic.version = 11 : i64} {
  func.func @_matmul_bias_relu_kernel(%arg0: i32, %arg1: i32, %arg2: i32, %arg3: memref<128x256xf32, #tpu.memory_space<vmem>>, %arg4: memref<256x128xf32, #tpu.memory_space<vmem>>, %arg5: memref<1x128xf32, #tpu.memory_space<vmem>>, %arg6: memref<128x128xf32, #tpu.memory_space<vmem>>, %arg7: memref<128x128xf32, #tpu.memory_space<vmem>>) attributes {dimension_semantics = [#tpu.dimension_semantics<parallel>, #tpu.dimension_semantics<parallel>, #tpu.dimension_semantics<arbitrary>], iteration_bounds = array<i64: 4, 1, 3>, scalar_prefetch = 0 : i64, scratch_operands = 1 : i64, tpu.core_type = #tpu.core_type<tc>, window_params = [{transform_indices = @transform_0, window_bounds = array<i64: 128, 256>}, {transform_indices = @transform_1, window_bounds = array<i64: 256, 128>}, {transform_indices = @transform_2, window_bounds = array<i64: 1, 128>}, {transform_indices = @transform_3, window_bounds = array<i64: 128, 128>}]} {
    %c0_i32 = arith.constant 0 : i32
    %0 = arith.cmpi eq, %arg2, %c0_i32 : i32
    %1 = arith.extui %0 : i1 to i32
    %c0_i32_0 = arith.constant 0 : i32
    %2 = arith.cmpi ne, %1, %c0_i32_0 : i32
    scf.if %2 {
      %cst_9 = arith.constant 0.000000e+00 : f32
      %12 = vector.broadcast %cst_9 : f32 to vector<128x128xf32>
      %c0_10 = arith.constant 0 : index
      %c0_11 = arith.constant 0 : index
      %13 = vector.load %arg7[%c0_10, %c0_11] : memref<128x128xf32, #tpu.memory_space<vmem>>, vector<128x128xf32>
      tpu.vector_store %arg7[%c0_10, %c0_11], %12 {strides = array<i32>} : memref<128x128xf32, #tpu.memory_space<vmem>>, vector<128x128xf32>,
    } else {
    }
    %c0 = arith.constant 0 : index
    %c0_1 = arith.constant 0 : index
    %3 = vector.load %arg7[%c0, %c0_1] : memref<128x128xf32, #tpu.memory_space<vmem>>, vector<128x128xf32>
    %c0_2 = arith.constant 0 : index
    %c0_3 = arith.constant 0 : index
    %4 = vector.load %arg3[%c0_2, %c0_3] : memref<128x256xf32, #tpu.memory_space<vmem>>, vector<128x256xf32>
    %c0_4 = arith.constant 0 : index
    %c0_5 = arith.constant 0 : index
    %5 = vector.load %arg4[%c0_4, %c0_5] : memref<256x128xf32, #tpu.memory_space<vmem>>, vector<256x128xf32>
    %cst = arith.constant dense<0.000000e+00> : vector<128x128xf32>
    %6 = tpu.matmul %4, %5, %cst {dimension_numbers = #tpu.dot_dimension_numbers<[1], [0], [0], [1], [0, 0, 1, 1], [], []>} : vector<128x256xf32>, vector<256x128xf32>, vector<128x128xf32> -> vector<128x128xf32>
    %7 = arith.addf %3, %6 : vector<128x128xf32>
    %c0_6 = arith.constant 0 : index
    %c0_7 = arith.constant 0 : index
    %8 = vector.load %arg7[%c0_6, %c0_7] : memref<128x128xf32, #tpu.memory_space<vmem>>, vector<128x128xf32>
    tpu.vector_store %arg7[%c0_6, %c0_7], %7 {strides = array<i32>} : memref<128x128xf32, #tpu.memory_space<vmem>>, vector<128x128xf32>,
    %c2_i32 = arith.constant 2 : i32
    %9 = arith.cmpi eq, %arg2, %c2_i32 : i32
    %10 = arith.extui %9 : i1 to i32
    %c0_i32_8 = arith.constant 0 : i32
    %11 = arith.cmpi ne, %10, %c0_i32_8 : i32
    scf.if %11 {
      %c0_9 = arith.constant 0 : index
      %c0_10 = arith.constant 0 : index
      %12 = vector.load %arg7[%c0_9, %c0_10] : memref<128x128xf32, #tpu.memory_space<vmem>>, vector<128x128xf32>
      %c0_11 = arith.constant 0 : index
      %c0_12 = arith.constant 0 : index
      %13 = vector.load %arg5[%c0_11, %c0_12] : memref<1x128xf32, #tpu.memory_space<vmem>>, vector<1x128xf32>
      %14 = vector.broadcast %13 : vector<1x128xf32> to vector<128x128xf32>
      %15 = arith.addf %12, %14 : vector<128x128xf32>
      %cst_13 = arith.constant 0.000000e+00 : f32
      %16 = vector.broadcast %cst_13 : f32 to vector<128x128xf32>
      %17 = arith.maximumf %15, %16 : vector<128x128xf32>
      %c0_14 = arith.constant 0 : index
      %c0_15 = arith.constant 0 : index
      %18 = vector.load %arg6[%c0_14, %c0_15] : memref<128x128xf32, #tpu.memory_space<vmem>>, vector<128x128xf32>
      tpu.vector_store %arg6[%c0_14, %c0_15], %17 {strides = array<i32>} : memref<128x128xf32, #tpu.memory_space<vmem>>, vector<128x128xf32>,
    } else {
    }
    return
  }
  func.func @transform_0(%arg0: i32, %arg1: i32, %arg2: i32) -> (i32, i32) {
    %c0_i32 = arith.constant 0 : i32
    return %arg0, %arg2 : i32, i32
  }
  func.func @transform_1(%arg0: i32, %arg1: i32, %arg2: i32) -> (i32, i32) {
    %c0_i32 = arith.constant 0 : i32
    return %arg2, %arg1 : i32, i32
  }
  func.func @transform_2(%arg0: i32, %arg1: i32, %arg2: i32) -> (i32, i32) {
    %c0_i32 = arith.constant 0 : i32
    %c0_i32_0 = arith.constant 0 : i32
    return %c0_i32, %arg1 : i32, i32
  }
  func.func @transform_3(%arg0: i32, %arg1: i32, %arg2: i32) -> (i32, i32) {
    %c0_i32 = arith.constant 0 : i32
    return %arg0, %arg1 : i32, i32
  }
}

module attributes {stable_mosaic.version = 11 : i64} {
  func.func @_sqdiff_partial_kernel(%arg0: i32, %arg1: memref<2x16384xf32, #tpu.memory_space<vmem>>, %arg2: memref<2x16384xf32, #tpu.memory_space<vmem>>, %arg3: memref<1x128xf32, #tpu.memory_space<vmem>>) attributes {dimension_semantics = [#tpu.dimension_semantics<parallel>], iteration_bounds = array<i64: 1>, scalar_prefetch = 0 : i64, scratch_operands = 0 : i64, tpu.core_type = #tpu.core_type<tc>, window_params = [{transform_indices = @transform_0, window_bounds = array<i64: 2, 16384>}, {transform_indices = @transform_1, window_bounds = array<i64: 2, 16384>}, {transform_indices = @transform_2, window_bounds = array<i64: 1, 128>}]} {
    %c0 = arith.constant 0 : index
    %c0_0 = arith.constant 0 : index
    %0 = vector.load %arg1[%c0, %c0_0] : memref<2x16384xf32, #tpu.memory_space<vmem>>, vector<2x16384xf32>
    %c0_1 = arith.constant 0 : index
    %c0_2 = arith.constant 0 : index
    %1 = vector.load %arg2[%c0_1, %c0_2] : memref<2x16384xf32, #tpu.memory_space<vmem>>, vector<2x16384xf32>
    %2 = arith.subf %0, %1 : vector<2x16384xf32>
    %3 = arith.mulf %2, %2 : vector<2x16384xf32>
    %4 = vector.shape_cast %3 : vector<2x16384xf32> to vector<1x2x16384xf32>
    %cst = arith.constant dense<0.000000e+00> : vector<1xf32>
    %5 = vector.multi_reduction <add>, %4, %cst [1, 2] : vector<1x2x16384xf32> to vector<1xf32>
    %6 = vector.shape_cast %5 : vector<1xf32> to vector<1x1x1xf32>
    %7 = vector.extract %6[0, 0, 0] : f32 from vector<1x1x1xf32>
    %8 = vector.broadcast %7 : f32 to vector<1x128xf32>
    %c0_3 = arith.constant 0 : index
    %c0_4 = arith.constant 0 : index
    %9 = vector.load %arg3[%c0_3, %c0_4] : memref<1x128xf32, #tpu.memory_space<vmem>>, vector<1x128xf32>
    tpu.vector_store %arg3[%c0_3, %c0_4], %8 {strides = array<i32>} : memref<1x128xf32, #tpu.memory_space<vmem>>, vector<1x128xf32>,
    return
  }
  func.func @transform_0(%arg0: i32) -> (i32, i32) {
    %c0_i32 = arith.constant 0 : i32
    %c0_i32_0 = arith.constant 0 : i32
    return %c0_i32, %arg0 : i32, i32
  }
  func.func @transform_1(%arg0: i32) -> (i32, i32) {
    %c0_i32 = arith.constant 0 : i32
    %c0_i32_0 = arith.constant 0 : i32
    return %c0_i32, %arg0 : i32, i32
  }
  func.func @transform_2(%arg0: i32) -> (i32, i32) {
    %c0_i32 = arith.constant 0 : i32
    %c0_i32_0 = arith.constant 0 : i32
    return %c0_i32, %arg0 : i32, i32
  }
}

module attributes {stable_mosaic.version = 11 : i64} {
  func.func @_matmul_bias_relu_kernel(%arg0: i32, %arg1: i32, %arg2: i32, %arg3: memref<128x256xf32, #tpu.memory_space<vmem>>, %arg4: memref<256x128xf32, #tpu.memory_space<vmem>>, %arg5: memref<1x128xf32, #tpu.memory_space<vmem>>, %arg6: memref<128x128xf32, #tpu.memory_space<vmem>>, %arg7: memref<128x128xf32, #tpu.memory_space<vmem>>) attributes {dimension_semantics = [#tpu.dimension_semantics<parallel>, #tpu.dimension_semantics<parallel>, #tpu.dimension_semantics<arbitrary>], iteration_bounds = array<i64: 1, 1, 3>, scalar_prefetch = 0 : i64, scratch_operands = 1 : i64, tpu.core_type = #tpu.core_type<tc>, window_params = [{transform_indices = @transform_0, window_bounds = array<i64: 128, 256>}, {transform_indices = @transform_1, window_bounds = array<i64: 256, 128>}, {transform_indices = @transform_2, window_bounds = array<i64: 1, 128>}, {transform_indices = @transform_3, window_bounds = array<i64: 128, 128>}]} {
    %c0_i32 = arith.constant 0 : i32
    %0 = arith.cmpi eq, %arg2, %c0_i32 : i32
    %1 = arith.extui %0 : i1 to i32
    %c0_i32_0 = arith.constant 0 : i32
    %2 = arith.cmpi ne, %1, %c0_i32_0 : i32
    scf.if %2 {
      %cst_9 = arith.constant 0.000000e+00 : f32
      %12 = vector.broadcast %cst_9 : f32 to vector<128x128xf32>
      %c0_10 = arith.constant 0 : index
      %c0_11 = arith.constant 0 : index
      %13 = vector.load %arg7[%c0_10, %c0_11] : memref<128x128xf32, #tpu.memory_space<vmem>>, vector<128x128xf32>
      tpu.vector_store %arg7[%c0_10, %c0_11], %12 {strides = array<i32>} : memref<128x128xf32, #tpu.memory_space<vmem>>, vector<128x128xf32>,
    } else {
    }
    %c0 = arith.constant 0 : index
    %c0_1 = arith.constant 0 : index
    %3 = vector.load %arg7[%c0, %c0_1] : memref<128x128xf32, #tpu.memory_space<vmem>>, vector<128x128xf32>
    %c0_2 = arith.constant 0 : index
    %c0_3 = arith.constant 0 : index
    %4 = vector.load %arg3[%c0_2, %c0_3] : memref<128x256xf32, #tpu.memory_space<vmem>>, vector<128x256xf32>
    %c0_4 = arith.constant 0 : index
    %c0_5 = arith.constant 0 : index
    %5 = vector.load %arg4[%c0_4, %c0_5] : memref<256x128xf32, #tpu.memory_space<vmem>>, vector<256x128xf32>
    %cst = arith.constant dense<0.000000e+00> : vector<128x128xf32>
    %6 = tpu.matmul %4, %5, %cst {dimension_numbers = #tpu.dot_dimension_numbers<[1], [0], [0], [1], [0, 0, 1, 1], [], []>} : vector<128x256xf32>, vector<256x128xf32>, vector<128x128xf32> -> vector<128x128xf32>
    %7 = arith.addf %3, %6 : vector<128x128xf32>
    %c0_6 = arith.constant 0 : index
    %c0_7 = arith.constant 0 : index
    %8 = vector.load %arg7[%c0_6, %c0_7] : memref<128x128xf32, #tpu.memory_space<vmem>>, vector<128x128xf32>
    tpu.vector_store %arg7[%c0_6, %c0_7], %7 {strides = array<i32>} : memref<128x128xf32, #tpu.memory_space<vmem>>, vector<128x128xf32>,
    %c2_i32 = arith.constant 2 : i32
    %9 = arith.cmpi eq, %arg2, %c2_i32 : i32
    %10 = arith.extui %9 : i1 to i32
    %c0_i32_8 = arith.constant 0 : i32
    %11 = arith.cmpi ne, %10, %c0_i32_8 : i32
    scf.if %11 {
      %c0_9 = arith.constant 0 : index
      %c0_10 = arith.constant 0 : index
      %12 = vector.load %arg7[%c0_9, %c0_10] : memref<128x128xf32, #tpu.memory_space<vmem>>, vector<128x128xf32>
      %c0_11 = arith.constant 0 : index
      %c0_12 = arith.constant 0 : index
      %13 = vector.load %arg5[%c0_11, %c0_12] : memref<1x128xf32, #tpu.memory_space<vmem>>, vector<1x128xf32>
      %14 = vector.broadcast %13 : vector<1x128xf32> to vector<128x128xf32>
      %15 = arith.addf %12, %14 : vector<128x128xf32>
      %cst_13 = arith.constant 0.000000e+00 : f32
      %16 = vector.broadcast %cst_13 : f32 to vector<128x128xf32>
      %17 = arith.maximumf %15, %16 : vector<128x128xf32>
      %c0_14 = arith.constant 0 : index
      %c0_15 = arith.constant 0 : index
      %18 = vector.load %arg6[%c0_14, %c0_15] : memref<128x128xf32, #tpu.memory_space<vmem>>, vector<128x128xf32>
      tpu.vector_store %arg6[%c0_14, %c0_15], %17 {strides = array<i32>} : memref<128x128xf32, #tpu.memory_space<vmem>>, vector<128x128xf32>,
    } else {
    }
    return
  }
  func.func @transform_0(%arg0: i32, %arg1: i32, %arg2: i32) -> (i32, i32) {
    %c0_i32 = arith.constant 0 : i32
    return %arg0, %arg2 : i32, i32
  }
  func.func @transform_1(%arg0: i32, %arg1: i32, %arg2: i32) -> (i32, i32) {
    %c0_i32 = arith.constant 0 : i32
    return %arg2, %arg1 : i32, i32
  }
  func.func @transform_2(%arg0: i32, %arg1: i32, %arg2: i32) -> (i32, i32) {
    %c0_i32 = arith.constant 0 : i32
    %c0_i32_0 = arith.constant 0 : i32
    return %c0_i32, %arg1 : i32, i32
  }
  func.func @transform_3(%arg0: i32, %arg1: i32, %arg2: i32) -> (i32, i32) {
    %c0_i32 = arith.constant 0 : i32
    return %arg0, %arg1 : i32, i32
  }
}

module attributes {stable_mosaic.version = 11 : i64} {
  func.func @_matmul_bias_relu_kernel(%arg0: i32, %arg1: i32, %arg2: i32, %arg3: memref<128x256xf32, #tpu.memory_space<vmem>>, %arg4: memref<256x128xf32, #tpu.memory_space<vmem>>, %arg5: memref<1x128xf32, #tpu.memory_space<vmem>>, %arg6: memref<128x128xf32, #tpu.memory_space<vmem>>, %arg7: memref<128x128xf32, #tpu.memory_space<vmem>>) attributes {dimension_semantics = [#tpu.dimension_semantics<parallel>, #tpu.dimension_semantics<parallel>, #tpu.dimension_semantics<arbitrary>], iteration_bounds = array<i64: 1, 1, 5>, scalar_prefetch = 0 : i64, scratch_operands = 1 : i64, tpu.core_type = #tpu.core_type<tc>, window_params = [{transform_indices = @transform_0, window_bounds = array<i64: 128, 256>}, {transform_indices = @transform_1, window_bounds = array<i64: 256, 128>}, {transform_indices = @transform_2, window_bounds = array<i64: 1, 128>}, {transform_indices = @transform_3, window_bounds = array<i64: 128, 128>}]} {
    %c0_i32 = arith.constant 0 : i32
    %0 = arith.cmpi eq, %arg2, %c0_i32 : i32
    %1 = arith.extui %0 : i1 to i32
    %c0_i32_0 = arith.constant 0 : i32
    %2 = arith.cmpi ne, %1, %c0_i32_0 : i32
    scf.if %2 {
      %cst_9 = arith.constant 0.000000e+00 : f32
      %12 = vector.broadcast %cst_9 : f32 to vector<128x128xf32>
      %c0_10 = arith.constant 0 : index
      %c0_11 = arith.constant 0 : index
      %13 = vector.load %arg7[%c0_10, %c0_11] : memref<128x128xf32, #tpu.memory_space<vmem>>, vector<128x128xf32>
      tpu.vector_store %arg7[%c0_10, %c0_11], %12 {strides = array<i32>} : memref<128x128xf32, #tpu.memory_space<vmem>>, vector<128x128xf32>,
    } else {
    }
    %c0 = arith.constant 0 : index
    %c0_1 = arith.constant 0 : index
    %3 = vector.load %arg7[%c0, %c0_1] : memref<128x128xf32, #tpu.memory_space<vmem>>, vector<128x128xf32>
    %c0_2 = arith.constant 0 : index
    %c0_3 = arith.constant 0 : index
    %4 = vector.load %arg3[%c0_2, %c0_3] : memref<128x256xf32, #tpu.memory_space<vmem>>, vector<128x256xf32>
    %c0_4 = arith.constant 0 : index
    %c0_5 = arith.constant 0 : index
    %5 = vector.load %arg4[%c0_4, %c0_5] : memref<256x128xf32, #tpu.memory_space<vmem>>, vector<256x128xf32>
    %cst = arith.constant dense<0.000000e+00> : vector<128x128xf32>
    %6 = tpu.matmul %4, %5, %cst {dimension_numbers = #tpu.dot_dimension_numbers<[1], [0], [0], [1], [0, 0, 1, 1], [], []>} : vector<128x256xf32>, vector<256x128xf32>, vector<128x128xf32> -> vector<128x128xf32>
    %7 = arith.addf %3, %6 : vector<128x128xf32>
    %c0_6 = arith.constant 0 : index
    %c0_7 = arith.constant 0 : index
    %8 = vector.load %arg7[%c0_6, %c0_7] : memref<128x128xf32, #tpu.memory_space<vmem>>, vector<128x128xf32>
    tpu.vector_store %arg7[%c0_6, %c0_7], %7 {strides = array<i32>} : memref<128x128xf32, #tpu.memory_space<vmem>>, vector<128x128xf32>,
    %c4_i32 = arith.constant 4 : i32
    %9 = arith.cmpi eq, %arg2, %c4_i32 : i32
    %10 = arith.extui %9 : i1 to i32
    %c0_i32_8 = arith.constant 0 : i32
    %11 = arith.cmpi ne, %10, %c0_i32_8 : i32
    scf.if %11 {
      %c0_9 = arith.constant 0 : index
      %c0_10 = arith.constant 0 : index
      %12 = vector.load %arg7[%c0_9, %c0_10] : memref<128x128xf32, #tpu.memory_space<vmem>>, vector<128x128xf32>
      %c0_11 = arith.constant 0 : index
      %c0_12 = arith.constant 0 : index
      %13 = vector.load %arg5[%c0_11, %c0_12] : memref<1x128xf32, #tpu.memory_space<vmem>>, vector<1x128xf32>
      %14 = vector.broadcast %13 : vector<1x128xf32> to vector<128x128xf32>
      %15 = arith.addf %12, %14 : vector<128x128xf32>
      %cst_13 = arith.constant 0.000000e+00 : f32
      %16 = vector.broadcast %cst_13 : f32 to vector<128x128xf32>
      %17 = arith.maximumf %15, %16 : vector<128x128xf32>
      %c0_14 = arith.constant 0 : index
      %c0_15 = arith.constant 0 : index
      %18 = vector.load %arg6[%c0_14, %c0_15] : memref<128x128xf32, #tpu.memory_space<vmem>>, vector<128x128xf32>
      tpu.vector_store %arg6[%c0_14, %c0_15], %17 {strides = array<i32>} : memref<128x128xf32, #tpu.memory_space<vmem>>, vector<128x128xf32>,
    } else {
    }
    return
  }
  func.func @transform_0(%arg0: i32, %arg1: i32, %arg2: i32) -> (i32, i32) {
    %c0_i32 = arith.constant 0 : i32
    return %arg0, %arg2 : i32, i32
  }
  func.func @transform_1(%arg0: i32, %arg1: i32, %arg2: i32) -> (i32, i32) {
    %c0_i32 = arith.constant 0 : i32
    return %arg2, %arg1 : i32, i32
  }
  func.func @transform_2(%arg0: i32, %arg1: i32, %arg2: i32) -> (i32, i32) {
    %c0_i32 = arith.constant 0 : i32
    %c0_i32_0 = arith.constant 0 : i32
    return %c0_i32, %arg1 : i32, i32
  }
  func.func @transform_3(%arg0: i32, %arg1: i32, %arg2: i32) -> (i32, i32) {
    %c0_i32 = arith.constant 0 : i32
    return %arg0, %arg1 : i32, i32
  }
}

module attributes {stable_mosaic.version = 11 : i64} {
  func.func @_sqdiff_partial_kernel(%arg0: i32, %arg1: memref<2x8192xf32, #tpu.memory_space<vmem>>, %arg2: memref<2x8192xf32, #tpu.memory_space<vmem>>, %arg3: memref<1x128xf32, #tpu.memory_space<vmem>>) attributes {dimension_semantics = [#tpu.dimension_semantics<parallel>], iteration_bounds = array<i64: 1>, scalar_prefetch = 0 : i64, scratch_operands = 0 : i64, tpu.core_type = #tpu.core_type<tc>, window_params = [{transform_indices = @transform_0, window_bounds = array<i64: 2, 8192>}, {transform_indices = @transform_1, window_bounds = array<i64: 2, 8192>}, {transform_indices = @transform_2, window_bounds = array<i64: 1, 128>}]} {
    %c0 = arith.constant 0 : index
    %c0_0 = arith.constant 0 : index
    %0 = vector.load %arg1[%c0, %c0_0] : memref<2x8192xf32, #tpu.memory_space<vmem>>, vector<2x8192xf32>
    %c0_1 = arith.constant 0 : index
    %c0_2 = arith.constant 0 : index
    %1 = vector.load %arg2[%c0_1, %c0_2] : memref<2x8192xf32, #tpu.memory_space<vmem>>, vector<2x8192xf32>
    %2 = arith.subf %0, %1 : vector<2x8192xf32>
    %3 = arith.mulf %2, %2 : vector<2x8192xf32>
    %4 = vector.shape_cast %3 : vector<2x8192xf32> to vector<1x2x8192xf32>
    %cst = arith.constant dense<0.000000e+00> : vector<1xf32>
    %5 = vector.multi_reduction <add>, %4, %cst [1, 2] : vector<1x2x8192xf32> to vector<1xf32>
    %6 = vector.shape_cast %5 : vector<1xf32> to vector<1x1x1xf32>
    %7 = vector.extract %6[0, 0, 0] : f32 from vector<1x1x1xf32>
    %8 = vector.broadcast %7 : f32 to vector<1x128xf32>
    %c0_3 = arith.constant 0 : index
    %c0_4 = arith.constant 0 : index
    %9 = vector.load %arg3[%c0_3, %c0_4] : memref<1x128xf32, #tpu.memory_space<vmem>>, vector<1x128xf32>
    tpu.vector_store %arg3[%c0_3, %c0_4], %8 {strides = array<i32>} : memref<1x128xf32, #tpu.memory_space<vmem>>, vector<1x128xf32>,
    return
  }
  func.func @transform_0(%arg0: i32) -> (i32, i32) {
    %c0_i32 = arith.constant 0 : i32
    %c0_i32_0 = arith.constant 0 : i32
    return %c0_i32, %arg0 : i32, i32
  }
  func.func @transform_1(%arg0: i32) -> (i32, i32) {
    %c0_i32 = arith.constant 0 : i32
    %c0_i32_0 = arith.constant 0 : i32
    return %c0_i32, %arg0 : i32, i32
  }
  func.func @transform_2(%arg0: i32) -> (i32, i32) {
    %c0_i32 = arith.constant 0 : i32
    %c0_i32_0 = arith.constant 0 : i32
    return %c0_i32, %arg0 : i32, i32
  }
}

module attributes {stable_mosaic.version = 11 : i64} {
  func.func @_matmul_bias_relu_kernel(%arg0: i32, %arg1: i32, %arg2: i32, %arg3: memref<128x256xf32, #tpu.memory_space<vmem>>, %arg4: memref<256x128xf32, #tpu.memory_space<vmem>>, %arg5: memref<1x128xf32, #tpu.memory_space<vmem>>, %arg6: memref<128x128xf32, #tpu.memory_space<vmem>>, %arg7: memref<128x128xf32, #tpu.memory_space<vmem>>) attributes {dimension_semantics = [#tpu.dimension_semantics<parallel>, #tpu.dimension_semantics<parallel>, #tpu.dimension_semantics<arbitrary>], iteration_bounds = array<i64: 1, 2, 5>, scalar_prefetch = 0 : i64, scratch_operands = 1 : i64, tpu.core_type = #tpu.core_type<tc>, window_params = [{transform_indices = @transform_0, window_bounds = array<i64: 128, 256>}, {transform_indices = @transform_1, window_bounds = array<i64: 256, 128>}, {transform_indices = @transform_2, window_bounds = array<i64: 1, 128>}, {transform_indices = @transform_3, window_bounds = array<i64: 128, 128>}]} {
    %c0_i32 = arith.constant 0 : i32
    %0 = arith.cmpi eq, %arg2, %c0_i32 : i32
    %1 = arith.extui %0 : i1 to i32
    %c0_i32_0 = arith.constant 0 : i32
    %2 = arith.cmpi ne, %1, %c0_i32_0 : i32
    scf.if %2 {
      %cst_9 = arith.constant 0.000000e+00 : f32
      %12 = vector.broadcast %cst_9 : f32 to vector<128x128xf32>
      %c0_10 = arith.constant 0 : index
      %c0_11 = arith.constant 0 : index
      %13 = vector.load %arg7[%c0_10, %c0_11] : memref<128x128xf32, #tpu.memory_space<vmem>>, vector<128x128xf32>
      tpu.vector_store %arg7[%c0_10, %c0_11], %12 {strides = array<i32>} : memref<128x128xf32, #tpu.memory_space<vmem>>, vector<128x128xf32>,
    } else {
    }
    %c0 = arith.constant 0 : index
    %c0_1 = arith.constant 0 : index
    %3 = vector.load %arg7[%c0, %c0_1] : memref<128x128xf32, #tpu.memory_space<vmem>>, vector<128x128xf32>
    %c0_2 = arith.constant 0 : index
    %c0_3 = arith.constant 0 : index
    %4 = vector.load %arg3[%c0_2, %c0_3] : memref<128x256xf32, #tpu.memory_space<vmem>>, vector<128x256xf32>
    %c0_4 = arith.constant 0 : index
    %c0_5 = arith.constant 0 : index
    %5 = vector.load %arg4[%c0_4, %c0_5] : memref<256x128xf32, #tpu.memory_space<vmem>>, vector<256x128xf32>
    %cst = arith.constant dense<0.000000e+00> : vector<128x128xf32>
    %6 = tpu.matmul %4, %5, %cst {dimension_numbers = #tpu.dot_dimension_numbers<[1], [0], [0], [1], [0, 0, 1, 1], [], []>} : vector<128x256xf32>, vector<256x128xf32>, vector<128x128xf32> -> vector<128x128xf32>
    %7 = arith.addf %3, %6 : vector<128x128xf32>
    %c0_6 = arith.constant 0 : index
    %c0_7 = arith.constant 0 : index
    %8 = vector.load %arg7[%c0_6, %c0_7] : memref<128x128xf32, #tpu.memory_space<vmem>>, vector<128x128xf32>
    tpu.vector_store %arg7[%c0_6, %c0_7], %7 {strides = array<i32>} : memref<128x128xf32, #tpu.memory_space<vmem>>, vector<128x128xf32>,
    %c4_i32 = arith.constant 4 : i32
    %9 = arith.cmpi eq, %arg2, %c4_i32 : i32
    %10 = arith.extui %9 : i1 to i32
    %c0_i32_8 = arith.constant 0 : i32
    %11 = arith.cmpi ne, %10, %c0_i32_8 : i32
    scf.if %11 {
      %c0_9 = arith.constant 0 : index
      %c0_10 = arith.constant 0 : index
      %12 = vector.load %arg7[%c0_9, %c0_10] : memref<128x128xf32, #tpu.memory_space<vmem>>, vector<128x128xf32>
      %c0_11 = arith.constant 0 : index
      %c0_12 = arith.constant 0 : index
      %13 = vector.load %arg5[%c0_11, %c0_12] : memref<1x128xf32, #tpu.memory_space<vmem>>, vector<1x128xf32>
      %14 = vector.broadcast %13 : vector<1x128xf32> to vector<128x128xf32>
      %15 = arith.addf %12, %14 : vector<128x128xf32>
      %cst_13 = arith.constant 0.000000e+00 : f32
      %16 = vector.broadcast %cst_13 : f32 to vector<128x128xf32>
      %17 = arith.maximumf %15, %16 : vector<128x128xf32>
      %c0_14 = arith.constant 0 : index
      %c0_15 = arith.constant 0 : index
      %18 = vector.load %arg6[%c0_14, %c0_15] : memref<128x128xf32, #tpu.memory_space<vmem>>, vector<128x128xf32>
      tpu.vector_store %arg6[%c0_14, %c0_15], %17 {strides = array<i32>} : memref<128x128xf32, #tpu.memory_space<vmem>>, vector<128x128xf32>,
    } else {
    }
    return
  }
  func.func @transform_0(%arg0: i32, %arg1: i32, %arg2: i32) -> (i32, i32) {
    %c0_i32 = arith.constant 0 : i32
    return %arg0, %arg2 : i32, i32
  }
  func.func @transform_1(%arg0: i32, %arg1: i32, %arg2: i32) -> (i32, i32) {
    %c0_i32 = arith.constant 0 : i32
    return %arg2, %arg1 : i32, i32
  }
  func.func @transform_2(%arg0: i32, %arg1: i32, %arg2: i32) -> (i32, i32) {
    %c0_i32 = arith.constant 0 : i32
    %c0_i32_0 = arith.constant 0 : i32
    return %c0_i32, %arg1 : i32, i32
  }
  func.func @transform_3(%arg0: i32, %arg1: i32, %arg2: i32) -> (i32, i32) {
    %c0_i32 = arith.constant 0 : i32
    return %arg0, %arg1 : i32, i32
  }
}

module attributes {stable_mosaic.version = 11 : i64} {
  func.func @_matmul_bias_relu_kernel(%arg0: i32, %arg1: i32, %arg2: i32, %arg3: memref<128x256xf32, #tpu.memory_space<vmem>>, %arg4: memref<256x128xf32, #tpu.memory_space<vmem>>, %arg5: memref<1x128xf32, #tpu.memory_space<vmem>>, %arg6: memref<128x128xf32, #tpu.memory_space<vmem>>, %arg7: memref<128x128xf32, #tpu.memory_space<vmem>>) attributes {dimension_semantics = [#tpu.dimension_semantics<parallel>, #tpu.dimension_semantics<parallel>, #tpu.dimension_semantics<arbitrary>], iteration_bounds = array<i64: 1, 2, 9>, scalar_prefetch = 0 : i64, scratch_operands = 1 : i64, tpu.core_type = #tpu.core_type<tc>, window_params = [{transform_indices = @transform_0, window_bounds = array<i64: 128, 256>}, {transform_indices = @transform_1, window_bounds = array<i64: 256, 128>}, {transform_indices = @transform_2, window_bounds = array<i64: 1, 128>}, {transform_indices = @transform_3, window_bounds = array<i64: 128, 128>}]} {
    %c0_i32 = arith.constant 0 : i32
    %0 = arith.cmpi eq, %arg2, %c0_i32 : i32
    %1 = arith.extui %0 : i1 to i32
    %c0_i32_0 = arith.constant 0 : i32
    %2 = arith.cmpi ne, %1, %c0_i32_0 : i32
    scf.if %2 {
      %cst_9 = arith.constant 0.000000e+00 : f32
      %12 = vector.broadcast %cst_9 : f32 to vector<128x128xf32>
      %c0_10 = arith.constant 0 : index
      %c0_11 = arith.constant 0 : index
      %13 = vector.load %arg7[%c0_10, %c0_11] : memref<128x128xf32, #tpu.memory_space<vmem>>, vector<128x128xf32>
      tpu.vector_store %arg7[%c0_10, %c0_11], %12 {strides = array<i32>} : memref<128x128xf32, #tpu.memory_space<vmem>>, vector<128x128xf32>,
    } else {
    }
    %c0 = arith.constant 0 : index
    %c0_1 = arith.constant 0 : index
    %3 = vector.load %arg7[%c0, %c0_1] : memref<128x128xf32, #tpu.memory_space<vmem>>, vector<128x128xf32>
    %c0_2 = arith.constant 0 : index
    %c0_3 = arith.constant 0 : index
    %4 = vector.load %arg3[%c0_2, %c0_3] : memref<128x256xf32, #tpu.memory_space<vmem>>, vector<128x256xf32>
    %c0_4 = arith.constant 0 : index
    %c0_5 = arith.constant 0 : index
    %5 = vector.load %arg4[%c0_4, %c0_5] : memref<256x128xf32, #tpu.memory_space<vmem>>, vector<256x128xf32>
    %cst = arith.constant dense<0.000000e+00> : vector<128x128xf32>
    %6 = tpu.matmul %4, %5, %cst {dimension_numbers = #tpu.dot_dimension_numbers<[1], [0], [0], [1], [0, 0, 1, 1], [], []>} : vector<128x256xf32>, vector<256x128xf32>, vector<128x128xf32> -> vector<128x128xf32>
    %7 = arith.addf %3, %6 : vector<128x128xf32>
    %c0_6 = arith.constant 0 : index
    %c0_7 = arith.constant 0 : index
    %8 = vector.load %arg7[%c0_6, %c0_7] : memref<128x128xf32, #tpu.memory_space<vmem>>, vector<128x128xf32>
    tpu.vector_store %arg7[%c0_6, %c0_7], %7 {strides = array<i32>} : memref<128x128xf32, #tpu.memory_space<vmem>>, vector<128x128xf32>,
    %c8_i32 = arith.constant 8 : i32
    %9 = arith.cmpi eq, %arg2, %c8_i32 : i32
    %10 = arith.extui %9 : i1 to i32
    %c0_i32_8 = arith.constant 0 : i32
    %11 = arith.cmpi ne, %10, %c0_i32_8 : i32
    scf.if %11 {
      %c0_9 = arith.constant 0 : index
      %c0_10 = arith.constant 0 : index
      %12 = vector.load %arg7[%c0_9, %c0_10] : memref<128x128xf32, #tpu.memory_space<vmem>>, vector<128x128xf32>
      %c0_11 = arith.constant 0 : index
      %c0_12 = arith.constant 0 : index
      %13 = vector.load %arg5[%c0_11, %c0_12] : memref<1x128xf32, #tpu.memory_space<vmem>>, vector<1x128xf32>
      %14 = vector.broadcast %13 : vector<1x128xf32> to vector<128x128xf32>
      %15 = arith.addf %12, %14 : vector<128x128xf32>
      %cst_13 = arith.constant 0.000000e+00 : f32
      %16 = vector.broadcast %cst_13 : f32 to vector<128x128xf32>
      %17 = arith.maximumf %15, %16 : vector<128x128xf32>
      %c0_14 = arith.constant 0 : index
      %c0_15 = arith.constant 0 : index
      %18 = vector.load %arg6[%c0_14, %c0_15] : memref<128x128xf32, #tpu.memory_space<vmem>>, vector<128x128xf32>
      tpu.vector_store %arg6[%c0_14, %c0_15], %17 {strides = array<i32>} : memref<128x128xf32, #tpu.memory_space<vmem>>, vector<128x128xf32>,
    } else {
    }
    return
  }
  func.func @transform_0(%arg0: i32, %arg1: i32, %arg2: i32) -> (i32, i32) {
    %c0_i32 = arith.constant 0 : i32
    return %arg0, %arg2 : i32, i32
  }
  func.func @transform_1(%arg0: i32, %arg1: i32, %arg2: i32) -> (i32, i32) {
    %c0_i32 = arith.constant 0 : i32
    return %arg2, %arg1 : i32, i32
  }
  func.func @transform_2(%arg0: i32, %arg1: i32, %arg2: i32) -> (i32, i32) {
    %c0_i32 = arith.constant 0 : i32
    %c0_i32_0 = arith.constant 0 : i32
    return %c0_i32, %arg1 : i32, i32
  }
  func.func @transform_3(%arg0: i32, %arg1: i32, %arg2: i32) -> (i32, i32) {
    %c0_i32 = arith.constant 0 : i32
    return %arg0, %arg1 : i32, i32
  }
}

module attributes {stable_mosaic.version = 11 : i64} {
  func.func @_sqdiff_partial_kernel(%arg0: i32, %arg1: memref<2x4096xf32, #tpu.memory_space<vmem>>, %arg2: memref<2x4096xf32, #tpu.memory_space<vmem>>, %arg3: memref<1x128xf32, #tpu.memory_space<vmem>>) attributes {dimension_semantics = [#tpu.dimension_semantics<parallel>], iteration_bounds = array<i64: 1>, scalar_prefetch = 0 : i64, scratch_operands = 0 : i64, tpu.core_type = #tpu.core_type<tc>, window_params = [{transform_indices = @transform_0, window_bounds = array<i64: 2, 4096>}, {transform_indices = @transform_1, window_bounds = array<i64: 2, 4096>}, {transform_indices = @transform_2, window_bounds = array<i64: 1, 128>}]} {
    %c0 = arith.constant 0 : index
    %c0_0 = arith.constant 0 : index
    %0 = vector.load %arg1[%c0, %c0_0] : memref<2x4096xf32, #tpu.memory_space<vmem>>, vector<2x4096xf32>
    %c0_1 = arith.constant 0 : index
    %c0_2 = arith.constant 0 : index
    %1 = vector.load %arg2[%c0_1, %c0_2] : memref<2x4096xf32, #tpu.memory_space<vmem>>, vector<2x4096xf32>
    %2 = arith.subf %0, %1 : vector<2x4096xf32>
    %3 = arith.mulf %2, %2 : vector<2x4096xf32>
    %4 = vector.shape_cast %3 : vector<2x4096xf32> to vector<1x2x4096xf32>
    %cst = arith.constant dense<0.000000e+00> : vector<1xf32>
    %5 = vector.multi_reduction <add>, %4, %cst [1, 2] : vector<1x2x4096xf32> to vector<1xf32>
    %6 = vector.shape_cast %5 : vector<1xf32> to vector<1x1x1xf32>
    %7 = vector.extract %6[0, 0, 0] : f32 from vector<1x1x1xf32>
    %8 = vector.broadcast %7 : f32 to vector<1x128xf32>
    %c0_3 = arith.constant 0 : index
    %c0_4 = arith.constant 0 : index
    %9 = vector.load %arg3[%c0_3, %c0_4] : memref<1x128xf32, #tpu.memory_space<vmem>>, vector<1x128xf32>
    tpu.vector_store %arg3[%c0_3, %c0_4], %8 {strides = array<i32>} : memref<1x128xf32, #tpu.memory_space<vmem>>, vector<1x128xf32>,
    return
  }
  func.func @transform_0(%arg0: i32) -> (i32, i32) {
    %c0_i32 = arith.constant 0 : i32
    %c0_i32_0 = arith.constant 0 : i32
    return %c0_i32, %arg0 : i32, i32
  }
  func.func @transform_1(%arg0: i32) -> (i32, i32) {
    %c0_i32 = arith.constant 0 : i32
    %c0_i32_0 = arith.constant 0 : i32
    return %c0_i32, %arg0 : i32, i32
  }
  func.func @transform_2(%arg0: i32) -> (i32, i32) {
    %c0_i32 = arith.constant 0 : i32
    %c0_i32_0 = arith.constant 0 : i32
    return %c0_i32, %arg0 : i32, i32
  }
}

</mosaic_0001>

<bundles_post_ra>
// kernel: loss_network_forward.17
= control target key start
LH: loop header
LB: loop body
LE: loop exit
PB: predicated region body
PF: predicated region fallthrough
CT: control target
= control target key end

     0   :  { %s944_s12 = smov 0   ;;  %s946_s13 = smov 0   ;;  %s1150_s0 = inlined_call_operand.vmem [shape: f32[512,256], index: 0, kind: input, shape index: {}]   ;;  %s1151_s1 = inlined_call_operand.vmem [shape: f32[256,128], index: 1, kind: input, shape index: {}]   ;;  %s1152_s2 = inlined_call_operand.vmem [shape: f32[1,128], index: 2, kind: input, shape index: {}]   ;;  %s1153_s3 = inlined_call_operand.vmem [shape: f32[512,128], index: 3, kind: output, shape index: {}]  }
   0x1   :  { %s948_s14 = smov 0  }
   0x2 LB: > { %s32_s15 = sadd.s32 1, %s918_s13  ;;  %p738_p0 = scmp.ge.s32.totalorder %s922_s14, 1  ;;  %s922_s14 = sphi %s948_s14, %s13_s14   ;;  %s918_s13 = sphi %s946_s13, %s1155_s13   ;;  %s914_s12 = sphi %s944_s12, %s1154_s12  }
   0x3   : > { %p34_p1 = scmp.ge.s32.totalorder %s32_s15, 4  ;;  %p191_p2 = scmp.lt.s32.totalorder %s922_s14, 5 }
   0x5   : > { %s1157_s15 = smov (%p34_p1, %s32_s15), 0  ;;  %p192_p3 = pnand %p738_p0, %p191_p2 }
   0x6   : > { %v351_v0 = vld [vmem:[%s1151_s1 + $0x80] sm:$0xff] (!%p192_p3)  ;;  %v352_v1 = vld [vmem:[%s1151_s1 + $0x88] sm:$0xff] (!%p192_p3)  ;;  %s739_s22 = sshll.u32 (!%p192_p3), %s914_s12, 4  ;;  %v353_v5 = vld [vmem:[%s1151_s1 + $0x90] sm:$0xff] (!%p192_p3) }
   0x7   : > { %195 = sbr.rel (%p192_p3) target bundleno = 290 (0x122), region = 32  ;;  %v335_v2 = vld [vmem:[%s1151_s1] sm:$0xff] (!%p192_p3)  ;;  %v828_v3 = vpack.c.bf16 (!%p192_p3), %v352_v1, %v351_v0  ;;  %v336_v4 = vld [vmem:[%s1151_s1 + $0x8] sm:$0xff] (!%p192_p3)  ;;  %v354_v6 = vld [vmem:[%s1151_s1 + $0x98] sm:$0xff] (!%p192_p3)  ;;  %p236_p4 = scmp.lt.s32.totalorder (!%p192_p3), %s739_s22, 63 }
   0x8   : > { %v830_v7 = vpack.c.bf16 (!%p192_p3), %v336_v4, %v335_v2  ;;  %v832_v8 = vpack.c.bf16 (!%p192_p3), %v354_v6, %v353_v5  ;;  %v337_v9 = vld [vmem:[%s1151_s1 + $0x10] sm:$0xff] (!%p192_p3)  ;;  %v338_v10 = vld [vmem:[%s1151_s1 + $0x18] sm:$0xff] (!%p192_p3)  ;;  %v355_v11 = vld [vmem:[%s1151_s1 + $0xa0] sm:$0xff] (!%p192_p3) }
   0x9   : > { %829 = vmatprep.subr.bf16.mxu0 (!%p192_p3), %v828_v3  ;;  %860 = vmatprep.subr.bf16.mxu1 (!%p192_p3), %v828_v3  ;;  %v356_v12 = vld [vmem:[%s1151_s1 + $0xa8] sm:$0xff] (!%p192_p3)  ;;  %v834_v13 = vpack.c.bf16 (!%p192_p3), %v338_v10, %v337_v9  ;;  %v339_v15 = vld [vmem:[%s1151_s1 + $0x20] sm:$0xff] (!%p192_p3)  ;;  %v357_v17 = vld [vmem:[%s1151_s1 + $0xb0] sm:$0xff] (!%p192_p3) }
   0xa   : > { %831 = vmatpush3.bf16.msra.mxu0 (!%p192_p3), %v830_v7  ;;  %868 = vmatpush3.bf16.msra.mxu1 (!%p192_p3), %v830_v7  ;;  %v836_v14 = vpack.c.bf16 (!%p192_p3), %v356_v12, %v355_v11  ;;  %v340_v16 = vld [vmem:[%s1151_s1 + $0x28] sm:$0xff] (!%p192_p3)  ;;  %v358_v18 = vld [vmem:[%s1151_s1 + $0xb8] sm:$0xff] (!%p192_p3)  ;;  %v341_v21 = vld [vmem:[%s1151_s1 + $0x30] sm:$0xff] (!%p192_p3) }
   0xb   : > { %833 = vmatprep.subr.bf16.mxu0 (!%p192_p3), %v832_v8  ;;  %861 = vmatprep.subr.bf16.mxu1 (!%p192_p3), %v832_v8  ;;  %v838_v19 = vpack.c.bf16 (!%p192_p3), %v340_v16, %v339_v15  ;;  %v840_v20 = vpack.c.bf16 (!%p192_p3), %v358_v18, %v357_v17  ;;  %v342_v22 = vld [vmem:[%s1151_s1 + $0x38] sm:$0xff] (!%p192_p3)  ;;  %v359_v23 = vld [vmem:[%s1151_s1 + $0xc0] sm:$0xff] (!%p192_p3)  ;;  %v360_v24 = vld [vmem:[%s1151_s1 + $0xc8] sm:$0xff] (!%p192_p3) }
   0xc   : > { %v842_v27 = vpack.c.bf16 (!%p192_p3), %v342_v22, %v341_v21  ;;  %v844_v28 = vpack.c.bf16 (!%p192_p3), %v360_v24, %v359_v23  ;;  %v343_v29 = vld [vmem:[%s1151_s1 + $0x40] sm:$0xff] (!%p192_p3)  ;;  %v344_v30 = vld [vmem:[%s1151_s1 + $0x48] sm:$0xff] (!%p192_p3)  ;;  %v361_v31 = vld [vmem:[%s1151_s1 + $0xd0] sm:$0xff] (!%p192_p3) }
   0xd   : > { %v362_v32 = vld [vmem:[%s1151_s1 + $0xd8] sm:$0xff] (!%p192_p3)  ;;  %v846_v33 = vpack.c.bf16 (!%p192_p3), %v344_v30, %v343_v29  ;;  %v345_v35 = vld [vmem:[%s1151_s1 + $0x50] sm:$0xff] (!%p192_p3)  ;;  %v363_v37 = vld [vmem:[%s1151_s1 + $0xe0] sm:$0xff] (!%p192_p3) }
   0xe   : > { %s1159_s22 = smov (!%p236_p4, %s739_s22), 63  ;;  %835 = vmatpush3.bf16.msra.mxu0 %v834_v13  ;;  %869 = vmatpush3.bf16.msra.mxu1 %v834_v13  ;;  %v848_v34 = vpack.c.bf16 %v362_v32, %v361_v31  ;;  %v346_v36 = vld [vmem:[%s1151_s1 + $0x58] sm:$0xff]  ;;  %v364_v38 = vld [vmem:[%s1151_s1 + $0xe8] sm:$0xff]  ;;  %v347_v41 = vld [vmem:[%s1151_s1 + $0x60] sm:$0xff] }
   0xf   : > { %s747_s17 = sshll.u32 %s1159_s22, 4  ;;  %837 = vmatprep.subr.bf16.mxu0 %v836_v14  ;;  %862 = vmatprep.subr.bf16.mxu1 %v836_v14  ;;  %v850_v39 = vpack.c.bf16 %v346_v36, %v345_v35  ;;  %v852_v40 = vpack.c.bf16 %v364_v38, %v363_v37  ;;  %v348_v42 = vld [vmem:[%s1151_s1 + $0x68] sm:$0xff]  ;;  %v365_v43 = vld [vmem:[%s1151_s1 + $0xf0] sm:$0xff]  ;;  %v366_v44 = vld [vmem:[%s1151_s1 + $0xf8] sm:$0xff]  ;;  %s743_s18 = sshll.u32 %s1159_s22, 3 }
  0x10   : > { %s1010_s25 = scalar_lea.vmem %s1150_s0, %s747_s17  ;;  %v854_v45 = vpack.c.bf16 %v348_v42, %v347_v41  ;;  %v856_v46 = vpack.c.bf16 %v366_v44, %v365_v43  ;;  %v349_v47 = vld [vmem:[%s1151_s1 + $0x70] sm:$0xff]  ;;  %v350_v48 = vld [vmem:[%s1151_s1 + $0x78] sm:$0xff]  ;;  %s1109_s20 = scalar_lea.vmem %s1153_s3, %s743_s18 }
  0x11   : > { %v304_v25 = vld [vmem:[%s1010_s25 + $0x8] sm:$0xff]  ;;  %v858_v49 = vpack.c.bf16 %v350_v48, %v349_v47  ;;  %v303_v50 = vld [vmem:[%s1010_s25] sm:$0xff]  ;;  %v306_v52 = vld [vmem:[%s1010_s25 + $0x18] sm:$0xff] }
  0x12   : > { %431 = vmatprep.mubr.f32.mxu0 %v304_v25  ;;  %v320_v26 = vld [vmem:[%s1010_s25 + $0x88] sm:$0xff]  ;;  %839 = vmatpush3.bf16.msra.mxu0 %v838_v19  ;;  %v319_v51 = vld [vmem:[%s1010_s25 + $0x80] sm:$0xff]  ;;  %v322_v53 = vld [vmem:[%s1010_s25 + $0x98] sm:$0xff] }
  0x13   : > { %870 = vmatpush3.bf16.msra.mxu1 %v838_v19  ;;  %841 = vmatprep.subr.bf16.mxu0 %v840_v20  ;;  %v305_v54 = vld [vmem:[%s1010_s25 + $0x10] sm:$0xff]  ;;  %v308_v56 = vld [vmem:[%s1010_s25 + $0x28] sm:$0xff]  ;;  %v307_v58 = vld [vmem:[%s1010_s25 + $0x20] sm:$0xff] }
  0x14   : > { %863 = vmatprep.subr.bf16.mxu1 %v840_v20  ;;  %471 = vmatprep.mubr.f32.mxu1 %v320_v26  ;;  %v321_v55 = vld [vmem:[%s1010_s25 + $0x90] sm:$0xff]  ;;  %v324_v57 = vld [vmem:[%s1010_s25 + $0xa8] sm:$0xff]  ;;  %v323_v59 = vld [vmem:[%s1010_s25 + $0xa0] sm:$0xff] }
  0x15   : > { %v310_v60 = vld [vmem:[%s1010_s25 + $0x38] sm:$0xff]  ;;  %v309_v62 = vld [vmem:[%s1010_s25 + $0x30] sm:$0xff]  ;;  %v312_v0 = vld [vmem:[%s1010_s25 + $0x48] sm:$0xff] }
  0x16   : > { %843 = vmatpush3.bf16.msra.mxu0 %v842_v27  ;;  %v326_v61 = vld [vmem:[%s1010_s25 + $0xb8] sm:$0xff]  ;;  %v325_v63 = vld [vmem:[%s1010_s25 + $0xb0] sm:$0xff]  ;;  %v328_v1 = vld [vmem:[%s1010_s25 + $0xc8] sm:$0xff] }
  0x17   : > { %871 = vmatpush3.bf16.msra.mxu1 %v842_v27  ;;  %845 = vmatprep.subr.bf16.mxu0 %v844_v28  ;;  %v311_v2 = vld [vmem:[%s1010_s25 + $0x40] sm:$0xff]  ;;  %v314_v4 = vld [vmem:[%s1010_s25 + $0x58] sm:$0xff]  ;;  %v313_v6 = vld [vmem:[%s1010_s25 + $0x50] sm:$0xff] }
  0x18   : > { %864 = vmatprep.subr.bf16.mxu1 %v844_v28  ;;  %v327_v3 = vld [vmem:[%s1010_s25 + $0xc0] sm:$0xff]  ;;  %v330_v5 = vld [vmem:[%s1010_s25 + $0xd8] sm:$0xff]  ;;  %v329_v7 = vld [vmem:[%s1010_s25 + $0xd0] sm:$0xff] }
  0x19   : > { %v316_v8 = vld [vmem:[%s1010_s25 + $0x68] sm:$0xff]  ;;  %v315_v10 = vld [vmem:[%s1010_s25 + $0x60] sm:$0xff]  ;;  %v318_v12 = vld [vmem:[%s1010_s25 + $0x78] sm:$0xff] }
  0x1a   : > { %847 = vmatpush3.bf16.msra.mxu0 %v846_v33  ;;  %v332_v9 = vld [vmem:[%s1010_s25 + $0xe8] sm:$0xff]  ;;  %v331_v11 = vld [vmem:[%s1010_s25 + $0xe0] sm:$0xff]  ;;  %v334_v13 = vld [vmem:[%s1010_s25 + $0xf8] sm:$0xff] }
  0x1b   : > { %872 = vmatpush3.bf16.msra.mxu1 %v846_v33  ;;  %849 = vmatprep.subr.bf16.mxu0 %v848_v34  ;;  %v317_v14 = vld [vmem:[%s1010_s25 + $0x70] sm:$0xff]  ;;  %v1101_v19 = vld [vmem:[%s1152_s2] ss:$0 sm:$0xff] }
  0x1c   : > { %865 = vmatprep.subr.bf16.mxu1 %v848_v34  ;;  %v333_v15 = vld [vmem:[%s1010_s25 + $0xf0] sm:$0xff] }
  0x1e   : > { %851 = vmatpush3.bf16.msra.mxu0 %v850_v39 }
  0x1f   : > { %873 = vmatpush3.bf16.msra.mxu1 %v850_v39  ;;  %853 = vmatprep.subr.bf16.mxu0 %v852_v40 }
  0x20   : > { %866 = vmatprep.subr.bf16.mxu1 %v852_v40 }
  0x22   : > { %855 = vmatpush3.bf16.msra.mxu0 %v854_v45 }
  0x23   : > { %874 = vmatpush3.bf16.msra.mxu1 %v854_v45  ;;  %857 = vmatprep.subr.bf16.mxu0 %v856_v46 }
  0x24   : > { %867 = vmatprep.subr.bf16.mxu1 %v856_v46 }
  0x26   : > { %859 = vmatpush3.bf16.msra.mxu0 %v858_v49 }
  0x27   : > { %875 = vmatpush3.bf16.msra.mxu1 %v858_v49 }
  0x29   : > { %432 = vmatmul.mubr.f32.vlgmr.msra.gmra.mrb[0].mxu0 %v303_v50 }
  0x2a   : > { %472 = vmatmul.mubr.f32.vlgmr.msra.gmra.mrb[0].mxu1 %v319_v51  ;;  %436 = vmatprep.mubr.f32.mxu0 %v306_v52 }
  0x2b   : > { %476 = vmatprep.mubr.f32.mxu1 %v322_v53 }
  0x2d   : > { %437 = vmatmul.mubr.f32.gmra.mrb[2].mxu0 %v305_v54 }
  0x2e   : > { %477 = vmatmul.mubr.f32.gmra.mrb[2].mxu1 %v321_v55  ;;  %441 = vmatprep.mubr.f32.mxu0 %v308_v56 }
  0x2f   : > { %481 = vmatprep.mubr.f32.mxu1 %v324_v57 }
  0x31   : > { %442 = vmatmul.mubr.f32.gmra.mrb[4].mxu0 %v307_v58 }
  0x32   : > { %482 = vmatmul.mubr.f32.gmra.mrb[4].mxu1 %v323_v59  ;;  %446 = vmatprep.mubr.f32.mxu0 %v310_v60 }
  0x33   : > { %486 = vmatprep.mubr.f32.mxu1 %v326_v61 }
  0x35   : > { %447 = vmatmul.mubr.f32.gmra.mrb[6].mxu0 %v309_v62 }
  0x36   : > { %487 = vmatmul.mubr.f32.gmra.mrb[6].mxu1 %v325_v63  ;;  %451 = vmatprep.mubr.f32.mxu0 %v312_v0 }
  0x37   : > { %491 = vmatprep.mubr.f32.mxu1 %v328_v1 }
  0x39   : > { %452 = vmatmul.mubr.f32.gmra.mrb[8].mxu0 %v311_v2 }
  0x3a   : > { %492 = vmatmul.mubr.f32.gmra.mrb[8].mxu1 %v327_v3  ;;  %456 = vmatprep.mubr.f32.mxu0 %v314_v4 }
  0x3b   : > { %496 = vmatprep.mubr.f32.mxu1 %v330_v5 }
  0x3d   : > { %457 = vmatmul.mubr.f32.gmra.mrb[10].mxu0 %v313_v6 }
  0x3e   : > { %497 = vmatmul.mubr.f32.gmra.mrb[10].mxu1 %v329_v7  ;;  %461 = vmatprep.mubr.f32.mxu0 %v316_v8 }
  0x3f   : > { %501 = vmatprep.mubr.f32.mxu1 %v332_v9 }
  0x41   : > { %462 = vmatmul.mubr.f32.gmra.mrb[12].mxu0 %v315_v10 }
  0x42   : > { %502 = vmatmul.mubr.f32.gmra.mrb[12].mxu1 %v331_v11  ;;  %466 = vmatprep.mubr.f32.mxu0 %v318_v12 }
  0x43   : > { %506 = vmatprep.mubr.f32.mxu1 %v334_v13 }
  0x45   : > { %467 = vmatmul.mubr.f32.gmra.mrb[14].mxu0 %v317_v14 }
  0x46   : > { %507 = vmatmul.mubr.f32.gmra.mrb[14].mxu1 %v333_v15 }
  0xfc   : > { %v780_v16 = vpop.f32.mrb[0].mxu0 }
  0xfd   : > { %v804_v17 = vpop.f32.mrb[0].mxu1  ;;  %v781_v18 = vpop.f32.mrb[1].mxu0 }
  0xfe   : > { %v805_v20 = vpop.f32.mrb[1].mxu1  ;;  %v782_v21 = vadd.f32 %v781_v18, %v780_v16 }
  0xff   : > { %v806_v22 = vadd.f32 %v805_v20, %v804_v17 }
 0x100   : > { %v570_v23 = vadd.f32 %v782_v21, %v1101_v19  ;;  %v783_v25 = vpop.f32.mrb[2].mxu0 }
 0x101   : > { %v578_v24 = vadd.f32 %v806_v22, %v1101_v19  ;;  %v807_v26 = vpop.f32.mrb[2].mxu1  ;;  %v784_v27 = vpop.f32.mrb[3].mxu0 }
 0x102   : > { %v808_v28 = vpop.f32.mrb[3].mxu1  ;;  %v586_v29 = vmax.f32 %v570_v23, 0.0  ;;  %v785_v31 = vadd.f32 %v784_v27, %v783_v25 }
 0x103   : > { %v594_v30 = vmax.f32 %v578_v24, 0.0  ;;  %v809_v32 = vadd.f32 %v808_v28, %v807_v26 }
 0x104   : > { %602 = vst [vmem:[%s1109_s20] sm:$0xff] %v586_v29  ;;  %v571_v33 = vadd.f32 %v785_v31, %v1101_v19  ;;  %v786_v35 = vpop.f32.mrb[4].mxu0 }
 0x105   : > { %610 = vst [vmem:[%s1109_s20 + $0x40] sm:$0xff] %v594_v30  ;;  %v579_v34 = vadd.f32 %v809_v32, %v1101_v19  ;;  %v810_v36 = vpop.f32.mrb[4].mxu1  ;;  %v787_v37 = vpop.f32.mrb[5].mxu0 }
 0x106   : > { %v811_v38 = vpop.f32.mrb[5].mxu1  ;;  %v587_v39 = vmax.f32 %v571_v33, 0.0  ;;  %v788_v41 = vadd.f32 %v787_v37, %v786_v35 }
 0x107   : > { %v595_v40 = vmax.f32 %v579_v34, 0.0  ;;  %v812_v42 = vadd.f32 %v811_v38, %v810_v36 }
 0x108   : > { %603 = vst [vmem:[%s1109_s20 + $0x8] sm:$0xff] %v587_v39  ;;  %v572_v43 = vadd.f32 %v788_v41, %v1101_v19  ;;  %v789_v45 = vpop.f32.mrb[6].mxu0 }
 0x109   : > { %611 = vst [vmem:[%s1109_s20 + $0x48] sm:$0xff] %v595_v40  ;;  %v580_v44 = vadd.f32 %v812_v42, %v1101_v19  ;;  %v813_v46 = vpop.f32.mrb[6].mxu1  ;;  %v790_v47 = vpop.f32.mrb[7].mxu0 }
 0x10a   : > { %v814_v48 = vpop.f32.mrb[7].mxu1  ;;  %v588_v49 = vmax.f32 %v572_v43, 0.0  ;;  %v791_v51 = vadd.f32 %v790_v47, %v789_v45 }
 0x10b   : > { %v596_v50 = vmax.f32 %v580_v44, 0.0  ;;  %v815_v52 = vadd.f32 %v814_v48, %v813_v46 }
 0x10c   : > { %604 = vst [vmem:[%s1109_s20 + $0x10] sm:$0xff] %v588_v49  ;;  %v573_v53 = vadd.f32 %v791_v51, %v1101_v19  ;;  %v792_v55 = vpop.f32.mrb[8].mxu0 }
 0x10d   : > { %612 = vst [vmem:[%s1109_s20 + $0x50] sm:$0xff] %v596_v50  ;;  %v581_v54 = vadd.f32 %v815_v52, %v1101_v19  ;;  %v816_v56 = vpop.f32.mrb[8].mxu1  ;;  %v793_v57 = vpop.f32.mrb[9].mxu0 }
 0x10e   : > { %v817_v58 = vpop.f32.mrb[9].mxu1  ;;  %v589_v59 = vmax.f32 %v573_v53, 0.0  ;;  %v794_v61 = vadd.f32 %v793_v57, %v792_v55 }
 0x10f   : > { %v597_v60 = vmax.f32 %v581_v54, 0.0  ;;  %v818_v62 = vadd.f32 %v817_v58, %v816_v56 }
 0x110   : > { %605 = vst [vmem:[%s1109_s20 + $0x18] sm:$0xff] %v589_v59  ;;  %v574_v63 = vadd.f32 %v794_v61, %v1101_v19  ;;  %v795_v1 = vpop.f32.mrb[10].mxu0 }
 0x111   : > { %613 = vst [vmem:[%s1109_s20 + $0x58] sm:$0xff] %v597_v60  ;;  %v582_v0 = vadd.f32 %v818_v62, %v1101_v19  ;;  %v819_v2 = vpop.f32.mrb[10].mxu1  ;;  %v796_v3 = vpop.f32.mrb[11].mxu0 }
 0x112   : > { %v820_v4 = vpop.f32.mrb[11].mxu1  ;;  %v590_v5 = vmax.f32 %v574_v63, 0.0  ;;  %v797_v7 = vadd.f32 %v796_v3, %v795_v1 }
 0x113   : > { %v598_v6 = vmax.f32 %v582_v0, 0.0  ;;  %v821_v8 = vadd.f32 %v820_v4, %v819_v2 }
 0x114   : > { %606 = vst [vmem:[%s1109_s20 + $0x20] sm:$0xff] %v590_v5  ;;  %v575_v9 = vadd.f32 %v797_v7, %v1101_v19  ;;  %v798_v11 = vpop.f32.mrb[12].mxu0 }
 0x115   : > { %614 = vst [vmem:[%s1109_s20 + $0x60] sm:$0xff] %v598_v6  ;;  %v583_v10 = vadd.f32 %v821_v8, %v1101_v19  ;;  %v822_v12 = vpop.f32.mrb[12].mxu1  ;;  %v799_v13 = vpop.f32.mrb[13].mxu0 }
 0x116   : > { %v823_v14 = vpop.f32.mrb[13].mxu1  ;;  %v591_v15 = vmax.f32 %v575_v9, 0.0  ;;  %v800_v17 = vadd.f32 %v799_v13, %v798_v11 }
 0x117   : > { %v599_v16 = vmax.f32 %v583_v10, 0.0  ;;  %v824_v18 = vadd.f32 %v823_v14, %v822_v12 }
 0x118   : > { %607 = vst [vmem:[%s1109_s20 + $0x28] sm:$0xff] %v591_v15  ;;  %v576_v20 = vadd.f32 %v800_v17, %v1101_v19  ;;  %v801_v22 = vpop.f32.mrb[14].mxu0 }
 0x119   : > { %615 = vst [vmem:[%s1109_s20 + $0x68] sm:$0xff] %v599_v16  ;;  %v584_v21 = vadd.f32 %v824_v18, %v1101_v19  ;;  %v825_v23 = vpop.f32.mrb[14].mxu1  ;;  %v802_v24 = vpop.f32.mrb[15].mxu0 }
 0x11a   : > { %v826_v25 = vpop.f32.mrb[15].mxu1  ;;  %v592_v26 = vmax.f32 %v576_v20, 0.0  ;;  %v803_v28 = vadd.f32 %v802_v24, %v801_v22 }
 0x11b   : > { %v600_v27 = vmax.f32 %v584_v21, 0.0  ;;  %v827_v29 = vadd.f32 %v826_v25, %v825_v23 }
 0x11c   : > { %608 = vst [vmem:[%s1109_s20 + $0x30] sm:$0xff] %v592_v26  ;;  %v577_v30 = vadd.f32 %v803_v28, %v1101_v19 }
 0x11d   : > { %616 = vst [vmem:[%s1109_s20 + $0x70] sm:$0xff] %v600_v27  ;;  %v585_v31 = vadd.f32 %v827_v29, %v1101_v19 }
 0x11e   : > { %v593_v32 = vmax.f32 %v577_v30, 0.0 }
 0x11f   : > { %v601_v33 = vmax.f32 %v585_v31, 0.0 }
 0x120   : > { %609 = vst [vmem:[%s1109_s20 + $0x38] sm:$0xff] %v593_v32 }
 0x121   : > { %617 = vst [vmem:[%s1109_s20 + $0x78] sm:$0xff] %v601_v33 }
 0x122 PF: > { %s13_s14 = sadd.s32 1, %s922_s14   ;;  %s1154_s12 = smov %s918_s13 }
 0x123   : > { %p10_p5 = scmp.ge.s32.totalorder %s13_s14, 6   ;;  %s1155_s13 = smov %s1157_s15 }
 0x125   :  { %12 = sbr.rel (!%p10_p5) target bundleno = 2 (0x2), region = 76 }

// kernel: loss_network_forward.18
= control target key start
LH: loop header
LB: loop body
LE: loop exit
PB: predicated region body
PF: predicated region fallthrough
CT: control target
= control target key end

     0   :  { %s1088_s12 = smov 0   ;;  %s1090_s13 = smov 0   ;;  %s1339_s0 = inlined_call_operand.vmem [shape: f32[512,768], index: 0, kind: input, shape index: {}]   ;;  %s1340_s1 = inlined_call_operand.vmem [shape: f32[768,128], index: 1, kind: input, shape index: {}]   ;;  %s1341_s2 = inlined_call_operand.vmem [shape: f32[1,128], index: 2, kind: input, shape index: {}]   ;;  %s1342_s3 = inlined_call_operand.vmem [shape: f32[512,128], index: 3, kind: output, shape index: {}]  }
   0x1   :  { %s1092_s14 = smov 0   ;;  %s1094_s15 = smov 0  }
   0x2   :  { %s1096_s16 = smov 0   ;;  %s1098_s17 = smov 0  }
   0x3   :  { %s1100_s18 = smov 0  }
   0x4 LB: > { %s25_s19 = sadd.s32 1, %s1057_s16  ;;  %s32_s20 = sadd.s32 1, %s1061_s17  ;;  %s1065_s18 = sphi %s1100_s18, %s13_s18   ;;  %s1061_s17 = sphi %s1098_s17, %s1348_s17   ;;  %s1057_s16 = sphi %s1096_s16, %s1347_s16   ;;  %s1053_s15 = sphi %s1094_s15, %s1346_s15   ;;  %s1049_s14 = sphi %s1092_s14, %s1345_s14   ;;  %s1045_s13 = sphi %s1090_s13, %s1344_s13   ;;  %s1041_s12 = sphi %s1088_s12, %s1343_s12  }
   0x5   : > { %p26_p0 = scmp.ge.s32.totalorder %s25_s19, 3  ;;  %p48_p1 = scmp.ne.s32.totalorder %s1045_s13, %s1041_s12 }
   0x6   : > { %p49_p2 = scmp.eq.s32.totalorder %s1065_s18, 0  ;;  %s41_s24 = sadd.s32 1, %s1045_s13 }
   0x7   : > { %s1350_s19 = smov (%p26_p0, %s25_s19), 0  ;;  %s1352_s20 = smov (!%p26_p0, %s32_s20), %s1061_s17 }
   0x8   : > { %p50_p3 = por %p49_p2, %p48_p1  ;;  %p34_p4 = scmp.ge.s32.totalorder %s1352_s20, 4 }
   0x9   : > { %s37_s21 = ssub.s32 %s1057_s16, %s1350_s19  ;;  %p808_p6 = scmp.ge.s32.totalorder %s1065_s18, 12 }
   0xa   : > { %s1354_s20 = smov (%p34_p4, %s1352_s20), 0 }
   0xb   : > { %s36_s22 = ssub.s32 %s1061_s17, %s1354_s20  ;;  %162 = sbr.rel (%p808_p6) target bundleno = 42 (0x2a), region = 20 }
   0xc   : > { %s38_s23 = sor.u32 %s37_s21, %s36_s22 }
   0xd   : > { %p39_p5 = scmp.eq.s32.totalorder %s38_s23, 0 }
   0xf   : > { %s1139_s25 = scalar_select %p39_p5, %s1045_s13, %s41_s24  }
  0x12   : > { %165 = sbr.rel (!%p50_p3) target bundleno = 42 (0x2a), region = 24  ;;  %s167_s26 = sand.u32 (%p50_p3), 1, %s1045_s13  }
  0x13   : > { %s811_s27 = sshll.u32 (%p50_p3), %s1057_s16, 1  ;;  %s809_s28 = sshll.u32 (%p50_p3), %s167_s26, 8 }
  0x14   : > { %s953_s29 = smul.u32 (%p50_p3), 96, %s1061_s17  ;;  %s1153_s8 = scalar_lea.vmem (%p50_p3), [#allocation3], %s809_s28 }
  0x16   : > { %s173_s30 = sadd.s32 (%p50_p3), %s953_s29, %s811_s27 }
  0x17   : > { %s813_s4 = sshll.u32 (%p50_p3), %s173_s30, 3 }
  0x18   : > { %s1148_s7 = scalar_lea.vmem (%p50_p3), %s1339_s0, %s813_s4 }
  0x19   : > { %v188_v0 = vld [vmem:[%s1148_s7] sm:$0xff]  ;;  %v190_v1 = vld [vmem:[%s1148_s7 + $0x8] sm:$0xff]  ;;  %v192_v2 = vld [vmem:[%s1148_s7 + $0x30] sm:$0xff] }
  0x1a   : > { %189 = vst [vmem:[%s1153_s8] sm:$0xff] %v188_v0  ;;  %191 = vst [vmem:[%s1153_s8 + $0x8] sm:$0xff] %v190_v1  ;;  %v194_v3 = vld [vmem:[%s1148_s7 + $0x38] sm:$0xff]  ;;  %v196_v4 = vld [vmem:[%s1148_s7 + $0x60] sm:$0xff] }
  0x1b   : > { %193 = vst [vmem:[%s1153_s8 + $0x10] sm:$0xff] %v192_v2  ;;  %v198_v5 = vld [vmem:[%s1148_s7 + $0x68] sm:$0xff]  ;;  %195 = vst [vmem:[%s1153_s8 + $0x18] sm:$0xff] %v194_v3  ;;  %v200_v6 = vld [vmem:[%s1148_s7 + $0x90] sm:$0xff] }
  0x1c   : > { %197 = vst [vmem:[%s1153_s8 + $0x20] sm:$0xff] %v196_v4  ;;  %199 = vst [vmem:[%s1153_s8 + $0x28] sm:$0xff] %v198_v5  ;;  %v202_v7 = vld [vmem:[%s1148_s7 + $0x98] sm:$0xff]  ;;  %v204_v8 = vld [vmem:[%s1148_s7 + $0xc0] sm:$0xff] }
  0x1d   : > { %201 = vst [vmem:[%s1153_s8 + $0x30] sm:$0xff] %v200_v6  ;;  %203 = vst [vmem:[%s1153_s8 + $0x38] sm:$0xff] %v202_v7  ;;  %v206_v9 = vld [vmem:[%s1148_s7 + $0xc8] sm:$0xff]  ;;  %v208_v10 = vld [vmem:[%s1148_s7 + $0xf0] sm:$0xff] }
  0x1e   : > { %205 = vst [vmem:[%s1153_s8 + $0x40] sm:$0xff] %v204_v8  ;;  %v210_v11 = vld [vmem:[%s1148_s7 + $0xf8] sm:$0xff]  ;;  %207 = vst [vmem:[%s1153_s8 + $0x48] sm:$0xff] %v206_v9  ;;  %v212_v12 = vld [vmem:[%s1148_s7 + $0x120] sm:$0xff] }
  0x1f   : > { %209 = vst [vmem:[%s1153_s8 + $0x50] sm:$0xff] %v208_v10  ;;  %211 = vst [vmem:[%s1153_s8 + $0x58] sm:$0xff] %v210_v11  ;;  %v214_v13 = vld [vmem:[%s1148_s7 + $0x128] sm:$0xff]  ;;  %v216_v14 = vld [vmem:[%s1148_s7 + $0x150] sm:$0xff] }
  0x20   : > { %213 = vst [vmem:[%s1153_s8 + $0x60] sm:$0xff] %v212_v12  ;;  %215 = vst [vmem:[%s1153_s8 + $0x68] sm:$0xff] %v214_v13  ;;  %v218_v15 = vld [vmem:[%s1148_s7 + $0x158] sm:$0xff]  ;;  %v220_v16 = vld [vmem:[%s1148_s7 + $0x180] sm:$0xff] }
  0x21   : > { %217 = vst [vmem:[%s1153_s8 + $0x70] sm:$0xff] %v216_v14  ;;  %v222_v17 = vld [vmem:[%s1148_s7 + $0x188] sm:$0xff]  ;;  %219 = vst [vmem:[%s1153_s8 + $0x78] sm:$0xff] %v218_v15  ;;  %v224_v18 = vld [vmem:[%s1148_s7 + $0x1b0] sm:$0xff] }
  0x22   : > { %221 = vst [vmem:[%s1153_s8 + $0x80] sm:$0xff] %v220_v16  ;;  %223 = vst [vmem:[%s1153_s8 + $0x88] sm:$0xff] %v222_v17  ;;  %v226_v19 = vld [vmem:[%s1148_s7 + $0x1b8] sm:$0xff]  ;;  %v228_v20 = vld [vmem:[%s1148_s7 + $0x1e0] sm:$0xff] }
  0x23   : > { %225 = vst [vmem:[%s1153_s8 + $0x90] sm:$0xff] %v224_v18  ;;  %227 = vst [vmem:[%s1153_s8 + $0x98] sm:$0xff] %v226_v19  ;;  %v230_v21 = vld [vmem:[%s1148_s7 + $0x1e8] sm:$0xff]  ;;  %v232_v22 = vld [vmem:[%s1148_s7 + $0x210] sm:$0xff] }
  0x24   : > { %229 = vst [vmem:[%s1153_s8 + $0xa0] sm:$0xff] %v228_v20  ;;  %v234_v23 = vld [vmem:[%s1148_s7 + $0x218] sm:$0xff]  ;;  %231 = vst [vmem:[%s1153_s8 + $0xa8] sm:$0xff] %v230_v21  ;;  %v236_v24 = vld [vmem:[%s1148_s7 + $0x240] sm:$0xff] }
  0x25   : > { %233 = vst [vmem:[%s1153_s8 + $0xb0] sm:$0xff] %v232_v22  ;;  %235 = vst [vmem:[%s1153_s8 + $0xb8] sm:$0xff] %v234_v23  ;;  %v238_v25 = vld [vmem:[%s1148_s7 + $0x248] sm:$0xff]  ;;  %v240_v26 = vld [vmem:[%s1148_s7 + $0x270] sm:$0xff] }
  0x26   : > { %237 = vst [vmem:[%s1153_s8 + $0xc0] sm:$0xff] %v236_v24  ;;  %239 = vst [vmem:[%s1153_s8 + $0xc8] sm:$0xff] %v238_v25  ;;  %v242_v27 = vld [vmem:[%s1148_s7 + $0x278] sm:$0xff]  ;;  %v244_v28 = vld [vmem:[%s1148_s7 + $0x2a0] sm:$0xff] }
  0x27   : > { %241 = vst [vmem:[%s1153_s8 + $0xd0] sm:$0xff] %v240_v26  ;;  %v246_v29 = vld [vmem:[%s1148_s7 + $0x2a8] sm:$0xff]  ;;  %243 = vst [vmem:[%s1153_s8 + $0xd8] sm:$0xff] %v242_v27  ;;  %v248_v30 = vld [vmem:[%s1148_s7 + $0x2d0] sm:$0xff] }
  0x28   : > { %245 = vst [vmem:[%s1153_s8 + $0xe0] sm:$0xff] %v244_v28  ;;  %247 = vst [vmem:[%s1153_s8 + $0xe8] sm:$0xff] %v246_v29  ;;  %v250_v31 = vld [vmem:[%s1148_s7 + $0x2d8] sm:$0xff] }
  0x29   : > { %249 = vst [vmem:[%s1153_s8 + $0xf0] sm:$0xff] %v248_v30  ;;  %251 = vst [vmem:[%s1153_s8 + $0xf8] sm:$0xff] %v250_v31 }
  0x2a PF: > { %p814_p7 = scmp.ge.s32.totalorder %s1065_s18, 1  ;;  %p268_p8 = scmp.lt.s32.totalorder %s1065_s18, 13 }
  0x2c   : > { %p269_p9 = pnand %p814_p7, %p268_p8 }
  0x2d   : > { %s275_s9 = sand.u32 (!%p269_p9), 1, %s1041_s12   ;;  %s816_s10 = sshll.u32 (!%p269_p9), %s1049_s14, 5 }
  0x2e   : > { %272 = sbr.rel (%p269_p9) target bundleno = 357 (0x165), region = 51  ;;  %s815_s11 = sshll.u32 (!%p269_p9), %s275_s9, 8 }
  0x2f   : > { %p315_p10 = scmp.lt.s32.totalorder (!%p269_p9), %s816_s10, 95  ;;  %s818_s21 = sshll.u32 (!%p269_p9), %s1053_s15, 4 }
  0x30   : > { %p327_p11 = scmp.lt.s32.totalorder (!%p269_p9), %s818_s21, 63  ;;  %s1231_s12 = scalar_lea.vmem (!%p269_p9), [#allocation3], %s815_s11 }
  0x31   : > { %p820_p12 = scmp.ne.s32.totalorder (!%p269_p9), %s1049_s14, 0 }
  0x35   : > { %s1356_s10 = smov (!%p315_p10, %s816_s10), 95  ;;  %s1358_s21 = smov (!%p327_p11, %s818_s21), 63 }
  0x36   : > { %s817_s22 = sshll.u32 %s1356_s10, 3  ;;  %s819_s27 = sshll.u32 %s1358_s21, 3  ;;  %v1067_v32 = vmov (!%p820_p12), 0.0  }
  0x37   : > { %s1224_s26 = scalar_lea.vmem %s1340_s1, %s817_s22  ;;  %s1229_s30 = scalar_lea.vmem %s1342_s3, %s819_s27  ;;  %339 = vst [vmem:[#allocation2] sm:$0xff] (!%p820_p12), %v1067_v32  ;;  %340 = vst [vmem:[#allocation2 + $0x8] sm:$0xff] (!%p820_p12), %v1067_v32 }
  0x38   : > { %338 = sbr.rel (%p820_p12) target bundleno = 63 (0x3f), region = 59  ;;  %341 = vst [vmem:[#allocation2 + $0x10] sm:$0xff] (!%p820_p12), %v1067_v32  ;;  %342 = vst [vmem:[#allocation2 + $0x18] sm:$0xff] (!%p820_p12), %v1067_v32 }
  0x39   : > { %343 = vst [vmem:[#allocation2 + $0x20] sm:$0xff] (!%p820_p12), %v1067_v32  ;;  %344 = vst [vmem:[#allocation2 + $0x28] sm:$0xff] (!%p820_p12), %v1067_v32 }
  0x3a   : > { %345 = vst [vmem:[#allocation2 + $0x30] sm:$0xff] (!%p820_p12), %v1067_v32  ;;  %346 = vst [vmem:[#allocation2 + $0x38] sm:$0xff] (!%p820_p12), %v1067_v32 }
  0x3b   : > { %347 = vst [vmem:[#allocation2 + $0x40] sm:$0xff] (!%p820_p12), %v1067_v32  ;;  %348 = vst [vmem:[#allocation2 + $0x48] sm:$0xff] (!%p820_p12), %v1067_v32 }
  0x3c   : > { %349 = vst [vmem:[#allocation2 + $0x50] sm:$0xff] (!%p820_p12), %v1067_v32  ;;  %350 = vst [vmem:[#allocation2 + $0x58] sm:$0xff] (!%p820_p12), %v1067_v32 }
  0x3d   : > { %351 = vst [vmem:[#allocation2 + $0x60] sm:$0xff] (!%p820_p12), %v1067_v32  ;;  %352 = vst [vmem:[#allocation2 + $0x68] sm:$0xff] (!%p820_p12), %v1067_v32 }
  0x3e   : > { %353 = vst [vmem:[#allocation2 + $0x70] sm:$0xff] (!%p820_p12), %v1067_v32  ;;  %354 = vst [vmem:[#allocation2 + $0x78] sm:$0xff] (!%p820_p12), %v1067_v32 }
  0x3f PF: > { %v419_v33 = vld [vmem:[%s1224_s26 + $0x80] sm:$0xff]  ;;  %v420_v34 = vld [vmem:[%s1224_s26 + $0x88] sm:$0xff]  ;;  %v421_v38 = vld [vmem:[%s1224_s26 + $0x90] sm:$0xff]  ;;  %p821_p13 = scmp.ne.s32.totalorder %s1049_s14, 2 }
  0x40   : > { %v403_v35 = vld [vmem:[%s1224_s26] sm:$0xff]  ;;  %v905_v36 = vpack.c.bf16 %v420_v34, %v419_v33  ;;  %v404_v37 = vld [vmem:[%s1224_s26 + $0x8] sm:$0xff]  ;;  %v422_v39 = vld [vmem:[%s1224_s26 + $0x98] sm:$0xff] }
  0x41   : > { %v907_v40 = vpack.c.bf16 %v404_v37, %v403_v35  ;;  %v909_v41 = vpack.c.bf16 %v422_v39, %v421_v38  ;;  %v405_v42 = vld [vmem:[%s1224_s26 + $0x10] sm:$0xff]  ;;  %v406_v43 = vld [vmem:[%s1224_s26 + $0x18] sm:$0xff]  ;;  %v423_v44 = vld [vmem:[%s1224_s26 + $0xa0] sm:$0xff] }
  0x42   : > { %906 = vmatprep.subr.bf16.mxu0 %v905_v36  ;;  %937 = vmatprep.subr.bf16.mxu1 %v905_v36  ;;  %v424_v45 = vld [vmem:[%s1224_s26 + $0xa8] sm:$0xff]  ;;  %v911_v46 = vpack.c.bf16 %v406_v43, %v405_v42  ;;  %v407_v48 = vld [vmem:[%s1224_s26 + $0x20] sm:$0xff]  ;;  %v425_v50 = vld [vmem:[%s1224_s26 + $0xb0] sm:$0xff] }
  0x43   : > { %908 = vmatpush3.bf16.msra.mxu0 %v907_v40  ;;  %945 = vmatpush3.bf16.msra.mxu1 %v907_v40  ;;  %v913_v47 = vpack.c.bf16 %v424_v45, %v423_v44  ;;  %v408_v49 = vld [vmem:[%s1224_s26 + $0x28] sm:$0xff]  ;;  %v426_v51 = vld [vmem:[%s1224_s26 + $0xb8] sm:$0xff]  ;;  %v409_v54 = vld [vmem:[%s1224_s26 + $0x30] sm:$0xff] }
  0x44   : > { %910 = vmatprep.subr.bf16.mxu0 %v909_v41  ;;  %938 = vmatprep.subr.bf16.mxu1 %v909_v41  ;;  %v915_v52 = vpack.c.bf16 %v408_v49, %v407_v48  ;;  %v917_v53 = vpack.c.bf16 %v426_v51, %v425_v50  ;;  %v410_v55 = vld [vmem:[%s1224_s26 + $0x38] sm:$0xff]  ;;  %v427_v56 = vld [vmem:[%s1224_s26 + $0xc0] sm:$0xff]  ;;  %v428_v57 = vld [vmem:[%s1224_s26 + $0xc8] sm:$0xff] }
  0x45   : > { %v372_v58 = vld [vmem:[%s1231_s12 + $0x8] sm:$0xff]  ;;  %v919_v60 = vpack.c.bf16 %v410_v55, %v409_v54  ;;  %v921_v61 = vpack.c.bf16 %v428_v57, %v427_v56  ;;  %v411_v62 = vld [vmem:[%s1224_s26 + $0x40] sm:$0xff]  ;;  %v429_v0 = vld [vmem:[%s1224_s26 + $0xd0] sm:$0xff] }
  0x46   : > { %499 = vmatprep.mubr.f32.mxu0 %v372_v58  ;;  %v388_v59 = vld [vmem:[%s1231_s12 + $0x88] sm:$0xff]  ;;  %v430_v1 = vld [vmem:[%s1224_s26 + $0xd8] sm:$0xff]  ;;  %v413_v4 = vld [vmem:[%s1224_s26 + $0x50] sm:$0xff] }
  0x47   : > { %912 = vmatpush3.bf16.msra.mxu0 %v911_v46  ;;  %946 = vmatpush3.bf16.msra.mxu1 %v911_v46  ;;  %v412_v63 = vld [vmem:[%s1224_s26 + $0x48] sm:$0xff]  ;;  %v925_v3 = vpack.c.bf16 %v430_v1, %v429_v0  ;;  %v414_v5 = vld [vmem:[%s1224_s26 + $0x58] sm:$0xff]  ;;  %v431_v6 = vld [vmem:[%s1224_s26 + $0xe0] sm:$0xff] }
  0x48   : > { %914 = vmatprep.subr.bf16.mxu0 %v913_v47  ;;  %939 = vmatprep.subr.bf16.mxu1 %v913_v47  ;;  %v923_v2 = vpack.c.bf16 %v412_v63, %v411_v62  ;;  %v432_v7 = vld [vmem:[%s1224_s26 + $0xe8] sm:$0xff]  ;;  %v927_v8 = vpack.c.bf16 %v414_v5, %v413_v4  ;;  %v415_v10 = vld [vmem:[%s1224_s26 + $0x60] sm:$0xff]  ;;  %v433_v12 = vld [vmem:[%s1224_s26 + $0xf0] sm:$0xff] }
  0x49   : > { %539 = vmatprep.mubr.f32.mxu1 %v388_v59  ;;  %v929_v9 = vpack.c.bf16 %v432_v7, %v431_v6  ;;  %v416_v11 = vld [vmem:[%s1224_s26 + $0x68] sm:$0xff]  ;;  %v434_v13 = vld [vmem:[%s1224_s26 + $0xf8] sm:$0xff]  ;;  %v417_v16 = vld [vmem:[%s1224_s26 + $0x70] sm:$0xff] }
  0x4a   : > { %v931_v14 = vpack.c.bf16 %v416_v11, %v415_v10  ;;  %v933_v15 = vpack.c.bf16 %v434_v13, %v433_v12  ;;  %v418_v17 = vld [vmem:[%s1224_s26 + $0x78] sm:$0xff]  ;;  %v371_v19 = vld [vmem:[%s1231_s12] sm:$0xff]  ;;  %v373_v23 = vld [vmem:[%s1231_s12 + $0x10] sm:$0xff] }
  0x4b   : > { %916 = vmatpush3.bf16.msra.mxu0 %v915_v52  ;;  %947 = vmatpush3.bf16.msra.mxu1 %v915_v52  ;;  %v935_v18 = vpack.c.bf16 %v418_v17, %v417_v16  ;;  %v387_v20 = vld [vmem:[%s1231_s12 + $0x80] sm:$0xff]  ;;  %v374_v21 = vld [vmem:[%s1231_s12 + $0x18] sm:$0xff]  ;;  %v389_v24 = vld [vmem:[%s1231_s12 + $0x90] sm:$0xff] }
  0x4c   : > { %918 = vmatprep.subr.bf16.mxu0 %v917_v53  ;;  %940 = vmatprep.subr.bf16.mxu1 %v917_v53  ;;  %v390_v22 = vld [vmem:[%s1231_s12 + $0x98] sm:$0xff]  ;;  %v376_v25 = vld [vmem:[%s1231_s12 + $0x28] sm:$0xff]  ;;  %v375_v27 = vld [vmem:[%s1231_s12 + $0x20] sm:$0xff] }
  0x4d   : > { %v392_v26 = vld [vmem:[%s1231_s12 + $0xa8] sm:$0xff]  ;;  %v391_v28 = vld [vmem:[%s1231_s12 + $0xa0] sm:$0xff]  ;;  %v378_v29 = vld [vmem:[%s1231_s12 + $0x38] sm:$0xff] }
  0x4e   : > { %v394_v30 = vld [vmem:[%s1231_s12 + $0xb8] sm:$0xff]  ;;  %v377_v31 = vld [vmem:[%s1231_s12 + $0x30] sm:$0xff]  ;;  %v380_v33 = vld [vmem:[%s1231_s12 + $0x48] sm:$0xff] }
  0x4f   : > { %920 = vmatpush3.bf16.msra.mxu0 %v919_v60  ;;  %948 = vmatpush3.bf16.msra.mxu1 %v919_v60  ;;  %v393_v32 = vld [vmem:[%s1231_s12 + $0xb0] sm:$0xff]  ;;  %v396_v34 = vld [vmem:[%s1231_s12 + $0xc8] sm:$0xff]  ;;  %v379_v35 = vld [vmem:[%s1231_s12 + $0x40] sm:$0xff] }
  0x50   : > { %922 = vmatprep.subr.bf16.mxu0 %v921_v61  ;;  %941 = vmatprep.subr.bf16.mxu1 %v921_v61  ;;  %v395_v36 = vld [vmem:[%s1231_s12 + $0xc0] sm:$0xff]  ;;  %v382_v37 = vld [vmem:[%s1231_s12 + $0x58] sm:$0xff]  ;;  %v381_v39 = vld [vmem:[%s1231_s12 + $0x50] sm:$0xff] }
  0x51   : > { %v398_v38 = vld [vmem:[%s1231_s12 + $0xd8] sm:$0xff]  ;;  %v397_v40 = vld [vmem:[%s1231_s12 + $0xd0] sm:$0xff]  ;;  %v384_v41 = vld [vmem:[%s1231_s12 + $0x68] sm:$0xff] }
  0x52   : > { %v400_v42 = vld [vmem:[%s1231_s12 + $0xe8] sm:$0xff]  ;;  %v383_v43 = vld [vmem:[%s1231_s12 + $0x60] sm:$0xff]  ;;  %v386_v45 = vld [vmem:[%s1231_s12 + $0x78] sm:$0xff] }
  0x53   : > { %924 = vmatpush3.bf16.msra.mxu0 %v923_v2  ;;  %949 = vmatpush3.bf16.msra.mxu1 %v923_v2  ;;  %v399_v44 = vld [vmem:[%s1231_s12 + $0xe0] sm:$0xff]  ;;  %v402_v46 = vld [vmem:[%s1231_s12 + $0xf8] sm:$0xff]  ;;  %v385_v47 = vld [vmem:[%s1231_s12 + $0x70] sm:$0xff] }
  0x54   : > { %926 = vmatprep.subr.bf16.mxu0 %v925_v3  ;;  %942 = vmatprep.subr.bf16.mxu1 %v925_v3  ;;  %v401_v48 = vld [vmem:[%s1231_s12 + $0xf0] sm:$0xff]  ;;  %v355_v51 = vld [vmem:[#allocation2] sm:$0xff]  ;;  %v356_v61 = vld [vmem:[#allocation2 + $0x8] sm:$0xff] }
  0x55   : > { %v363_v53 = vld [vmem:[#allocation2 + $0x40] sm:$0xff]  ;;  %v364_v63 = vld [vmem:[#allocation2 + $0x48] sm:$0xff]  ;;  %v357_v7 = vld [vmem:[#allocation2 + $0x10] sm:$0xff] }
  0x56   : > { %v358_v17 = vld [vmem:[#allocation2 + $0x18] sm:$0xff] }
  0x57   : > { %928 = vmatpush3.bf16.msra.mxu0 %v927_v8  ;;  %950 = vmatpush3.bf16.msra.mxu1 %v927_v8 }
  0x58   : > { %930 = vmatprep.subr.bf16.mxu0 %v929_v9  ;;  %943 = vmatprep.subr.bf16.mxu1 %v929_v9  ;;  %v365_v9 = vld [vmem:[#allocation2 + $0x50] sm:$0xff] }
  0x5b   : > { %932 = vmatpush3.bf16.msra.mxu0 %v931_v14  ;;  %951 = vmatpush3.bf16.msra.mxu1 %v931_v14 }
  0x5c   : > { %934 = vmatprep.subr.bf16.mxu0 %v933_v15  ;;  %944 = vmatprep.subr.bf16.mxu1 %v933_v15 }
  0x5f   : > { %936 = vmatpush3.bf16.msra.mxu0 %v935_v18  ;;  %952 = vmatpush3.bf16.msra.mxu1 %v935_v18 }
  0x62   : > { %500 = vmatmul.mubr.f32.vlgmr.msra.gmra.mrb[0].mxu0 %v371_v19  ;;  %540 = vmatmul.mubr.f32.vlgmr.msra.gmra.mrb[0].mxu1 %v387_v20  ;;  %v366_v19 = vld [vmem:[#allocation2 + $0x58] sm:$0xff] }
  0x63   : > { %504 = vmatprep.mubr.f32.mxu0 %v374_v21  ;;  %544 = vmatprep.mubr.f32.mxu1 %v390_v22 }
  0x66   : > { %505 = vmatmul.mubr.f32.gmra.mrb[2].mxu0 %v373_v23  ;;  %545 = vmatmul.mubr.f32.gmra.mrb[2].mxu1 %v389_v24 }
  0x67   : > { %509 = vmatprep.mubr.f32.mxu0 %v376_v25  ;;  %549 = vmatprep.mubr.f32.mxu1 %v392_v26 }
  0x6a   : > { %510 = vmatmul.mubr.f32.gmra.mrb[4].mxu0 %v375_v27  ;;  %550 = vmatmul.mubr.f32.gmra.mrb[4].mxu1 %v391_v28  ;;  %v359_v27 = vld [vmem:[#allocation2 + $0x20] sm:$0xff] }
  0x6b   : > { %514 = vmatprep.mubr.f32.mxu0 %v378_v29  ;;  %554 = vmatprep.mubr.f32.mxu1 %v394_v30  ;;  %v367_v29 = vld [vmem:[#allocation2 + $0x60] sm:$0xff] }
  0x6e   : > { %515 = vmatmul.mubr.f32.gmra.mrb[6].mxu0 %v377_v31  ;;  %555 = vmatmul.mubr.f32.gmra.mrb[6].mxu1 %v393_v32 }
  0x6f   : > { %519 = vmatprep.mubr.f32.mxu0 %v380_v33  ;;  %559 = vmatprep.mubr.f32.mxu1 %v396_v34 }
  0x72   : > { %520 = vmatmul.mubr.f32.gmra.mrb[8].mxu0 %v379_v35  ;;  %560 = vmatmul.mubr.f32.gmra.mrb[8].mxu1 %v395_v36 }
  0x73   : > { %524 = vmatprep.mubr.f32.mxu0 %v382_v37  ;;  %564 = vmatprep.mubr.f32.mxu1 %v398_v38  ;;  %v360_v37 = vld [vmem:[#allocation2 + $0x28] sm:$0xff] }
  0x76   : > { %525 = vmatmul.mubr.f32.gmra.mrb[10].mxu0 %v381_v39  ;;  %565 = vmatmul.mubr.f32.gmra.mrb[10].mxu1 %v397_v40  ;;  %v368_v39 = vld [vmem:[#allocation2 + $0x68] sm:$0xff] }
  0x77   : > { %529 = vmatprep.mubr.f32.mxu0 %v384_v41  ;;  %569 = vmatprep.mubr.f32.mxu1 %v400_v42 }
  0x7a   : > { %530 = vmatmul.mubr.f32.gmra.mrb[12].mxu0 %v383_v43  ;;  %570 = vmatmul.mubr.f32.gmra.mrb[12].mxu1 %v399_v44 }
  0x7b   : > { %534 = vmatprep.mubr.f32.mxu0 %v386_v45  ;;  %574 = vmatprep.mubr.f32.mxu1 %v402_v46 }
  0x7e   : > { %535 = vmatmul.mubr.f32.gmra.mrb[14].mxu0 %v385_v47  ;;  %575 = vmatmul.mubr.f32.gmra.mrb[14].mxu1 %v401_v48  ;;  %v361_v47 = vld [vmem:[#allocation2 + $0x30] sm:$0xff] }
 0x135   : > { %v857_v49 = vpop.f32.mrb[0].mxu0  ;;  %v881_v50 = vpop.f32.mrb[0].mxu1 }
 0x136   : > { %v858_v52 = vpop.f32.mrb[1].mxu0  ;;  %v882_v54 = vpop.f32.mrb[1].mxu1 }
 0x137   : > { %v859_v55 = vadd.f32 %v858_v52, %v857_v49  ;;  %v883_v56 = vadd.f32 %v882_v54, %v881_v50  ;;  %v369_v49 = vld [vmem:[#allocation2 + $0x70] sm:$0xff] }
 0x139   : > { %v580_v57 = vadd.f32 %v859_v55, %v355_v51  ;;  %v588_v58 = vadd.f32 %v883_v56, %v363_v53  ;;  %v860_v59 = vpop.f32.mrb[2].mxu0  ;;  %v884_v60 = vpop.f32.mrb[2].mxu1 }
 0x13a   : > { %v861_v62 = vpop.f32.mrb[3].mxu0  ;;  %v885_v0 = vpop.f32.mrb[3].mxu1 }
 0x13b   : > { %596 = vst [vmem:[#allocation2] sm:$0xff] %v580_v57  ;;  %604 = vst [vmem:[#allocation2 + $0x40] sm:$0xff] %v588_v58  ;;  %v862_v1 = vadd.f32 %v861_v62, %v860_v59  ;;  %v886_v2 = vadd.f32 %v885_v0, %v884_v60  ;;  %v362_v57 = vld [vmem:[#allocation2 + $0x38] sm:$0xff] }
 0x13c   : > { %v370_v59 = vld [vmem:[#allocation2 + $0x78] sm:$0xff] }
 0x13d   : > { %v581_v3 = vadd.f32 %v862_v1, %v356_v61  ;;  %v589_v4 = vadd.f32 %v886_v2, %v364_v63  ;;  %v863_v5 = vpop.f32.mrb[4].mxu0  ;;  %v887_v6 = vpop.f32.mrb[4].mxu1  ;;  %v822_v2 = vld [vmem:[%s1341_s2] ss:$0 sm:$0xff] (!%p821_p13) }
 0x13e   : > { %v864_v8 = vpop.f32.mrb[5].mxu0  ;;  %v888_v10 = vpop.f32.mrb[5].mxu1 }
 0x13f   : > { %597 = vst [vmem:[#allocation2 + $0x8] sm:$0xff] %v581_v3  ;;  %605 = vst [vmem:[#allocation2 + $0x48] sm:$0xff] %v589_v4  ;;  %v865_v11 = vadd.f32 %v864_v8, %v863_v5  ;;  %v889_v12 = vadd.f32 %v888_v10, %v887_v6 }
 0x141   : > { %v582_v13 = vadd.f32 %v865_v11, %v357_v7  ;;  %v590_v14 = vadd.f32 %v889_v12, %v365_v9  ;;  %v866_v15 = vpop.f32.mrb[6].mxu0  ;;  %v890_v16 = vpop.f32.mrb[6].mxu1 }
 0x142   : > { %v867_v18 = vpop.f32.mrb[7].mxu0  ;;  %v891_v20 = vpop.f32.mrb[7].mxu1  ;;  %v616_v1 = vld [vmem:[#allocation2] sm:$0xff] (!%p821_p13) }
 0x143   : > { %598 = vst [vmem:[#allocation2 + $0x10] sm:$0xff] %v582_v13  ;;  %606 = vst [vmem:[#allocation2 + $0x50] sm:$0xff] %v590_v14  ;;  %v868_v21 = vadd.f32 %v867_v18, %v866_v15  ;;  %v892_v22 = vadd.f32 %v891_v20, %v890_v16  ;;  %v639_v4 = vadd.f32 (!%p821_p13), %v822_v2, %v616_v1 }
 0x145   : > { %v583_v23 = vadd.f32 %v868_v21, %v358_v17  ;;  %v591_v24 = vadd.f32 %v892_v22, %v366_v19  ;;  %v869_v25 = vpop.f32.mrb[8].mxu0  ;;  %v893_v26 = vpop.f32.mrb[8].mxu1  ;;  %v655_v15 = vmax.f32 (!%p821_p13), %v639_v4, 0.0  ;;  %v624_v19 = vld [vmem:[#allocation2 + $0x40] sm:$0xff] (!%p821_p13) }
 0x146   : > { %v870_v28 = vpop.f32.mrb[9].mxu0  ;;  %v894_v30 = vpop.f32.mrb[9].mxu1  ;;  %v617_v3 = vld [vmem:[#allocation2 + $0x8] sm:$0xff] (!%p821_p13) }
 0x147   : > { %599 = vst [vmem:[#allocation2 + $0x18] sm:$0xff] %v583_v23  ;;  %607 = vst [vmem:[#allocation2 + $0x58] sm:$0xff] %v591_v24  ;;  %v871_v31 = vadd.f32 %v870_v28, %v869_v25  ;;  %v895_v32 = vadd.f32 %v894_v30, %v893_v26  ;;  %v640_v5 = vadd.f32 (!%p821_p13), %v822_v2, %v617_v3  ;;  %v625_v20 = vld [vmem:[#allocation2 + $0x48] sm:$0xff] (!%p821_p13) }
 0x148   : > { %671 = vst [vmem:[%s1229_s30] sm:$0xff] (!%p821_p13), %v655_v15 }
 0x149   : > { %v584_v33 = vadd.f32 %v871_v31, %v359_v27  ;;  %v592_v34 = vadd.f32 %v895_v32, %v367_v29  ;;  %v872_v35 = vpop.f32.mrb[10].mxu0  ;;  %v896_v36 = vpop.f32.mrb[10].mxu1  ;;  %v656_v16 = vmax.f32 (!%p821_p13), %v640_v5, 0.0  ;;  %v647_v31 = vadd.f32 (!%p821_p13), %v822_v2, %v624_v19 }
 0x14a   : > { %v873_v38 = vpop.f32.mrb[11].mxu0  ;;  %v897_v40 = vpop.f32.mrb[11].mxu1  ;;  %v618_v6 = vld [vmem:[#allocation2 + $0x10] sm:$0xff] (!%p821_p13)  ;;  %v648_v32 = vadd.f32 (!%p821_p13), %v822_v2, %v625_v20 }
 0x14b   : > { %600 = vst [vmem:[#allocation2 + $0x20] sm:$0xff] %v584_v33  ;;  %608 = vst [vmem:[#allocation2 + $0x60] sm:$0xff] %v592_v34  ;;  %v874_v41 = vadd.f32 %v873_v38, %v872_v35  ;;  %v898_v42 = vadd.f32 %v897_v40, %v896_v36  ;;  %v641_v9 = vadd.f32 (!%p821_p13), %v822_v2, %v618_v6  ;;  %v626_v21 = vld [vmem:[#allocation2 + $0x50] sm:$0xff] (!%p821_p13) }
 0x14c   : > { %672 = vst [vmem:[%s1229_s30 + $0x8] sm:$0xff] (!%p821_p13), %v656_v16  ;;  %v649_v36 = vadd.f32 (!%p821_p13), %v822_v2, %v626_v21  ;;  %v664_v40 = vmax.f32 (!%p821_p13), %v648_v32, 0.0 }
 0x14d   : > { %v585_v43 = vadd.f32 %v874_v41, %v360_v37  ;;  %v593_v44 = vadd.f32 %v898_v42, %v368_v39  ;;  %v875_v45 = vpop.f32.mrb[12].mxu0  ;;  %v899_v46 = vpop.f32.mrb[12].mxu1  ;;  %v657_v22 = vmax.f32 (!%p821_p13), %v641_v9, 0.0  ;;  %v663_v39 = vmax.f32 (!%p821_p13), %v647_v31, 0.0 }
 0x14e   : > { %v876_v48 = vpop.f32.mrb[13].mxu0  ;;  %v900_v50 = vpop.f32.mrb[13].mxu1  ;;  %v619_v7 = vld [vmem:[#allocation2 + $0x18] sm:$0xff] (!%p821_p13)  ;;  %680 = vst [vmem:[%s1229_s30 + $0x48] sm:$0xff] (!%p821_p13), %v664_v40 }
 0x14f   : > { %601 = vst [vmem:[#allocation2 + $0x28] sm:$0xff] %v585_v43  ;;  %609 = vst [vmem:[#allocation2 + $0x68] sm:$0xff] %v593_v44  ;;  %v877_v51 = vadd.f32 %v876_v48, %v875_v45  ;;  %v901_v52 = vadd.f32 %v900_v50, %v899_v46  ;;  %v642_v10 = vadd.f32 (!%p821_p13), %v822_v2, %v619_v7  ;;  %v627_v26 = vld [vmem:[#allocation2 + $0x58] sm:$0xff] (!%p821_p13)  ;;  %v665_v43 = vmax.f32 (!%p821_p13), %v649_v36, 0.0 }
 0x150   : > { %673 = vst [vmem:[%s1229_s30 + $0x10] sm:$0xff] (!%p821_p13), %v657_v22  ;;  %v650_v37 = vadd.f32 (!%p821_p13), %v822_v2, %v627_v26  ;;  %679 = vst [vmem:[%s1229_s30 + $0x40] sm:$0xff] (!%p821_p13), %v663_v39 }
 0x151   : > { %v586_v53 = vadd.f32 %v877_v51, %v361_v47  ;;  %v594_v54 = vadd.f32 %v901_v52, %v369_v49  ;;  %v878_v55 = vpop.f32.mrb[14].mxu0  ;;  %v902_v56 = vpop.f32.mrb[14].mxu1  ;;  %615 = sbr.rel (%p821_p13) target bundleno = 357 (0x165), region = 63  ;;  %v658_v23 = vmax.f32 (!%p821_p13), %v642_v10, 0.0  ;;  %681 = vst [vmem:[%s1229_s30 + $0x50] sm:$0xff] (!%p821_p13), %v665_v43 }
 0x152   : > { %v879_v58 = vpop.f32.mrb[15].mxu0  ;;  %v903_v60 = vpop.f32.mrb[15].mxu1  ;;  %v620_v8 = vld [vmem:[#allocation2 + $0x20] sm:$0xff] (!%p821_p13)  ;;  %v666_v44 = vmax.f32 (!%p821_p13), %v650_v37, 0.0 }
 0x153   : > { %602 = vst [vmem:[#allocation2 + $0x30] sm:$0xff] %v586_v53  ;;  %610 = vst [vmem:[#allocation2 + $0x70] sm:$0xff] %v594_v54  ;;  %v880_v61 = vadd.f32 %v879_v58, %v878_v55  ;;  %v904_v62 = vadd.f32 %v903_v60, %v902_v56  ;;  %v643_v11 = vadd.f32 (!%p821_p13), %v822_v2, %v620_v8  ;;  %v628_v27 = vld [vmem:[#allocation2 + $0x60] sm:$0xff] (!%p821_p13) }
 0x154   : > { %674 = vst [vmem:[%s1229_s30 + $0x18] sm:$0xff] (!%p821_p13), %v658_v23  ;;  %v651_v38 = vadd.f32 (!%p821_p13), %v822_v2, %v628_v27  ;;  %682 = vst [vmem:[%s1229_s30 + $0x58] sm:$0xff] (!%p821_p13), %v666_v44 }
 0x155   : > { %v587_v63 = vadd.f32 %v880_v61, %v362_v57  ;;  %v595_v0 = vadd.f32 %v904_v62, %v370_v59  ;;  %v659_v24 = vmax.f32 (!%p821_p13), %v643_v11, 0.0 }
 0x156   : > { %v621_v12 = vld [vmem:[#allocation2 + $0x28] sm:$0xff] (!%p821_p13)  ;;  %v667_v45 = vmax.f32 (!%p821_p13), %v651_v38, 0.0 }
 0x157   : > { %603 = vst [vmem:[#allocation2 + $0x38] sm:$0xff] %v587_v63  ;;  %611 = vst [vmem:[#allocation2 + $0x78] sm:$0xff] %v595_v0  ;;  %v644_v17 = vadd.f32 (!%p821_p13), %v822_v2, %v621_v12  ;;  %v629_v28 = vld [vmem:[#allocation2 + $0x68] sm:$0xff] (!%p821_p13) }
 0x158   : > { %675 = vst [vmem:[%s1229_s30 + $0x20] sm:$0xff] %v659_v24  ;;  %v652_v41 = vadd.f32 %v822_v2, %v629_v28  ;;  %683 = vst [vmem:[%s1229_s30 + $0x60] sm:$0xff] %v667_v45 }
 0x159   : > { %v660_v29 = vmax.f32 %v644_v17, 0.0 }
 0x15a   : > { %v622_v13 = vld [vmem:[#allocation2 + $0x30] sm:$0xff]  ;;  %v668_v47 = vmax.f32 %v652_v41, 0.0 }
 0x15b   : > { %v645_v18 = vadd.f32 %v822_v2, %v622_v13  ;;  %v630_v33 = vld [vmem:[#allocation2 + $0x70] sm:$0xff]  ;;  %676 = vst [vmem:[%s1229_s30 + $0x28] sm:$0xff] %v660_v29 }
 0x15c   : > { %v653_v42 = vadd.f32 %v822_v2, %v630_v33  ;;  %684 = vst [vmem:[%s1229_s30 + $0x68] sm:$0xff] %v668_v47 }
 0x15d   : > { %v661_v30 = vmax.f32 %v645_v18, 0.0 }
 0x15e   : > { %v623_v14 = vld [vmem:[#allocation2 + $0x38] sm:$0xff]  ;;  %v669_v48 = vmax.f32 %v653_v42, 0.0 }
 0x15f   : > { %v646_v25 = vadd.f32 %v822_v2, %v623_v14  ;;  %v631_v34 = vld [vmem:[#allocation2 + $0x78] sm:$0xff]  ;;  %677 = vst [vmem:[%s1229_s30 + $0x30] sm:$0xff] %v661_v30 }
 0x160   : > { %v654_v46 = vadd.f32 %v822_v2, %v631_v34  ;;  %685 = vst [vmem:[%s1229_s30 + $0x70] sm:$0xff] %v669_v48 }
 0x161   : > { %v662_v35 = vmax.f32 %v646_v25, 0.0 }
 0x162   : > { %v670_v49 = vmax.f32 %v654_v46, 0.0 }
 0x163   : > { %678 = vst [vmem:[%s1229_s30 + $0x38] sm:$0xff] %v662_v35 }
 0x164   : > { %686 = vst [vmem:[%s1229_s30 + $0x78] sm:$0xff] %v670_v49 }
 0x165 PF: > { %s13_s18 = sadd.s32 1, %s1065_s18   ;;  %s1343_s12 = smov %s1045_s13 }
 0x166   : > { %p10_p0 = scmp.ge.s32.totalorder %s13_s18, 14   ;;  %s1344_s13 = smov %s1139_s25 }
 0x167   : > { %s1345_s14 = smov %s1057_s16  ;;  %s1346_s15 = smov %s1061_s17 }
 0x168   : > { %s1347_s16 = smov %s1350_s19  ;;  %s1348_s17 = smov %s1354_s20 }
 0x169   :  { %12 = sbr.rel (!%p10_p0) target bundleno = 4 (0x4), region = 104 }

// kernel: loss_network_forward.31
= control target key start
LH: loop header
LB: loop body
LE: loop exit
PB: predicated region body
PF: predicated region fallthrough
CT: control target
= control target key end

     0   :  { %vm843_vm0 = vcmask 1041408   ;;  %s1810_s0 = inlined_call_operand.vmem [shape: f32[2,16384], index: 0, kind: input, shape index: {}]   ;;  %s1811_s1 = inlined_call_operand.vmem [shape: f32[2,16384], index: 1, kind: input, shape index: {}]   ;;  %s1812_s2 = inlined_call_operand.vmem [shape: f32[1,128], index: 2, kind: output, shape index: {}]  }
   0x1   :  { %v19_v0 = vld [vmem:[%s1810_s0 + $0x40] sm:$0xff]  ;;  %v20_v1 = vld [vmem:[%s1810_s0 + $0x48] sm:$0xff]  ;;  %v21_v2 = vld [vmem:[%s1810_s0 + $0x50] sm:$0xff] }
   0x2   :  { %v22_v3 = vld [vmem:[%s1810_s0 + $0x58] sm:$0xff]  ;;  %v23_v4 = vld [vmem:[%s1810_s0 + $0x60] sm:$0xff]  ;;  %v24_v5 = vld [vmem:[%s1810_s0 + $0x68] sm:$0xff] }
   0x3   :  { %v25_v6 = vld [vmem:[%s1810_s0 + $0x70] sm:$0xff]  ;;  %v26_v7 = vld [vmem:[%s1810_s0 + $0x78] sm:$0xff]  ;;  %v27_v8 = vld [vmem:[%s1810_s0 + $0x80] sm:$0xff] }
   0x4   :  { %v28_v9 = vld [vmem:[%s1810_s0 + $0x88] sm:$0xff]  ;;  %v29_v10 = vld [vmem:[%s1810_s0 + $0x90] sm:$0xff]  ;;  %v30_v11 = vld [vmem:[%s1810_s0 + $0x98] sm:$0xff] }
   0x5   :  { %v31_v12 = vld [vmem:[%s1810_s0 + $0xa0] sm:$0xff]  ;;  %v32_v13 = vld [vmem:[%s1810_s0 + $0xa8] sm:$0xff]  ;;  %v33_v16 = vld [vmem:[%s1810_s0 + $0xb0] sm:$0xff] }
   0x6   :  { %v51_v14 = vld [vmem:[%s1811_s1 + $0x40] sm:$0xff]  ;;  %v52_v15 = vld [vmem:[%s1811_s1 + $0x48] sm:$0xff]  ;;  %v34_v17 = vld [vmem:[%s1810_s0 + $0xb8] sm:$0xff] }
   0x7   :  { %v35_v18 = vld [vmem:[%s1810_s0 + $0xc0] sm:$0xff]  ;;  %v53_v19 = vld [vmem:[%s1811_s1 + $0x50] sm:$0xff]  ;;  %v54_v20 = vld [vmem:[%s1811_s1 + $0x58] sm:$0xff]  ;;  %v83_v22 = vsub.f32 %v19_v0, %v51_v14  ;;  %v84_v23 = vsub.f32 %v20_v1, %v52_v15 }
   0x8   :  { %v55_v21 = vld [vmem:[%s1811_s1 + $0x60] sm:$0xff]  ;;  %v36_v24 = vld [vmem:[%s1810_s0 + $0xc8] sm:$0xff]  ;;  %v37_v25 = vld [vmem:[%s1810_s0 + $0xd0] sm:$0xff]  ;;  %v85_v30 = vsub.f32 %v21_v2, %v53_v19  ;;  %v86_v31 = vsub.f32 %v22_v3, %v54_v20 }
   0x9   :  { %v38_v26 = vld [vmem:[%s1810_s0 + $0xd8] sm:$0xff]  ;;  %v56_v27 = vld [vmem:[%s1811_s1 + $0x68] sm:$0xff]  ;;  %v57_v28 = vld [vmem:[%s1811_s1 + $0x70] sm:$0xff]  ;;  %v87_v32 = vsub.f32 %v23_v4, %v55_v21  ;;  %v116_v14 = vmul.f32 %v84_v23, %v84_v23 }
   0xa   :  { %v58_v29 = vld [vmem:[%s1811_s1 + $0x78] sm:$0xff]  ;;  %v39_v33 = vld [vmem:[%s1810_s0 + $0xe0] sm:$0xff]  ;;  %v40_v34 = vld [vmem:[%s1810_s0 + $0xe8] sm:$0xff]  ;;  %v88_v39 = vsub.f32 %v24_v5, %v56_v27  ;;  %v89_v40 = vsub.f32 %v25_v6, %v57_v28  ;;  %v117_v15 = vmul.f32 %v85_v30, %v85_v30 }
   0xb   :  { %v41_v35 = vld [vmem:[%s1810_s0 + $0xf0] sm:$0xff]  ;;  %v59_v36 = vld [vmem:[%s1811_s1 + $0x80] sm:$0xff]  ;;  %v60_v37 = vld [vmem:[%s1811_s1 + $0x88] sm:$0xff]  ;;  %v90_v41 = vsub.f32 %v26_v7, %v58_v29  ;;  %v119_v20 = vmul.f32 %v87_v32, %v87_v32 }
   0xc   :  { %v61_v38 = vld [vmem:[%s1811_s1 + $0x90] sm:$0xff]  ;;  %v42_v42 = vld [vmem:[%s1810_s0 + $0xf8] sm:$0xff]  ;;  %v63_v44 = vld [vmem:[%s1811_s1 + $0xa0] sm:$0xff]  ;;  %v91_v46 = vsub.f32 %v27_v8, %v59_v36  ;;  %v92_v47 = vsub.f32 %v28_v9, %v60_v37  ;;  %v1117_v8 = vmov 1983009808   ;;  %v341_v27 = vcombine.high %v117_v15, %v117_v15 }
   0xd   :  { %v62_v43 = vld [vmem:[%s1811_s1 + $0x98] sm:$0xff]  ;;  %v64_v45 = vld [vmem:[%s1811_s1 + $0xa8] sm:$0xff]  ;;  %v93_v48 = vsub.f32 %v29_v10, %v61_v38  ;;  %v65_v49 = vld [vmem:[%s1811_s1 + $0xb0] sm:$0xff]  ;;  %v1256_v53 = vsub.f32 %v31_v12, %v63_v44  ;;  %v173_v9 = vunpack.c.l.s4 %v1117_v8  ;;  %v175_v10 = vlaneseq }
   0xe   :  { %v66_v50 = vld [vmem:[%s1811_s1 + $0xb8] sm:$0xff]  ;;  %v67_v51 = vld [vmem:[%s1811_s1 + $0xc0] sm:$0xff]  ;;  %v94_v52 = vsub.f32 %v30_v11, %v62_v43  ;;  %v1258_v54 = vsub.f32 %v32_v13, %v64_v45  ;;  %v68_v55 = vld [vmem:[%s1811_s1 + $0xc8] sm:$0xff]  ;;  %v1269_v58 = vsub.f32 %v33_v16, %v65_v49  ;;  %v115_v13 = vmul.f32 %v83_v22, %v83_v22 }
   0xf   :  { %v69_v56 = vld [vmem:[%s1811_s1 + $0xd0] sm:$0xff]  ;;  %v70_v57 = vld [vmem:[%s1811_s1 + $0xd8] sm:$0xff]  ;;  %v1271_v59 = vsub.f32 %v34_v17, %v66_v50  ;;  %v1273_v60 = vsub.f32 %v35_v18, %v67_v51  ;;  %v71_v61 = vld [vmem:[%s1811_s1 + $0xe0] sm:$0xff]  ;;  %v1284_v0 = vsub.f32 %v36_v24, %v68_v55  ;;  %v174_v11 = vunpack.c.0.s8 %v173_v9 }
  0x10   :  { %v72_v62 = vld [vmem:[%s1811_s1 + $0xe8] sm:$0xff]  ;;  %v73_v63 = vld [vmem:[%s1811_s1 + $0xf0] sm:$0xff]  ;;  %v1286_v1 = vsub.f32 %v37_v25, %v69_v56  ;;  %v1288_v2 = vsub.f32 %v38_v26, %v70_v57  ;;  %v74_v3 = vld [vmem:[%s1811_s1 + $0xf8] sm:$0xff]  ;;  %v1293_v4 = vsub.f32 %v39_v33, %v71_v61  ;;  %v176_v12 = vshrl.u32 %v175_v10, 7 }
  0x11   :  { %v1295_v5 = vsub.f32 %v40_v34, %v72_v62  ;;  %v1297_v6 = vsub.f32 %v41_v35, %v73_v63  ;;  %v1299_v7 = vsub.f32 %v42_v42, %v74_v3  ;;  %v307_v17 = vcombine.high %v115_v13, %v115_v13  ;;  %v43_v51 = vld [vmem:[%s1811_s1] sm:$0xff] }
  0x12   :  { %v1301_v16 = vsub.s32 %v174_v11, %v176_v12  ;;  %v118_v18 = vmul.f32 %v86_v31, %v86_v31  ;;  %v324_v24 = vcombine.high %v116_v14, %v116_v14  ;;  %v120_v26 = vmul.f32 %v88_v39, %v88_v39  ;;  %v44_v12 = vld [vmem:[%s1811_s1 + $0x8] sm:$0xff] }
  0x13   :  { %v121_v29 = vmul.f32 %v89_v40, %v89_v40  ;;  %v375_v32 = vcombine.high %v119_v20, %v119_v20  ;;  %v122_v33 = vmul.f32 %v90_v41, %v90_v41  ;;  %v123_v37 = vmul.f32 %v91_v46, %v91_v46 }
  0x14   :  { %v1304_v19 = vrot.slane %v115_v13, %v1301_v16  ;;  %v1307_v21 = vrot.slane %v307_v17, %v1301_v16  ;;  %v1310_v25 = vrot.slane %v116_v14, %v1301_v16  ;;  %v1313_v22 = vrot.slane %v117_v15, %v1301_v16 }
  0x15   :  { %v1316_v23 = vrot.slane %v324_v24, %v1301_v16  ;;  %v358_v28 = vcombine.high %v118_v18, %v118_v18  ;;  %v1319_v30 = vrot.slane %v341_v27, %v1301_v16  ;;  %v1322_v31 = vrot.slane %v118_v18, %v1301_v16 }
  0x16   :  { %v1328_v35 = vrot.slane %v119_v20, %v1301_v16  ;;  %v392_v36 = vcombine.high %v120_v26, %v120_v26  ;;  %v1331_v38 = vrot.slane %v375_v32, %v1301_v16  ;;  %v1334_v39 = vrot.slane %v120_v26, %v1301_v16 }
  0x17   :  { %v1325_v34 = vrot.slane %v358_v28, %v1301_v16  ;;  %v124_v40 = vmul.f32 %v92_v47, %v92_v47  ;;  %v409_v43 = vcombine.high %v121_v29, %v121_v29  ;;  %v1340_v41 = vrot.slane %v121_v29, %v1301_v16  ;;  %v11_v47 = vld [vmem:[%s1810_s0] sm:$0xff] }
  0x18   :  { %v1337_v42 = vrot.slane %v392_v36, %v1301_v16  ;;  %v426_v44 = vcombine.high %v122_v33, %v122_v33  ;;  %v125_v45 = vmul.f32 %v93_v48, %v93_v48  ;;  %v1346_v46 = vrot.slane %v122_v33, %v1301_v16 }
  0x19   :  { %v1343_v49 = vrot.slane %v409_v43, %v1301_v16  ;;  %v443_v50 = vcombine.high %v123_v37, %v123_v37  ;;  %v126_v55 = vmul.f32 %v94_v52, %v94_v52  ;;  %v1358_v48 = vrot.slane %v123_v37, %v1301_v16 }
  0x1a   :  { %v1355_v56 = vrot.slane %v426_v44, %v1301_v16  ;;  %v460_v57 = vcombine.high %v124_v40, %v124_v40  ;;  %v127_v61 = vmul.f32 %v1256_v53, %v1256_v53  ;;  %v1366_v63 = vrot.slane %v124_v40, %v1301_v16  ;;  %v12_v53 = vld [vmem:[%s1810_s0 + $0x8] sm:$0xff] }
  0x1b   :  { %v1363_v62 = vrot.slane %v443_v50, %v1301_v16  ;;  %v128_v3 = vmul.f32 %v1258_v54, %v1258_v54  ;;  %v477_v8 = vcombine.high %v125_v45, %v125_v45  ;;  %v75_v9 = vsub.f32 %v11_v47, %v43_v51 }
  0x1c   :  { %v1371_v52 = vrot.slane %v460_v57, %v1301_v16  ;;  %v1374_v10 = vrot.slane %v125_v45, %v1301_v16  ;;  %v494_v11 = vcombine.high %v126_v55, %v126_v55  ;;  %v129_v54 = vmul.f32 %v1269_v58, %v1269_v58 }
  0x1d   :  { %v1385_v13 = vrot.slane %v477_v8, %v1301_v16  ;;  %v1388_v14 = vrot.slane %v126_v55, %v1301_v16  ;;  %v511_v15 = vcombine.high %v127_v61, %v127_v61  ;;  %v130_v17 = vmul.f32 %v1271_v59, %v1271_v59 }
  0x1e   :  { %v1393_v18 = vrot.slane %v494_v11, %v1301_v16  ;;  %v1396_v20 = vrot.slane %v127_v61, %v1301_v16  ;;  %v528_v24 = vcombine.high %v128_v3, %v128_v3  ;;  %v131_v58 = vmul.f32 %v1273_v60, %v1273_v60 }
  0x1f   :  { %v1401_v26 = vrot.slane %v511_v15, %v1301_v16  ;;  %v1404_v27 = vrot.slane %v128_v3, %v1301_v16  ;;  %v76_v28 = vsub.f32 %v12_v53, %v44_v12  ;;  %v132_v59 = vmul.f32 %v1284_v0, %v1284_v0  ;;  %v13_v12 = vld [vmem:[%s1810_s0 + $0x10] sm:$0xff] }
  0x20   :  { %v1409_v29 = vrot.slane %v528_v24, %v1301_v16  ;;  %v545_v32 = vcombine.high %v129_v54, %v129_v54  ;;  %v107_v33 = vmul.f32 %v75_v9, %v75_v9  ;;  %v133_v36 = vmul.f32 %v1286_v1, %v1286_v1 }
  0x21   :  { %v1414_v60 = vrot.slane %v129_v54, %v1301_v16  ;;  %v562_v37 = vcombine.high %v130_v17, %v130_v17  ;;  %v134_v40 = vmul.f32 %v1288_v2, %v1288_v2  ;;  %v1422_v0 = vrot.slane %v130_v17, %v1301_v16 }
  0x22   :  { %v1419_v43 = vrot.slane %v545_v32, %v1301_v16  ;;  %v579_v44 = vcombine.high %v131_v58, %v131_v58  ;;  %v171_v45 = vcombine.high %v107_v33, %v107_v33  ;;  %v1428_v1 = vrot.slane %v131_v58, %v1301_v16 }
  0x23   :  { %v1425_v50 = vrot.slane %v562_v37, %v1301_v16  ;;  %v596_v47 = vcombine.high %v132_v59, %v132_v59  ;;  %v135_v51 = vmul.f32 %v1293_v4, %v1293_v4  ;;  %v1436_v55 = vrot.slane %v132_v59, %v1301_v16 }
  0x24   :  { %v1433_v2 = vrot.slane %v579_v44, %v1301_v16  ;;  %v136_v57 = vmul.f32 %v1295_v5, %v1295_v5  ;;  %v178_v61 = vrot.slane %v107_v33, %v1301_v16  ;;  %v613_v8 = vcombine.high %v133_v36, %v133_v36  ;;  %v45_v5 = vld [vmem:[%s1811_s1 + $0x10] sm:$0xff] }
  0x25   :  { %v1442_v3 = vrot.slane %v596_v47, %v1301_v16  ;;  %v108_v9 = vmul.f32 %v76_v28, %v76_v28  ;;  %v137_v11 = vmul.f32 %v1297_v6, %v1297_v6  ;;  %v1447_v4 = vrot.slane %v133_v36, %v1301_v16 }
  0x26   :  { %v630_v53 = vcombine.high %v134_v40, %v134_v40  ;;  %v185_v54 = vrot.slane %v171_v45, %v1301_v16  ;;  %v1457_v15 = vrot.slane %v613_v8, %v1301_v16  ;;  %v1460_v17 = vrot.slane %v134_v40, %v1301_v16 }
  0x27   :  { %v647_v6 = vcombine.high %v135_v51, %v135_v51  ;;  %v138_v24 = vmul.f32 %v1299_v7, %v1299_v7  ;;  %v1468_v28 = vrot.slane %v135_v51, %v1301_v16  ;;  %v664_v59 = vcombine.high %v136_v57, %v136_v57 }
  0x28   :  { %v1465_v58 = vrot.slane %v630_v53, %v1301_v16  ;;  %v186_v32 = vcombine.high %v178_v61, %v178_v61  ;;  %v1474_v36 = vrot.slane %v136_v57, %v1301_v16  ;;  %v77_v37 = vsub.f32 %v13_v12, %v45_v5 }
  0x29   :  { %1823 = vst [vmem:[#allocation3_spill] sm:$0xff] %v1468_v28  ;;  %v1471_v33 = vrot.slane %v647_v6, %v1301_v16  ;;  %v188_v40 = vcombine.high %v108_v9, %v108_v9  ;;  %v1477_v44 = vrot.slane %v664_v59, %v1301_v16  ;;  %v681_v7 = vcombine.high %v137_v11, %v137_v11 }
  0x2a   :  { %1822 = vst [vmem:[#allocation2_spill] sm:$0xff] %v1465_v58  ;;  %1825 = vst [vmem:[#allocation5_spill] sm:$0xff] %v1474_v36  ;;  %v187_v45 = vcombine.high %v185_v54, %v185_v54  ;;  %v195_v47 = vrot.slane %v108_v9, %v1301_v16  ;;  %v1481_v51 = vrot.slane %v137_v11, %v1301_v16  ;;  %v844_v12 = vsel %vm843_vm0, %v178_v61, 0.0  ;;  %v14_v11 = vld [vmem:[%s1810_s0 + $0x18] sm:$0xff] }
  0x2b   :  { %1824 = vst [vmem:[#allocation4_spill] sm:$0xff] %v1471_v33  ;;  %1826 = vst [vmem:[#allocation6_spill] sm:$0xff] %v1477_v44  ;;  %v698_v8 = vcombine.high %v138_v24, %v138_v24  ;;  %v1484_v53 = vrot.slane %v681_v7, %v1301_v16  ;;  %v1487_v57 = vrot.slane %v138_v24, %v1301_v16  ;;  %v845_v6 = vsel %vm843_vm0, %v186_v32, 0.0  ;;  %v46_v7 = vld [vmem:[%s1811_s1 + $0x18] sm:$0xff] }
  0x2c   :  { %1827 = vst [vmem:[#allocation7_spill] sm:$0xff] %v1481_v51  ;;  %v847_v59 = vsel %vm843_vm0, %v185_v54, 0.0  ;;  %v846_v9 = vadd.f32 %v845_v6, %v844_v12  ;;  %v109_v24 = vmul.f32 %v77_v37, %v77_v37  ;;  %v203_v61 = vcombine.high %v195_v47, %v195_v47 }
  0x2d   :  { %1828 = vst [vmem:[#allocation8_spill] sm:$0xff] %v1484_v53  ;;  %1829 = vst [vmem:[#allocation9_spill] sm:$0xff] %v1487_v57  ;;  %v1491_v5 = vrot.slane %v698_v8, %v1301_v16  ;;  %v202_v57 = vrot.slane %v188_v40, %v1301_v16  ;;  %v849_v8 = vsel %vm843_vm0, %v187_v45, 0.0  ;;  %v851_v32 = vsel %vm843_vm0, %v195_v47, 0.0  ;;  %v15_v40 = vld [vmem:[%s1810_s0 + $0x20] sm:$0xff] }
  0x2e   :  { %v78_v53 = vsub.f32 %v14_v11, %v46_v7  ;;  %v205_v6 = vcombine.high %v109_v24, %v109_v24  ;;  %v212_v51 = vrot.slane %v109_v24, %v1301_v16  ;;  %v853_v44 = vsel %vm843_vm0, %v203_v61, 0.0  ;;  %v47_v45 = vld [vmem:[%s1811_s1 + $0x20] sm:$0xff] }
  0x2f   :  { %1830 = vst [vmem:[#allocation10_spill] sm:$0xff] %v1491_v5  ;;  %v848_v5 = vadd.f32 %v847_v59, %v846_v9  ;;  %v204_v12 = vcombine.high %v202_v57, %v202_v57  ;;  %v855_v33 = vsel %vm843_vm0, %v202_v57, 0.0  ;;  %v79_v24 = vsub.f32 %v15_v40, %v47_v45 }
  0x30   :  { %v110_v47 = vmul.f32 %v78_v53, %v78_v53  ;;  %v220_v59 = vcombine.high %v212_v51, %v212_v51  ;;  %v859_v7 = vsel %vm843_vm0, %v212_v51, 0.0 }
  0x31   :  { %v850_v54 = vadd.f32 %v849_v8, %v848_v5  ;;  %v219_v5 = vrot.slane %v205_v6, %v1301_v16  ;;  %v857_v9 = vsel %vm843_vm0, %v204_v12, 0.0  ;;  %v16_v6 = vld [vmem:[%s1810_s0 + $0x28] sm:$0xff]  ;;  %v111_v51 = vmul.f32 %v79_v24, %v79_v24 }
  0x32   :  { %v229_v61 = vrot.slane %v110_v47, %v1301_v16  ;;  %v861_v8 = vsel %vm843_vm0, %v220_v59, 0.0 }
  0x33   :  { %v852_v36 = vadd.f32 %v851_v32, %v850_v54  ;;  %v863_v54 = vsel %vm843_vm0, %v219_v5, 0.0 }
  0x35   :  { %v854_v37 = vadd.f32 %v853_v44, %v852_v36  ;;  %v221_v36 = vcombine.high %v219_v5, %v219_v5  ;;  %v222_v44 = vcombine.high %v110_v47, %v110_v47  ;;  %v867_v47 = vsel %vm843_vm0, %v229_v61, 0.0 }
  0x37   :  { %v856_v11 = vadd.f32 %v855_v33, %v854_v37  ;;  %v48_v33 = vld [vmem:[%s1811_s1 + $0x28] sm:$0xff]  ;;  %v236_v12 = vrot.slane %v222_v44, %v1301_v16  ;;  %v237_v37 = vcombine.high %v229_v61, %v229_v61  ;;  %v865_v40 = vsel %vm843_vm0, %v221_v36, 0.0  ;;  %v17_v44 = vld [vmem:[%s1810_s0 + $0x30] sm:$0xff] }
  0x38   :  { %v80_v59 = vsub.f32 %v16_v6, %v48_v33  ;;  %v49_v36 = vld [vmem:[%s1811_s1 + $0x30] sm:$0xff] }
  0x39   :  { %v858_v57 = vadd.f32 %v857_v9, %v856_v11  ;;  %v238_v9 = vcombine.high %v236_v12, %v236_v12  ;;  %v239_v11 = vcombine.high %v111_v51, %v111_v51 }
  0x3a   :  { %v112_v61 = vmul.f32 %v80_v59, %v80_v59 }
  0x3b   :  { %v860_v32 = vadd.f32 %v859_v7, %v858_v57  ;;  %v246_v7 = vrot.slane %v111_v51, %v1301_v16  ;;  %v869_v57 = vsel %vm843_vm0, %v237_v37, 0.0  ;;  %v873_v6 = vsel %vm843_vm0, %v238_v9, 0.0  ;;  %v50_v9 = vld [vmem:[%s1811_s1 + $0x38] sm:$0xff] }
  0x3c   :  { %v81_v37 = vsub.f32 %v17_v44, %v49_v36 }
  0x3d   :  { %v862_v53 = vadd.f32 %v861_v8, %v860_v32  ;;  %v871_v32 = vsel %vm843_vm0, %v236_v12, 0.0  ;;  %v875_v51 = vsel %vm843_vm0, %v246_v7, 0.0 }
  0x3f   :  { %v864_v45 = vadd.f32 %v863_v54, %v862_v53  ;;  %v253_v54 = vrot.slane %v239_v11, %v1301_v16  ;;  %v254_v53 = vcombine.high %v246_v7, %v246_v7  ;;  %v18_v11 = vld [vmem:[%s1810_s0 + $0x38] sm:$0xff]  ;;  %v113_v7 = vmul.f32 %v81_v37, %v81_v37 }
  0x41   :  { %v866_v5 = vadd.f32 %v865_v40, %v864_v45  ;;  %v255_v40 = vcombine.high %v253_v54, %v253_v54  ;;  %v256_v45 = vcombine.high %v112_v61, %v112_v61 }
  0x43   :  { %v868_v8 = vadd.f32 %v867_v47, %v866_v5  ;;  %v263_v47 = vrot.slane %v112_v61, %v1301_v16  ;;  %v877_v5 = vsel %vm843_vm0, %v254_v53, 0.0  ;;  %v881_v44 = vsel %vm843_vm0, %v255_v40, 0.0 }
  0x44   :  { %v82_v53 = vsub.f32 %v18_v11, %v50_v9 }
  0x45   :  { %v870_v24 = vadd.f32 %v869_v57, %v868_v8  ;;  %v879_v8 = vsel %vm843_vm0, %v253_v54, 0.0  ;;  %v883_v61 = vsel %vm843_vm0, %v263_v47, 0.0 }
  0x46   :  { %v114_v28 = vmul.f32 %v82_v53, %v82_v53 }
  0x47   :  { %v872_v33 = vadd.f32 %v871_v32, %v870_v24  ;;  %v270_v32 = vrot.slane %v256_v45, %v1301_v16  ;;  %v271_v24 = vcombine.high %v263_v47, %v263_v47 }
  0x48   :  { %v290_v9 = vcombine.high %v114_v28, %v114_v28 }
  0x49   :  { %v874_v12 = vadd.f32 %v873_v6, %v872_v33  ;;  %v272_v6 = vcombine.high %v270_v32, %v270_v32  ;;  %v273_v33 = vcombine.high %v113_v7, %v113_v7 }
  0x4b   :  { %v876_v57 = vadd.f32 %v875_v51, %v874_v12  ;;  %v280_v51 = vrot.slane %v113_v7, %v1301_v16  ;;  %v885_v12 = vsel %vm843_vm0, %v271_v24, 0.0  ;;  %v287_v45 = vrot.slane %v273_v33, %v1301_v16 }
  0x4c   :  { %v889_v40 = vsel %vm843_vm0, %v272_v6, 0.0  ;;  %v297_v7 = vrot.slane %v114_v28, %v1301_v16 }
  0x4d   :  { %v878_v59 = vadd.f32 %v877_v5, %v876_v57  ;;  %v887_v57 = vsel %vm843_vm0, %v270_v32, 0.0  ;;  %v288_v58 = vcombine.high %v280_v51, %v280_v51  ;;  %v891_v47 = vsel %vm843_vm0, %v280_v51, 0.0 }
  0x4e   :  { %v289_v11 = vcombine.high %v287_v45, %v287_v45  ;;  %v895_v32 = vsel %vm843_vm0, %v287_v45, 0.0  ;;  %v305_v53 = vcombine.high %v297_v7, %v297_v7  ;;  %v899_v33 = vsel %vm843_vm0, %v297_v7, 0.0 }
  0x4f   :  { %v880_v36 = vadd.f32 %v879_v8, %v878_v59  ;;  %v893_v24 = vsel %vm843_vm0, %v288_v58, 0.0 }
  0x51   :  { %v882_v54 = vadd.f32 %v881_v44, %v880_v36 }
  0x53   :  { %v884_v5 = vadd.f32 %v883_v61, %v882_v54  ;;  %v304_v61 = vrot.slane %v290_v9, %v1301_v16  ;;  %v897_v54 = vsel %vm843_vm0, %v289_v11, 0.0  ;;  %v911_v9 = vsel %vm843_vm0, %v1307_v21, 0.0 }
  0x55   :  { %v886_v37 = vadd.f32 %v885_v12, %v884_v5  ;;  %v306_v12 = vcombine.high %v304_v61, %v304_v61  ;;  %v901_v5 = vsel %vm843_vm0, %v305_v53, 0.0  ;;  %v903_v28 = vsel %vm843_vm0, %v304_v61, 0.0 }
  0x56   :  { %v340_v61 = vcombine.high %v1316_v23, %v1316_v23 }
  0x57   :  { %v888_v8 = vadd.f32 %v887_v57, %v886_v37  ;;  %v322_v37 = vcombine.high %v1304_v19, %v1304_v19  ;;  %v905_v45 = vsel %vm843_vm0, %v306_v12, 0.0 }
  0x59   :  { %v890_v59 = vadd.f32 %v889_v40, %v888_v8  ;;  %v907_v40 = vsel %vm843_vm0, %v1304_v19, 0.0  ;;  %v915_v19 = vsel %vm843_vm0, %v1310_v25, 0.0 }
  0x5b   :  { %v892_v44 = vadd.f32 %v891_v47, %v890_v59  ;;  %v323_v47 = vcombine.high %v1307_v21, %v1307_v21  ;;  %v909_v59 = vsel %vm843_vm0, %v322_v37, 0.0  ;;  %v919_v21 = vsel %vm843_vm0, %v1316_v23, 0.0 }
  0x5c   :  { %v927_v23 = vsel %vm843_vm0, %v1319_v30, 0.0 }
  0x5d   :  { %v894_v36 = vadd.f32 %v893_v24, %v892_v44  ;;  %v339_v24 = vcombine.high %v1310_v25, %v1310_v25  ;;  %v913_v44 = vsel %vm843_vm0, %v323_v47, 0.0  ;;  %v923_v25 = vsel %vm843_vm0, %v1313_v22, 0.0 }
  0x5e   :  { %v374_v47 = vcombine.high %v1325_v34, %v1325_v34 }
  0x5f   :  { %v896_v6 = vadd.f32 %v895_v32, %v894_v36  ;;  %v917_v53 = vsel %vm843_vm0, %v339_v24, 0.0 }
  0x60   :  { %v937_v24 = vsel %vm843_vm0, %v374_v47, 0.0 }
  0x61   :  { %v898_v51 = vadd.f32 %v897_v54, %v896_v6 }
  0x63   :  { %v900_v57 = vadd.f32 %v899_v33, %v898_v51  ;;  %v356_v33 = vcombine.high %v1313_v22, %v1313_v22  ;;  %v921_v51 = vsel %vm843_vm0, %v340_v61, 0.0  ;;  %v931_v22 = vsel %vm843_vm0, %v1322_v31, 0.0 }
  0x65   :  { %v902_v58 = vadd.f32 %v901_v5, %v900_v57  ;;  %v357_v57 = vcombine.high %v1319_v30, %v1319_v30  ;;  %v935_v30 = vsel %vm843_vm0, %v1325_v34, 0.0  ;;  %v943_v34 = vsel %vm843_vm0, %v1331_v38, 0.0 }
  0x67   :  { %v904_v16 = vadd.f32 %v903_v28, %v902_v58  ;;  %v925_v28 = vsel %vm843_vm0, %v356_v33, 0.0 }
  0x69   :  { %v906_v8 = vadd.f32 %v905_v45, %v904_v16  ;;  %v373_v45 = vcombine.high %v1322_v31, %v1322_v31  ;;  %v929_v16 = vsel %vm843_vm0, %v357_v57, 0.0  ;;  %v939_v31 = vsel %vm843_vm0, %v1328_v35, 0.0 }
  0x6a   :  { %v424_v57 = vcombine.high %v1340_v41, %v1340_v41 }
  0x6b   :  { %v908_v11 = vadd.f32 %v907_v40, %v906_v8 }
  0x6d   :  { %v910_v7 = vadd.f32 %v909_v59, %v908_v11  ;;  %v933_v59 = vsel %vm843_vm0, %v373_v45, 0.0  ;;  %v957_v45 = vsel %vm843_vm0, %v424_v57, 0.0 }
  0x6f   :  { %v912_v32 = vadd.f32 %v911_v9, %v910_v7  ;;  %v390_v7 = vcombine.high %v1328_v35, %v1328_v35  ;;  %v947_v35 = vsel %vm843_vm0, %v1334_v39, 0.0 }
  0x71   :  { %v914_v36 = vadd.f32 %v913_v44, %v912_v32 }
  0x73   :  { %v916_v54 = vadd.f32 %v915_v19, %v914_v36  ;;  %v391_v19 = vcombine.high %v1331_v38, %v1331_v38  ;;  %v941_v36 = vsel %vm843_vm0, %v390_v7, 0.0  ;;  %v951_v38 = vsel %vm843_vm0, %v1337_v42, 0.0 }
  0x75   :  { %v918_v6 = vadd.f32 %v917_v53, %v916_v54  ;;  %v407_v54 = vcombine.high %v1334_v39, %v1334_v39  ;;  %v955_v39 = vsel %vm843_vm0, %v1340_v41, 0.0  ;;  %v963_v41 = vsel %vm843_vm0, %v1346_v46, 0.0 }
  0x77   :  { %v920_v12 = vadd.f32 %v919_v21, %v918_v6  ;;  %v945_v21 = vsel %vm843_vm0, %v391_v19, 0.0  ;;  %v459_v19 = vcombine.high %v1363_v62, %v1363_v62 }
  0x79   :  { %v922_v5 = vadd.f32 %v921_v51, %v920_v12  ;;  %v408_v51 = vcombine.high %v1337_v42, %v1337_v42  ;;  %v949_v12 = vsel %vm843_vm0, %v407_v54, 0.0  ;;  %v959_v42 = vsel %vm843_vm0, %v1343_v49, 0.0 }
  0x7a   :  { %v977_v54 = vsel %vm843_vm0, %v459_v19, 0.0  ;;  %v544_v19 = vcombine.high %v1409_v29, %v1409_v29 }
  0x7b   :  { %v924_v58 = vadd.f32 %v923_v25, %v922_v5 }
  0x7d   :  { %v926_v37 = vadd.f32 %v925_v28, %v924_v58  ;;  %v953_v28 = vsel %vm843_vm0, %v408_v51, 0.0 }
  0x7f   :  { %v928_v40 = vadd.f32 %v927_v23, %v926_v37  ;;  %v425_v37 = vcombine.high %v1343_v49, %v1343_v49  ;;  %v967_v49 = vsel %vm843_vm0, %v1355_v56, 0.0 }
  0x81   :  { %v930_v8 = vadd.f32 %v929_v16, %v928_v40 }
  0x83   :  { %v932_v11 = vadd.f32 %v931_v22, %v930_v8  ;;  %v441_v22 = vcombine.high %v1346_v46, %v1346_v46  ;;  %v961_v8 = vsel %vm843_vm0, %v425_v37, 0.0  ;;  %v971_v46 = vsel %vm843_vm0, %v1358_v48, 0.0 }
  0x84   :  { %v509_v37 = vcombine.high %v1388_v14, %v1388_v14 }
  0x85   :  { %v934_v9 = vadd.f32 %v933_v59, %v932_v11  ;;  %v442_v11 = vcombine.high %v1355_v56, %v1355_v56  ;;  %v975_v56 = vsel %vm843_vm0, %v1363_v62, 0.0  ;;  %v983_v62 = vsel %vm843_vm0, %v1371_v52, 0.0 }
  0x87   :  { %v936_v44 = vadd.f32 %v935_v30, %v934_v9  ;;  %v965_v30 = vsel %vm843_vm0, %v441_v22, 0.0  ;;  %v997_v22 = vsel %vm843_vm0, %v509_v37, 0.0 }
  0x89   :  { %v938_v32 = vadd.f32 %v937_v24, %v936_v44  ;;  %v458_v24 = vcombine.high %v1358_v48, %v1358_v48  ;;  %v969_v44 = vsel %vm843_vm0, %v442_v11, 0.0  ;;  %v979_v48 = vsel %vm843_vm0, %v1366_v63, 0.0 }
  0x8b   :  { %v940_v61 = vadd.f32 %v939_v31, %v938_v32 }
  0x8d   :  { %v942_v53 = vadd.f32 %v941_v36, %v940_v61  ;;  %v973_v36 = vsel %vm843_vm0, %v458_v24, 0.0 }
  0x8f   :  { %v944_v6 = vadd.f32 %v943_v34, %v942_v53  ;;  %v475_v53 = vcombine.high %v1366_v63, %v1366_v63  ;;  %v987_v63 = vsel %vm843_vm0, %v1374_v10, 0.0 }
  0x91   :  { %v946_v33 = vadd.f32 %v945_v21, %v944_v6 }
  0x93   :  { %v948_v25 = vadd.f32 %v947_v35, %v946_v33  ;;  %v476_v35 = vcombine.high %v1371_v52, %v1371_v52  ;;  %v981_v33 = vsel %vm843_vm0, %v475_v53, 0.0  ;;  %v991_v52 = vsel %vm843_vm0, %v1385_v13, 0.0 }
  0x94   :  { %v1017_v53 = vsel %vm843_vm0, %v544_v19, 0.0 }
  0x95   :  { %v950_v5 = vadd.f32 %v949_v12, %v948_v25  ;;  %v492_v25 = vcombine.high %v1374_v10, %v1374_v10  ;;  %v995_v10 = vsel %vm843_vm0, %v1388_v14, 0.0  ;;  %v1003_v14 = vsel %vm843_vm0, %v1396_v20, 0.0 }
  0x97   :  { %v952_v58 = vadd.f32 %v951_v38, %v950_v5  ;;  %v985_v38 = vsel %vm843_vm0, %v476_v35, 0.0 }
  0x99   :  { %v954_v23 = vadd.f32 %v953_v28, %v952_v58  ;;  %v493_v28 = vcombine.high %v1385_v13, %v1385_v13  ;;  %v989_v58 = vsel %vm843_vm0, %v492_v25, 0.0  ;;  %v999_v13 = vsel %vm843_vm0, %v1393_v18, 0.0 }
  0x9b   :  { %v956_v16 = vadd.f32 %v955_v39, %v954_v23 }
  0x9d   :  { %v958_v40 = vadd.f32 %v957_v45, %v956_v16  ;;  %v993_v45 = vsel %vm843_vm0, %v493_v28, 0.0  ;;  %v594_v28 = vcombine.high %v1428_v1, %v1428_v1 }
  0x9f   :  { %v960_v47 = vadd.f32 %v959_v42, %v958_v40  ;;  %v510_v40 = vcombine.high %v1393_v18, %v1393_v18  ;;  %v1007_v18 = vsel %vm843_vm0, %v1401_v26, 0.0  ;;  %v1037_v37 = vsel %vm843_vm0, %v594_v28, 0.0 }
  0xa1   :  { %v962_v59 = vadd.f32 %v961_v8, %v960_v47 }
  0xa3   :  { %v964_v9 = vadd.f32 %v963_v41, %v962_v59  ;;  %v526_v41 = vcombine.high %v1396_v20, %v1396_v20  ;;  %v1001_v59 = vsel %vm843_vm0, %v510_v40, 0.0  ;;  %v1011_v20 = vsel %vm843_vm0, %v1404_v27, 0.0 }
  0xa5   :  { %v966_v7 = vadd.f32 %v965_v30, %v964_v9  ;;  %v527_v9 = vcombine.high %v1401_v26, %v1401_v26  ;;  %v1015_v26 = vsel %vm843_vm0, %v1409_v29, 0.0  ;;  %v1023_v29 = vsel %vm843_vm0, %v1419_v43, 0.0 }
  0xa7   :  { %v968_v31 = vadd.f32 %v967_v49, %v966_v7  ;;  %v1005_v49 = vsel %vm843_vm0, %v526_v41, 0.0 }
  0xa9   :  { %v970_v32 = vadd.f32 %v969_v44, %v968_v31  ;;  %v543_v44 = vcombine.high %v1404_v27, %v1404_v27  ;;  %v1009_v31 = vsel %vm843_vm0, %v527_v9, 0.0  ;;  %v1019_v27 = vsel %vm843_vm0, %v1414_v60, 0.0 }
  0xaa   :  { %v629_v9 = vcombine.high %v1457_v15, %v1457_v15 }
  0xab   :  { %v972_v61 = vadd.f32 %v971_v46, %v970_v32 }
  0xad   :  { %v974_v34 = vadd.f32 %v973_v36, %v972_v61  ;;  %v1013_v36 = vsel %vm843_vm0, %v543_v44, 0.0  ;;  %v1057_v44 = vsel %vm843_vm0, %v629_v9, 0.0 }
  0xaf   :  { %v976_v21 = vadd.f32 %v975_v56, %v974_v34  ;;  %v560_v34 = vcombine.high %v1414_v60, %v1414_v60  ;;  %v1027_v60 = vsel %vm843_vm0, %v1422_v0, 0.0 }
  0xb1   :  { %v978_v6 = vadd.f32 %v977_v54, %v976_v21 }
  0xb3   :  { %v980_v51 = vadd.f32 %v979_v48, %v978_v6  ;;  %v561_v48 = vcombine.high %v1419_v43, %v1419_v43  ;;  %v1021_v6 = vsel %vm843_vm0, %v560_v34, 0.0  ;;  %v1031_v43 = vsel %vm843_vm0, %v1425_v50, 0.0 }
  0xb5   :  { %v982_v12 = vadd.f32 %v981_v33, %v980_v51  ;;  %v577_v51 = vcombine.high %v1422_v0, %v1422_v0  ;;  %v1035_v0 = vsel %vm843_vm0, %v1428_v1, 0.0  ;;  %v1043_v1 = vsel %vm843_vm0, %v1436_v55, 0.0 }
  0xb7   :  { %v984_v5 = vadd.f32 %v983_v62, %v982_v12  ;;  %v1025_v62 = vsel %vm843_vm0, %v561_v48, 0.0 }
  0xb9   :  { %v986_v57 = vadd.f32 %v985_v38, %v984_v5  ;;  %v578_v38 = vcombine.high %v1425_v50, %v1425_v50  ;;  %v1029_v5 = vsel %vm843_vm0, %v577_v51, 0.0  ;;  %v1039_v50 = vsel %vm843_vm0, %v1433_v2, 0.0 }
  0xbb   :  { %v988_v39 = vadd.f32 %v987_v63, %v986_v57 }
  0xbd   :  { %v990_v23 = vadd.f32 %v989_v58, %v988_v39  ;;  %v1033_v58 = vsel %vm843_vm0, %v578_v38, 0.0  ;;  %v1835_v38 = vld [vmem:[#allocation6_spill] sm:$0xff] }
  0xbf   :  { %v992_v16 = vadd.f32 %v991_v52, %v990_v23  ;;  %v595_v23 = vcombine.high %v1433_v2, %v1433_v2  ;;  %v1047_v2 = vsel %vm843_vm0, %v1442_v3, 0.0 }
  0xc1   :  { %v994_v42 = vadd.f32 %v993_v45, %v992_v16 }
  0xc3   :  { %v996_v8 = vadd.f32 %v995_v10, %v994_v42  ;;  %v611_v10 = vcombine.high %v1436_v55, %v1436_v55  ;;  %v1041_v42 = vsel %vm843_vm0, %v595_v23, 0.0  ;;  %v1051_v55 = vsel %vm843_vm0, %v1447_v4, 0.0 }
  0xc5   :  { %v998_v47 = vadd.f32 %v997_v22, %v996_v8  ;;  %v612_v8 = vcombine.high %v1442_v3, %v1442_v3  ;;  %v1055_v3 = vsel %vm843_vm0, %v1457_v15, 0.0 }
  0xc7   :  { %v1000_v11 = vadd.f32 %v999_v13, %v998_v47  ;;  %v1045_v13 = vsel %vm843_vm0, %v611_v10, 0.0 }
  0xc9   :  { %v1002_v30 = vadd.f32 %v1001_v59, %v1000_v11  ;;  %v628_v59 = vcombine.high %v1447_v4, %v1447_v4  ;;  %v1049_v11 = vsel %vm843_vm0, %v612_v8, 0.0  ;;  %v1059_v4 = vsel %vm843_vm0, %v1460_v17, 0.0 }
  0xcb   :  { %v1004_v7 = vadd.f32 %v1003_v14, %v1002_v30 }
  0xcd   :  { %v1006_v24 = vadd.f32 %v1005_v49, %v1004_v7  ;;  %v1053_v49 = vsel %vm843_vm0, %v628_v59, 0.0 }
  0xcf   :  { %v1008_v46 = vadd.f32 %v1007_v18, %v1006_v24  ;;  %v645_v24 = vcombine.high %v1460_v17, %v1460_v17 }
  0xd1   :  { %v1010_v32 = vadd.f32 %v1009_v31, %v1008_v46  ;;  %v1061_v19 = vsel %vm843_vm0, %v645_v24, 0.0 }
  0xd3   :  { %v1012_v61 = vadd.f32 %v1011_v20, %v1010_v32  ;;  %v1831_v20 = vld [vmem:[#allocation2_spill] sm:$0xff] }
  0xd4   :  { %v646_v32 = vcombine.high %v1831_v20, %v1831_v20  ;;  %v1063_v15 = vsel %vm843_vm0, %v1831_v20, 0.0 }
  0xd5   :  { %v1014_v56 = vadd.f32 %v1013_v36, %v1012_v61 }
  0xd6   :  { %v1065_v34 = vsel %vm843_vm0, %v646_v32, 0.0 }
  0xd7   :  { %v1016_v54 = vadd.f32 %v1015_v26, %v1014_v56  ;;  %v1832_v26 = vld [vmem:[#allocation3_spill] sm:$0xff] }
  0xd8   :  { %v662_v56 = vcombine.high %v1832_v26, %v1832_v26  ;;  %v1067_v17 = vsel %vm843_vm0, %v1832_v26, 0.0 }
  0xd9   :  { %v1018_v21 = vadd.f32 %v1017_v53, %v1016_v54 }
  0xda   :  { %v1069_v48 = vsel %vm843_vm0, %v662_v56, 0.0 }
  0xdb   :  { %v1020_v35 = vadd.f32 %v1019_v27, %v1018_v21  ;;  %v1833_v27 = vld [vmem:[#allocation4_spill] sm:$0xff] }
  0xdc   :  { %v663_v21 = vcombine.high %v1833_v27, %v1833_v27 }
  0xdd   :  { %v1022_v33 = vadd.f32 %v1021_v6, %v1020_v35  ;;  %v1071_v35 = vsel %vm843_vm0, %v1833_v27, 0.0 }
  0xdf   :  { %v1024_v12 = vadd.f32 %v1023_v29, %v1022_v33  ;;  %v1834_v33 = vld [vmem:[#allocation5_spill] sm:$0xff] }
  0xe0   :  { %v679_v51 = vcombine.high %v1834_v33, %v1834_v33 }
  0xe1   :  { %v1026_v25 = vadd.f32 %v1025_v62, %v1024_v12  ;;  %v1073_v62 = vsel %vm843_vm0, %v663_v21, 0.0 }
  0xe3   :  { %v1028_v63 = vadd.f32 %v1027_v60, %v1026_v25  ;;  %v1075_v60 = vsel %vm843_vm0, %v1834_v33, 0.0 }
  0xe5   :  { %v1030_v57 = vadd.f32 %v1029_v5, %v1028_v63  ;;  %v680_v5 = vcombine.high %v1835_v38, %v1835_v38  ;;  %v1077_v63 = vsel %vm843_vm0, %v679_v51, 0.0 }
  0xe7   :  { %v1032_v39 = vadd.f32 %v1031_v43, %v1030_v57  ;;  %v1079_v57 = vsel %vm843_vm0, %v1835_v38, 0.0 }
  0xe9   :  { %v1034_v52 = vadd.f32 %v1033_v58, %v1032_v39  ;;  %v1836_v58 = vld [vmem:[#allocation7_spill] sm:$0xff] }
  0xea   :  { %v696_v39 = vcombine.high %v1836_v58, %v1836_v58  ;;  %v1083_v23 = vsel %vm843_vm0, %v1836_v58, 0.0 }
  0xeb   :  { %v1036_v45 = vadd.f32 %v1035_v0, %v1034_v52  ;;  %v1081_v0 = vsel %vm843_vm0, %v680_v5, 0.0 }
  0xed   :  { %v1038_v16 = vadd.f32 %v1037_v37, %v1036_v45  ;;  %v1837_v45 = vld [vmem:[#allocation8_spill] sm:$0xff] }
  0xef   :  { %v1040_v40 = vadd.f32 %v1039_v50, %v1038_v16  ;;  %v697_v50 = vcombine.high %v1837_v45, %v1837_v45  ;;  %v1085_v16 = vsel %vm843_vm0, %v696_v39, 0.0 }
  0xf1   :  { %v1042_v22 = vadd.f32 %v1041_v42, %v1040_v40  ;;  %v1087_v42 = vsel %vm843_vm0, %v1837_v45, 0.0  ;;  %v1089_v8 = vsel %vm843_vm0, %v697_v50, 0.0 }
  0xf3   :  { %v1044_v47 = vadd.f32 %v1043_v1, %v1042_v22  ;;  %v1838_v1 = vld [vmem:[#allocation9_spill] sm:$0xff] }
  0xf4   :  { %v713_v22 = vcombine.high %v1838_v1, %v1838_v1 }
  0xf5   :  { %v1046_v41 = vadd.f32 %v1045_v13, %v1044_v47  ;;  %v1091_v47 = vsel %vm843_vm0, %v1838_v1, 0.0 }
  0xf7   :  { %v1048_v14 = vadd.f32 %v1047_v2, %v1046_v41  ;;  %v1839_v41 = vld [vmem:[#allocation10_spill] sm:$0xff] }
  0xf8   :  { %v714_v59 = vcombine.high %v1839_v41, %v1839_v41 }
  0xf9   :  { %v1050_v30 = vadd.f32 %v1049_v11, %v1048_v14  ;;  %v1093_v11 = vsel %vm843_vm0, %v713_v22, 0.0 }
  0xfa   :  { %v1097_v9 = vsel %vm843_vm0, %v714_v59, 0.0 }
  0xfb   :  { %v1052_v7 = vadd.f32 %v1051_v55, %v1050_v30  ;;  %v1095_v55 = vsel %vm843_vm0, %v1839_v41, 0.0 }
  0xfd   :  { %v1054_v18 = vadd.f32 %v1053_v49, %v1052_v7 }
  0xff   :  { %v1056_v31 = vadd.f32 %v1055_v3, %v1054_v18 }
 0x101   :  { %v1058_v46 = vadd.f32 %v1057_v44, %v1056_v31 }
 0x103   :  { %v1060_v36 = vadd.f32 %v1059_v4, %v1058_v46 }
 0x105   :  { %v1062_v61 = vadd.f32 %v1061_v19, %v1060_v36 }
 0x107   :  { %v1064_v53 = vadd.f32 %v1063_v15, %v1062_v61 }
 0x109   :  { %v1066_v54 = vadd.f32 %v1065_v34, %v1064_v53 }
 0x10b   :  { %v1068_v6 = vadd.f32 %v1067_v17, %v1066_v54 }
 0x10d   :  { %v1070_v29 = vadd.f32 %v1069_v48, %v1068_v6 }
 0x10f   :  { %v1072_v12 = vadd.f32 %v1071_v35, %v1070_v29 }
 0x111   :  { %v1074_v25 = vadd.f32 %v1073_v62, %v1072_v12 }
 0x113   :  { %v1076_v43 = vadd.f32 %v1075_v60, %v1074_v25 }
 0x115   :  { %v1078_v28 = vadd.f32 %v1077_v63, %v1076_v43 }
 0x117   :  { %v1080_v52 = vadd.f32 %v1079_v57, %v1078_v28 }
 0x119   :  { %v1082_v37 = vadd.f32 %v1081_v0, %v1080_v52 }
 0x11b   :  { %v1084_v10 = vadd.f32 %v1083_v23, %v1082_v37 }
 0x11d   :  { %v1086_v40 = vadd.f32 %v1085_v16, %v1084_v10 }
 0x11f   :  { %v1088_v13 = vadd.f32 %v1087_v42, %v1086_v40 }
 0x121   :  { %v1090_v2 = vadd.f32 %v1089_v8, %v1088_v13 }
 0x123   :  { %v1092_v14 = vadd.f32 %v1091_v47, %v1090_v2 }
 0x125   :  { %v1094_v30 = vadd.f32 %v1093_v11, %v1092_v14 }
 0x127   :  { %v1096_v49 = vadd.f32 %v1095_v55, %v1094_v30 }
 0x129   :  { %v1098_v7 = vadd.f32 %v1097_v9, %v1096_v49 }
 0x12b   :  { %1099 = vadd.xlane.f32.xlu0 %v1098_v7 }
 0x1b8   :  { %v1100_v3 = vpop.xlane.xlu0 %1099 }
 0x1b9   :  { %v1101_v18 = vrot.slane %v1100_v3, 4 }
 0x1bb   :  { %v1102_v24 = vadd.f32 %v1101_v18, %v1100_v3 }
 0x1bd   :  { %v1103_v44 = vrot.slane %v1102_v24, 2 }
 0x1bf   :  { %v1104_v31 = vadd.f32 %v1103_v44, %v1102_v24 }
 0x1c1   :  { %v1105_v4 = vrot.slane %v1104_v31, 1 }
 0x1c3   :  { %v1106_v46 = vadd.f32 %v1105_v4, %v1104_v31 }
 0x1c5   :  { %1114 = vpush %v1106_v46 }
 0x1f6   :  { %s1115_s0 = spop %1114 }
 0x1f7   :  { %v1108_v20 = vstv %s1115_s0 }
 0x1f8   :  { %1109 = vst [vmem:[%s1812_s2] sm:$0x1] %v1108_v20 }

// kernel: loss_network_forward.19
= control target key start
LH: loop header
LB: loop body
LE: loop exit
PB: predicated region body
PF: predicated region fallthrough
CT: control target
= control target key end

     0   :  { %s1047_s12 = smov 0   ;;  %s1049_s13 = smov 0   ;;  %s1301_s0 = inlined_call_operand.vmem [shape: f32[128,768], index: 0, kind: input, shape index: {}]   ;;  %s1302_s1 = inlined_call_operand.vmem [shape: f32[768,128], index: 1, kind: input, shape index: {}]   ;;  %s1303_s2 = inlined_call_operand.vmem [shape: f32[1,128], index: 2, kind: input, shape index: {}]   ;;  %s1304_s3 = inlined_call_operand.vmem [shape: f32[128,128], index: 3, kind: output, shape index: {}]  }
   0x1   :  { %s1051_s14 = smov 0   ;;  %s1053_s15 = smov 0  }
   0x2   :  { %s1055_s16 = smov 0  }
   0x3 LB: > { %s25_s17 = sadd.s32 1, %s1020_s15  ;;  %p48_p1 = scmp.ne.s32.totalorder %s1012_s13, %s1008_s12  ;;  %s1024_s16 = sphi %s1055_s16, %s13_s16   ;;  %s1020_s15 = sphi %s1053_s15, %s1308_s15   ;;  %s1016_s14 = sphi %s1051_s14, %s1307_s14   ;;  %s1012_s13 = sphi %s1049_s13, %s1306_s13   ;;  %s1008_s12 = sphi %s1047_s12, %s1305_s12  }
   0x4   : > { %p26_p0 = scmp.ge.s32.totalorder %s25_s17, 3  ;;  %p49_p2 = scmp.eq.s32.totalorder %s1024_s16, 0 }
   0x5   : > { %s41_s19 = sadd.s32 1, %s1012_s13  ;;  %p801_p5 = scmp.ge.s32.totalorder %s1024_s16, 3 }
   0x6   : > { %s1310_s17 = smov (%p26_p0, %s25_s17), 0  ;;  %p50_p3 = por %p49_p2, %p48_p1 }
   0x7   : > { %s37_s18 = ssub.s32 %s1020_s15, %s1310_s17  ;;  %162 = sbr.rel (%p801_p5) target bundleno = 34 (0x22), region = 20 }
   0x8   : > { %p39_p4 = scmp.eq.s32.totalorder %s37_s18, 0 }
   0xa   : > { %s1082_s20 = scalar_select %p39_p4, %s1012_s13, %s41_s19  }
   0xe   : > { %165 = sbr.rel (!%p50_p3) target bundleno = 34 (0x22), region = 24  ;;  %s167_s21 = sand.u32 (%p50_p3), 1, %s1012_s13  }
   0xf   : > { %s816_s22 = sshll.u32 (%p50_p3), %s1020_s15, 4  ;;  %s802_s23 = sshll.u32 (%p50_p3), %s167_s21, 8 }
  0x10   : > { %s1090_s26 = scalar_lea.vmem (%p50_p3), %s1301_s0, %s816_s22  ;;  %s1095_s27 = scalar_lea.vmem (%p50_p3), [#allocation3], %s802_s23 }
  0x11   : > { %v188_v0 = vld [vmem:[%s1090_s26] sm:$0xff] (%p50_p3)  ;;  %v190_v1 = vld [vmem:[%s1090_s26 + $0x8] sm:$0xff] (%p50_p3)  ;;  %v192_v2 = vld [vmem:[%s1090_s26 + $0x30] sm:$0xff] (%p50_p3) }
  0x12   : > { %189 = vst [vmem:[%s1095_s27] sm:$0xff] (%p50_p3), %v188_v0  ;;  %191 = vst [vmem:[%s1095_s27 + $0x8] sm:$0xff] (%p50_p3), %v190_v1  ;;  %v194_v3 = vld [vmem:[%s1090_s26 + $0x38] sm:$0xff] (%p50_p3)  ;;  %v196_v4 = vld [vmem:[%s1090_s26 + $0x60] sm:$0xff] (%p50_p3) }
  0x13   : > { %193 = vst [vmem:[%s1095_s27 + $0x10] sm:$0xff] (%p50_p3), %v192_v2  ;;  %v198_v5 = vld [vmem:[%s1090_s26 + $0x68] sm:$0xff] (%p50_p3)  ;;  %195 = vst [vmem:[%s1095_s27 + $0x18] sm:$0xff] (%p50_p3), %v194_v3  ;;  %v200_v6 = vld [vmem:[%s1090_s26 + $0x90] sm:$0xff] (%p50_p3) }
  0x14   : > { %197 = vst [vmem:[%s1095_s27 + $0x20] sm:$0xff] (%p50_p3), %v196_v4  ;;  %199 = vst [vmem:[%s1095_s27 + $0x28] sm:$0xff] (%p50_p3), %v198_v5  ;;  %v202_v7 = vld [vmem:[%s1090_s26 + $0x98] sm:$0xff] (%p50_p3)  ;;  %v204_v8 = vld [vmem:[%s1090_s26 + $0xc0] sm:$0xff] (%p50_p3) }
  0x15   : > { %201 = vst [vmem:[%s1095_s27 + $0x30] sm:$0xff] %v200_v6  ;;  %203 = vst [vmem:[%s1095_s27 + $0x38] sm:$0xff] %v202_v7  ;;  %v206_v9 = vld [vmem:[%s1090_s26 + $0xc8] sm:$0xff]  ;;  %v208_v10 = vld [vmem:[%s1090_s26 + $0xf0] sm:$0xff] }
  0x16   : > { %205 = vst [vmem:[%s1095_s27 + $0x40] sm:$0xff] %v204_v8  ;;  %v210_v11 = vld [vmem:[%s1090_s26 + $0xf8] sm:$0xff]  ;;  %207 = vst [vmem:[%s1095_s27 + $0x48] sm:$0xff] %v206_v9  ;;  %v212_v12 = vld [vmem:[%s1090_s26 + $0x120] sm:$0xff] }
  0x17   : > { %209 = vst [vmem:[%s1095_s27 + $0x50] sm:$0xff] %v208_v10  ;;  %211 = vst [vmem:[%s1095_s27 + $0x58] sm:$0xff] %v210_v11  ;;  %v214_v13 = vld [vmem:[%s1090_s26 + $0x128] sm:$0xff]  ;;  %v216_v14 = vld [vmem:[%s1090_s26 + $0x150] sm:$0xff] }
  0x18   : > { %213 = vst [vmem:[%s1095_s27 + $0x60] sm:$0xff] %v212_v12  ;;  %215 = vst [vmem:[%s1095_s27 + $0x68] sm:$0xff] %v214_v13  ;;  %v218_v15 = vld [vmem:[%s1090_s26 + $0x158] sm:$0xff]  ;;  %v220_v16 = vld [vmem:[%s1090_s26 + $0x180] sm:$0xff] }
  0x19   : > { %217 = vst [vmem:[%s1095_s27 + $0x70] sm:$0xff] %v216_v14  ;;  %v222_v17 = vld [vmem:[%s1090_s26 + $0x188] sm:$0xff]  ;;  %219 = vst [vmem:[%s1095_s27 + $0x78] sm:$0xff] %v218_v15  ;;  %v224_v18 = vld [vmem:[%s1090_s26 + $0x1b0] sm:$0xff] }
  0x1a   : > { %221 = vst [vmem:[%s1095_s27 + $0x80] sm:$0xff] %v220_v16  ;;  %223 = vst [vmem:[%s1095_s27 + $0x88] sm:$0xff] %v222_v17  ;;  %v226_v19 = vld [vmem:[%s1090_s26 + $0x1b8] sm:$0xff]  ;;  %v228_v20 = vld [vmem:[%s1090_s26 + $0x1e0] sm:$0xff] }
  0x1b   : > { %225 = vst [vmem:[%s1095_s27 + $0x90] sm:$0xff] %v224_v18  ;;  %227 = vst [vmem:[%s1095_s27 + $0x98] sm:$0xff] %v226_v19  ;;  %v230_v21 = vld [vmem:[%s1090_s26 + $0x1e8] sm:$0xff]  ;;  %v232_v22 = vld [vmem:[%s1090_s26 + $0x210] sm:$0xff] }
  0x1c   : > { %229 = vst [vmem:[%s1095_s27 + $0xa0] sm:$0xff] %v228_v20  ;;  %v234_v23 = vld [vmem:[%s1090_s26 + $0x218] sm:$0xff]  ;;  %231 = vst [vmem:[%s1095_s27 + $0xa8] sm:$0xff] %v230_v21  ;;  %v236_v24 = vld [vmem:[%s1090_s26 + $0x240] sm:$0xff] }
  0x1d   : > { %233 = vst [vmem:[%s1095_s27 + $0xb0] sm:$0xff] %v232_v22  ;;  %235 = vst [vmem:[%s1095_s27 + $0xb8] sm:$0xff] %v234_v23  ;;  %v238_v25 = vld [vmem:[%s1090_s26 + $0x248] sm:$0xff]  ;;  %v240_v26 = vld [vmem:[%s1090_s26 + $0x270] sm:$0xff] }
  0x1e   : > { %237 = vst [vmem:[%s1095_s27 + $0xc0] sm:$0xff] %v236_v24  ;;  %239 = vst [vmem:[%s1095_s27 + $0xc8] sm:$0xff] %v238_v25  ;;  %v242_v27 = vld [vmem:[%s1090_s26 + $0x278] sm:$0xff]  ;;  %v244_v28 = vld [vmem:[%s1090_s26 + $0x2a0] sm:$0xff] }
  0x1f   : > { %241 = vst [vmem:[%s1095_s27 + $0xd0] sm:$0xff] %v240_v26  ;;  %v246_v29 = vld [vmem:[%s1090_s26 + $0x2a8] sm:$0xff]  ;;  %243 = vst [vmem:[%s1095_s27 + $0xd8] sm:$0xff] %v242_v27  ;;  %v248_v30 = vld [vmem:[%s1090_s26 + $0x2d0] sm:$0xff] }
  0x20   : > { %245 = vst [vmem:[%s1095_s27 + $0xe0] sm:$0xff] %v244_v28  ;;  %247 = vst [vmem:[%s1095_s27 + $0xe8] sm:$0xff] %v246_v29  ;;  %v250_v31 = vld [vmem:[%s1090_s26 + $0x2d8] sm:$0xff] }
  0x21   : > { %249 = vst [vmem:[%s1095_s27 + $0xf0] sm:$0xff] %v248_v30  ;;  %251 = vst [vmem:[%s1095_s27 + $0xf8] sm:$0xff] %v250_v31 }
  0x22 PF: > { %p805_p6 = scmp.ge.s32.totalorder %s1024_s16, 1  ;;  %p268_p7 = scmp.lt.s32.totalorder %s1024_s16, 4 }
  0x24   : > { %p269_p8 = pnand %p805_p6, %p268_p7 }
  0x25   : > { %s275_s28 = sand.u32 (!%p269_p8), 1, %s1008_s12   ;;  %s807_s29 = sshll.u32 (!%p269_p8), %s1016_s14, 5 }
  0x26   : > { %272 = sbr.rel (%p269_p8) target bundleno = 349 (0x15d), region = 51  ;;  %s806_s30 = sshll.u32 (!%p269_p8), %s275_s28, 8 }
  0x27   : > { %p315_p9 = scmp.lt.s32.totalorder (!%p269_p8), %s807_s29, 95  ;;  %s1167_s8 = scalar_lea.vmem (!%p269_p8), [#allocation3], %s806_s30 }
  0x28   : > { %p809_p10 = scmp.ne.s32.totalorder (!%p269_p8), %s1016_s14, 0 }
  0x2d   : > { %s1312_s29 = smov (!%p315_p9, %s807_s29), 95  ;;  %338 = sbr.rel (%p809_p10) target bundleno = 55 (0x37), region = 59 }
  0x2e   : > { %s808_s4 = sshll.u32 %s1312_s29, 3  ;;  %v1026_v32 = vmov (!%p809_p10), 0.0  }
  0x2f   : > { %s1165_s7 = scalar_lea.vmem %s1302_s1, %s808_s4  ;;  %339 = vst [vmem:[#allocation2] sm:$0xff] (!%p809_p10), %v1026_v32  ;;  %340 = vst [vmem:[#allocation2 + $0x8] sm:$0xff] (!%p809_p10), %v1026_v32 }
  0x30   : > { %341 = vst [vmem:[#allocation2 + $0x10] sm:$0xff] (!%p809_p10), %v1026_v32  ;;  %342 = vst [vmem:[#allocation2 + $0x18] sm:$0xff] (!%p809_p10), %v1026_v32 }
  0x31   : > { %343 = vst [vmem:[#allocation2 + $0x20] sm:$0xff] (!%p809_p10), %v1026_v32  ;;  %344 = vst [vmem:[#allocation2 + $0x28] sm:$0xff] (!%p809_p10), %v1026_v32 }
  0x32   : > { %345 = vst [vmem:[#allocation2 + $0x30] sm:$0xff] (!%p809_p10), %v1026_v32  ;;  %346 = vst [vmem:[#allocation2 + $0x38] sm:$0xff] (!%p809_p10), %v1026_v32 }
  0x33   : > { %347 = vst [vmem:[#allocation2 + $0x40] sm:$0xff] (!%p809_p10), %v1026_v32  ;;  %348 = vst [vmem:[#allocation2 + $0x48] sm:$0xff] (!%p809_p10), %v1026_v32 }
  0x34   : > { %349 = vst [vmem:[#allocation2 + $0x50] sm:$0xff] %v1026_v32  ;;  %350 = vst [vmem:[#allocation2 + $0x58] sm:$0xff] %v1026_v32 }
  0x35   : > { %351 = vst [vmem:[#allocation2 + $0x60] sm:$0xff] %v1026_v32  ;;  %352 = vst [vmem:[#allocation2 + $0x68] sm:$0xff] %v1026_v32 }
  0x36   : > { %353 = vst [vmem:[#allocation2 + $0x70] sm:$0xff] %v1026_v32  ;;  %354 = vst [vmem:[#allocation2 + $0x78] sm:$0xff] %v1026_v32 }
  0x37 PF: > { %v419_v33 = vld [vmem:[%s1165_s7 + $0x80] sm:$0xff]  ;;  %v420_v34 = vld [vmem:[%s1165_s7 + $0x88] sm:$0xff]  ;;  %v421_v38 = vld [vmem:[%s1165_s7 + $0x90] sm:$0xff]  ;;  %p810_p11 = scmp.ne.s32.totalorder %s1016_s14, 2 }
  0x38   : > { %v403_v35 = vld [vmem:[%s1165_s7] sm:$0xff]  ;;  %v897_v36 = vpack.c.bf16 %v420_v34, %v419_v33  ;;  %v404_v37 = vld [vmem:[%s1165_s7 + $0x8] sm:$0xff]  ;;  %v422_v39 = vld [vmem:[%s1165_s7 + $0x98] sm:$0xff] }
  0x39   : > { %v899_v40 = vpack.c.bf16 %v404_v37, %v403_v35  ;;  %v901_v41 = vpack.c.bf16 %v422_v39, %v421_v38  ;;  %v405_v42 = vld [vmem:[%s1165_s7 + $0x10] sm:$0xff]  ;;  %v406_v43 = vld [vmem:[%s1165_s7 + $0x18] sm:$0xff]  ;;  %v423_v44 = vld [vmem:[%s1165_s7 + $0xa0] sm:$0xff] }
  0x3a   : > { %898 = vmatprep.subr.bf16.mxu0 %v897_v36  ;;  %929 = vmatprep.subr.bf16.mxu1 %v897_v36  ;;  %v424_v45 = vld [vmem:[%s1165_s7 + $0xa8] sm:$0xff]  ;;  %v903_v46 = vpack.c.bf16 %v406_v43, %v405_v42  ;;  %v407_v48 = vld [vmem:[%s1165_s7 + $0x20] sm:$0xff]  ;;  %v425_v50 = vld [vmem:[%s1165_s7 + $0xb0] sm:$0xff] }
  0x3b   : > { %900 = vmatpush3.bf16.msra.mxu0 %v899_v40  ;;  %937 = vmatpush3.bf16.msra.mxu1 %v899_v40  ;;  %v905_v47 = vpack.c.bf16 %v424_v45, %v423_v44  ;;  %v408_v49 = vld [vmem:[%s1165_s7 + $0x28] sm:$0xff]  ;;  %v426_v51 = vld [vmem:[%s1165_s7 + $0xb8] sm:$0xff]  ;;  %v409_v54 = vld [vmem:[%s1165_s7 + $0x30] sm:$0xff] }
  0x3c   : > { %902 = vmatprep.subr.bf16.mxu0 %v901_v41  ;;  %930 = vmatprep.subr.bf16.mxu1 %v901_v41  ;;  %v907_v52 = vpack.c.bf16 %v408_v49, %v407_v48  ;;  %v909_v53 = vpack.c.bf16 %v426_v51, %v425_v50  ;;  %v410_v55 = vld [vmem:[%s1165_s7 + $0x38] sm:$0xff]  ;;  %v427_v56 = vld [vmem:[%s1165_s7 + $0xc0] sm:$0xff]  ;;  %v428_v57 = vld [vmem:[%s1165_s7 + $0xc8] sm:$0xff] }
  0x3d   : > { %v372_v58 = vld [vmem:[%s1167_s8 + $0x8] sm:$0xff]  ;;  %v911_v60 = vpack.c.bf16 %v410_v55, %v409_v54  ;;  %v913_v61 = vpack.c.bf16 %v428_v57, %v427_v56  ;;  %v411_v62 = vld [vmem:[%s1165_s7 + $0x40] sm:$0xff]  ;;  %v429_v0 = vld [vmem:[%s1165_s7 + $0xd0] sm:$0xff] }
  0x3e   : > { %499 = vmatprep.mubr.f32.mxu0 %v372_v58  ;;  %v388_v59 = vld [vmem:[%s1167_s8 + $0x88] sm:$0xff]  ;;  %v430_v1 = vld [vmem:[%s1165_s7 + $0xd8] sm:$0xff]  ;;  %v413_v4 = vld [vmem:[%s1165_s7 + $0x50] sm:$0xff] }
  0x3f   : > { %904 = vmatpush3.bf16.msra.mxu0 %v903_v46  ;;  %938 = vmatpush3.bf16.msra.mxu1 %v903_v46  ;;  %v412_v63 = vld [vmem:[%s1165_s7 + $0x48] sm:$0xff]  ;;  %v917_v3 = vpack.c.bf16 %v430_v1, %v429_v0  ;;  %v414_v5 = vld [vmem:[%s1165_s7 + $0x58] sm:$0xff]  ;;  %v431_v6 = vld [vmem:[%s1165_s7 + $0xe0] sm:$0xff] }
  0x40   : > { %906 = vmatprep.subr.bf16.mxu0 %v905_v47  ;;  %931 = vmatprep.subr.bf16.mxu1 %v905_v47  ;;  %v915_v2 = vpack.c.bf16 %v412_v63, %v411_v62  ;;  %v432_v7 = vld [vmem:[%s1165_s7 + $0xe8] sm:$0xff]  ;;  %v919_v8 = vpack.c.bf16 %v414_v5, %v413_v4  ;;  %v415_v10 = vld [vmem:[%s1165_s7 + $0x60] sm:$0xff]  ;;  %v433_v12 = vld [vmem:[%s1165_s7 + $0xf0] sm:$0xff] }
  0x41   : > { %539 = vmatprep.mubr.f32.mxu1 %v388_v59  ;;  %v921_v9 = vpack.c.bf16 %v432_v7, %v431_v6  ;;  %v416_v11 = vld [vmem:[%s1165_s7 + $0x68] sm:$0xff]  ;;  %v434_v13 = vld [vmem:[%s1165_s7 + $0xf8] sm:$0xff]  ;;  %v417_v16 = vld [vmem:[%s1165_s7 + $0x70] sm:$0xff] }
  0x42   : > { %v923_v14 = vpack.c.bf16 %v416_v11, %v415_v10  ;;  %v925_v15 = vpack.c.bf16 %v434_v13, %v433_v12  ;;  %v418_v17 = vld [vmem:[%s1165_s7 + $0x78] sm:$0xff]  ;;  %v371_v19 = vld [vmem:[%s1167_s8] sm:$0xff]  ;;  %v373_v23 = vld [vmem:[%s1167_s8 + $0x10] sm:$0xff] }
  0x43   : > { %908 = vmatpush3.bf16.msra.mxu0 %v907_v52  ;;  %939 = vmatpush3.bf16.msra.mxu1 %v907_v52  ;;  %v927_v18 = vpack.c.bf16 %v418_v17, %v417_v16  ;;  %v387_v20 = vld [vmem:[%s1167_s8 + $0x80] sm:$0xff]  ;;  %v374_v21 = vld [vmem:[%s1167_s8 + $0x18] sm:$0xff]  ;;  %v389_v24 = vld [vmem:[%s1167_s8 + $0x90] sm:$0xff] }
  0x44   : > { %910 = vmatprep.subr.bf16.mxu0 %v909_v53  ;;  %932 = vmatprep.subr.bf16.mxu1 %v909_v53  ;;  %v390_v22 = vld [vmem:[%s1167_s8 + $0x98] sm:$0xff]  ;;  %v376_v25 = vld [vmem:[%s1167_s8 + $0x28] sm:$0xff]  ;;  %v375_v27 = vld [vmem:[%s1167_s8 + $0x20] sm:$0xff] }
  0x45   : > { %v392_v26 = vld [vmem:[%s1167_s8 + $0xa8] sm:$0xff]  ;;  %v391_v28 = vld [vmem:[%s1167_s8 + $0xa0] sm:$0xff]  ;;  %v378_v29 = vld [vmem:[%s1167_s8 + $0x38] sm:$0xff] }
  0x46   : > { %v394_v30 = vld [vmem:[%s1167_s8 + $0xb8] sm:$0xff]  ;;  %v377_v31 = vld [vmem:[%s1167_s8 + $0x30] sm:$0xff]  ;;  %v380_v33 = vld [vmem:[%s1167_s8 + $0x48] sm:$0xff] }
  0x47   : > { %912 = vmatpush3.bf16.msra.mxu0 %v911_v60  ;;  %940 = vmatpush3.bf16.msra.mxu1 %v911_v60  ;;  %v393_v32 = vld [vmem:[%s1167_s8 + $0xb0] sm:$0xff]  ;;  %v396_v34 = vld [vmem:[%s1167_s8 + $0xc8] sm:$0xff]  ;;  %v379_v35 = vld [vmem:[%s1167_s8 + $0x40] sm:$0xff] }
  0x48   : > { %914 = vmatprep.subr.bf16.mxu0 %v913_v61  ;;  %933 = vmatprep.subr.bf16.mxu1 %v913_v61  ;;  %v395_v36 = vld [vmem:[%s1167_s8 + $0xc0] sm:$0xff]  ;;  %v382_v37 = vld [vmem:[%s1167_s8 + $0x58] sm:$0xff]  ;;  %v381_v39 = vld [vmem:[%s1167_s8 + $0x50] sm:$0xff] }
  0x49   : > { %v398_v38 = vld [vmem:[%s1167_s8 + $0xd8] sm:$0xff]  ;;  %v397_v40 = vld [vmem:[%s1167_s8 + $0xd0] sm:$0xff]  ;;  %v384_v41 = vld [vmem:[%s1167_s8 + $0x68] sm:$0xff] }
  0x4a   : > { %v400_v42 = vld [vmem:[%s1167_s8 + $0xe8] sm:$0xff]  ;;  %v383_v43 = vld [vmem:[%s1167_s8 + $0x60] sm:$0xff]  ;;  %v386_v45 = vld [vmem:[%s1167_s8 + $0x78] sm:$0xff] }
  0x4b   : > { %916 = vmatpush3.bf16.msra.mxu0 %v915_v2  ;;  %941 = vmatpush3.bf16.msra.mxu1 %v915_v2  ;;  %v399_v44 = vld [vmem:[%s1167_s8 + $0xe0] sm:$0xff]  ;;  %v402_v46 = vld [vmem:[%s1167_s8 + $0xf8] sm:$0xff]  ;;  %v385_v47 = vld [vmem:[%s1167_s8 + $0x70] sm:$0xff] }
  0x4c   : > { %918 = vmatprep.subr.bf16.mxu0 %v917_v3  ;;  %934 = vmatprep.subr.bf16.mxu1 %v917_v3  ;;  %v401_v48 = vld [vmem:[%s1167_s8 + $0xf0] sm:$0xff]  ;;  %v355_v51 = vld [vmem:[#allocation2] sm:$0xff]  ;;  %v356_v61 = vld [vmem:[#allocation2 + $0x8] sm:$0xff] }
  0x4d   : > { %v363_v53 = vld [vmem:[#allocation2 + $0x40] sm:$0xff]  ;;  %v364_v63 = vld [vmem:[#allocation2 + $0x48] sm:$0xff]  ;;  %v357_v7 = vld [vmem:[#allocation2 + $0x10] sm:$0xff] }
  0x4e   : > { %v358_v17 = vld [vmem:[#allocation2 + $0x18] sm:$0xff] }
  0x4f   : > { %920 = vmatpush3.bf16.msra.mxu0 %v919_v8  ;;  %942 = vmatpush3.bf16.msra.mxu1 %v919_v8 }
  0x50   : > { %922 = vmatprep.subr.bf16.mxu0 %v921_v9  ;;  %935 = vmatprep.subr.bf16.mxu1 %v921_v9  ;;  %v365_v9 = vld [vmem:[#allocation2 + $0x50] sm:$0xff] }
  0x53   : > { %924 = vmatpush3.bf16.msra.mxu0 %v923_v14  ;;  %943 = vmatpush3.bf16.msra.mxu1 %v923_v14 }
  0x54   : > { %926 = vmatprep.subr.bf16.mxu0 %v925_v15  ;;  %936 = vmatprep.subr.bf16.mxu1 %v925_v15 }
  0x57   : > { %928 = vmatpush3.bf16.msra.mxu0 %v927_v18  ;;  %944 = vmatpush3.bf16.msra.mxu1 %v927_v18 }
  0x5a   : > { %500 = vmatmul.mubr.f32.vlgmr.msra.gmra.mrb[0].mxu0 %v371_v19  ;;  %540 = vmatmul.mubr.f32.vlgmr.msra.gmra.mrb[0].mxu1 %v387_v20  ;;  %v366_v19 = vld [vmem:[#allocation2 + $0x58] sm:$0xff] }
  0x5b   : > { %504 = vmatprep.mubr.f32.mxu0 %v374_v21  ;;  %544 = vmatprep.mubr.f32.mxu1 %v390_v22 }
  0x5e   : > { %505 = vmatmul.mubr.f32.gmra.mrb[2].mxu0 %v373_v23  ;;  %545 = vmatmul.mubr.f32.gmra.mrb[2].mxu1 %v389_v24 }
  0x5f   : > { %509 = vmatprep.mubr.f32.mxu0 %v376_v25  ;;  %549 = vmatprep.mubr.f32.mxu1 %v392_v26 }
  0x62   : > { %510 = vmatmul.mubr.f32.gmra.mrb[4].mxu0 %v375_v27  ;;  %550 = vmatmul.mubr.f32.gmra.mrb[4].mxu1 %v391_v28  ;;  %v359_v27 = vld [vmem:[#allocation2 + $0x20] sm:$0xff] }
  0x63   : > { %514 = vmatprep.mubr.f32.mxu0 %v378_v29  ;;  %554 = vmatprep.mubr.f32.mxu1 %v394_v30  ;;  %v367_v29 = vld [vmem:[#allocation2 + $0x60] sm:$0xff] }
  0x66   : > { %515 = vmatmul.mubr.f32.gmra.mrb[6].mxu0 %v377_v31  ;;  %555 = vmatmul.mubr.f32.gmra.mrb[6].mxu1 %v393_v32 }
  0x67   : > { %519 = vmatprep.mubr.f32.mxu0 %v380_v33  ;;  %559 = vmatprep.mubr.f32.mxu1 %v396_v34 }
  0x6a   : > { %520 = vmatmul.mubr.f32.gmra.mrb[8].mxu0 %v379_v35  ;;  %560 = vmatmul.mubr.f32.gmra.mrb[8].mxu1 %v395_v36 }
  0x6b   : > { %524 = vmatprep.mubr.f32.mxu0 %v382_v37  ;;  %564 = vmatprep.mubr.f32.mxu1 %v398_v38  ;;  %v360_v37 = vld [vmem:[#allocation2 + $0x28] sm:$0xff] }
  0x6e   : > { %525 = vmatmul.mubr.f32.gmra.mrb[10].mxu0 %v381_v39  ;;  %565 = vmatmul.mubr.f32.gmra.mrb[10].mxu1 %v397_v40  ;;  %v368_v39 = vld [vmem:[#allocation2 + $0x68] sm:$0xff] }
  0x6f   : > { %529 = vmatprep.mubr.f32.mxu0 %v384_v41  ;;  %569 = vmatprep.mubr.f32.mxu1 %v400_v42 }
  0x72   : > { %530 = vmatmul.mubr.f32.gmra.mrb[12].mxu0 %v383_v43  ;;  %570 = vmatmul.mubr.f32.gmra.mrb[12].mxu1 %v399_v44 }
  0x73   : > { %534 = vmatprep.mubr.f32.mxu0 %v386_v45  ;;  %574 = vmatprep.mubr.f32.mxu1 %v402_v46 }
  0x76   : > { %535 = vmatmul.mubr.f32.gmra.mrb[14].mxu0 %v385_v47  ;;  %575 = vmatmul.mubr.f32.gmra.mrb[14].mxu1 %v401_v48  ;;  %v361_v47 = vld [vmem:[#allocation2 + $0x30] sm:$0xff] }
 0x12d   : > { %v849_v49 = vpop.f32.mrb[0].mxu0  ;;  %v873_v50 = vpop.f32.mrb[0].mxu1 }
 0x12e   : > { %v850_v52 = vpop.f32.mrb[1].mxu0  ;;  %v874_v54 = vpop.f32.mrb[1].mxu1 }
 0x12f   : > { %v851_v55 = vadd.f32 %v850_v52, %v849_v49  ;;  %v875_v56 = vadd.f32 %v874_v54, %v873_v50  ;;  %v369_v49 = vld [vmem:[#allocation2 + $0x70] sm:$0xff] }
 0x131   : > { %v580_v57 = vadd.f32 %v851_v55, %v355_v51  ;;  %v588_v58 = vadd.f32 %v875_v56, %v363_v53  ;;  %v852_v59 = vpop.f32.mrb[2].mxu0  ;;  %v876_v60 = vpop.f32.mrb[2].mxu1 }
 0x132   : > { %v853_v62 = vpop.f32.mrb[3].mxu0  ;;  %v877_v0 = vpop.f32.mrb[3].mxu1 }
 0x133   : > { %596 = vst [vmem:[#allocation2] sm:$0xff] %v580_v57  ;;  %604 = vst [vmem:[#allocation2 + $0x40] sm:$0xff] %v588_v58  ;;  %v854_v1 = vadd.f32 %v853_v62, %v852_v59  ;;  %v878_v2 = vadd.f32 %v877_v0, %v876_v60  ;;  %v362_v57 = vld [vmem:[#allocation2 + $0x38] sm:$0xff] }
 0x134   : > { %v370_v59 = vld [vmem:[#allocation2 + $0x78] sm:$0xff] }
 0x135   : > { %v581_v3 = vadd.f32 %v854_v1, %v356_v61  ;;  %v589_v4 = vadd.f32 %v878_v2, %v364_v63  ;;  %v855_v5 = vpop.f32.mrb[4].mxu0  ;;  %v879_v6 = vpop.f32.mrb[4].mxu1  ;;  %v811_v2 = vld [vmem:[%s1303_s2] ss:$0 sm:$0xff] (!%p810_p11) }
 0x136   : > { %v856_v8 = vpop.f32.mrb[5].mxu0  ;;  %v880_v10 = vpop.f32.mrb[5].mxu1 }
 0x137   : > { %597 = vst [vmem:[#allocation2 + $0x8] sm:$0xff] %v581_v3  ;;  %605 = vst [vmem:[#allocation2 + $0x48] sm:$0xff] %v589_v4  ;;  %v857_v11 = vadd.f32 %v856_v8, %v855_v5  ;;  %v881_v12 = vadd.f32 %v880_v10, %v879_v6 }
 0x139   : > { %v582_v13 = vadd.f32 %v857_v11, %v357_v7  ;;  %v590_v14 = vadd.f32 %v881_v12, %v365_v9  ;;  %v858_v15 = vpop.f32.mrb[6].mxu0  ;;  %v882_v16 = vpop.f32.mrb[6].mxu1 }
 0x13a   : > { %v859_v18 = vpop.f32.mrb[7].mxu0  ;;  %v883_v20 = vpop.f32.mrb[7].mxu1  ;;  %v616_v1 = vld [vmem:[#allocation2] sm:$0xff] (!%p810_p11) }
 0x13b   : > { %598 = vst [vmem:[#allocation2 + $0x10] sm:$0xff] %v582_v13  ;;  %606 = vst [vmem:[#allocation2 + $0x50] sm:$0xff] %v590_v14  ;;  %v860_v21 = vadd.f32 %v859_v18, %v858_v15  ;;  %v884_v22 = vadd.f32 %v883_v20, %v882_v16  ;;  %v639_v4 = vadd.f32 (!%p810_p11), %v811_v2, %v616_v1 }
 0x13d   : > { %v583_v23 = vadd.f32 %v860_v21, %v358_v17  ;;  %v591_v24 = vadd.f32 %v884_v22, %v366_v19  ;;  %v861_v25 = vpop.f32.mrb[8].mxu0  ;;  %v885_v26 = vpop.f32.mrb[8].mxu1  ;;  %v655_v15 = vmax.f32 (!%p810_p11), %v639_v4, 0.0  ;;  %v624_v19 = vld [vmem:[#allocation2 + $0x40] sm:$0xff] (!%p810_p11) }
 0x13e   : > { %v862_v28 = vpop.f32.mrb[9].mxu0  ;;  %v886_v30 = vpop.f32.mrb[9].mxu1  ;;  %v617_v3 = vld [vmem:[#allocation2 + $0x8] sm:$0xff] (!%p810_p11) }
 0x13f   : > { %599 = vst [vmem:[#allocation2 + $0x18] sm:$0xff] %v583_v23  ;;  %607 = vst [vmem:[#allocation2 + $0x58] sm:$0xff] %v591_v24  ;;  %v863_v31 = vadd.f32 %v862_v28, %v861_v25  ;;  %v887_v32 = vadd.f32 %v886_v30, %v885_v26  ;;  %v640_v5 = vadd.f32 (!%p810_p11), %v811_v2, %v617_v3  ;;  %v625_v20 = vld [vmem:[#allocation2 + $0x48] sm:$0xff] (!%p810_p11) }
 0x140   : > { %671 = vst [vmem:[%s1304_s3] sm:$0xff] (!%p810_p11), %v655_v15 }
 0x141   : > { %v584_v33 = vadd.f32 %v863_v31, %v359_v27  ;;  %v592_v34 = vadd.f32 %v887_v32, %v367_v29  ;;  %v864_v35 = vpop.f32.mrb[10].mxu0  ;;  %v888_v36 = vpop.f32.mrb[10].mxu1  ;;  %v656_v16 = vmax.f32 (!%p810_p11), %v640_v5, 0.0  ;;  %v647_v31 = vadd.f32 (!%p810_p11), %v811_v2, %v624_v19 }
 0x142   : > { %v865_v38 = vpop.f32.mrb[11].mxu0  ;;  %v889_v40 = vpop.f32.mrb[11].mxu1  ;;  %v618_v6 = vld [vmem:[#allocation2 + $0x10] sm:$0xff] (!%p810_p11)  ;;  %v648_v32 = vadd.f32 (!%p810_p11), %v811_v2, %v625_v20 }
 0x143   : > { %600 = vst [vmem:[#allocation2 + $0x20] sm:$0xff] %v584_v33  ;;  %608 = vst [vmem:[#allocation2 + $0x60] sm:$0xff] %v592_v34  ;;  %v866_v41 = vadd.f32 %v865_v38, %v864_v35  ;;  %v890_v42 = vadd.f32 %v889_v40, %v888_v36  ;;  %v641_v9 = vadd.f32 (!%p810_p11), %v811_v2, %v618_v6  ;;  %v626_v21 = vld [vmem:[#allocation2 + $0x50] sm:$0xff] (!%p810_p11) }
 0x144   : > { %672 = vst [vmem:[%s1304_s3 + $0x8] sm:$0xff] (!%p810_p11), %v656_v16  ;;  %v649_v36 = vadd.f32 (!%p810_p11), %v811_v2, %v626_v21  ;;  %v664_v40 = vmax.f32 (!%p810_p11), %v648_v32, 0.0 }
 0x145   : > { %v585_v43 = vadd.f32 %v866_v41, %v360_v37  ;;  %v593_v44 = vadd.f32 %v890_v42, %v368_v39  ;;  %v867_v45 = vpop.f32.mrb[12].mxu0  ;;  %v891_v46 = vpop.f32.mrb[12].mxu1  ;;  %v657_v22 = vmax.f32 (!%p810_p11), %v641_v9, 0.0  ;;  %v663_v39 = vmax.f32 (!%p810_p11), %v647_v31, 0.0 }
 0x146   : > { %v868_v48 = vpop.f32.mrb[13].mxu0  ;;  %v892_v50 = vpop.f32.mrb[13].mxu1  ;;  %v619_v7 = vld [vmem:[#allocation2 + $0x18] sm:$0xff] (!%p810_p11)  ;;  %680 = vst [vmem:[%s1304_s3 + $0x48] sm:$0xff] (!%p810_p11), %v664_v40 }
 0x147   : > { %601 = vst [vmem:[#allocation2 + $0x28] sm:$0xff] %v585_v43  ;;  %609 = vst [vmem:[#allocation2 + $0x68] sm:$0xff] %v593_v44  ;;  %v869_v51 = vadd.f32 %v868_v48, %v867_v45  ;;  %v893_v52 = vadd.f32 %v892_v50, %v891_v46  ;;  %v642_v10 = vadd.f32 (!%p810_p11), %v811_v2, %v619_v7  ;;  %v627_v26 = vld [vmem:[#allocation2 + $0x58] sm:$0xff] (!%p810_p11)  ;;  %v665_v43 = vmax.f32 (!%p810_p11), %v649_v36, 0.0 }
 0x148   : > { %673 = vst [vmem:[%s1304_s3 + $0x10] sm:$0xff] (!%p810_p11), %v657_v22  ;;  %v650_v37 = vadd.f32 (!%p810_p11), %v811_v2, %v627_v26  ;;  %679 = vst [vmem:[%s1304_s3 + $0x40] sm:$0xff] (!%p810_p11), %v663_v39 }
 0x149   : > { %v586_v53 = vadd.f32 %v869_v51, %v361_v47  ;;  %v594_v54 = vadd.f32 %v893_v52, %v369_v49  ;;  %v870_v55 = vpop.f32.mrb[14].mxu0  ;;  %v894_v56 = vpop.f32.mrb[14].mxu1  ;;  %615 = sbr.rel (%p810_p11) target bundleno = 349 (0x15d), region = 63  ;;  %v658_v23 = vmax.f32 (!%p810_p11), %v642_v10, 0.0  ;;  %681 = vst [vmem:[%s1304_s3 + $0x50] sm:$0xff] (!%p810_p11), %v665_v43 }
 0x14a   : > { %v871_v58 = vpop.f32.mrb[15].mxu0  ;;  %v895_v60 = vpop.f32.mrb[15].mxu1  ;;  %v620_v8 = vld [vmem:[#allocation2 + $0x20] sm:$0xff] (!%p810_p11)  ;;  %v666_v44 = vmax.f32 (!%p810_p11), %v650_v37, 0.0 }
 0x14b   : > { %602 = vst [vmem:[#allocation2 + $0x30] sm:$0xff] %v586_v53  ;;  %610 = vst [vmem:[#allocation2 + $0x70] sm:$0xff] %v594_v54  ;;  %v872_v61 = vadd.f32 %v871_v58, %v870_v55  ;;  %v896_v62 = vadd.f32 %v895_v60, %v894_v56  ;;  %v643_v11 = vadd.f32 (!%p810_p11), %v811_v2, %v620_v8  ;;  %v628_v27 = vld [vmem:[#allocation2 + $0x60] sm:$0xff] (!%p810_p11) }
 0x14c   : > { %674 = vst [vmem:[%s1304_s3 + $0x18] sm:$0xff] (!%p810_p11), %v658_v23  ;;  %v651_v38 = vadd.f32 (!%p810_p11), %v811_v2, %v628_v27  ;;  %682 = vst [vmem:[%s1304_s3 + $0x58] sm:$0xff] (!%p810_p11), %v666_v44 }
 0x14d   : > { %v587_v63 = vadd.f32 %v872_v61, %v362_v57  ;;  %v595_v0 = vadd.f32 %v896_v62, %v370_v59  ;;  %v659_v24 = vmax.f32 (!%p810_p11), %v643_v11, 0.0 }
 0x14e   : > { %v621_v12 = vld [vmem:[#allocation2 + $0x28] sm:$0xff] (!%p810_p11)  ;;  %v667_v45 = vmax.f32 (!%p810_p11), %v651_v38, 0.0 }
 0x14f   : > { %603 = vst [vmem:[#allocation2 + $0x38] sm:$0xff] %v587_v63  ;;  %611 = vst [vmem:[#allocation2 + $0x78] sm:$0xff] %v595_v0  ;;  %v644_v17 = vadd.f32 (!%p810_p11), %v811_v2, %v621_v12  ;;  %v629_v28 = vld [vmem:[#allocation2 + $0x68] sm:$0xff] (!%p810_p11) }
 0x150   : > { %675 = vst [vmem:[%s1304_s3 + $0x20] sm:$0xff] %v659_v24  ;;  %v652_v41 = vadd.f32 %v811_v2, %v629_v28  ;;  %683 = vst [vmem:[%s1304_s3 + $0x60] sm:$0xff] %v667_v45 }
 0x151   : > { %v660_v29 = vmax.f32 %v644_v17, 0.0 }
 0x152   : > { %v622_v13 = vld [vmem:[#allocation2 + $0x30] sm:$0xff]  ;;  %v668_v47 = vmax.f32 %v652_v41, 0.0 }
 0x153   : > { %v645_v18 = vadd.f32 %v811_v2, %v622_v13  ;;  %v630_v33 = vld [vmem:[#allocation2 + $0x70] sm:$0xff]  ;;  %676 = vst [vmem:[%s1304_s3 + $0x28] sm:$0xff] %v660_v29 }
 0x154   : > { %v653_v42 = vadd.f32 %v811_v2, %v630_v33  ;;  %684 = vst [vmem:[%s1304_s3 + $0x68] sm:$0xff] %v668_v47 }
 0x155   : > { %v661_v30 = vmax.f32 %v645_v18, 0.0 }
 0x156   : > { %v623_v14 = vld [vmem:[#allocation2 + $0x38] sm:$0xff]  ;;  %v669_v48 = vmax.f32 %v653_v42, 0.0 }
 0x157   : > { %v646_v25 = vadd.f32 %v811_v2, %v623_v14  ;;  %v631_v34 = vld [vmem:[#allocation2 + $0x78] sm:$0xff]  ;;  %677 = vst [vmem:[%s1304_s3 + $0x30] sm:$0xff] %v661_v30 }
 0x158   : > { %v654_v46 = vadd.f32 %v811_v2, %v631_v34  ;;  %685 = vst [vmem:[%s1304_s3 + $0x70] sm:$0xff] %v669_v48 }
 0x159   : > { %v662_v35 = vmax.f32 %v646_v25, 0.0 }
 0x15a   : > { %v670_v49 = vmax.f32 %v654_v46, 0.0 }
 0x15b   : > { %678 = vst [vmem:[%s1304_s3 + $0x38] sm:$0xff] %v662_v35 }
 0x15c   : > { %686 = vst [vmem:[%s1304_s3 + $0x78] sm:$0xff] %v670_v49 }
 0x15d PF: > { %s13_s16 = sadd.s32 1, %s1024_s16   ;;  %s1305_s12 = smov %s1012_s13 }
 0x15e   : > { %p10_p12 = scmp.ge.s32.totalorder %s13_s16, 5   ;;  %s1306_s13 = smov %s1082_s20 }
 0x15f   : > { %s1307_s14 = smov %s1020_s15  ;;  %s1308_s15 = smov %s1310_s17 }
 0x160   :  { %12 = sbr.rel (!%p10_p12) target bundleno = 3 (0x3), region = 104 }

// kernel: loss_network_forward.20
= control target key start
LH: loop header
LB: loop body
LE: loop exit
PB: predicated region body
PF: predicated region fallthrough
CT: control target
= control target key end

     0   :  { %s1047_s12 = smov 0   ;;  %s1049_s13 = smov 0   ;;  %s1301_s0 = inlined_call_operand.vmem [shape: f32[128,1280], index: 0, kind: input, shape index: {}]   ;;  %s1302_s1 = inlined_call_operand.vmem [shape: f32[1280,128], index: 1, kind: input, shape index: {}]   ;;  %s1303_s2 = inlined_call_operand.vmem [shape: f32[1,128], index: 2, kind: input, shape index: {}]   ;;  %s1304_s3 = inlined_call_operand.vmem [shape: f32[128,128], index: 3, kind: output, shape index: {}]  }
   0x1   :  { %s1051_s14 = smov 0   ;;  %s1053_s15 = smov 0  }
   0x2   :  { %s1055_s16 = smov 0  }
   0x3 LB: > { %s25_s17 = sadd.s32 1, %s1020_s15  ;;  %p48_p1 = scmp.ne.s32.totalorder %s1012_s13, %s1008_s12  ;;  %s1024_s16 = sphi %s1055_s16, %s13_s16   ;;  %s1020_s15 = sphi %s1053_s15, %s1308_s15   ;;  %s1016_s14 = sphi %s1051_s14, %s1307_s14   ;;  %s1012_s13 = sphi %s1049_s13, %s1306_s13   ;;  %s1008_s12 = sphi %s1047_s12, %s1305_s12  }
   0x4   : > { %p26_p0 = scmp.ge.s32.totalorder %s25_s17, 5  ;;  %p49_p2 = scmp.eq.s32.totalorder %s1024_s16, 0 }
   0x5   : > { %s41_s19 = sadd.s32 1, %s1012_s13  ;;  %p801_p5 = scmp.ge.s32.totalorder %s1024_s16, 5 }
   0x6   : > { %s1310_s17 = smov (%p26_p0, %s25_s17), 0  ;;  %p50_p3 = por %p49_p2, %p48_p1 }
   0x7   : > { %s37_s18 = ssub.s32 %s1020_s15, %s1310_s17  ;;  %162 = sbr.rel (%p801_p5) target bundleno = 34 (0x22), region = 20 }
   0x8   : > { %p39_p4 = scmp.eq.s32.totalorder %s37_s18, 0 }
   0xa   : > { %s1082_s20 = scalar_select %p39_p4, %s1012_s13, %s41_s19  }
   0xe   : > { %165 = sbr.rel (!%p50_p3) target bundleno = 34 (0x22), region = 24  ;;  %s167_s21 = sand.u32 (%p50_p3), 1, %s1012_s13  }
   0xf   : > { %s816_s22 = sshll.u32 (%p50_p3), %s1020_s15, 4  ;;  %s802_s23 = sshll.u32 (%p50_p3), %s167_s21, 8 }
  0x10   : > { %s1090_s26 = scalar_lea.vmem (%p50_p3), %s1301_s0, %s816_s22  ;;  %s1095_s27 = scalar_lea.vmem (%p50_p3), [#allocation3], %s802_s23 }
  0x11   : > { %v188_v0 = vld [vmem:[%s1090_s26] sm:$0xff] (%p50_p3)  ;;  %v190_v1 = vld [vmem:[%s1090_s26 + $0x8] sm:$0xff] (%p50_p3)  ;;  %v192_v2 = vld [vmem:[%s1090_s26 + $0x50] sm:$0xff] (%p50_p3) }
  0x12   : > { %189 = vst [vmem:[%s1095_s27] sm:$0xff] (%p50_p3), %v188_v0  ;;  %191 = vst [vmem:[%s1095_s27 + $0x8] sm:$0xff] (%p50_p3), %v190_v1  ;;  %v194_v3 = vld [vmem:[%s1090_s26 + $0x58] sm:$0xff] (%p50_p3)  ;;  %v196_v4 = vld [vmem:[%s1090_s26 + $0xa0] sm:$0xff] (%p50_p3) }
  0x13   : > { %193 = vst [vmem:[%s1095_s27 + $0x10] sm:$0xff] (%p50_p3), %v192_v2  ;;  %v198_v5 = vld [vmem:[%s1090_s26 + $0xa8] sm:$0xff] (%p50_p3)  ;;  %195 = vst [vmem:[%s1095_s27 + $0x18] sm:$0xff] (%p50_p3), %v194_v3  ;;  %v200_v6 = vld [vmem:[%s1090_s26 + $0xf0] sm:$0xff] (%p50_p3) }
  0x14   : > { %197 = vst [vmem:[%s1095_s27 + $0x20] sm:$0xff] (%p50_p3), %v196_v4  ;;  %199 = vst [vmem:[%s1095_s27 + $0x28] sm:$0xff] (%p50_p3), %v198_v5  ;;  %v202_v7 = vld [vmem:[%s1090_s26 + $0xf8] sm:$0xff] (%p50_p3)  ;;  %v204_v8 = vld [vmem:[%s1090_s26 + $0x140] sm:$0xff] (%p50_p3) }
  0x15   : > { %201 = vst [vmem:[%s1095_s27 + $0x30] sm:$0xff] %v200_v6  ;;  %203 = vst [vmem:[%s1095_s27 + $0x38] sm:$0xff] %v202_v7  ;;  %v206_v9 = vld [vmem:[%s1090_s26 + $0x148] sm:$0xff]  ;;  %v208_v10 = vld [vmem:[%s1090_s26 + $0x190] sm:$0xff] }
  0x16   : > { %205 = vst [vmem:[%s1095_s27 + $0x40] sm:$0xff] %v204_v8  ;;  %v210_v11 = vld [vmem:[%s1090_s26 + $0x198] sm:$0xff]  ;;  %207 = vst [vmem:[%s1095_s27 + $0x48] sm:$0xff] %v206_v9  ;;  %v212_v12 = vld [vmem:[%s1090_s26 + $0x1e0] sm:$0xff] }
  0x17   : > { %209 = vst [vmem:[%s1095_s27 + $0x50] sm:$0xff] %v208_v10  ;;  %211 = vst [vmem:[%s1095_s27 + $0x58] sm:$0xff] %v210_v11  ;;  %v214_v13 = vld [vmem:[%s1090_s26 + $0x1e8] sm:$0xff]  ;;  %v216_v14 = vld [vmem:[%s1090_s26 + $0x230] sm:$0xff] }
  0x18   : > { %213 = vst [vmem:[%s1095_s27 + $0x60] sm:$0xff] %v212_v12  ;;  %215 = vst [vmem:[%s1095_s27 + $0x68] sm:$0xff] %v214_v13  ;;  %v218_v15 = vld [vmem:[%s1090_s26 + $0x238] sm:$0xff]  ;;  %v220_v16 = vld [vmem:[%s1090_s26 + $0x280] sm:$0xff] }
  0x19   : > { %217 = vst [vmem:[%s1095_s27 + $0x70] sm:$0xff] %v216_v14  ;;  %v222_v17 = vld [vmem:[%s1090_s26 + $0x288] sm:$0xff]  ;;  %219 = vst [vmem:[%s1095_s27 + $0x78] sm:$0xff] %v218_v15  ;;  %v224_v18 = vld [vmem:[%s1090_s26 + $0x2d0] sm:$0xff] }
  0x1a   : > { %221 = vst [vmem:[%s1095_s27 + $0x80] sm:$0xff] %v220_v16  ;;  %223 = vst [vmem:[%s1095_s27 + $0x88] sm:$0xff] %v222_v17  ;;  %v226_v19 = vld [vmem:[%s1090_s26 + $0x2d8] sm:$0xff]  ;;  %v228_v20 = vld [vmem:[%s1090_s26 + $0x320] sm:$0xff] }
  0x1b   : > { %225 = vst [vmem:[%s1095_s27 + $0x90] sm:$0xff] %v224_v18  ;;  %227 = vst [vmem:[%s1095_s27 + $0x98] sm:$0xff] %v226_v19  ;;  %v230_v21 = vld [vmem:[%s1090_s26 + $0x328] sm:$0xff]  ;;  %v232_v22 = vld [vmem:[%s1090_s26 + $0x370] sm:$0xff] }
  0x1c   : > { %229 = vst [vmem:[%s1095_s27 + $0xa0] sm:$0xff] %v228_v20  ;;  %v234_v23 = vld [vmem:[%s1090_s26 + $0x378] sm:$0xff]  ;;  %231 = vst [vmem:[%s1095_s27 + $0xa8] sm:$0xff] %v230_v21  ;;  %v236_v24 = vld [vmem:[%s1090_s26 + $0x3c0] sm:$0xff] }
  0x1d   : > { %233 = vst [vmem:[%s1095_s27 + $0xb0] sm:$0xff] %v232_v22  ;;  %235 = vst [vmem:[%s1095_s27 + $0xb8] sm:$0xff] %v234_v23  ;;  %v238_v25 = vld [vmem:[%s1090_s26 + $0x3c8] sm:$0xff]  ;;  %v240_v26 = vld [vmem:[%s1090_s26 + $0x410] sm:$0xff] }
  0x1e   : > { %237 = vst [vmem:[%s1095_s27 + $0xc0] sm:$0xff] %v236_v24  ;;  %239 = vst [vmem:[%s1095_s27 + $0xc8] sm:$0xff] %v238_v25  ;;  %v242_v27 = vld [vmem:[%s1090_s26 + $0x418] sm:$0xff]  ;;  %v244_v28 = vld [vmem:[%s1090_s26 + $0x460] sm:$0xff] }
  0x1f   : > { %241 = vst [vmem:[%s1095_s27 + $0xd0] sm:$0xff] %v240_v26  ;;  %v246_v29 = vld [vmem:[%s1090_s26 + $0x468] sm:$0xff]  ;;  %243 = vst [vmem:[%s1095_s27 + $0xd8] sm:$0xff] %v242_v27  ;;  %v248_v30 = vld [vmem:[%s1090_s26 + $0x4b0] sm:$0xff] }
  0x20   : > { %245 = vst [vmem:[%s1095_s27 + $0xe0] sm:$0xff] %v244_v28  ;;  %247 = vst [vmem:[%s1095_s27 + $0xe8] sm:$0xff] %v246_v29  ;;  %v250_v31 = vld [vmem:[%s1090_s26 + $0x4b8] sm:$0xff] }
  0x21   : > { %249 = vst [vmem:[%s1095_s27 + $0xf0] sm:$0xff] %v248_v30  ;;  %251 = vst [vmem:[%s1095_s27 + $0xf8] sm:$0xff] %v250_v31 }
  0x22 PF: > { %p805_p6 = scmp.ge.s32.totalorder %s1024_s16, 1  ;;  %p268_p7 = scmp.lt.s32.totalorder %s1024_s16, 6 }
  0x24   : > { %p269_p8 = pnand %p805_p6, %p268_p7 }
  0x25   : > { %s275_s28 = sand.u32 (!%p269_p8), 1, %s1008_s12   ;;  %s807_s29 = sshll.u32 (!%p269_p8), %s1016_s14, 5 }
  0x26   : > { %272 = sbr.rel (%p269_p8) target bundleno = 349 (0x15d), region = 51  ;;  %s806_s30 = sshll.u32 (!%p269_p8), %s275_s28, 8 }
  0x27   : > { %p315_p9 = scmp.lt.s32.totalorder (!%p269_p8), %s807_s29, 159  ;;  %s1167_s8 = scalar_lea.vmem (!%p269_p8), [#allocation3], %s806_s30 }
  0x28   : > { %p809_p10 = scmp.ne.s32.totalorder (!%p269_p8), %s1016_s14, 0 }
  0x2d   : > { %s1312_s29 = smov (!%p315_p9, %s807_s29), 159  ;;  %338 = sbr.rel (%p809_p10) target bundleno = 55 (0x37), region = 59 }
  0x2e   : > { %s808_s4 = sshll.u32 %s1312_s29, 3  ;;  %v1026_v32 = vmov (!%p809_p10), 0.0  }
  0x2f   : > { %s1165_s7 = scalar_lea.vmem %s1302_s1, %s808_s4  ;;  %339 = vst [vmem:[#allocation2] sm:$0xff] (!%p809_p10), %v1026_v32  ;;  %340 = vst [vmem:[#allocation2 + $0x8] sm:$0xff] (!%p809_p10), %v1026_v32 }
  0x30   : > { %341 = vst [vmem:[#allocation2 + $0x10] sm:$0xff] (!%p809_p10), %v1026_v32  ;;  %342 = vst [vmem:[#allocation2 + $0x18] sm:$0xff] (!%p809_p10), %v1026_v32 }
  0x31   : > { %343 = vst [vmem:[#allocation2 + $0x20] sm:$0xff] (!%p809_p10), %v1026_v32  ;;  %344 = vst [vmem:[#allocation2 + $0x28] sm:$0xff] (!%p809_p10), %v1026_v32 }
  0x32   : > { %345 = vst [vmem:[#allocation2 + $0x30] sm:$0xff] (!%p809_p10), %v1026_v32  ;;  %346 = vst [vmem:[#allocation2 + $0x38] sm:$0xff] (!%p809_p10), %v1026_v32 }
  0x33   : > { %347 = vst [vmem:[#allocation2 + $0x40] sm:$0xff] (!%p809_p10), %v1026_v32  ;;  %348 = vst [vmem:[#allocation2 + $0x48] sm:$0xff] (!%p809_p10), %v1026_v32 }
  0x34   : > { %349 = vst [vmem:[#allocation2 + $0x50] sm:$0xff] %v1026_v32  ;;  %350 = vst [vmem:[#allocation2 + $0x58] sm:$0xff] %v1026_v32 }
  0x35   : > { %351 = vst [vmem:[#allocation2 + $0x60] sm:$0xff] %v1026_v32  ;;  %352 = vst [vmem:[#allocation2 + $0x68] sm:$0xff] %v1026_v32 }
  0x36   : > { %353 = vst [vmem:[#allocation2 + $0x70] sm:$0xff] %v1026_v32  ;;  %354 = vst [vmem:[#allocation2 + $0x78] sm:$0xff] %v1026_v32 }
  0x37 PF: > { %v419_v33 = vld [vmem:[%s1165_s7 + $0x80] sm:$0xff]  ;;  %v420_v34 = vld [vmem:[%s1165_s7 + $0x88] sm:$0xff]  ;;  %v421_v38 = vld [vmem:[%s1165_s7 + $0x90] sm:$0xff]  ;;  %p810_p11 = scmp.ne.s32.totalorder %s1016_s14, 4 }
  0x38   : > { %v403_v35 = vld [vmem:[%s1165_s7] sm:$0xff]  ;;  %v897_v36 = vpack.c.bf16 %v420_v34, %v419_v33  ;;  %v404_v37 = vld [vmem:[%s1165_s7 + $0x8] sm:$0xff]  ;;  %v422_v39 = vld [vmem:[%s1165_s7 + $0x98] sm:$0xff] }
  0x39   : > { %v899_v40 = vpack.c.bf16 %v404_v37, %v403_v35  ;;  %v901_v41 = vpack.c.bf16 %v422_v39, %v421_v38  ;;  %v405_v42 = vld [vmem:[%s1165_s7 + $0x10] sm:$0xff]  ;;  %v406_v43 = vld [vmem:[%s1165_s7 + $0x18] sm:$0xff]  ;;  %v423_v44 = vld [vmem:[%s1165_s7 + $0xa0] sm:$0xff] }
  0x3a   : > { %898 = vmatprep.subr.bf16.mxu0 %v897_v36  ;;  %929 = vmatprep.subr.bf16.mxu1 %v897_v36  ;;  %v424_v45 = vld [vmem:[%s1165_s7 + $0xa8] sm:$0xff]  ;;  %v903_v46 = vpack.c.bf16 %v406_v43, %v405_v42  ;;  %v407_v48 = vld [vmem:[%s1165_s7 + $0x20] sm:$0xff]  ;;  %v425_v50 = vld [vmem:[%s1165_s7 + $0xb0] sm:$0xff] }
  0x3b   : > { %900 = vmatpush3.bf16.msra.mxu0 %v899_v40  ;;  %937 = vmatpush3.bf16.msra.mxu1 %v899_v40  ;;  %v905_v47 = vpack.c.bf16 %v424_v45, %v423_v44  ;;  %v408_v49 = vld [vmem:[%s1165_s7 + $0x28] sm:$0xff]  ;;  %v426_v51 = vld [vmem:[%s1165_s7 + $0xb8] sm:$0xff]  ;;  %v409_v54 = vld [vmem:[%s1165_s7 + $0x30] sm:$0xff] }
  0x3c   : > { %902 = vmatprep.subr.bf16.mxu0 %v901_v41  ;;  %930 = vmatprep.subr.bf16.mxu1 %v901_v41  ;;  %v907_v52 = vpack.c.bf16 %v408_v49, %v407_v48  ;;  %v909_v53 = vpack.c.bf16 %v426_v51, %v425_v50  ;;  %v410_v55 = vld [vmem:[%s1165_s7 + $0x38] sm:$0xff]  ;;  %v427_v56 = vld [vmem:[%s1165_s7 + $0xc0] sm:$0xff]  ;;  %v428_v57 = vld [vmem:[%s1165_s7 + $0xc8] sm:$0xff] }
  0x3d   : > { %v372_v58 = vld [vmem:[%s1167_s8 + $0x8] sm:$0xff]  ;;  %v911_v60 = vpack.c.bf16 %v410_v55, %v409_v54  ;;  %v913_v61 = vpack.c.bf16 %v428_v57, %v427_v56  ;;  %v411_v62 = vld [vmem:[%s1165_s7 + $0x40] sm:$0xff]  ;;  %v429_v0 = vld [vmem:[%s1165_s7 + $0xd0] sm:$0xff] }
  0x3e   : > { %499 = vmatprep.mubr.f32.mxu0 %v372_v58  ;;  %v388_v59 = vld [vmem:[%s1167_s8 + $0x88] sm:$0xff]  ;;  %v430_v1 = vld [vmem:[%s1165_s7 + $0xd8] sm:$0xff]  ;;  %v413_v4 = vld [vmem:[%s1165_s7 + $0x50] sm:$0xff] }
  0x3f   : > { %904 = vmatpush3.bf16.msra.mxu0 %v903_v46  ;;  %938 = vmatpush3.bf16.msra.mxu1 %v903_v46  ;;  %v412_v63 = vld [vmem:[%s1165_s7 + $0x48] sm:$0xff]  ;;  %v917_v3 = vpack.c.bf16 %v430_v1, %v429_v0  ;;  %v414_v5 = vld [vmem:[%s1165_s7 + $0x58] sm:$0xff]  ;;  %v431_v6 = vld [vmem:[%s1165_s7 + $0xe0] sm:$0xff] }
  0x40   : > { %906 = vmatprep.subr.bf16.mxu0 %v905_v47  ;;  %931 = vmatprep.subr.bf16.mxu1 %v905_v47  ;;  %v915_v2 = vpack.c.bf16 %v412_v63, %v411_v62  ;;  %v432_v7 = vld [vmem:[%s1165_s7 + $0xe8] sm:$0xff]  ;;  %v919_v8 = vpack.c.bf16 %v414_v5, %v413_v4  ;;  %v415_v10 = vld [vmem:[%s1165_s7 + $0x60] sm:$0xff]  ;;  %v433_v12 = vld [vmem:[%s1165_s7 + $0xf0] sm:$0xff] }
  0x41   : > { %539 = vmatprep.mubr.f32.mxu1 %v388_v59  ;;  %v921_v9 = vpack.c.bf16 %v432_v7, %v431_v6  ;;  %v416_v11 = vld [vmem:[%s1165_s7 + $0x68] sm:$0xff]  ;;  %v434_v13 = vld [vmem:[%s1165_s7 + $0xf8] sm:$0xff]  ;;  %v417_v16 = vld [vmem:[%s1165_s7 + $0x70] sm:$0xff] }
  0x42   : > { %v923_v14 = vpack.c.bf16 %v416_v11, %v415_v10  ;;  %v925_v15 = vpack.c.bf16 %v434_v13, %v433_v12  ;;  %v418_v17 = vld [vmem:[%s1165_s7 + $0x78] sm:$0xff]  ;;  %v371_v19 = vld [vmem:[%s1167_s8] sm:$0xff]  ;;  %v373_v23 = vld [vmem:[%s1167_s8 + $0x10] sm:$0xff] }
  0x43   : > { %908 = vmatpush3.bf16.msra.mxu0 %v907_v52  ;;  %939 = vmatpush3.bf16.msra.mxu1 %v907_v52  ;;  %v927_v18 = vpack.c.bf16 %v418_v17, %v417_v16  ;;  %v387_v20 = vld [vmem:[%s1167_s8 + $0x80] sm:$0xff]  ;;  %v374_v21 = vld [vmem:[%s1167_s8 + $0x18] sm:$0xff]  ;;  %v389_v24 = vld [vmem:[%s1167_s8 + $0x90] sm:$0xff] }
  0x44   : > { %910 = vmatprep.subr.bf16.mxu0 %v909_v53  ;;  %932 = vmatprep.subr.bf16.mxu1 %v909_v53  ;;  %v390_v22 = vld [vmem:[%s1167_s8 + $0x98] sm:$0xff]  ;;  %v376_v25 = vld [vmem:[%s1167_s8 + $0x28] sm:$0xff]  ;;  %v375_v27 = vld [vmem:[%s1167_s8 + $0x20] sm:$0xff] }
  0x45   : > { %v392_v26 = vld [vmem:[%s1167_s8 + $0xa8] sm:$0xff]  ;;  %v391_v28 = vld [vmem:[%s1167_s8 + $0xa0] sm:$0xff]  ;;  %v378_v29 = vld [vmem:[%s1167_s8 + $0x38] sm:$0xff] }
  0x46   : > { %v394_v30 = vld [vmem:[%s1167_s8 + $0xb8] sm:$0xff]  ;;  %v377_v31 = vld [vmem:[%s1167_s8 + $0x30] sm:$0xff]  ;;  %v380_v33 = vld [vmem:[%s1167_s8 + $0x48] sm:$0xff] }
  0x47   : > { %912 = vmatpush3.bf16.msra.mxu0 %v911_v60  ;;  %940 = vmatpush3.bf16.msra.mxu1 %v911_v60  ;;  %v393_v32 = vld [vmem:[%s1167_s8 + $0xb0] sm:$0xff]  ;;  %v396_v34 = vld [vmem:[%s1167_s8 + $0xc8] sm:$0xff]  ;;  %v379_v35 = vld [vmem:[%s1167_s8 + $0x40] sm:$0xff] }
  0x48   : > { %914 = vmatprep.subr.bf16.mxu0 %v913_v61  ;;  %933 = vmatprep.subr.bf16.mxu1 %v913_v61  ;;  %v395_v36 = vld [vmem:[%s1167_s8 + $0xc0] sm:$0xff]  ;;  %v382_v37 = vld [vmem:[%s1167_s8 + $0x58] sm:$0xff]  ;;  %v381_v39 = vld [vmem:[%s1167_s8 + $0x50] sm:$0xff] }
  0x49   : > { %v398_v38 = vld [vmem:[%s1167_s8 + $0xd8] sm:$0xff]  ;;  %v397_v40 = vld [vmem:[%s1167_s8 + $0xd0] sm:$0xff]  ;;  %v384_v41 = vld [vmem:[%s1167_s8 + $0x68] sm:$0xff] }
  0x4a   : > { %v400_v42 = vld [vmem:[%s1167_s8 + $0xe8] sm:$0xff]  ;;  %v383_v43 = vld [vmem:[%s1167_s8 + $0x60] sm:$0xff]  ;;  %v386_v45 = vld [vmem:[%s1167_s8 + $0x78] sm:$0xff] }
  0x4b   : > { %916 = vmatpush3.bf16.msra.mxu0 %v915_v2  ;;  %941 = vmatpush3.bf16.msra.mxu1 %v915_v2  ;;  %v399_v44 = vld [vmem:[%s1167_s8 + $0xe0] sm:$0xff]  ;;  %v402_v46 = vld [vmem:[%s1167_s8 + $0xf8] sm:$0xff]  ;;  %v385_v47 = vld [vmem:[%s1167_s8 + $0x70] sm:$0xff] }
  0x4c   : > { %918 = vmatprep.subr.bf16.mxu0 %v917_v3  ;;  %934 = vmatprep.subr.bf16.mxu1 %v917_v3  ;;  %v401_v48 = vld [vmem:[%s1167_s8 + $0xf0] sm:$0xff]  ;;  %v355_v51 = vld [vmem:[#allocation2] sm:$0xff]  ;;  %v356_v61 = vld [vmem:[#allocation2 + $0x8] sm:$0xff] }
  0x4d   : > { %v363_v53 = vld [vmem:[#allocation2 + $0x40] sm:$0xff]  ;;  %v364_v63 = vld [vmem:[#allocation2 + $0x48] sm:$0xff]  ;;  %v357_v7 = vld [vmem:[#allocation2 + $0x10] sm:$0xff] }
  0x4e   : > { %v358_v17 = vld [vmem:[#allocation2 + $0x18] sm:$0xff] }
  0x4f   : > { %920 = vmatpush3.bf16.msra.mxu0 %v919_v8  ;;  %942 = vmatpush3.bf16.msra.mxu1 %v919_v8 }
  0x50   : > { %922 = vmatprep.subr.bf16.mxu0 %v921_v9  ;;  %935 = vmatprep.subr.bf16.mxu1 %v921_v9  ;;  %v365_v9 = vld [vmem:[#allocation2 + $0x50] sm:$0xff] }
  0x53   : > { %924 = vmatpush3.bf16.msra.mxu0 %v923_v14  ;;  %943 = vmatpush3.bf16.msra.mxu1 %v923_v14 }
  0x54   : > { %926 = vmatprep.subr.bf16.mxu0 %v925_v15  ;;  %936 = vmatprep.subr.bf16.mxu1 %v925_v15 }
  0x57   : > { %928 = vmatpush3.bf16.msra.mxu0 %v927_v18  ;;  %944 = vmatpush3.bf16.msra.mxu1 %v927_v18 }
  0x5a   : > { %500 = vmatmul.mubr.f32.vlgmr.msra.gmra.mrb[0].mxu0 %v371_v19  ;;  %540 = vmatmul.mubr.f32.vlgmr.msra.gmra.mrb[0].mxu1 %v387_v20  ;;  %v366_v19 = vld [vmem:[#allocation2 + $0x58] sm:$0xff] }
  0x5b   : > { %504 = vmatprep.mubr.f32.mxu0 %v374_v21  ;;  %544 = vmatprep.mubr.f32.mxu1 %v390_v22 }
  0x5e   : > { %505 = vmatmul.mubr.f32.gmra.mrb[2].mxu0 %v373_v23  ;;  %545 = vmatmul.mubr.f32.gmra.mrb[2].mxu1 %v389_v24 }
  0x5f   : > { %509 = vmatprep.mubr.f32.mxu0 %v376_v25  ;;  %549 = vmatprep.mubr.f32.mxu1 %v392_v26 }
  0x62   : > { %510 = vmatmul.mubr.f32.gmra.mrb[4].mxu0 %v375_v27  ;;  %550 = vmatmul.mubr.f32.gmra.mrb[4].mxu1 %v391_v28  ;;  %v359_v27 = vld [vmem:[#allocation2 + $0x20] sm:$0xff] }
  0x63   : > { %514 = vmatprep.mubr.f32.mxu0 %v378_v29  ;;  %554 = vmatprep.mubr.f32.mxu1 %v394_v30  ;;  %v367_v29 = vld [vmem:[#allocation2 + $0x60] sm:$0xff] }
  0x66   : > { %515 = vmatmul.mubr.f32.gmra.mrb[6].mxu0 %v377_v31  ;;  %555 = vmatmul.mubr.f32.gmra.mrb[6].mxu1 %v393_v32 }
  0x67   : > { %519 = vmatprep.mubr.f32.mxu0 %v380_v33  ;;  %559 = vmatprep.mubr.f32.mxu1 %v396_v34 }
  0x6a   : > { %520 = vmatmul.mubr.f32.gmra.mrb[8].mxu0 %v379_v35  ;;  %560 = vmatmul.mubr.f32.gmra.mrb[8].mxu1 %v395_v36 }
  0x6b   : > { %524 = vmatprep.mubr.f32.mxu0 %v382_v37  ;;  %564 = vmatprep.mubr.f32.mxu1 %v398_v38  ;;  %v360_v37 = vld [vmem:[#allocation2 + $0x28] sm:$0xff] }
  0x6e   : > { %525 = vmatmul.mubr.f32.gmra.mrb[10].mxu0 %v381_v39  ;;  %565 = vmatmul.mubr.f32.gmra.mrb[10].mxu1 %v397_v40  ;;  %v368_v39 = vld [vmem:[#allocation2 + $0x68] sm:$0xff] }
  0x6f   : > { %529 = vmatprep.mubr.f32.mxu0 %v384_v41  ;;  %569 = vmatprep.mubr.f32.mxu1 %v400_v42 }
  0x72   : > { %530 = vmatmul.mubr.f32.gmra.mrb[12].mxu0 %v383_v43  ;;  %570 = vmatmul.mubr.f32.gmra.mrb[12].mxu1 %v399_v44 }
  0x73   : > { %534 = vmatprep.mubr.f32.mxu0 %v386_v45  ;;  %574 = vmatprep.mubr.f32.mxu1 %v402_v46 }
  0x76   : > { %535 = vmatmul.mubr.f32.gmra.mrb[14].mxu0 %v385_v47  ;;  %575 = vmatmul.mubr.f32.gmra.mrb[14].mxu1 %v401_v48  ;;  %v361_v47 = vld [vmem:[#allocation2 + $0x30] sm:$0xff] }
 0x12d   : > { %v849_v49 = vpop.f32.mrb[0].mxu0  ;;  %v873_v50 = vpop.f32.mrb[0].mxu1 }
 0x12e   : > { %v850_v52 = vpop.f32.mrb[1].mxu0  ;;  %v874_v54 = vpop.f32.mrb[1].mxu1 }
 0x12f   : > { %v851_v55 = vadd.f32 %v850_v52, %v849_v49  ;;  %v875_v56 = vadd.f32 %v874_v54, %v873_v50  ;;  %v369_v49 = vld [vmem:[#allocation2 + $0x70] sm:$0xff] }
 0x131   : > { %v580_v57 = vadd.f32 %v851_v55, %v355_v51  ;;  %v588_v58 = vadd.f32 %v875_v56, %v363_v53  ;;  %v852_v59 = vpop.f32.mrb[2].mxu0  ;;  %v876_v60 = vpop.f32.mrb[2].mxu1 }
 0x132   : > { %v853_v62 = vpop.f32.mrb[3].mxu0  ;;  %v877_v0 = vpop.f32.mrb[3].mxu1 }
 0x133   : > { %596 = vst [vmem:[#allocation2] sm:$0xff] %v580_v57  ;;  %604 = vst [vmem:[#allocation2 + $0x40] sm:$0xff] %v588_v58  ;;  %v854_v1 = vadd.f32 %v853_v62, %v852_v59  ;;  %v878_v2 = vadd.f32 %v877_v0, %v876_v60  ;;  %v362_v57 = vld [vmem:[#allocation2 + $0x38] sm:$0xff] }
 0x134   : > { %v370_v59 = vld [vmem:[#allocation2 + $0x78] sm:$0xff] }
 0x135   : > { %v581_v3 = vadd.f32 %v854_v1, %v356_v61  ;;  %v589_v4 = vadd.f32 %v878_v2, %v364_v63  ;;  %v855_v5 = vpop.f32.mrb[4].mxu0  ;;  %v879_v6 = vpop.f32.mrb[4].mxu1  ;;  %v811_v2 = vld [vmem:[%s1303_s2] ss:$0 sm:$0xff] (!%p810_p11) }
 0x136   : > { %v856_v8 = vpop.f32.mrb[5].mxu0  ;;  %v880_v10 = vpop.f32.mrb[5].mxu1 }
 0x137   : > { %597 = vst [vmem:[#allocation2 + $0x8] sm:$0xff] %v581_v3  ;;  %605 = vst [vmem:[#allocation2 + $0x48] sm:$0xff] %v589_v4  ;;  %v857_v11 = vadd.f32 %v856_v8, %v855_v5  ;;  %v881_v12 = vadd.f32 %v880_v10, %v879_v6 }
 0x139   : > { %v582_v13 = vadd.f32 %v857_v11, %v357_v7  ;;  %v590_v14 = vadd.f32 %v881_v12, %v365_v9  ;;  %v858_v15 = vpop.f32.mrb[6].mxu0  ;;  %v882_v16 = vpop.f32.mrb[6].mxu1 }
 0x13a   : > { %v859_v18 = vpop.f32.mrb[7].mxu0  ;;  %v883_v20 = vpop.f32.mrb[7].mxu1  ;;  %v616_v1 = vld [vmem:[#allocation2] sm:$0xff] (!%p810_p11) }
 0x13b   : > { %598 = vst [vmem:[#allocation2 + $0x10] sm:$0xff] %v582_v13  ;;  %606 = vst [vmem:[#allocation2 + $0x50] sm:$0xff] %v590_v14  ;;  %v860_v21 = vadd.f32 %v859_v18, %v858_v15  ;;  %v884_v22 = vadd.f32 %v883_v20, %v882_v16  ;;  %v639_v4 = vadd.f32 (!%p810_p11), %v811_v2, %v616_v1 }
 0x13d   : > { %v583_v23 = vadd.f32 %v860_v21, %v358_v17  ;;  %v591_v24 = vadd.f32 %v884_v22, %v366_v19  ;;  %v861_v25 = vpop.f32.mrb[8].mxu0  ;;  %v885_v26 = vpop.f32.mrb[8].mxu1  ;;  %v655_v15 = vmax.f32 (!%p810_p11), %v639_v4, 0.0  ;;  %v624_v19 = vld [vmem:[#allocation2 + $0x40] sm:$0xff] (!%p810_p11) }
 0x13e   : > { %v862_v28 = vpop.f32.mrb[9].mxu0  ;;  %v886_v30 = vpop.f32.mrb[9].mxu1  ;;  %v617_v3 = vld [vmem:[#allocation2 + $0x8] sm:$0xff] (!%p810_p11) }
 0x13f   : > { %599 = vst [vmem:[#allocation2 + $0x18] sm:$0xff] %v583_v23  ;;  %607 = vst [vmem:[#allocation2 + $0x58] sm:$0xff] %v591_v24  ;;  %v863_v31 = vadd.f32 %v862_v28, %v861_v25  ;;  %v887_v32 = vadd.f32 %v886_v30, %v885_v26  ;;  %v640_v5 = vadd.f32 (!%p810_p11), %v811_v2, %v617_v3  ;;  %v625_v20 = vld [vmem:[#allocation2 + $0x48] sm:$0xff] (!%p810_p11) }
 0x140   : > { %671 = vst [vmem:[%s1304_s3] sm:$0xff] (!%p810_p11), %v655_v15 }
 0x141   : > { %v584_v33 = vadd.f32 %v863_v31, %v359_v27  ;;  %v592_v34 = vadd.f32 %v887_v32, %v367_v29  ;;  %v864_v35 = vpop.f32.mrb[10].mxu0  ;;  %v888_v36 = vpop.f32.mrb[10].mxu1  ;;  %v656_v16 = vmax.f32 (!%p810_p11), %v640_v5, 0.0  ;;  %v647_v31 = vadd.f32 (!%p810_p11), %v811_v2, %v624_v19 }
 0x142   : > { %v865_v38 = vpop.f32.mrb[11].mxu0  ;;  %v889_v40 = vpop.f32.mrb[11].mxu1  ;;  %v618_v6 = vld [vmem:[#allocation2 + $0x10] sm:$0xff] (!%p810_p11)  ;;  %v648_v32 = vadd.f32 (!%p810_p11), %v811_v2, %v625_v20 }
 0x143   : > { %600 = vst [vmem:[#allocation2 + $0x20] sm:$0xff] %v584_v33  ;;  %608 = vst [vmem:[#allocation2 + $0x60] sm:$0xff] %v592_v34  ;;  %v866_v41 = vadd.f32 %v865_v38, %v864_v35  ;;  %v890_v42 = vadd.f32 %v889_v40, %v888_v36  ;;  %v641_v9 = vadd.f32 (!%p810_p11), %v811_v2, %v618_v6  ;;  %v626_v21 = vld [vmem:[#allocation2 + $0x50] sm:$0xff] (!%p810_p11) }
 0x144   : > { %672 = vst [vmem:[%s1304_s3 + $0x8] sm:$0xff] (!%p810_p11), %v656_v16  ;;  %v649_v36 = vadd.f32 (!%p810_p11), %v811_v2, %v626_v21  ;;  %v664_v40 = vmax.f32 (!%p810_p11), %v648_v32, 0.0 }
 0x145   : > { %v585_v43 = vadd.f32 %v866_v41, %v360_v37  ;;  %v593_v44 = vadd.f32 %v890_v42, %v368_v39  ;;  %v867_v45 = vpop.f32.mrb[12].mxu0  ;;  %v891_v46 = vpop.f32.mrb[12].mxu1  ;;  %v657_v22 = vmax.f32 (!%p810_p11), %v641_v9, 0.0  ;;  %v663_v39 = vmax.f32 (!%p810_p11), %v647_v31, 0.0 }
 0x146   : > { %v868_v48 = vpop.f32.mrb[13].mxu0  ;;  %v892_v50 = vpop.f32.mrb[13].mxu1  ;;  %v619_v7 = vld [vmem:[#allocation2 + $0x18] sm:$0xff] (!%p810_p11)  ;;  %680 = vst [vmem:[%s1304_s3 + $0x48] sm:$0xff] (!%p810_p11), %v664_v40 }
 0x147   : > { %601 = vst [vmem:[#allocation2 + $0x28] sm:$0xff] %v585_v43  ;;  %609 = vst [vmem:[#allocation2 + $0x68] sm:$0xff] %v593_v44  ;;  %v869_v51 = vadd.f32 %v868_v48, %v867_v45  ;;  %v893_v52 = vadd.f32 %v892_v50, %v891_v46  ;;  %v642_v10 = vadd.f32 (!%p810_p11), %v811_v2, %v619_v7  ;;  %v627_v26 = vld [vmem:[#allocation2 + $0x58] sm:$0xff] (!%p810_p11)  ;;  %v665_v43 = vmax.f32 (!%p810_p11), %v649_v36, 0.0 }
 0x148   : > { %673 = vst [vmem:[%s1304_s3 + $0x10] sm:$0xff] (!%p810_p11), %v657_v22  ;;  %v650_v37 = vadd.f32 (!%p810_p11), %v811_v2, %v627_v26  ;;  %679 = vst [vmem:[%s1304_s3 + $0x40] sm:$0xff] (!%p810_p11), %v663_v39 }
 0x149   : > { %v586_v53 = vadd.f32 %v869_v51, %v361_v47  ;;  %v594_v54 = vadd.f32 %v893_v52, %v369_v49  ;;  %v870_v55 = vpop.f32.mrb[14].mxu0  ;;  %v894_v56 = vpop.f32.mrb[14].mxu1  ;;  %615 = sbr.rel (%p810_p11) target bundleno = 349 (0x15d), region = 63  ;;  %v658_v23 = vmax.f32 (!%p810_p11), %v642_v10, 0.0  ;;  %681 = vst [vmem:[%s1304_s3 + $0x50] sm:$0xff] (!%p810_p11), %v665_v43 }
 0x14a   : > { %v871_v58 = vpop.f32.mrb[15].mxu0  ;;  %v895_v60 = vpop.f32.mrb[15].mxu1  ;;  %v620_v8 = vld [vmem:[#allocation2 + $0x20] sm:$0xff] (!%p810_p11)  ;;  %v666_v44 = vmax.f32 (!%p810_p11), %v650_v37, 0.0 }
 0x14b   : > { %602 = vst [vmem:[#allocation2 + $0x30] sm:$0xff] %v586_v53  ;;  %610 = vst [vmem:[#allocation2 + $0x70] sm:$0xff] %v594_v54  ;;  %v872_v61 = vadd.f32 %v871_v58, %v870_v55  ;;  %v896_v62 = vadd.f32 %v895_v60, %v894_v56  ;;  %v643_v11 = vadd.f32 (!%p810_p11), %v811_v2, %v620_v8  ;;  %v628_v27 = vld [vmem:[#allocation2 + $0x60] sm:$0xff] (!%p810_p11) }
 0x14c   : > { %674 = vst [vmem:[%s1304_s3 + $0x18] sm:$0xff] (!%p810_p11), %v658_v23  ;;  %v651_v38 = vadd.f32 (!%p810_p11), %v811_v2, %v628_v27  ;;  %682 = vst [vmem:[%s1304_s3 + $0x58] sm:$0xff] (!%p810_p11), %v666_v44 }
 0x14d   : > { %v587_v63 = vadd.f32 %v872_v61, %v362_v57  ;;  %v595_v0 = vadd.f32 %v896_v62, %v370_v59  ;;  %v659_v24 = vmax.f32 (!%p810_p11), %v643_v11, 0.0 }
 0x14e   : > { %v621_v12 = vld [vmem:[#allocation2 + $0x28] sm:$0xff] (!%p810_p11)  ;;  %v667_v45 = vmax.f32 (!%p810_p11), %v651_v38, 0.0 }
 0x14f   : > { %603 = vst [vmem:[#allocation2 + $0x38] sm:$0xff] %v587_v63  ;;  %611 = vst [vmem:[#allocation2 + $0x78] sm:$0xff] %v595_v0  ;;  %v644_v17 = vadd.f32 (!%p810_p11), %v811_v2, %v621_v12  ;;  %v629_v28 = vld [vmem:[#allocation2 + $0x68] sm:$0xff] (!%p810_p11) }
 0x150   : > { %675 = vst [vmem:[%s1304_s3 + $0x20] sm:$0xff] %v659_v24  ;;  %v652_v41 = vadd.f32 %v811_v2, %v629_v28  ;;  %683 = vst [vmem:[%s1304_s3 + $0x60] sm:$0xff] %v667_v45 }
 0x151   : > { %v660_v29 = vmax.f32 %v644_v17, 0.0 }
 0x152   : > { %v622_v13 = vld [vmem:[#allocation2 + $0x30] sm:$0xff]  ;;  %v668_v47 = vmax.f32 %v652_v41, 0.0 }
 0x153   : > { %v645_v18 = vadd.f32 %v811_v2, %v622_v13  ;;  %v630_v33 = vld [vmem:[#allocation2 + $0x70] sm:$0xff]  ;;  %676 = vst [vmem:[%s1304_s3 + $0x28] sm:$0xff] %v660_v29 }
 0x154   : > { %v653_v42 = vadd.f32 %v811_v2, %v630_v33  ;;  %684 = vst [vmem:[%s1304_s3 + $0x68] sm:$0xff] %v668_v47 }
 0x155   : > { %v661_v30 = vmax.f32 %v645_v18, 0.0 }
 0x156   : > { %v623_v14 = vld [vmem:[#allocation2 + $0x38] sm:$0xff]  ;;  %v669_v48 = vmax.f32 %v653_v42, 0.0 }
 0x157   : > { %v646_v25 = vadd.f32 %v811_v2, %v623_v14  ;;  %v631_v34 = vld [vmem:[#allocation2 + $0x78] sm:$0xff]  ;;  %677 = vst [vmem:[%s1304_s3 + $0x30] sm:$0xff] %v661_v30 }
 0x158   : > { %v654_v46 = vadd.f32 %v811_v2, %v631_v34  ;;  %685 = vst [vmem:[%s1304_s3 + $0x70] sm:$0xff] %v669_v48 }
 0x159   : > { %v662_v35 = vmax.f32 %v646_v25, 0.0 }
 0x15a   : > { %v670_v49 = vmax.f32 %v654_v46, 0.0 }
 0x15b   : > { %678 = vst [vmem:[%s1304_s3 + $0x38] sm:$0xff] %v662_v35 }
 0x15c   : > { %686 = vst [vmem:[%s1304_s3 + $0x78] sm:$0xff] %v670_v49 }
 0x15d PF: > { %s13_s16 = sadd.s32 1, %s1024_s16   ;;  %s1305_s12 = smov %s1012_s13 }
 0x15e   : > { %p10_p12 = scmp.ge.s32.totalorder %s13_s16, 7   ;;  %s1306_s13 = smov %s1082_s20 }
 0x15f   : > { %s1307_s14 = smov %s1020_s15  ;;  %s1308_s15 = smov %s1310_s17 }
 0x160   :  { %12 = sbr.rel (!%p10_p12) target bundleno = 3 (0x3), region = 104 }

// kernel: loss_network_forward.32
= control target key start
LH: loop header
LB: loop body
LE: loop exit
PB: predicated region body
PF: predicated region fallthrough
CT: control target
= control target key end

     0   :  { %v573_v24 = vmov 1983009808   ;;  %v95_v26 = vlaneseq  ;;  %vm427_vm0 = vcmask 1041408   ;;  %s977_s0 = inlined_call_operand.vmem [shape: f32[2,8192], index: 0, kind: input, shape index: {}]   ;;  %s978_s1 = inlined_call_operand.vmem [shape: f32[2,8192], index: 1, kind: input, shape index: {}]   ;;  %s979_s2 = inlined_call_operand.vmem [shape: f32[1,128], index: 2, kind: output, shape index: {}]  }
   0x1   :  { %v19_v0 = vld [vmem:[%s977_s0 + $0x40] sm:$0xff]  ;;  %v20_v1 = vld [vmem:[%s977_s0 + $0x48] sm:$0xff]  ;;  %v21_v2 = vld [vmem:[%s977_s0 + $0x50] sm:$0xff]  ;;  %v93_v25 = vunpack.c.l.s4 %v573_v24 }
   0x2   :  { %v22_v3 = vld [vmem:[%s977_s0 + $0x58] sm:$0xff]  ;;  %v23_v4 = vld [vmem:[%s977_s0 + $0x60] sm:$0xff]  ;;  %v24_v5 = vld [vmem:[%s977_s0 + $0x68] sm:$0xff]  ;;  %v96_v36 = vshrl.u32 %v95_v26, 7 }
   0x3   :  { %v25_v6 = vld [vmem:[%s977_s0 + $0x70] sm:$0xff]  ;;  %v26_v7 = vld [vmem:[%s977_s0 + $0x78] sm:$0xff]  ;;  %v35_v8 = vld [vmem:[%s978_s1 + $0x40] sm:$0xff]  ;;  %v94_v35 = vunpack.c.0.s8 %v93_v25 }
   0x4   :  { %v36_v9 = vld [vmem:[%s978_s1 + $0x48] sm:$0xff]  ;;  %v37_v10 = vld [vmem:[%s978_s1 + $0x50] sm:$0xff]  ;;  %v38_v11 = vld [vmem:[%s978_s1 + $0x58] sm:$0xff]  ;;  %v51_v14 = vsub.f32 %v19_v0, %v35_v8 }
   0x5   :  { %v39_v12 = vld [vmem:[%s978_s1 + $0x60] sm:$0xff]  ;;  %v40_v13 = vld [vmem:[%s978_s1 + $0x68] sm:$0xff]  ;;  %v52_v15 = vsub.f32 %v20_v1, %v36_v9  ;;  %v53_v16 = vsub.f32 %v21_v2, %v37_v10  ;;  %v41_v17 = vld [vmem:[%s978_s1 + $0x70] sm:$0xff]  ;;  %v54_v19 = vsub.f32 %v22_v3, %v38_v11  ;;  %v667_v46 = vsub.s32 %v94_v35, %v96_v36 }
   0x6   :  { %v42_v18 = vld [vmem:[%s978_s1 + $0x78] sm:$0xff]  ;;  %v55_v20 = vsub.f32 %v23_v4, %v39_v12  ;;  %v56_v21 = vsub.f32 %v24_v5, %v40_v13  ;;  %v57_v22 = vsub.f32 %v25_v6, %v41_v17  ;;  %v11_v27 = vld [vmem:[%s977_s0] sm:$0xff]  ;;  %v12_v28 = vld [vmem:[%s977_s0 + $0x8] sm:$0xff]  ;;  %v67_v43 = vmul.f32 %v51_v14, %v51_v14 }
   0x7   :  { %v58_v23 = vsub.f32 %v26_v7, %v42_v18  ;;  %v13_v29 = vld [vmem:[%s977_s0 + $0x10] sm:$0xff]  ;;  %v27_v30 = vld [vmem:[%s978_s1] sm:$0xff]  ;;  %v28_v31 = vld [vmem:[%s978_s1 + $0x8] sm:$0xff]  ;;  %v68_v45 = vmul.f32 %v52_v15, %v52_v15  ;;  %v69_v50 = vmul.f32 %v53_v16, %v53_v16  ;;  %v70_v52 = vmul.f32 %v54_v19, %v54_v19 }
   0x8   :  { %v29_v32 = vld [vmem:[%s978_s1 + $0x10] sm:$0xff]  ;;  %v14_v33 = vld [vmem:[%s977_s0 + $0x18] sm:$0xff]  ;;  %v15_v37 = vld [vmem:[%s977_s0 + $0x20] sm:$0xff]  ;;  %v43_v39 = vsub.f32 %v11_v27, %v27_v30  ;;  %v44_v40 = vsub.f32 %v12_v28, %v28_v31  ;;  %v71_v53 = vmul.f32 %v55_v20, %v55_v20  ;;  %v227_v54 = vcombine.high %v67_v43, %v67_v43 }
   0x9   :  { %v30_v34 = vld [vmem:[%s978_s1 + $0x18] sm:$0xff]  ;;  %v31_v38 = vld [vmem:[%s978_s1 + $0x20] sm:$0xff]  ;;  %v45_v41 = vsub.f32 %v13_v29, %v29_v32  ;;  %v72_v55 = vmul.f32 %v56_v21, %v56_v21  ;;  %v73_v56 = vmul.f32 %v57_v22, %v57_v22  ;;  %v670_v58 = vrot.slane %v67_v43, %v667_v46 }
   0xa   :  { %v46_v42 = vsub.f32 %v14_v33, %v30_v34  ;;  %v47_v44 = vsub.f32 %v15_v37, %v31_v38  ;;  %v59_v47 = vmul.f32 %v43_v39, %v43_v39  ;;  %v60_v48 = vmul.f32 %v44_v40, %v44_v40 }
   0xb   :  { %v61_v49 = vmul.f32 %v45_v41, %v45_v41  ;;  %v74_v59 = vmul.f32 %v58_v23, %v58_v23  ;;  %v673_v60 = vrot.slane %v227_v54, %v667_v46  ;;  %v244_v61 = vcombine.high %v68_v45, %v68_v45 }
   0xc   :  { %v62_v51 = vmul.f32 %v46_v42, %v46_v42  ;;  %v91_v57 = vcombine.high %v59_v47, %v59_v47  ;;  %v676_v62 = vrot.slane %v68_v45, %v667_v46  ;;  %v98_v63 = vrot.slane %v59_v47, %v667_v46 }
   0xd   :  { %v261_v0 = vcombine.high %v69_v50, %v69_v50  ;;  %v680_v1 = vrot.slane %v69_v50, %v667_v46  ;;  %v278_v2 = vcombine.high %v70_v52, %v70_v52  ;;  %v108_v3 = vcombine.high %v60_v48, %v60_v48 }
   0xe   :  { %v115_v4 = vrot.slane %v60_v48, %v667_v46  ;;  %v684_v5 = vrot.slane %v244_v61, %v667_v46  ;;  %v687_v6 = vrot.slane %v70_v52, %v667_v46  ;;  %v105_v7 = vrot.slane %v91_v57, %v667_v46 }
   0xf   :  { %v691_v8 = vrot.slane %v261_v0, %v667_v46  ;;  %v694_v9 = vrot.slane %v278_v2, %v667_v46  ;;  %v295_v10 = vcombine.high %v71_v53, %v71_v53  ;;  %v125_v11 = vcombine.high %v61_v49, %v61_v49 }
  0x10   :  { %v132_v12 = vrot.slane %v61_v49, %v667_v46  ;;  %v698_v13 = vrot.slane %v71_v53, %v667_v46  ;;  %v312_v14 = vcombine.high %v72_v55, %v72_v55  ;;  %v106_v15 = vcombine.high %v98_v63, %v98_v63 }
  0x11   :  { %v142_v16 = vcombine.high %v62_v51, %v62_v51  ;;  %v701_v17 = vrot.slane %v295_v10, %v667_v46  ;;  %v704_v18 = vrot.slane %v72_v55, %v667_v46  ;;  %v707_v19 = vrot.slane %v62_v51, %v667_v46 }
  0x12   :  { %v710_v20 = vrot.slane %v312_v14, %v667_v46  ;;  %v329_v21 = vcombine.high %v73_v56, %v73_v56  ;;  %v713_v22 = vrot.slane %v73_v56, %v667_v46  ;;  %v107_v23 = vcombine.high %v105_v7, %v105_v7 }
  0x13   :  { %v122_v24 = vrot.slane %v108_v3, %v667_v46  ;;  %v346_v25 = vcombine.high %v74_v59, %v74_v59  ;;  %v717_v26 = vrot.slane %v74_v59, %v667_v46  ;;  %v139_v27 = vrot.slane %v125_v11, %v667_v46 }
  0x14   :  { %v721_v28 = vrot.slane %v329_v21, %v667_v46  ;;  %v428_v29 = vsel %vm427_vm0, %v98_v63, 0.0  ;;  %v429_v31 = vsel %vm427_vm0, %v106_v15, 0.0  ;;  %v431_v32 = vsel %vm427_vm0, %v105_v7, 0.0 }
  0x15   :  { %v725_v30 = vrot.slane %v346_v25, %v667_v46  ;;  %v729_v33 = vmul.f32 %v47_v44, %v47_v44  ;;  %v123_v34 = vcombine.high %v115_v4, %v115_v4  ;;  %v140_v35 = vcombine.high %v132_v12, %v132_v12 }
  0x16   :  { %v430_v36 = vadd.f32 %v429_v31, %v428_v29  ;;  %v124_v37 = vcombine.high %v122_v24, %v122_v24  ;;  %v732_v38 = vrot.slane %v142_v16, %v667_v46  ;;  %v157_v39 = vcombine.high %v707_v19, %v707_v19 }
  0x17   :  { %v433_v40 = vsel %vm427_vm0, %v107_v23, 0.0  ;;  %v141_v41 = vcombine.high %v139_v27, %v139_v27  ;;  %v242_v42 = vcombine.high %v670_v58, %v670_v58  ;;  %v243_v43 = vcombine.high %v673_v60, %v673_v60 }
  0x18   :  { %v432_v44 = vadd.f32 %v431_v32, %v430_v36  ;;  %v259_v45 = vcombine.high %v676_v62, %v676_v62  ;;  %v260_v47 = vcombine.high %v684_v5, %v684_v5  ;;  %v276_v48 = vcombine.high %v680_v1, %v680_v1 }
  0x19   :  { %v435_v49 = vsel %vm427_vm0, %v115_v4, 0.0  ;;  %v277_v50 = vcombine.high %v691_v8, %v691_v8  ;;  %v293_v51 = vcombine.high %v687_v6, %v687_v6  ;;  %v294_v52 = vcombine.high %v694_v9, %v694_v9 }
  0x1a   :  { %v434_v53 = vadd.f32 %v433_v40, %v432_v44  ;;  %v310_v54 = vcombine.high %v698_v13, %v698_v13  ;;  %v311_v55 = vcombine.high %v701_v17, %v701_v17  ;;  %v327_v56 = vcombine.high %v704_v18, %v704_v18 }
  0x1b   :  { %v437_v57 = vsel %vm427_vm0, %v123_v34, 0.0  ;;  %v328_v59 = vcombine.high %v710_v20, %v710_v20  ;;  %v344_v61 = vcombine.high %v713_v22, %v713_v22  ;;  %v361_v63 = vcombine.high %v717_v26, %v717_v26 }
  0x1c   :  { %v436_v0 = vadd.f32 %v435_v49, %v434_v53  ;;  %v345_v2 = vcombine.high %v721_v28, %v721_v28  ;;  %v362_v3 = vcombine.high %v725_v30, %v725_v30  ;;  %v439_v4 = vsel %vm427_vm0, %v122_v24, 0.0 }
  0x1d   :  { %v441_v7 = vsel %vm427_vm0, %v124_v37, 0.0  ;;  %v443_v11 = vsel %vm427_vm0, %v132_v12, 0.0  ;;  %v445_v14 = vsel %vm427_vm0, %v140_v35, 0.0  ;;  %v447_v15 = vsel %vm427_vm0, %v139_v27, 0.0 }
  0x1e   :  { %v438_v10 = vadd.f32 %v437_v57, %v436_v0  ;;  %v449_v16 = vsel %vm427_vm0, %v141_v41, 0.0  ;;  %v778_v21 = vsel %vm427_vm0, %v242_v42, 0.0  ;;  %v782_v23 = vsel %vm427_vm0, %v673_v60, 0.0  ;;  %v17_v0 = vld [vmem:[%s977_s0 + $0x30] sm:$0xff] }
  0x1f   :  { %v785_v24 = vsel %vm427_vm0, %v243_v43, 0.0  ;;  %v789_v12 = vsel %vm427_vm0, %v676_v62, 0.0  ;;  %v792_v29 = vsel %vm427_vm0, %v259_v45, 0.0  ;;  %v796_v27 = vsel %vm427_vm0, %v684_v5, 0.0 }
  0x20   :  { %v440_v25 = vadd.f32 %v439_v4, %v438_v10  ;;  %v799_v31 = vsel %vm427_vm0, %v260_v47, 0.0  ;;  %v803_v60 = vsel %vm427_vm0, %v680_v1, 0.0  ;;  %v806_v32 = vsel %vm427_vm0, %v276_v48, 0.0 }
  0x21   :  { %v810_v62 = vsel %vm427_vm0, %v691_v8, 0.0  ;;  %v813_v35 = vsel %vm427_vm0, %v277_v50, 0.0  ;;  %v817_v5 = vsel %vm427_vm0, %v687_v6, 0.0  ;;  %v820_v36 = vsel %vm427_vm0, %v293_v51, 0.0 }
  0x22   :  { %v442_v34 = vadd.f32 %v441_v7, %v440_v25  ;;  %v824_v1 = vsel %vm427_vm0, %v694_v9, 0.0  ;;  %v827_v37 = vsel %vm427_vm0, %v294_v52, 0.0  ;;  %v831_v8 = vsel %vm427_vm0, %v698_v13, 0.0 }
  0x23   :  { %v834_v40 = vsel %vm427_vm0, %v310_v54, 0.0  ;;  %v838_v6 = vsel %vm427_vm0, %v701_v17, 0.0  ;;  %v841_v42 = vsel %vm427_vm0, %v311_v55, 0.0  ;;  %v845_v9 = vsel %vm427_vm0, %v704_v18, 0.0 }
  0x24   :  { %v444_v41 = vadd.f32 %v443_v11, %v442_v34  ;;  %v848_v43 = vsel %vm427_vm0, %v327_v56, 0.0  ;;  %v852_v13 = vsel %vm427_vm0, %v710_v20, 0.0  ;;  %v855_v44 = vsel %vm427_vm0, %v328_v59, 0.0  ;;  %v16_v20 = vld [vmem:[%s977_s0 + $0x28] sm:$0xff] }
  0x25   :  { %v859_v17 = vsel %vm427_vm0, %v713_v22, 0.0  ;;  %v862_v47 = vsel %vm427_vm0, %v344_v61, 0.0  ;;  %v866_v18 = vsel %vm427_vm0, %v721_v28, 0.0  ;;  %v869_v48 = vsel %vm427_vm0, %v345_v2, 0.0  ;;  %v32_v22 = vld [vmem:[%s978_s1 + $0x28] sm:$0xff]  ;;  %v33_v2 = vld [vmem:[%s978_s1 + $0x30] sm:$0xff] }
  0x26   :  { %v446_v45 = vadd.f32 %v445_v14, %v444_v41  ;;  %v879_v49 = vsel %vm427_vm0, %v717_v26, 0.0  ;;  %v882_v50 = vsel %vm427_vm0, %v361_v63, 0.0  ;;  %v886_v28 = vsel %vm427_vm0, %v725_v30, 0.0 }
  0x27   :  { %v889_v51 = vsel %vm427_vm0, %v362_v3, 0.0  ;;  %v451_v53 = vsel %vm427_vm0, %v707_v19, 0.0  ;;  %v48_v54 = vsub.f32 %v16_v20, %v32_v22  ;;  %v158_v26 = vcombine.high %v732_v38, %v732_v38  ;;  %v34_v20 = vld [vmem:[%s978_s1 + $0x38] sm:$0xff] }
  0x28   :  { %v448_v52 = vadd.f32 %v447_v15, %v446_v45  ;;  %v159_v56 = vcombine.high %v729_v33, %v729_v33  ;;  %v166_v57 = vrot.slane %v729_v33, %v667_v46  ;;  %v453_v30 = vsel %vm427_vm0, %v157_v39, 0.0  ;;  %v18_v45 = vld [vmem:[%s977_s0 + $0x38] sm:$0xff] }
  0x29   :  { %v455_v61 = vsel %vm427_vm0, %v732_v38, 0.0  ;;  %v64_v3 = vmul.f32 %v48_v54, %v48_v54  ;;  %v457_v19 = vsel %vm427_vm0, %v158_v26, 0.0  ;;  %v49_v10 = vsub.f32 %v17_v0, %v33_v2 }
  0x2a   :  { %v450_v55 = vadd.f32 %v449_v16, %v448_v52  ;;  %v173_v33 = vrot.slane %v159_v56, %v667_v46  ;;  %v174_v4 = vcombine.high %v166_v57, %v166_v57  ;;  %v459_v7 = vsel %vm427_vm0, %v166_v57, 0.0 }
  0x2b   :  { %v176_v14 = vcombine.high %v64_v3, %v64_v3  ;;  %v183_v15 = vrot.slane %v64_v3, %v667_v46  ;;  %v65_v22 = vmul.f32 %v49_v10, %v49_v10  ;;  %v50_v56 = vsub.f32 %v18_v45, %v34_v20 }
  0x2c   :  { %v452_v59 = vadd.f32 %v451_v53, %v450_v55  ;;  %v175_v11 = vcombine.high %v173_v33, %v173_v33  ;;  %v461_v16 = vsel %vm427_vm0, %v174_v4, 0.0  ;;  %v463_v34 = vsel %vm427_vm0, %v173_v33, 0.0 }
  0x2d   :  { %v190_v52 = vrot.slane %v176_v14, %v667_v46  ;;  %v191_v53 = vcombine.high %v183_v15, %v183_v15  ;;  %v467_v26 = vsel %vm427_vm0, %v183_v15, 0.0  ;;  %v66_v33 = vmul.f32 %v50_v56, %v50_v56 }
  0x2e   :  { %v454_v63 = vadd.f32 %v453_v30, %v452_v59  ;;  %v465_v54 = vsel %vm427_vm0, %v175_v11, 0.0  ;;  %v193_v59 = vcombine.high %v65_v22, %v65_v22 }
  0x2f   :  { %v192_v30 = vcombine.high %v190_v52, %v190_v52  ;;  %v471_v2 = vsel %vm427_vm0, %v190_v52, 0.0  ;;  %v210_v14 = vcombine.high %v66_v33, %v66_v33  ;;  %v217_v15 = vrot.slane %v66_v33, %v667_v46 }
  0x30   :  { %v456_v39 = vadd.f32 %v455_v61, %v454_v63  ;;  %v200_v61 = vrot.slane %v65_v22, %v667_v46  ;;  %v469_v63 = vsel %vm427_vm0, %v191_v53, 0.0  ;;  %v207_v4 = vrot.slane %v193_v59, %v667_v46 }
  0x31   :  { %v224_v45 = vrot.slane %v210_v14, %v667_v46  ;;  %v225_v20 = vcombine.high %v217_v15, %v217_v15  ;;  %v483_v53 = vsel %vm427_vm0, %v217_v15, 0.0  ;;  %v491_v46 = vsel %vm427_vm0, %v670_v58, 0.0 }
  0x32   :  { %v458_v38 = vadd.f32 %v457_v19, %v456_v39  ;;  %v208_v19 = vcombine.high %v200_v61, %v200_v61  ;;  %v473_v39 = vsel %vm427_vm0, %v192_v30, 0.0  ;;  %v475_v10 = vsel %vm427_vm0, %v200_v61, 0.0 }
  0x33   :  { %v209_v11 = vcombine.high %v207_v4, %v207_v4 }
  0x34   :  { %v460_v25 = vadd.f32 %v459_v7, %v458_v38 }
  0x35   :  { %v481_v22 = vsel %vm427_vm0, %v209_v11, 0.0 }
  0x36   :  { %v462_v41 = vadd.f32 %v461_v16, %v460_v25  ;;  %v477_v16 = vsel %vm427_vm0, %v208_v19, 0.0 }
  0x38   :  { %v464_v55 = vadd.f32 %v463_v34, %v462_v41  ;;  %v479_v34 = vsel %vm427_vm0, %v207_v4, 0.0 }
  0x3a   :  { %v466_v57 = vadd.f32 %v465_v54, %v464_v55  ;;  %v226_v55 = vcombine.high %v224_v45, %v224_v45 }
  0x3c   :  { %v468_v0 = vadd.f32 %v467_v26, %v466_v57  ;;  %v485_v26 = vsel %vm427_vm0, %v225_v20, 0.0  ;;  %v487_v57 = vsel %vm427_vm0, %v224_v45, 0.0  ;;  %v489_v59 = vsel %vm427_vm0, %v226_v55, 0.0 }
  0x3e   :  { %v470_v3 = vadd.f32 %v469_v63, %v468_v0 }
  0x40   :  { %v472_v7 = vadd.f32 %v471_v2, %v470_v3 }
  0x42   :  { %v474_v38 = vadd.f32 %v473_v39, %v472_v7 }
  0x44   :  { %v476_v25 = vadd.f32 %v475_v10, %v474_v38 }
  0x46   :  { %v478_v41 = vadd.f32 %v477_v16, %v476_v25 }
  0x48   :  { %v480_v52 = vadd.f32 %v479_v34, %v478_v41 }
  0x4a   :  { %v482_v54 = vadd.f32 %v481_v22, %v480_v52 }
  0x4c   :  { %v484_v56 = vadd.f32 %v483_v53, %v482_v54 }
  0x4e   :  { %v486_v30 = vadd.f32 %v485_v26, %v484_v56 }
  0x50   :  { %v488_v61 = vadd.f32 %v487_v57, %v486_v30 }
  0x52   :  { %v490_v63 = vadd.f32 %v489_v59, %v488_v61 }
  0x54   :  { %v492_v0 = vadd.f32 %v491_v46, %v490_v63 }
  0x56   :  { %v494_v2 = vadd.f32 %v778_v21, %v492_v0 }
  0x58   :  { %v496_v3 = vadd.f32 %v782_v23, %v494_v2 }
  0x5a   :  { %v498_v33 = vadd.f32 %v785_v24, %v496_v3 }
  0x5c   :  { %v500_v4 = vadd.f32 %v789_v12, %v498_v33 }
  0x5e   :  { %v502_v19 = vadd.f32 %v792_v29, %v500_v4 }
  0x60   :  { %v504_v39 = vadd.f32 %v796_v27, %v502_v19 }
  0x62   :  { %v506_v7 = vadd.f32 %v799_v31, %v504_v39 }
  0x64   :  { %v508_v10 = vadd.f32 %v803_v60, %v506_v7 }
  0x66   :  { %v510_v58 = vadd.f32 %v806_v32, %v508_v10 }
  0x68   :  { %v512_v38 = vadd.f32 %v810_v62, %v510_v58 }
  0x6a   :  { %v514_v21 = vadd.f32 %v813_v35, %v512_v38 }
  0x6c   :  { %v516_v23 = vadd.f32 %v817_v5, %v514_v21 }
  0x6e   :  { %v518_v24 = vadd.f32 %v820_v36, %v516_v23 }
  0x70   :  { %v520_v12 = vadd.f32 %v824_v1, %v518_v24 }
  0x72   :  { %v522_v29 = vadd.f32 %v827_v37, %v520_v12 }
  0x74   :  { %v524_v27 = vadd.f32 %v831_v8, %v522_v29 }
  0x76   :  { %v526_v31 = vadd.f32 %v834_v40, %v524_v27 }
  0x78   :  { %v528_v60 = vadd.f32 %v838_v6, %v526_v31 }
  0x7a   :  { %v530_v32 = vadd.f32 %v841_v42, %v528_v60 }
  0x7c   :  { %v532_v62 = vadd.f32 %v845_v9, %v530_v32 }
  0x7e   :  { %v534_v35 = vadd.f32 %v848_v43, %v532_v62 }
  0x80   :  { %v536_v5 = vadd.f32 %v852_v13, %v534_v35 }
  0x82   :  { %v538_v36 = vadd.f32 %v855_v44, %v536_v5 }
  0x84   :  { %v540_v1 = vadd.f32 %v859_v17, %v538_v36 }
  0x86   :  { %v542_v37 = vadd.f32 %v862_v47, %v540_v1 }
  0x88   :  { %v544_v8 = vadd.f32 %v866_v18, %v542_v37 }
  0x8a   :  { %v546_v40 = vadd.f32 %v869_v48, %v544_v8 }
  0x8c   :  { %v548_v6 = vadd.f32 %v879_v49, %v546_v40 }
  0x8e   :  { %v550_v42 = vadd.f32 %v882_v50, %v548_v6 }
  0x90   :  { %v552_v9 = vadd.f32 %v886_v28, %v550_v42 }
  0x92   :  { %v554_v43 = vadd.f32 %v889_v51, %v552_v9 }
  0x94   :  { %555 = vadd.xlane.f32.xlu0 %v554_v43 }
 0x121   :  { %v556_v13 = vpop.xlane.xlu0 %555 }
 0x122   :  { %v557_v11 = vrot.slane %v556_v13, 4 }
 0x124   :  { %v558_v44 = vadd.f32 %v557_v11, %v556_v13 }
 0x126   :  { %v559_v14 = vrot.slane %v558_v44, 2 }
 0x128   :  { %v560_v17 = vadd.f32 %v559_v14, %v558_v44 }
 0x12a   :  { %v561_v15 = vrot.slane %v560_v17, 1 }
 0x12c   :  { %v562_v47 = vadd.f32 %v561_v15, %v560_v17 }
 0x12e   :  { %570 = vpush %v562_v47 }
 0x15f   :  { %s571_s0 = spop %570 }
 0x160   :  { %v564_v18 = vstv %s571_s0 }
 0x161   :  { %565 = vst [vmem:[%s979_s2] sm:$0x1] %v564_v18 }

// kernel: loss_network_forward.21
= control target key start
LH: loop header
LB: loop body
LE: loop exit
PB: predicated region body
PF: predicated region fallthrough
CT: control target
= control target key end

     0   :  { %s1796_s0 = inlined_call_operand.vmem [shape: f32[128,1280], index: 0, kind: input, shape index: {}]   ;;  %s1797_s1 = inlined_call_operand.vmem [shape: f32[1280,256], index: 1, kind: input, shape index: {}]   ;;  %s1798_s2 = inlined_call_operand.vmem [shape: f32[1,256], index: 2, kind: input, shape index: {}]   ;;  %s1799_s3 = inlined_call_operand.vmem [shape: f32[128,256], index: 3, kind: output, shape index: {}]  }
   0x1   :  { %1801 = sst [smem:[#allocation7_spill]] %s1796_s0 }
   0x2   :  { %1802 = sst [smem:[#allocation8_spill]] %s1797_s1 }
   0x3   :  { %s1385_s12 = smov 0   ;;  %s1387_s13 = smov 0  }
   0x4   :  { %s1389_s14 = smov 0   ;;  %s1391_s15 = smov 0  }
   0x5   :  { %s1393_s16 = smov 0   ;;  %s1395_s17 = smov 0  }
   0x6   :  { %s1397_s18 = smov 0   ;;  %s1399_s19 = smov 0  }
   0x7   :  { %s1401_s20 = smov 0   ;;  %s1403_s21 = smov 0  }
   0x8   :  { %s1405_s22 = smov 0  }
   0x9 LB: > { %s1035_s23 = sadd.s32 4294967295, %s1362_s22   ;;  %s25_s24 = sadd.s32 1, %s1354_s20  ;;  %s1362_s22 = sphi %s1405_s22, %s13_s22   ;;  %s1358_s21 = sphi %s1403_s21, %s1819_s21   ;;  %s1354_s20 = sphi %s1401_s20, %s1818_s20   ;;  %s1350_s19 = sphi %s1399_s19, %s1817_s19   ;;  %s1346_s18 = sphi %s1397_s18, %s1816_s18   ;;  %s1342_s17 = sphi %s1395_s17, %s1815_s17   ;;  %s1338_s16 = sphi %s1393_s16, %s1814_s16   ;;  %s1334_s15 = sphi %s1391_s15, %s1813_s15   ;;  %s1330_s14 = sphi %s1389_s14, %s1812_s14   ;;  %s1326_s13 = sphi %s1387_s13, %s1811_s13   ;;  %s1322_s12 = sphi %s1385_s12, %s1810_s12  }
   0xa   : > { %p26_p0 = scmp.ge.s32.totalorder %s25_s24, 5  ;;  %s28_s25 = sadd.s32 1, %s1358_s21 }
   0xb   : > { %s41_s26 = sadd.s32 1, %s1342_s17  ;;  %p48_p1 = scmp.ne.s32.totalorder %s1342_s17, %s1338_s16 }
   0xc   : > { %s1821_s24 = smov (%p26_p0, %s25_s24), 0  ;;  %s1823_s25 = smov (!%p26_p0, %s28_s25), %s1358_s21 }
   0xd   : > { %s37_s27 = ssub.s32 %s1354_s20, %s1821_s24  ;;  %p49_p2 = scmp.eq.s32.totalorder %s1362_s22, 0 }
   0xe   : > { %p30_p3 = scmp.ge.s32.totalorder %s1823_s25, 2  ;;  %p39_p4 = scmp.eq.s32.totalorder %s37_s27, 0 }
   0xf   : > { %p1452_p5 = por %p49_p2, %p48_p1  ;;  %s69_s29 = sadd.s32 1, %s1334_s15 }
  0x10   : > { %s1825_s25 = smov (%p30_p3, %s1823_s25), 0  ;;  %p76_p6 = scmp.ne.s32.totalorder %s1334_s15, %s1330_s14 }
  0x11   : > { %1804 = sst [smem:[#allocation6_spill]] %s1825_s25  ;;  %s65_s4 = ssub.s32 %s1358_s21, %s1825_s25 }
  0x12   : > { %s1460_s30 = scalar_select %p39_p4, %s1342_s17, %s41_s26  }
  0x13   : > { %s66_s5 = sor.u32 %s65_s4, %s37_s27  ;;  %p121_p7 = scmp.eq.s32.totalorder %s65_s4, 0 }
  0x14   : > { %p67_p8 = scmp.eq.s32.totalorder %s66_s5, 0  ;;  %p1466_p9 = por %p76_p6, %p49_p2 }
  0x15   : > { %s123_s7 = sadd.s32 1, %s1326_s13  ;;  %p133_p10 = scmp.ne.s32.totalorder %s1326_s13, %s1322_s12 }
  0x16   : > { %s1474_s8 = scalar_select %p67_p8, %s1334_s15, %s69_s29  }
  0x17   : > { %s1477_s9 = scalar_select %p121_p7, %s1326_s13, %s123_s7  }
  0x18   : > { %p134_p11 = scmp.eq.s32.totalorder %s1035_s23, 9  ;;  %p1038_p13 = scmp.ge.s32.totalorder %s1362_s22, 10 }
  0x1a   : > { %p1479_p12 = por %p134_p11, %p133_p10  ;;  %156 = sbr.rel (%p1038_p13) target bundleno = 85 (0x55), region = 16 }
  0x21   : > { %159 = sbr.rel (!%p1452_p5) target bundleno = 59 (0x3b), region = 20  ;;  %s161_s11 = sand.u32 (%p1452_p5), 1, %s1342_s17  }
  0x22   : > { %s1057_s26 = sshll.u32 (%p1452_p5), %s1354_s20, 4  ;;  %s1039_s27 = sshll.u32 (%p1452_p5), %s161_s11, 8 }
  0x23   : > { %s1807_s0 = sld [smem:[#allocation7_spill]] (%p1452_p5)  ;;  %s1496_s23 = scalar_lea.vmem (%p1452_p5), [#allocation3], %s1039_s27 }
  0x29   : > { %s1491_s5 = scalar_lea.vmem %s1807_s0, %s1057_s26 }
  0x2a   : > { %v182_v0 = vld [vmem:[%s1491_s5] sm:$0xff]  ;;  %v184_v1 = vld [vmem:[%s1491_s5 + $0x8] sm:$0xff]  ;;  %v186_v2 = vld [vmem:[%s1491_s5 + $0x50] sm:$0xff] }
  0x2b   : > { %183 = vst [vmem:[%s1496_s23] sm:$0xff] %v182_v0  ;;  %185 = vst [vmem:[%s1496_s23 + $0x8] sm:$0xff] %v184_v1  ;;  %v188_v3 = vld [vmem:[%s1491_s5 + $0x58] sm:$0xff]  ;;  %v190_v4 = vld [vmem:[%s1491_s5 + $0xa0] sm:$0xff] }
  0x2c   : > { %187 = vst [vmem:[%s1496_s23 + $0x10] sm:$0xff] %v186_v2  ;;  %v192_v5 = vld [vmem:[%s1491_s5 + $0xa8] sm:$0xff]  ;;  %189 = vst [vmem:[%s1496_s23 + $0x18] sm:$0xff] %v188_v3  ;;  %v194_v6 = vld [vmem:[%s1491_s5 + $0xf0] sm:$0xff] }
  0x2d   : > { %191 = vst [vmem:[%s1496_s23 + $0x20] sm:$0xff] %v190_v4  ;;  %193 = vst [vmem:[%s1496_s23 + $0x28] sm:$0xff] %v192_v5  ;;  %v196_v7 = vld [vmem:[%s1491_s5 + $0xf8] sm:$0xff]  ;;  %v198_v8 = vld [vmem:[%s1491_s5 + $0x140] sm:$0xff] }
  0x2e   : > { %195 = vst [vmem:[%s1496_s23 + $0x30] sm:$0xff] %v194_v6  ;;  %197 = vst [vmem:[%s1496_s23 + $0x38] sm:$0xff] %v196_v7  ;;  %v200_v9 = vld [vmem:[%s1491_s5 + $0x148] sm:$0xff]  ;;  %v202_v10 = vld [vmem:[%s1491_s5 + $0x190] sm:$0xff] }
  0x2f   : > { %199 = vst [vmem:[%s1496_s23 + $0x40] sm:$0xff] %v198_v8  ;;  %v204_v11 = vld [vmem:[%s1491_s5 + $0x198] sm:$0xff]  ;;  %201 = vst [vmem:[%s1496_s23 + $0x48] sm:$0xff] %v200_v9  ;;  %v206_v12 = vld [vmem:[%s1491_s5 + $0x1e0] sm:$0xff] }
  0x30   : > { %203 = vst [vmem:[%s1496_s23 + $0x50] sm:$0xff] %v202_v10  ;;  %205 = vst [vmem:[%s1496_s23 + $0x58] sm:$0xff] %v204_v11  ;;  %v208_v13 = vld [vmem:[%s1491_s5 + $0x1e8] sm:$0xff]  ;;  %v210_v14 = vld [vmem:[%s1491_s5 + $0x230] sm:$0xff] }
  0x31   : > { %207 = vst [vmem:[%s1496_s23 + $0x60] sm:$0xff] %v206_v12  ;;  %209 = vst [vmem:[%s1496_s23 + $0x68] sm:$0xff] %v208_v13  ;;  %v212_v15 = vld [vmem:[%s1491_s5 + $0x238] sm:$0xff]  ;;  %v214_v16 = vld [vmem:[%s1491_s5 + $0x280] sm:$0xff] }
  0x32   : > { %211 = vst [vmem:[%s1496_s23 + $0x70] sm:$0xff] %v210_v14  ;;  %v216_v17 = vld [vmem:[%s1491_s5 + $0x288] sm:$0xff]  ;;  %213 = vst [vmem:[%s1496_s23 + $0x78] sm:$0xff] %v212_v15  ;;  %v218_v18 = vld [vmem:[%s1491_s5 + $0x2d0] sm:$0xff] }
  0x33   : > { %215 = vst [vmem:[%s1496_s23 + $0x80] sm:$0xff] %v214_v16  ;;  %217 = vst [vmem:[%s1496_s23 + $0x88] sm:$0xff] %v216_v17  ;;  %v220_v19 = vld [vmem:[%s1491_s5 + $0x2d8] sm:$0xff]  ;;  %v222_v20 = vld [vmem:[%s1491_s5 + $0x320] sm:$0xff] }
  0x34   : > { %219 = vst [vmem:[%s1496_s23 + $0x90] sm:$0xff] %v218_v18  ;;  %221 = vst [vmem:[%s1496_s23 + $0x98] sm:$0xff] %v220_v19  ;;  %v224_v21 = vld [vmem:[%s1491_s5 + $0x328] sm:$0xff]  ;;  %v226_v22 = vld [vmem:[%s1491_s5 + $0x370] sm:$0xff] }
  0x35   : > { %223 = vst [vmem:[%s1496_s23 + $0xa0] sm:$0xff] %v222_v20  ;;  %v228_v23 = vld [vmem:[%s1491_s5 + $0x378] sm:$0xff]  ;;  %225 = vst [vmem:[%s1496_s23 + $0xa8] sm:$0xff] %v224_v21  ;;  %v230_v24 = vld [vmem:[%s1491_s5 + $0x3c0] sm:$0xff] }
  0x36   : > { %227 = vst [vmem:[%s1496_s23 + $0xb0] sm:$0xff] %v226_v22  ;;  %229 = vst [vmem:[%s1496_s23 + $0xb8] sm:$0xff] %v228_v23  ;;  %v232_v25 = vld [vmem:[%s1491_s5 + $0x3c8] sm:$0xff]  ;;  %v234_v26 = vld [vmem:[%s1491_s5 + $0x410] sm:$0xff] }
  0x37   : > { %231 = vst [vmem:[%s1496_s23 + $0xc0] sm:$0xff] %v230_v24  ;;  %233 = vst [vmem:[%s1496_s23 + $0xc8] sm:$0xff] %v232_v25  ;;  %v236_v27 = vld [vmem:[%s1491_s5 + $0x418] sm:$0xff]  ;;  %v238_v28 = vld [vmem:[%s1491_s5 + $0x460] sm:$0xff] }
  0x38   : > { %235 = vst [vmem:[%s1496_s23 + $0xd0] sm:$0xff] %v234_v26  ;;  %v240_v29 = vld [vmem:[%s1491_s5 + $0x468] sm:$0xff]  ;;  %237 = vst [vmem:[%s1496_s23 + $0xd8] sm:$0xff] %v236_v27  ;;  %v242_v30 = vld [vmem:[%s1491_s5 + $0x4b0] sm:$0xff] }
  0x39   : > { %239 = vst [vmem:[%s1496_s23 + $0xe0] sm:$0xff] %v238_v28  ;;  %241 = vst [vmem:[%s1496_s23 + $0xe8] sm:$0xff] %v240_v29  ;;  %v244_v31 = vld [vmem:[%s1491_s5 + $0x4b8] sm:$0xff] }
  0x3a   : > { %243 = vst [vmem:[%s1496_s23 + $0xf0] sm:$0xff] %v242_v30  ;;  %245 = vst [vmem:[%s1496_s23 + $0xf8] sm:$0xff] %v244_v31 }
  0x3b PF: > { %251 = sbr.rel (!%p1466_p9) target bundleno = 85 (0x55), region = 43  ;;  %s253_s28 = sand.u32 (%p1466_p9), 1, %s1334_s15  }
  0x3c   : > { %s1058_s7 = sshll.u32 (%p1466_p9), %s1354_s20, 6  ;;  %s1042_s11 = sshll.u32 (%p1466_p9), %s253_s28, 8 }
  0x3d   : > { %s258_s26 = sadd.s32 (%p1466_p9), %s1358_s21, %s1058_s7  ;;  %s1808_s1 = sld [smem:[#allocation8_spill]] (%p1466_p9) }
  0x3e   : > { %s1045_s27 = sshll.u32 (%p1466_p9), %s258_s26, 3  ;;  %s1572_s6 = scalar_lea.vmem (%p1466_p9), [#allocation4], %s1042_s11 }
  0x43   : > { %s1567_s0 = scalar_lea.vmem %s1808_s1, %s1045_s27 }
  0x44   : > { %v350_v32 = vld [vmem:[%s1567_s0] sm:$0xff]  ;;  %v352_v33 = vld [vmem:[%s1567_s0 + $0x10] sm:$0xff] }
  0x45   : > { %v354_v34 = vld [vmem:[%s1567_s0 + $0x20] sm:$0xff]  ;;  %351 = vst [vmem:[%s1572_s6] sm:$0xff] %v350_v32  ;;  %353 = vst [vmem:[%s1572_s6 + $0x8] sm:$0xff] %v352_v33  ;;  %v356_v35 = vld [vmem:[%s1567_s0 + $0x30] sm:$0xff] }
  0x46   : > { %355 = vst [vmem:[%s1572_s6 + $0x10] sm:$0xff] %v354_v34  ;;  %v358_v36 = vld [vmem:[%s1567_s0 + $0x40] sm:$0xff]  ;;  %v360_v37 = vld [vmem:[%s1567_s0 + $0x50] sm:$0xff]  ;;  %357 = vst [vmem:[%s1572_s6 + $0x18] sm:$0xff] %v356_v35 }
  0x47   : > { %359 = vst [vmem:[%s1572_s6 + $0x20] sm:$0xff] %v358_v36  ;;  %361 = vst [vmem:[%s1572_s6 + $0x28] sm:$0xff] %v360_v37  ;;  %v362_v38 = vld [vmem:[%s1567_s0 + $0x60] sm:$0xff]  ;;  %v364_v39 = vld [vmem:[%s1567_s0 + $0x70] sm:$0xff] }
  0x48   : > { %v366_v40 = vld [vmem:[%s1567_s0 + $0x80] sm:$0xff]  ;;  %363 = vst [vmem:[%s1572_s6 + $0x30] sm:$0xff] %v362_v38  ;;  %365 = vst [vmem:[%s1572_s6 + $0x38] sm:$0xff] %v364_v39  ;;  %v368_v41 = vld [vmem:[%s1567_s0 + $0x90] sm:$0xff] }
  0x49   : > { %367 = vst [vmem:[%s1572_s6 + $0x40] sm:$0xff] %v366_v40  ;;  %v370_v42 = vld [vmem:[%s1567_s0 + $0xa0] sm:$0xff]  ;;  %v372_v43 = vld [vmem:[%s1567_s0 + $0xb0] sm:$0xff]  ;;  %369 = vst [vmem:[%s1572_s6 + $0x48] sm:$0xff] %v368_v41 }
  0x4a   : > { %371 = vst [vmem:[%s1572_s6 + $0x50] sm:$0xff] %v370_v42  ;;  %373 = vst [vmem:[%s1572_s6 + $0x58] sm:$0xff] %v372_v43  ;;  %v374_v44 = vld [vmem:[%s1567_s0 + $0xc0] sm:$0xff]  ;;  %v376_v45 = vld [vmem:[%s1567_s0 + $0xd0] sm:$0xff] }
  0x4b   : > { %v378_v46 = vld [vmem:[%s1567_s0 + $0xe0] sm:$0xff]  ;;  %375 = vst [vmem:[%s1572_s6 + $0x60] sm:$0xff] %v374_v44  ;;  %377 = vst [vmem:[%s1572_s6 + $0x68] sm:$0xff] %v376_v45  ;;  %v380_v47 = vld [vmem:[%s1567_s0 + $0xf0] sm:$0xff] }
  0x4c   : > { %379 = vst [vmem:[%s1572_s6 + $0x70] sm:$0xff] %v378_v46  ;;  %v382_v48 = vld [vmem:[%s1567_s0 + $0x100] sm:$0xff]  ;;  %v384_v49 = vld [vmem:[%s1567_s0 + $0x110] sm:$0xff]  ;;  %381 = vst [vmem:[%s1572_s6 + $0x78] sm:$0xff] %v380_v47 }
  0x4d   : > { %383 = vst [vmem:[%s1572_s6 + $0x80] sm:$0xff] %v382_v48  ;;  %385 = vst [vmem:[%s1572_s6 + $0x88] sm:$0xff] %v384_v49  ;;  %v386_v50 = vld [vmem:[%s1567_s0 + $0x120] sm:$0xff]  ;;  %v388_v51 = vld [vmem:[%s1567_s0 + $0x130] sm:$0xff] }
  0x4e   : > { %v390_v52 = vld [vmem:[%s1567_s0 + $0x140] sm:$0xff]  ;;  %387 = vst [vmem:[%s1572_s6 + $0x90] sm:$0xff] %v386_v50  ;;  %389 = vst [vmem:[%s1572_s6 + $0x98] sm:$0xff] %v388_v51  ;;  %v392_v53 = vld [vmem:[%s1567_s0 + $0x150] sm:$0xff] }
  0x4f   : > { %391 = vst [vmem:[%s1572_s6 + $0xa0] sm:$0xff] %v390_v52  ;;  %v394_v54 = vld [vmem:[%s1567_s0 + $0x160] sm:$0xff]  ;;  %v396_v55 = vld [vmem:[%s1567_s0 + $0x170] sm:$0xff]  ;;  %393 = vst [vmem:[%s1572_s6 + $0xa8] sm:$0xff] %v392_v53 }
  0x50   : > { %395 = vst [vmem:[%s1572_s6 + $0xb0] sm:$0xff] %v394_v54  ;;  %397 = vst [vmem:[%s1572_s6 + $0xb8] sm:$0xff] %v396_v55  ;;  %v398_v56 = vld [vmem:[%s1567_s0 + $0x180] sm:$0xff]  ;;  %v400_v57 = vld [vmem:[%s1567_s0 + $0x190] sm:$0xff] }
  0x51   : > { %v402_v58 = vld [vmem:[%s1567_s0 + $0x1a0] sm:$0xff]  ;;  %399 = vst [vmem:[%s1572_s6 + $0xc0] sm:$0xff] %v398_v56  ;;  %401 = vst [vmem:[%s1572_s6 + $0xc8] sm:$0xff] %v400_v57  ;;  %v404_v59 = vld [vmem:[%s1567_s0 + $0x1b0] sm:$0xff] }
  0x52   : > { %403 = vst [vmem:[%s1572_s6 + $0xd0] sm:$0xff] %v402_v58  ;;  %v406_v60 = vld [vmem:[%s1567_s0 + $0x1c0] sm:$0xff]  ;;  %v408_v61 = vld [vmem:[%s1567_s0 + $0x1d0] sm:$0xff]  ;;  %405 = vst [vmem:[%s1572_s6 + $0xd8] sm:$0xff] %v404_v59 }
  0x53   : > { %407 = vst [vmem:[%s1572_s6 + $0xe0] sm:$0xff] %v406_v60  ;;  %409 = vst [vmem:[%s1572_s6 + $0xe8] sm:$0xff] %v408_v61  ;;  %v410_v62 = vld [vmem:[%s1567_s0 + $0x1e0] sm:$0xff]  ;;  %v412_v63 = vld [vmem:[%s1567_s0 + $0x1f0] sm:$0xff] }
  0x54   : > { %411 = vst [vmem:[%s1572_s6 + $0xf0] sm:$0xff] %v410_v62  ;;  %413 = vst [vmem:[%s1572_s6 + $0xf8] sm:$0xff] %v412_v63 }
  0x55 PF: > { %p1046_p0 = scmp.ge.s32.totalorder %s1362_s22, 1  ;;  %p424_p1 = scmp.lt.s32.totalorder %s1362_s22, 11 }
  0x57   : > { %p425_p2 = pnand %p1046_p0, %p424_p1 }
  0x58   : > { %s431_s5 = sand.u32 (!%p425_p2), 1, %s1338_s16   ;;  %s438_s23 = sand.u32 (!%p425_p2), 1, %s1330_s14  }
  0x59   : > { %428 = sbr.rel (%p425_p2) target bundleno = 410 (0x19a), region = 85  ;;  %s1047_s28 = sshll.u32 (!%p425_p2), %s431_s5, 8 }
  0x5a   : > { %s1048_s7 = sshll.u32 (!%p425_p2), %s438_s23, 8  ;;  %s464_s0 = sand.u32 (!%p425_p2), 1, %s1322_s12  }
  0x5b   : > { %p470_p3 = scmp.lt.s32.totalorder (!%p425_p2), %s1350_s19, 1  ;;  %s1049_s11 = sshll.u32 (!%p425_p2), %s464_s0, 7 }
  0x5c   : > { %s1648_s6 = scalar_lea.vmem (!%p425_p2), [#allocation3], %s1047_s28  ;;  %s1650_s1 = scalar_lea.vmem (!%p425_p2), [#allocation4], %s1048_s7 }
  0x5d   : > { %s1652_s25 = scalar_lea.vmem (!%p425_p2), [#allocation5], %s1049_s11  ;;  %p1050_p4 = scmp.ne.s32.totalorder (!%p425_p2), %s1346_s18, 0 }
  0x60   : > { %s1642_s26 = scalar_select %p470_p3, %s1350_s19, 1 }
  0x61   : > { %477 = sbr.rel (%p1050_p4) target bundleno = 106 (0x6a), region = 97  ;;  %v1364_v0 = vmov (!%p1050_p4), 0.0  }
  0x62   : > { %s472_s4 = scalar_lea.vmem %s1798_s2, %s1642_s26  ;;  %478 = vst [vmem:[#allocation2] sm:$0xff] (!%p1050_p4), %v1364_v0  ;;  %479 = vst [vmem:[#allocation2 + $0x8] sm:$0xff] (!%p1050_p4), %v1364_v0 }
  0x63   : > { %480 = vst [vmem:[#allocation2 + $0x10] sm:$0xff] (!%p1050_p4), %v1364_v0  ;;  %481 = vst [vmem:[#allocation2 + $0x18] sm:$0xff] (!%p1050_p4), %v1364_v0 }
  0x64   : > { %482 = vst [vmem:[#allocation2 + $0x20] sm:$0xff] (!%p1050_p4), %v1364_v0  ;;  %483 = vst [vmem:[#allocation2 + $0x28] sm:$0xff] (!%p1050_p4), %v1364_v0 }
  0x65   : > { %484 = vst [vmem:[#allocation2 + $0x30] sm:$0xff] (!%p1050_p4), %v1364_v0  ;;  %485 = vst [vmem:[#allocation2 + $0x38] sm:$0xff] (!%p1050_p4), %v1364_v0 }
  0x66   : > { %486 = vst [vmem:[#allocation2 + $0x40] sm:$0xff] (!%p1050_p4), %v1364_v0  ;;  %487 = vst [vmem:[#allocation2 + $0x48] sm:$0xff] (!%p1050_p4), %v1364_v0 }
  0x67   : > { %488 = vst [vmem:[#allocation2 + $0x50] sm:$0xff] (!%p1050_p4), %v1364_v0  ;;  %489 = vst [vmem:[#allocation2 + $0x58] sm:$0xff] (!%p1050_p4), %v1364_v0 }
  0x68   : > { %490 = vst [vmem:[#allocation2 + $0x60] sm:$0xff] %v1364_v0  ;;  %491 = vst [vmem:[#allocation2 + $0x68] sm:$0xff] %v1364_v0 }
  0x69   : > { %492 = vst [vmem:[#allocation2 + $0x70] sm:$0xff] %v1364_v0  ;;  %493 = vst [vmem:[#allocation2 + $0x78] sm:$0xff] %v1364_v0 }
  0x6a PF: > { %v558_v1 = vld [vmem:[%s1650_s1 + $0x80] sm:$0xff]  ;;  %v559_v2 = vld [vmem:[%s1650_s1 + $0x88] sm:$0xff]  ;;  %v560_v6 = vld [vmem:[%s1650_s1 + $0x90] sm:$0xff]  ;;  %p1051_p5 = scmp.ne.s32.totalorder %s1346_s18, 4 }
  0x6b   : > { %v542_v3 = vld [vmem:[%s1650_s1] sm:$0xff]  ;;  %v1139_v4 = vpack.c.bf16 %v559_v2, %v558_v1  ;;  %v543_v5 = vld [vmem:[%s1650_s1 + $0x8] sm:$0xff]  ;;  %v561_v7 = vld [vmem:[%s1650_s1 + $0x98] sm:$0xff] }
  0x6c   : > { %v1141_v8 = vpack.c.bf16 %v543_v5, %v542_v3  ;;  %v1143_v9 = vpack.c.bf16 %v561_v7, %v560_v6  ;;  %v544_v10 = vld [vmem:[%s1650_s1 + $0x10] sm:$0xff]  ;;  %v545_v11 = vld [vmem:[%s1650_s1 + $0x18] sm:$0xff]  ;;  %v562_v12 = vld [vmem:[%s1650_s1 + $0xa0] sm:$0xff] }
  0x6d   : > { %1140 = vmatprep.subr.bf16.mxu0 %v1139_v4  ;;  %1171 = vmatprep.subr.bf16.mxu1 %v1139_v4  ;;  %v563_v13 = vld [vmem:[%s1650_s1 + $0xa8] sm:$0xff]  ;;  %v1145_v14 = vpack.c.bf16 %v545_v11, %v544_v10  ;;  %v546_v16 = vld [vmem:[%s1650_s1 + $0x20] sm:$0xff]  ;;  %v564_v18 = vld [vmem:[%s1650_s1 + $0xb0] sm:$0xff] }
  0x6e   : > { %1142 = vmatpush3.bf16.msra.mxu0 %v1141_v8  ;;  %1179 = vmatpush3.bf16.msra.mxu1 %v1141_v8  ;;  %v1147_v15 = vpack.c.bf16 %v563_v13, %v562_v12  ;;  %v547_v17 = vld [vmem:[%s1650_s1 + $0x28] sm:$0xff]  ;;  %v565_v19 = vld [vmem:[%s1650_s1 + $0xb8] sm:$0xff]  ;;  %v548_v22 = vld [vmem:[%s1650_s1 + $0x30] sm:$0xff] }
  0x6f   : > { %1144 = vmatprep.subr.bf16.mxu0 %v1143_v9  ;;  %1172 = vmatprep.subr.bf16.mxu1 %v1143_v9  ;;  %v1149_v20 = vpack.c.bf16 %v547_v17, %v546_v16  ;;  %v1151_v21 = vpack.c.bf16 %v565_v19, %v564_v18  ;;  %v549_v23 = vld [vmem:[%s1650_s1 + $0x38] sm:$0xff]  ;;  %v566_v24 = vld [vmem:[%s1650_s1 + $0xc0] sm:$0xff]  ;;  %v567_v25 = vld [vmem:[%s1650_s1 + $0xc8] sm:$0xff] }
  0x70   : > { %v511_v26 = vld [vmem:[%s1648_s6 + $0x8] sm:$0xff]  ;;  %v1153_v28 = vpack.c.bf16 %v549_v23, %v548_v22  ;;  %v1155_v29 = vpack.c.bf16 %v567_v25, %v566_v24  ;;  %v550_v30 = vld [vmem:[%s1650_s1 + $0x40] sm:$0xff]  ;;  %v568_v32 = vld [vmem:[%s1650_s1 + $0xd0] sm:$0xff] }
  0x71   : > { %638 = vmatprep.mubr.f32.mxu0 %v511_v26  ;;  %v527_v27 = vld [vmem:[%s1648_s6 + $0x88] sm:$0xff]  ;;  %v569_v33 = vld [vmem:[%s1650_s1 + $0xd8] sm:$0xff]  ;;  %v552_v36 = vld [vmem:[%s1650_s1 + $0x50] sm:$0xff] }
  0x72   : > { %1146 = vmatpush3.bf16.msra.mxu0 %v1145_v14  ;;  %1180 = vmatpush3.bf16.msra.mxu1 %v1145_v14  ;;  %v551_v31 = vld [vmem:[%s1650_s1 + $0x48] sm:$0xff]  ;;  %v1159_v35 = vpack.c.bf16 %v569_v33, %v568_v32  ;;  %v553_v37 = vld [vmem:[%s1650_s1 + $0x58] sm:$0xff]  ;;  %v570_v38 = vld [vmem:[%s1650_s1 + $0xe0] sm:$0xff] }
  0x73   : > { %1148 = vmatprep.subr.bf16.mxu0 %v1147_v15  ;;  %1173 = vmatprep.subr.bf16.mxu1 %v1147_v15  ;;  %v1157_v34 = vpack.c.bf16 %v551_v31, %v550_v30  ;;  %v571_v39 = vld [vmem:[%s1650_s1 + $0xe8] sm:$0xff]  ;;  %v1161_v40 = vpack.c.bf16 %v553_v37, %v552_v36  ;;  %v554_v42 = vld [vmem:[%s1650_s1 + $0x60] sm:$0xff]  ;;  %v572_v44 = vld [vmem:[%s1650_s1 + $0xf0] sm:$0xff] }
  0x74   : > { %678 = vmatprep.mubr.f32.mxu1 %v527_v27  ;;  %v1163_v41 = vpack.c.bf16 %v571_v39, %v570_v38  ;;  %v555_v43 = vld [vmem:[%s1650_s1 + $0x68] sm:$0xff]  ;;  %v573_v45 = vld [vmem:[%s1650_s1 + $0xf8] sm:$0xff]  ;;  %v556_v48 = vld [vmem:[%s1650_s1 + $0x70] sm:$0xff] }
  0x75   : > { %v1165_v46 = vpack.c.bf16 %v555_v43, %v554_v42  ;;  %v1167_v47 = vpack.c.bf16 %v573_v45, %v572_v44  ;;  %v557_v49 = vld [vmem:[%s1650_s1 + $0x78] sm:$0xff]  ;;  %v510_v51 = vld [vmem:[%s1648_s6] sm:$0xff]  ;;  %v512_v55 = vld [vmem:[%s1648_s6 + $0x10] sm:$0xff] }
  0x76   : > { %1150 = vmatpush3.bf16.msra.mxu0 %v1149_v20  ;;  %1181 = vmatpush3.bf16.msra.mxu1 %v1149_v20  ;;  %v1169_v50 = vpack.c.bf16 %v557_v49, %v556_v48  ;;  %v526_v52 = vld [vmem:[%s1648_s6 + $0x80] sm:$0xff]  ;;  %v513_v53 = vld [vmem:[%s1648_s6 + $0x18] sm:$0xff]  ;;  %v528_v56 = vld [vmem:[%s1648_s6 + $0x90] sm:$0xff] }
  0x77   : > { %1152 = vmatprep.subr.bf16.mxu0 %v1151_v21  ;;  %1174 = vmatprep.subr.bf16.mxu1 %v1151_v21  ;;  %v529_v54 = vld [vmem:[%s1648_s6 + $0x98] sm:$0xff]  ;;  %v515_v57 = vld [vmem:[%s1648_s6 + $0x28] sm:$0xff]  ;;  %v514_v59 = vld [vmem:[%s1648_s6 + $0x20] sm:$0xff] }
  0x78   : > { %v531_v58 = vld [vmem:[%s1648_s6 + $0xa8] sm:$0xff]  ;;  %v530_v60 = vld [vmem:[%s1648_s6 + $0xa0] sm:$0xff]  ;;  %v517_v61 = vld [vmem:[%s1648_s6 + $0x38] sm:$0xff] }
  0x79   : > { %v533_v62 = vld [vmem:[%s1648_s6 + $0xb8] sm:$0xff]  ;;  %v516_v63 = vld [vmem:[%s1648_s6 + $0x30] sm:$0xff]  ;;  %v519_v1 = vld [vmem:[%s1648_s6 + $0x48] sm:$0xff] }
  0x7a   : > { %1154 = vmatpush3.bf16.msra.mxu0 %v1153_v28  ;;  %1182 = vmatpush3.bf16.msra.mxu1 %v1153_v28  ;;  %v532_v0 = vld [vmem:[%s1648_s6 + $0xb0] sm:$0xff]  ;;  %v535_v2 = vld [vmem:[%s1648_s6 + $0xc8] sm:$0xff]  ;;  %v518_v3 = vld [vmem:[%s1648_s6 + $0x40] sm:$0xff] }
  0x7b   : > { %1156 = vmatprep.subr.bf16.mxu0 %v1155_v29  ;;  %1175 = vmatprep.subr.bf16.mxu1 %v1155_v29  ;;  %v534_v4 = vld [vmem:[%s1648_s6 + $0xc0] sm:$0xff]  ;;  %v521_v5 = vld [vmem:[%s1648_s6 + $0x58] sm:$0xff]  ;;  %v520_v7 = vld [vmem:[%s1648_s6 + $0x50] sm:$0xff] }
  0x7c   : > { %v537_v6 = vld [vmem:[%s1648_s6 + $0xd8] sm:$0xff]  ;;  %v536_v8 = vld [vmem:[%s1648_s6 + $0xd0] sm:$0xff]  ;;  %v523_v9 = vld [vmem:[%s1648_s6 + $0x68] sm:$0xff] }
  0x7d   : > { %v539_v10 = vld [vmem:[%s1648_s6 + $0xe8] sm:$0xff]  ;;  %v522_v11 = vld [vmem:[%s1648_s6 + $0x60] sm:$0xff]  ;;  %v525_v13 = vld [vmem:[%s1648_s6 + $0x78] sm:$0xff] }
  0x7e   : > { %1158 = vmatpush3.bf16.msra.mxu0 %v1157_v34  ;;  %1183 = vmatpush3.bf16.msra.mxu1 %v1157_v34  ;;  %v538_v12 = vld [vmem:[%s1648_s6 + $0xe0] sm:$0xff]  ;;  %v541_v14 = vld [vmem:[%s1648_s6 + $0xf8] sm:$0xff]  ;;  %v524_v15 = vld [vmem:[%s1648_s6 + $0x70] sm:$0xff] }
  0x7f   : > { %1160 = vmatprep.subr.bf16.mxu0 %v1159_v35  ;;  %1176 = vmatprep.subr.bf16.mxu1 %v1159_v35  ;;  %v540_v16 = vld [vmem:[%s1648_s6 + $0xf0] sm:$0xff]  ;;  %v494_v19 = vld [vmem:[#allocation2] sm:$0xff]  ;;  %v495_v29 = vld [vmem:[#allocation2 + $0x8] sm:$0xff] }
  0x80   : > { %v502_v21 = vld [vmem:[#allocation2 + $0x40] sm:$0xff]  ;;  %v503_v31 = vld [vmem:[#allocation2 + $0x48] sm:$0xff]  ;;  %v496_v39 = vld [vmem:[#allocation2 + $0x10] sm:$0xff] }
  0x81   : > { %v497_v49 = vld [vmem:[#allocation2 + $0x18] sm:$0xff] }
  0x82   : > { %1162 = vmatpush3.bf16.msra.mxu0 %v1161_v40  ;;  %1184 = vmatpush3.bf16.msra.mxu1 %v1161_v40 }
  0x83   : > { %1164 = vmatprep.subr.bf16.mxu0 %v1163_v41  ;;  %1177 = vmatprep.subr.bf16.mxu1 %v1163_v41  ;;  %v504_v41 = vld [vmem:[#allocation2 + $0x50] sm:$0xff] }
  0x86   : > { %1166 = vmatpush3.bf16.msra.mxu0 %v1165_v46  ;;  %1185 = vmatpush3.bf16.msra.mxu1 %v1165_v46 }
  0x87   : > { %1168 = vmatprep.subr.bf16.mxu0 %v1167_v47  ;;  %1178 = vmatprep.subr.bf16.mxu1 %v1167_v47 }
  0x8a   : > { %1170 = vmatpush3.bf16.msra.mxu0 %v1169_v50  ;;  %1186 = vmatpush3.bf16.msra.mxu1 %v1169_v50 }
  0x8d   : > { %639 = vmatmul.mubr.f32.vlgmr.msra.gmra.mrb[0].mxu0 %v510_v51  ;;  %679 = vmatmul.mubr.f32.vlgmr.msra.gmra.mrb[0].mxu1 %v526_v52  ;;  %v505_v51 = vld [vmem:[#allocation2 + $0x58] sm:$0xff] }
  0x8e   : > { %643 = vmatprep.mubr.f32.mxu0 %v513_v53  ;;  %683 = vmatprep.mubr.f32.mxu1 %v529_v54 }
  0x91   : > { %644 = vmatmul.mubr.f32.gmra.mrb[2].mxu0 %v512_v55  ;;  %684 = vmatmul.mubr.f32.gmra.mrb[2].mxu1 %v528_v56 }
  0x92   : > { %648 = vmatprep.mubr.f32.mxu0 %v515_v57  ;;  %688 = vmatprep.mubr.f32.mxu1 %v531_v58 }
  0x95   : > { %649 = vmatmul.mubr.f32.gmra.mrb[4].mxu0 %v514_v59  ;;  %689 = vmatmul.mubr.f32.gmra.mrb[4].mxu1 %v530_v60  ;;  %v498_v59 = vld [vmem:[#allocation2 + $0x20] sm:$0xff] }
  0x96   : > { %653 = vmatprep.mubr.f32.mxu0 %v517_v61  ;;  %693 = vmatprep.mubr.f32.mxu1 %v533_v62  ;;  %v506_v61 = vld [vmem:[#allocation2 + $0x60] sm:$0xff] }
  0x99   : > { %654 = vmatmul.mubr.f32.gmra.mrb[6].mxu0 %v516_v63  ;;  %694 = vmatmul.mubr.f32.gmra.mrb[6].mxu1 %v532_v0 }
  0x9a   : > { %658 = vmatprep.mubr.f32.mxu0 %v519_v1  ;;  %698 = vmatprep.mubr.f32.mxu1 %v535_v2 }
  0x9d   : > { %659 = vmatmul.mubr.f32.gmra.mrb[8].mxu0 %v518_v3  ;;  %699 = vmatmul.mubr.f32.gmra.mrb[8].mxu1 %v534_v4 }
  0x9e   : > { %663 = vmatprep.mubr.f32.mxu0 %v521_v5  ;;  %703 = vmatprep.mubr.f32.mxu1 %v537_v6  ;;  %v499_v5 = vld [vmem:[#allocation2 + $0x28] sm:$0xff] }
  0xa1   : > { %664 = vmatmul.mubr.f32.gmra.mrb[10].mxu0 %v520_v7  ;;  %704 = vmatmul.mubr.f32.gmra.mrb[10].mxu1 %v536_v8  ;;  %v507_v7 = vld [vmem:[#allocation2 + $0x68] sm:$0xff] }
  0xa2   : > { %668 = vmatprep.mubr.f32.mxu0 %v523_v9  ;;  %708 = vmatprep.mubr.f32.mxu1 %v539_v10 }
  0xa5   : > { %669 = vmatmul.mubr.f32.gmra.mrb[12].mxu0 %v522_v11  ;;  %709 = vmatmul.mubr.f32.gmra.mrb[12].mxu1 %v538_v12 }
  0xa6   : > { %673 = vmatprep.mubr.f32.mxu0 %v525_v13  ;;  %713 = vmatprep.mubr.f32.mxu1 %v541_v14 }
  0xa9   : > { %674 = vmatmul.mubr.f32.gmra.mrb[14].mxu0 %v524_v15  ;;  %714 = vmatmul.mubr.f32.gmra.mrb[14].mxu1 %v540_v16  ;;  %v500_v15 = vld [vmem:[#allocation2 + $0x30] sm:$0xff] }
 0x160   : > { %v1091_v17 = vpop.f32.mrb[0].mxu0  ;;  %v1115_v18 = vpop.f32.mrb[0].mxu1 }
 0x161   : > { %v1092_v20 = vpop.f32.mrb[1].mxu0  ;;  %v1116_v22 = vpop.f32.mrb[1].mxu1 }
 0x162   : > { %v1093_v23 = vadd.f32 %v1092_v20, %v1091_v17  ;;  %v1117_v24 = vadd.f32 %v1116_v22, %v1115_v18  ;;  %v508_v17 = vld [vmem:[#allocation2 + $0x70] sm:$0xff] }
 0x164   : > { %v719_v25 = vadd.f32 %v1093_v23, %v494_v19  ;;  %v727_v26 = vadd.f32 %v1117_v24, %v502_v21  ;;  %v1094_v27 = vpop.f32.mrb[2].mxu0  ;;  %v1118_v28 = vpop.f32.mrb[2].mxu1 }
 0x165   : > { %v1095_v30 = vpop.f32.mrb[3].mxu0  ;;  %v1119_v32 = vpop.f32.mrb[3].mxu1 }
 0x166   : > { %735 = vst [vmem:[#allocation2] sm:$0xff] %v719_v25  ;;  %743 = vst [vmem:[#allocation2 + $0x40] sm:$0xff] %v727_v26  ;;  %v1096_v33 = vadd.f32 %v1095_v30, %v1094_v27  ;;  %v1120_v34 = vadd.f32 %v1119_v32, %v1118_v28  ;;  %v501_v25 = vld [vmem:[#allocation2 + $0x38] sm:$0xff] }
 0x167   : > { %v509_v27 = vld [vmem:[#allocation2 + $0x78] sm:$0xff] }
 0x168   : > { %v720_v35 = vadd.f32 %v1096_v33, %v495_v29  ;;  %v728_v36 = vadd.f32 %v1120_v34, %v503_v31  ;;  %v1097_v37 = vpop.f32.mrb[4].mxu0  ;;  %v1121_v38 = vpop.f32.mrb[4].mxu1  ;;  %v1052_v34 = vld [vmem:[%s472_s4] ss:$0 sm:$0xff] (!%p1051_p5) }
 0x169   : > { %v1098_v40 = vpop.f32.mrb[5].mxu0  ;;  %v1122_v42 = vpop.f32.mrb[5].mxu1 }
 0x16a   : > { %736 = vst [vmem:[#allocation2 + $0x8] sm:$0xff] %v720_v35  ;;  %744 = vst [vmem:[#allocation2 + $0x48] sm:$0xff] %v728_v36  ;;  %v1099_v43 = vadd.f32 %v1098_v40, %v1097_v37  ;;  %v1123_v44 = vadd.f32 %v1122_v42, %v1121_v38 }
 0x16c   : > { %v721_v45 = vadd.f32 %v1099_v43, %v496_v39  ;;  %v729_v46 = vadd.f32 %v1123_v44, %v504_v41  ;;  %v1100_v47 = vpop.f32.mrb[6].mxu0  ;;  %v1124_v48 = vpop.f32.mrb[6].mxu1 }
 0x16d   : > { %v1101_v50 = vpop.f32.mrb[7].mxu0  ;;  %v1125_v52 = vpop.f32.mrb[7].mxu1  ;;  %v755_v33 = vld [vmem:[#allocation2] sm:$0xff] (!%p1051_p5) }
 0x16e   : > { %737 = vst [vmem:[#allocation2 + $0x10] sm:$0xff] %v721_v45  ;;  %745 = vst [vmem:[#allocation2 + $0x50] sm:$0xff] %v729_v46  ;;  %v1102_v53 = vadd.f32 %v1101_v50, %v1100_v47  ;;  %v1126_v54 = vadd.f32 %v1125_v52, %v1124_v48  ;;  %v778_v36 = vadd.f32 (!%p1051_p5), %v1052_v34, %v755_v33 }
 0x170   : > { %v722_v55 = vadd.f32 %v1102_v53, %v497_v49  ;;  %v730_v56 = vadd.f32 %v1126_v54, %v505_v51  ;;  %v1103_v57 = vpop.f32.mrb[8].mxu0  ;;  %v1127_v58 = vpop.f32.mrb[8].mxu1  ;;  %v794_v47 = vmax.f32 (!%p1051_p5), %v778_v36, 0.0  ;;  %v763_v51 = vld [vmem:[#allocation2 + $0x40] sm:$0xff] (!%p1051_p5) }
 0x171   : > { %v1104_v60 = vpop.f32.mrb[9].mxu0  ;;  %v1128_v62 = vpop.f32.mrb[9].mxu1  ;;  %v756_v35 = vld [vmem:[#allocation2 + $0x8] sm:$0xff] (!%p1051_p5) }
 0x172   : > { %738 = vst [vmem:[#allocation2 + $0x18] sm:$0xff] %v722_v55  ;;  %746 = vst [vmem:[#allocation2 + $0x58] sm:$0xff] %v730_v56  ;;  %v1105_v63 = vadd.f32 %v1104_v60, %v1103_v57  ;;  %v1129_v0 = vadd.f32 %v1128_v62, %v1127_v58  ;;  %v779_v37 = vadd.f32 (!%p1051_p5), %v1052_v34, %v756_v35  ;;  %v764_v52 = vld [vmem:[#allocation2 + $0x48] sm:$0xff] (!%p1051_p5) }
 0x173   : > { %810 = vst [vmem:[%s1652_s25] sm:$0xff] (!%p1051_p5), %v794_v47 }
 0x174   : > { %v723_v1 = vadd.f32 %v1105_v63, %v498_v59  ;;  %v731_v2 = vadd.f32 %v1129_v0, %v506_v61  ;;  %v1106_v3 = vpop.f32.mrb[10].mxu0  ;;  %v1130_v4 = vpop.f32.mrb[10].mxu1  ;;  %v795_v48 = vmax.f32 (!%p1051_p5), %v779_v37, 0.0  ;;  %v786_v63 = vadd.f32 (!%p1051_p5), %v1052_v34, %v763_v51 }
 0x175   : > { %v1107_v6 = vpop.f32.mrb[11].mxu0  ;;  %v1131_v8 = vpop.f32.mrb[11].mxu1  ;;  %v757_v38 = vld [vmem:[#allocation2 + $0x10] sm:$0xff] (!%p1051_p5)  ;;  %v787_v0 = vadd.f32 (!%p1051_p5), %v1052_v34, %v764_v52 }
 0x176   : > { %739 = vst [vmem:[#allocation2 + $0x20] sm:$0xff] %v723_v1  ;;  %747 = vst [vmem:[#allocation2 + $0x60] sm:$0xff] %v731_v2  ;;  %v1108_v9 = vadd.f32 %v1107_v6, %v1106_v3  ;;  %v1132_v10 = vadd.f32 %v1131_v8, %v1130_v4  ;;  %v780_v41 = vadd.f32 (!%p1051_p5), %v1052_v34, %v757_v38  ;;  %v765_v53 = vld [vmem:[#allocation2 + $0x50] sm:$0xff] (!%p1051_p5) }
 0x177   : > { %811 = vst [vmem:[%s1652_s25 + $0x8] sm:$0xff] (!%p1051_p5), %v795_v48  ;;  %v788_v4 = vadd.f32 (!%p1051_p5), %v1052_v34, %v765_v53  ;;  %v803_v8 = vmax.f32 (!%p1051_p5), %v787_v0, 0.0 }
 0x178   : > { %v724_v11 = vadd.f32 %v1108_v9, %v499_v5  ;;  %v732_v12 = vadd.f32 %v1132_v10, %v507_v7  ;;  %v1109_v13 = vpop.f32.mrb[12].mxu0  ;;  %v1133_v14 = vpop.f32.mrb[12].mxu1  ;;  %v796_v54 = vmax.f32 (!%p1051_p5), %v780_v41, 0.0  ;;  %v802_v7 = vmax.f32 (!%p1051_p5), %v786_v63, 0.0 }
 0x179   : > { %v1110_v16 = vpop.f32.mrb[13].mxu0  ;;  %v1134_v18 = vpop.f32.mrb[13].mxu1  ;;  %v758_v39 = vld [vmem:[#allocation2 + $0x18] sm:$0xff] (!%p1051_p5)  ;;  %819 = vst [vmem:[%s1652_s25 + $0x48] sm:$0xff] (!%p1051_p5), %v803_v8 }
 0x17a   : > { %740 = vst [vmem:[#allocation2 + $0x28] sm:$0xff] %v724_v11  ;;  %748 = vst [vmem:[#allocation2 + $0x68] sm:$0xff] %v732_v12  ;;  %v1111_v19 = vadd.f32 %v1110_v16, %v1109_v13  ;;  %v1135_v20 = vadd.f32 %v1134_v18, %v1133_v14  ;;  %v781_v42 = vadd.f32 (!%p1051_p5), %v1052_v34, %v758_v39  ;;  %v766_v58 = vld [vmem:[#allocation2 + $0x58] sm:$0xff] (!%p1051_p5)  ;;  %v804_v11 = vmax.f32 (!%p1051_p5), %v788_v4, 0.0 }
 0x17b   : > { %812 = vst [vmem:[%s1652_s25 + $0x10] sm:$0xff] (!%p1051_p5), %v796_v54  ;;  %v789_v5 = vadd.f32 (!%p1051_p5), %v1052_v34, %v766_v58  ;;  %818 = vst [vmem:[%s1652_s25 + $0x40] sm:$0xff] (!%p1051_p5), %v802_v7 }
 0x17c   : > { %v725_v21 = vadd.f32 %v1111_v19, %v500_v15  ;;  %v733_v22 = vadd.f32 %v1135_v20, %v508_v17  ;;  %v1112_v23 = vpop.f32.mrb[14].mxu0  ;;  %v1136_v24 = vpop.f32.mrb[14].mxu1  ;;  %754 = sbr.rel (%p1051_p5) target bundleno = 400 (0x190), region = 101  ;;  %v797_v55 = vmax.f32 (!%p1051_p5), %v781_v42, 0.0  ;;  %820 = vst [vmem:[%s1652_s25 + $0x50] sm:$0xff] (!%p1051_p5), %v804_v11 }
 0x17d   : > { %v1113_v26 = vpop.f32.mrb[15].mxu0  ;;  %v1137_v28 = vpop.f32.mrb[15].mxu1  ;;  %v759_v40 = vld [vmem:[#allocation2 + $0x20] sm:$0xff] (!%p1051_p5)  ;;  %v805_v12 = vmax.f32 (!%p1051_p5), %v789_v5, 0.0 }
 0x17e   : > { %741 = vst [vmem:[#allocation2 + $0x30] sm:$0xff] %v725_v21  ;;  %749 = vst [vmem:[#allocation2 + $0x70] sm:$0xff] %v733_v22  ;;  %v1114_v29 = vadd.f32 %v1113_v26, %v1112_v23  ;;  %v1138_v30 = vadd.f32 %v1137_v28, %v1136_v24  ;;  %v782_v43 = vadd.f32 (!%p1051_p5), %v1052_v34, %v759_v40  ;;  %v767_v59 = vld [vmem:[#allocation2 + $0x60] sm:$0xff] (!%p1051_p5) }
 0x17f   : > { %813 = vst [vmem:[%s1652_s25 + $0x18] sm:$0xff] (!%p1051_p5), %v797_v55  ;;  %v790_v6 = vadd.f32 (!%p1051_p5), %v1052_v34, %v767_v59  ;;  %821 = vst [vmem:[%s1652_s25 + $0x58] sm:$0xff] (!%p1051_p5), %v805_v12 }
 0x180   : > { %v726_v31 = vadd.f32 %v1114_v29, %v501_v25  ;;  %v734_v32 = vadd.f32 %v1138_v30, %v509_v27  ;;  %v798_v56 = vmax.f32 (!%p1051_p5), %v782_v43, 0.0 }
 0x181   : > { %v760_v44 = vld [vmem:[#allocation2 + $0x28] sm:$0xff] (!%p1051_p5)  ;;  %v806_v13 = vmax.f32 (!%p1051_p5), %v790_v6, 0.0 }
 0x182   : > { %742 = vst [vmem:[#allocation2 + $0x38] sm:$0xff] %v726_v31  ;;  %750 = vst [vmem:[#allocation2 + $0x78] sm:$0xff] %v734_v32  ;;  %v783_v49 = vadd.f32 (!%p1051_p5), %v1052_v34, %v760_v44  ;;  %v768_v60 = vld [vmem:[#allocation2 + $0x68] sm:$0xff] (!%p1051_p5) }
 0x183   : > { %814 = vst [vmem:[%s1652_s25 + $0x20] sm:$0xff] %v798_v56  ;;  %v791_v9 = vadd.f32 %v1052_v34, %v768_v60  ;;  %822 = vst [vmem:[%s1652_s25 + $0x60] sm:$0xff] %v806_v13 }
 0x184   : > { %v799_v61 = vmax.f32 %v783_v49, 0.0 }
 0x185   : > { %v761_v45 = vld [vmem:[#allocation2 + $0x30] sm:$0xff]  ;;  %v807_v15 = vmax.f32 %v791_v9, 0.0 }
 0x186   : > { %v784_v50 = vadd.f32 %v1052_v34, %v761_v45  ;;  %v769_v1 = vld [vmem:[#allocation2 + $0x70] sm:$0xff]  ;;  %815 = vst [vmem:[%s1652_s25 + $0x28] sm:$0xff] %v799_v61 }
 0x187   : > { %v792_v10 = vadd.f32 %v1052_v34, %v769_v1  ;;  %823 = vst [vmem:[%s1652_s25 + $0x68] sm:$0xff] %v807_v15 }
 0x188   : > { %v800_v62 = vmax.f32 %v784_v50, 0.0 }
 0x189   : > { %v762_v46 = vld [vmem:[#allocation2 + $0x38] sm:$0xff]  ;;  %v808_v16 = vmax.f32 %v792_v10, 0.0 }
 0x18a   : > { %v785_v57 = vadd.f32 %v1052_v34, %v762_v46  ;;  %v770_v2 = vld [vmem:[#allocation2 + $0x78] sm:$0xff]  ;;  %816 = vst [vmem:[%s1652_s25 + $0x30] sm:$0xff] %v800_v62 }
 0x18b   : > { %v793_v14 = vadd.f32 %v1052_v34, %v770_v2  ;;  %824 = vst [vmem:[%s1652_s25 + $0x70] sm:$0xff] %v808_v16 }
 0x18c   : > { %v801_v3 = vmax.f32 %v785_v57, 0.0 }
 0x18d   : > { %v809_v17 = vmax.f32 %v793_v14, 0.0 }
 0x18e   : > { %817 = vst [vmem:[%s1652_s25 + $0x38] sm:$0xff] %v801_v3 }
 0x18f   : > { %825 = vst [vmem:[%s1652_s25 + $0x78] sm:$0xff] %v809_v17 }
 0x190 PF: > { %832 = sbr.rel (!%p1479_p12) target bundleno = 410 (0x19a), region = 105  ;;  %s1054_s14 = sshll.u32 (%p1479_p12), %s1350_s19, 3  ;;  %v895_v18 = vld [vmem:[%s1652_s25] sm:$0xff] (%p1479_p12)  ;;  %v897_v19 = vld [vmem:[%s1652_s25 + $0x8] sm:$0xff] (%p1479_p12)  ;;  %v899_v20 = vld [vmem:[%s1652_s25 + $0x10] sm:$0xff] (%p1479_p12) }
 0x191   : > { %s837_s5 = scalar_lea.vmem (%p1479_p12), %s1799_s3, %s1054_s14  ;;  %v905_v23 = vld [vmem:[%s1652_s25 + $0x28] sm:$0xff] (%p1479_p12)  ;;  %v907_v24 = vld [vmem:[%s1652_s25 + $0x30] sm:$0xff] (%p1479_p12)  ;;  %v911_v26 = vld [vmem:[%s1652_s25 + $0x40] sm:$0xff] (%p1479_p12) }
 0x192   : > { %896 = vst [vmem:[%s837_s5] sm:$0xff] (%p1479_p12), %v895_v18  ;;  %898 = vst [vmem:[%s837_s5 + $0x10] sm:$0xff] (%p1479_p12), %v897_v19  ;;  %v913_v27 = vld [vmem:[%s1652_s25 + $0x48] sm:$0xff] (%p1479_p12)  ;;  %v915_v28 = vld [vmem:[%s1652_s25 + $0x50] sm:$0xff] (%p1479_p12) }
 0x193   : > { %v901_v21 = vld [vmem:[%s1652_s25 + $0x18] sm:$0xff] (%p1479_p12)  ;;  %900 = vst [vmem:[%s837_s5 + $0x20] sm:$0xff] (%p1479_p12), %v899_v20  ;;  %906 = vst [vmem:[%s837_s5 + $0x50] sm:$0xff] (%p1479_p12), %v905_v23  ;;  %v921_v31 = vld [vmem:[%s1652_s25 + $0x68] sm:$0xff] (%p1479_p12) }
 0x194   : > { %902 = vst [vmem:[%s837_s5 + $0x30] sm:$0xff] (%p1479_p12), %v901_v21  ;;  %908 = vst [vmem:[%s837_s5 + $0x60] sm:$0xff] (%p1479_p12), %v907_v24  ;;  %v917_v29 = vld [vmem:[%s1652_s25 + $0x58] sm:$0xff] (%p1479_p12)  ;;  %v923_v32 = vld [vmem:[%s1652_s25 + $0x70] sm:$0xff] (%p1479_p12) }
 0x195   : > { %v909_v25 = vld [vmem:[%s1652_s25 + $0x38] sm:$0xff] (%p1479_p12)  ;;  %912 = vst [vmem:[%s837_s5 + $0x80] sm:$0xff] (%p1479_p12), %v911_v26  ;;  %914 = vst [vmem:[%s837_s5 + $0x90] sm:$0xff] (%p1479_p12), %v913_v27 }
 0x196   : > { %910 = vst [vmem:[%s837_s5 + $0x70] sm:$0xff] (%p1479_p12), %v909_v25  ;;  %916 = vst [vmem:[%s837_s5 + $0xa0] sm:$0xff] (%p1479_p12), %v915_v28  ;;  %v925_v33 = vld [vmem:[%s1652_s25 + $0x78] sm:$0xff] (%p1479_p12) }
 0x197   : > { %v903_v22 = vld [vmem:[%s1652_s25 + $0x20] sm:$0xff]  ;;  %918 = vst [vmem:[%s837_s5 + $0xb0] sm:$0xff] %v917_v29  ;;  %922 = vst [vmem:[%s837_s5 + $0xd0] sm:$0xff] %v921_v31 }
 0x198   : > { %904 = vst [vmem:[%s837_s5 + $0x40] sm:$0xff] %v903_v22  ;;  %v919_v30 = vld [vmem:[%s1652_s25 + $0x60] sm:$0xff]  ;;  %924 = vst [vmem:[%s837_s5 + $0xe0] sm:$0xff] %v923_v32 }
 0x199   : > { %920 = vst [vmem:[%s837_s5 + $0xc0] sm:$0xff] %v919_v30  ;;  %926 = vst [vmem:[%s837_s5 + $0xf0] sm:$0xff] %v925_v33 }
 0x19a PF: > { %s13_s22 = sadd.s32 1, %s1362_s22   ;;  %s1809_s10 = sld [smem:[#allocation6_spill]] }
 0x19b   : > { %p10_p6 = scmp.ge.s32.totalorder %s13_s22, 12   ;;  %s1810_s12 = smov %s1326_s13 }
 0x19c   : > { %s1811_s13 = smov %s1477_s9  ;;  %s1812_s14 = smov %s1334_s15 }
 0x19d   : > { %s1813_s15 = smov %s1474_s8  ;;  %s1814_s16 = smov %s1342_s17 }
 0x19e   : > { %s1815_s17 = smov %s1460_s30  ;;  %s1816_s18 = smov %s1354_s20 }
 0x19f   : > { %s1817_s19 = smov %s1358_s21  ;;  %s1818_s20 = smov %s1821_s24 }
 0x1a0   : > { %s1819_s21 = smov %s1809_s10  ;;  %12 = sbr.rel (!%p10_p6) target bundleno = 9 (0x9), region = 185 }

// kernel: loss_network_forward.22
= control target key start
LH: loop header
LB: loop body
LE: loop exit
PB: predicated region body
PF: predicated region fallthrough
CT: control target
= control target key end

     0   :  { %s1796_s0 = inlined_call_operand.vmem [shape: f32[128,2304], index: 0, kind: input, shape index: {}]   ;;  %s1797_s1 = inlined_call_operand.vmem [shape: f32[2304,256], index: 1, kind: input, shape index: {}]   ;;  %s1798_s2 = inlined_call_operand.vmem [shape: f32[1,256], index: 2, kind: input, shape index: {}]   ;;  %s1799_s3 = inlined_call_operand.vmem [shape: f32[128,256], index: 3, kind: output, shape index: {}]  }
   0x1   :  { %1801 = sst [smem:[#allocation7_spill]] %s1796_s0 }
   0x2   :  { %1802 = sst [smem:[#allocation8_spill]] %s1797_s1 }
   0x3   :  { %s1385_s12 = smov 0   ;;  %s1387_s13 = smov 0  }
   0x4   :  { %s1389_s14 = smov 0   ;;  %s1391_s15 = smov 0  }
   0x5   :  { %s1393_s16 = smov 0   ;;  %s1395_s17 = smov 0  }
   0x6   :  { %s1397_s18 = smov 0   ;;  %s1399_s19 = smov 0  }
   0x7   :  { %s1401_s20 = smov 0   ;;  %s1403_s21 = smov 0  }
   0x8   :  { %s1405_s22 = smov 0  }
   0x9 LB: > { %s1035_s23 = sadd.s32 4294967295, %s1362_s22   ;;  %s25_s24 = sadd.s32 1, %s1354_s20  ;;  %s1362_s22 = sphi %s1405_s22, %s13_s22   ;;  %s1358_s21 = sphi %s1403_s21, %s1819_s21   ;;  %s1354_s20 = sphi %s1401_s20, %s1818_s20   ;;  %s1350_s19 = sphi %s1399_s19, %s1817_s19   ;;  %s1346_s18 = sphi %s1397_s18, %s1816_s18   ;;  %s1342_s17 = sphi %s1395_s17, %s1815_s17   ;;  %s1338_s16 = sphi %s1393_s16, %s1814_s16   ;;  %s1334_s15 = sphi %s1391_s15, %s1813_s15   ;;  %s1330_s14 = sphi %s1389_s14, %s1812_s14   ;;  %s1326_s13 = sphi %s1387_s13, %s1811_s13   ;;  %s1322_s12 = sphi %s1385_s12, %s1810_s12  }
   0xa   : > { %p26_p0 = scmp.ge.s32.totalorder %s25_s24, 9  ;;  %s28_s25 = sadd.s32 1, %s1358_s21 }
   0xb   : > { %s41_s26 = sadd.s32 1, %s1342_s17  ;;  %p48_p1 = scmp.ne.s32.totalorder %s1342_s17, %s1338_s16 }
   0xc   : > { %s1821_s24 = smov (%p26_p0, %s25_s24), 0  ;;  %s1823_s25 = smov (!%p26_p0, %s28_s25), %s1358_s21 }
   0xd   : > { %s37_s27 = ssub.s32 %s1354_s20, %s1821_s24  ;;  %p49_p2 = scmp.eq.s32.totalorder %s1362_s22, 0 }
   0xe   : > { %p30_p3 = scmp.ge.s32.totalorder %s1823_s25, 2  ;;  %p39_p4 = scmp.eq.s32.totalorder %s37_s27, 0 }
   0xf   : > { %p1452_p5 = por %p49_p2, %p48_p1  ;;  %s69_s29 = sadd.s32 1, %s1334_s15 }
  0x10   : > { %s1825_s25 = smov (%p30_p3, %s1823_s25), 0  ;;  %p76_p6 = scmp.ne.s32.totalorder %s1334_s15, %s1330_s14 }
  0x11   : > { %1804 = sst [smem:[#allocation6_spill]] %s1825_s25  ;;  %s65_s4 = ssub.s32 %s1358_s21, %s1825_s25 }
  0x12   : > { %s1460_s30 = scalar_select %p39_p4, %s1342_s17, %s41_s26  }
  0x13   : > { %s66_s5 = sor.u32 %s65_s4, %s37_s27  ;;  %p121_p7 = scmp.eq.s32.totalorder %s65_s4, 0 }
  0x14   : > { %p67_p8 = scmp.eq.s32.totalorder %s66_s5, 0  ;;  %p1466_p9 = por %p76_p6, %p49_p2 }
  0x15   : > { %s123_s7 = sadd.s32 1, %s1326_s13  ;;  %p133_p10 = scmp.ne.s32.totalorder %s1326_s13, %s1322_s12 }
  0x16   : > { %s1474_s8 = scalar_select %p67_p8, %s1334_s15, %s69_s29  }
  0x17   : > { %s1477_s9 = scalar_select %p121_p7, %s1326_s13, %s123_s7  }
  0x18   : > { %p134_p11 = scmp.eq.s32.totalorder %s1035_s23, 17  ;;  %p1038_p13 = scmp.ge.s32.totalorder %s1362_s22, 18 }
  0x1a   : > { %p1479_p12 = por %p134_p11, %p133_p10  ;;  %156 = sbr.rel (%p1038_p13) target bundleno = 85 (0x55), region = 16 }
  0x21   : > { %159 = sbr.rel (!%p1452_p5) target bundleno = 59 (0x3b), region = 20  ;;  %s161_s11 = sand.u32 (%p1452_p5), 1, %s1342_s17  }
  0x22   : > { %s1057_s26 = sshll.u32 (%p1452_p5), %s1354_s20, 4  ;;  %s1039_s27 = sshll.u32 (%p1452_p5), %s161_s11, 8 }
  0x23   : > { %s1807_s0 = sld [smem:[#allocation7_spill]] (%p1452_p5)  ;;  %s1496_s23 = scalar_lea.vmem (%p1452_p5), [#allocation3], %s1039_s27 }
  0x29   : > { %s1491_s5 = scalar_lea.vmem %s1807_s0, %s1057_s26 }
  0x2a   : > { %v182_v0 = vld [vmem:[%s1491_s5] sm:$0xff]  ;;  %v184_v1 = vld [vmem:[%s1491_s5 + $0x8] sm:$0xff]  ;;  %v186_v2 = vld [vmem:[%s1491_s5 + $0x90] sm:$0xff] }
  0x2b   : > { %183 = vst [vmem:[%s1496_s23] sm:$0xff] %v182_v0  ;;  %185 = vst [vmem:[%s1496_s23 + $0x8] sm:$0xff] %v184_v1  ;;  %v188_v3 = vld [vmem:[%s1491_s5 + $0x98] sm:$0xff]  ;;  %v190_v4 = vld [vmem:[%s1491_s5 + $0x120] sm:$0xff] }
  0x2c   : > { %187 = vst [vmem:[%s1496_s23 + $0x10] sm:$0xff] %v186_v2  ;;  %v192_v5 = vld [vmem:[%s1491_s5 + $0x128] sm:$0xff]  ;;  %189 = vst [vmem:[%s1496_s23 + $0x18] sm:$0xff] %v188_v3  ;;  %v194_v6 = vld [vmem:[%s1491_s5 + $0x1b0] sm:$0xff] }
  0x2d   : > { %191 = vst [vmem:[%s1496_s23 + $0x20] sm:$0xff] %v190_v4  ;;  %193 = vst [vmem:[%s1496_s23 + $0x28] sm:$0xff] %v192_v5  ;;  %v196_v7 = vld [vmem:[%s1491_s5 + $0x1b8] sm:$0xff]  ;;  %v198_v8 = vld [vmem:[%s1491_s5 + $0x240] sm:$0xff] }
  0x2e   : > { %195 = vst [vmem:[%s1496_s23 + $0x30] sm:$0xff] %v194_v6  ;;  %197 = vst [vmem:[%s1496_s23 + $0x38] sm:$0xff] %v196_v7  ;;  %v200_v9 = vld [vmem:[%s1491_s5 + $0x248] sm:$0xff]  ;;  %v202_v10 = vld [vmem:[%s1491_s5 + $0x2d0] sm:$0xff] }
  0x2f   : > { %199 = vst [vmem:[%s1496_s23 + $0x40] sm:$0xff] %v198_v8  ;;  %v204_v11 = vld [vmem:[%s1491_s5 + $0x2d8] sm:$0xff]  ;;  %201 = vst [vmem:[%s1496_s23 + $0x48] sm:$0xff] %v200_v9  ;;  %v206_v12 = vld [vmem:[%s1491_s5 + $0x360] sm:$0xff] }
  0x30   : > { %203 = vst [vmem:[%s1496_s23 + $0x50] sm:$0xff] %v202_v10  ;;  %205 = vst [vmem:[%s1496_s23 + $0x58] sm:$0xff] %v204_v11  ;;  %v208_v13 = vld [vmem:[%s1491_s5 + $0x368] sm:$0xff]  ;;  %v210_v14 = vld [vmem:[%s1491_s5 + $0x3f0] sm:$0xff] }
  0x31   : > { %207 = vst [vmem:[%s1496_s23 + $0x60] sm:$0xff] %v206_v12  ;;  %209 = vst [vmem:[%s1496_s23 + $0x68] sm:$0xff] %v208_v13  ;;  %v212_v15 = vld [vmem:[%s1491_s5 + $0x3f8] sm:$0xff]  ;;  %v214_v16 = vld [vmem:[%s1491_s5 + $0x480] sm:$0xff] }
  0x32   : > { %211 = vst [vmem:[%s1496_s23 + $0x70] sm:$0xff] %v210_v14  ;;  %v216_v17 = vld [vmem:[%s1491_s5 + $0x488] sm:$0xff]  ;;  %213 = vst [vmem:[%s1496_s23 + $0x78] sm:$0xff] %v212_v15  ;;  %v218_v18 = vld [vmem:[%s1491_s5 + $0x510] sm:$0xff] }
  0x33   : > { %215 = vst [vmem:[%s1496_s23 + $0x80] sm:$0xff] %v214_v16  ;;  %217 = vst [vmem:[%s1496_s23 + $0x88] sm:$0xff] %v216_v17  ;;  %v220_v19 = vld [vmem:[%s1491_s5 + $0x518] sm:$0xff]  ;;  %v222_v20 = vld [vmem:[%s1491_s5 + $0x5a0] sm:$0xff] }
  0x34   : > { %219 = vst [vmem:[%s1496_s23 + $0x90] sm:$0xff] %v218_v18  ;;  %221 = vst [vmem:[%s1496_s23 + $0x98] sm:$0xff] %v220_v19  ;;  %v224_v21 = vld [vmem:[%s1491_s5 + $0x5a8] sm:$0xff]  ;;  %v226_v22 = vld [vmem:[%s1491_s5 + $0x630] sm:$0xff] }
  0x35   : > { %223 = vst [vmem:[%s1496_s23 + $0xa0] sm:$0xff] %v222_v20  ;;  %v228_v23 = vld [vmem:[%s1491_s5 + $0x638] sm:$0xff]  ;;  %225 = vst [vmem:[%s1496_s23 + $0xa8] sm:$0xff] %v224_v21  ;;  %v230_v24 = vld [vmem:[%s1491_s5 + $0x6c0] sm:$0xff] }
  0x36   : > { %227 = vst [vmem:[%s1496_s23 + $0xb0] sm:$0xff] %v226_v22  ;;  %229 = vst [vmem:[%s1496_s23 + $0xb8] sm:$0xff] %v228_v23  ;;  %v232_v25 = vld [vmem:[%s1491_s5 + $0x6c8] sm:$0xff]  ;;  %v234_v26 = vld [vmem:[%s1491_s5 + $0x750] sm:$0xff] }
  0x37   : > { %231 = vst [vmem:[%s1496_s23 + $0xc0] sm:$0xff] %v230_v24  ;;  %233 = vst [vmem:[%s1496_s23 + $0xc8] sm:$0xff] %v232_v25  ;;  %v236_v27 = vld [vmem:[%s1491_s5 + $0x758] sm:$0xff]  ;;  %v238_v28 = vld [vmem:[%s1491_s5 + $0x7e0] sm:$0xff] }
  0x38   : > { %235 = vst [vmem:[%s1496_s23 + $0xd0] sm:$0xff] %v234_v26  ;;  %v240_v29 = vld [vmem:[%s1491_s5 + $0x7e8] sm:$0xff]  ;;  %237 = vst [vmem:[%s1496_s23 + $0xd8] sm:$0xff] %v236_v27  ;;  %v242_v30 = vld [vmem:[%s1491_s5 + $0x870] sm:$0xff] }
  0x39   : > { %239 = vst [vmem:[%s1496_s23 + $0xe0] sm:$0xff] %v238_v28  ;;  %241 = vst [vmem:[%s1496_s23 + $0xe8] sm:$0xff] %v240_v29  ;;  %v244_v31 = vld [vmem:[%s1491_s5 + $0x878] sm:$0xff] }
  0x3a   : > { %243 = vst [vmem:[%s1496_s23 + $0xf0] sm:$0xff] %v242_v30  ;;  %245 = vst [vmem:[%s1496_s23 + $0xf8] sm:$0xff] %v244_v31 }
  0x3b PF: > { %251 = sbr.rel (!%p1466_p9) target bundleno = 85 (0x55), region = 43  ;;  %s253_s28 = sand.u32 (%p1466_p9), 1, %s1334_s15  }
  0x3c   : > { %s1058_s7 = sshll.u32 (%p1466_p9), %s1354_s20, 6  ;;  %s1042_s11 = sshll.u32 (%p1466_p9), %s253_s28, 8 }
  0x3d   : > { %s258_s26 = sadd.s32 (%p1466_p9), %s1358_s21, %s1058_s7  ;;  %s1808_s1 = sld [smem:[#allocation8_spill]] (%p1466_p9) }
  0x3e   : > { %s1045_s27 = sshll.u32 (%p1466_p9), %s258_s26, 3  ;;  %s1572_s6 = scalar_lea.vmem (%p1466_p9), [#allocation4], %s1042_s11 }
  0x43   : > { %s1567_s0 = scalar_lea.vmem %s1808_s1, %s1045_s27 }
  0x44   : > { %v350_v32 = vld [vmem:[%s1567_s0] sm:$0xff]  ;;  %v352_v33 = vld [vmem:[%s1567_s0 + $0x10] sm:$0xff] }
  0x45   : > { %v354_v34 = vld [vmem:[%s1567_s0 + $0x20] sm:$0xff]  ;;  %351 = vst [vmem:[%s1572_s6] sm:$0xff] %v350_v32  ;;  %353 = vst [vmem:[%s1572_s6 + $0x8] sm:$0xff] %v352_v33  ;;  %v356_v35 = vld [vmem:[%s1567_s0 + $0x30] sm:$0xff] }
  0x46   : > { %355 = vst [vmem:[%s1572_s6 + $0x10] sm:$0xff] %v354_v34  ;;  %v358_v36 = vld [vmem:[%s1567_s0 + $0x40] sm:$0xff]  ;;  %v360_v37 = vld [vmem:[%s1567_s0 + $0x50] sm:$0xff]  ;;  %357 = vst [vmem:[%s1572_s6 + $0x18] sm:$0xff] %v356_v35 }
  0x47   : > { %359 = vst [vmem:[%s1572_s6 + $0x20] sm:$0xff] %v358_v36  ;;  %361 = vst [vmem:[%s1572_s6 + $0x28] sm:$0xff] %v360_v37  ;;  %v362_v38 = vld [vmem:[%s1567_s0 + $0x60] sm:$0xff]  ;;  %v364_v39 = vld [vmem:[%s1567_s0 + $0x70] sm:$0xff] }
  0x48   : > { %v366_v40 = vld [vmem:[%s1567_s0 + $0x80] sm:$0xff]  ;;  %363 = vst [vmem:[%s1572_s6 + $0x30] sm:$0xff] %v362_v38  ;;  %365 = vst [vmem:[%s1572_s6 + $0x38] sm:$0xff] %v364_v39  ;;  %v368_v41 = vld [vmem:[%s1567_s0 + $0x90] sm:$0xff] }
  0x49   : > { %367 = vst [vmem:[%s1572_s6 + $0x40] sm:$0xff] %v366_v40  ;;  %v370_v42 = vld [vmem:[%s1567_s0 + $0xa0] sm:$0xff]  ;;  %v372_v43 = vld [vmem:[%s1567_s0 + $0xb0] sm:$0xff]  ;;  %369 = vst [vmem:[%s1572_s6 + $0x48] sm:$0xff] %v368_v41 }
  0x4a   : > { %371 = vst [vmem:[%s1572_s6 + $0x50] sm:$0xff] %v370_v42  ;;  %373 = vst [vmem:[%s1572_s6 + $0x58] sm:$0xff] %v372_v43  ;;  %v374_v44 = vld [vmem:[%s1567_s0 + $0xc0] sm:$0xff]  ;;  %v376_v45 = vld [vmem:[%s1567_s0 + $0xd0] sm:$0xff] }
  0x4b   : > { %v378_v46 = vld [vmem:[%s1567_s0 + $0xe0] sm:$0xff]  ;;  %375 = vst [vmem:[%s1572_s6 + $0x60] sm:$0xff] %v374_v44  ;;  %377 = vst [vmem:[%s1572_s6 + $0x68] sm:$0xff] %v376_v45  ;;  %v380_v47 = vld [vmem:[%s1567_s0 + $0xf0] sm:$0xff] }
  0x4c   : > { %379 = vst [vmem:[%s1572_s6 + $0x70] sm:$0xff] %v378_v46  ;;  %v382_v48 = vld [vmem:[%s1567_s0 + $0x100] sm:$0xff]  ;;  %v384_v49 = vld [vmem:[%s1567_s0 + $0x110] sm:$0xff]  ;;  %381 = vst [vmem:[%s1572_s6 + $0x78] sm:$0xff] %v380_v47 }
  0x4d   : > { %383 = vst [vmem:[%s1572_s6 + $0x80] sm:$0xff] %v382_v48  ;;  %385 = vst [vmem:[%s1572_s6 + $0x88] sm:$0xff] %v384_v49  ;;  %v386_v50 = vld [vmem:[%s1567_s0 + $0x120] sm:$0xff]  ;;  %v388_v51 = vld [vmem:[%s1567_s0 + $0x130] sm:$0xff] }
  0x4e   : > { %v390_v52 = vld [vmem:[%s1567_s0 + $0x140] sm:$0xff]  ;;  %387 = vst [vmem:[%s1572_s6 + $0x90] sm:$0xff] %v386_v50  ;;  %389 = vst [vmem:[%s1572_s6 + $0x98] sm:$0xff] %v388_v51  ;;  %v392_v53 = vld [vmem:[%s1567_s0 + $0x150] sm:$0xff] }
  0x4f   : > { %391 = vst [vmem:[%s1572_s6 + $0xa0] sm:$0xff] %v390_v52  ;;  %v394_v54 = vld [vmem:[%s1567_s0 + $0x160] sm:$0xff]  ;;  %v396_v55 = vld [vmem:[%s1567_s0 + $0x170] sm:$0xff]  ;;  %393 = vst [vmem:[%s1572_s6 + $0xa8] sm:$0xff] %v392_v53 }
  0x50   : > { %395 = vst [vmem:[%s1572_s6 + $0xb0] sm:$0xff] %v394_v54  ;;  %397 = vst [vmem:[%s1572_s6 + $0xb8] sm:$0xff] %v396_v55  ;;  %v398_v56 = vld [vmem:[%s1567_s0 + $0x180] sm:$0xff]  ;;  %v400_v57 = vld [vmem:[%s1567_s0 + $0x190] sm:$0xff] }
  0x51   : > { %v402_v58 = vld [vmem:[%s1567_s0 + $0x1a0] sm:$0xff]  ;;  %399 = vst [vmem:[%s1572_s6 + $0xc0] sm:$0xff] %v398_v56  ;;  %401 = vst [vmem:[%s1572_s6 + $0xc8] sm:$0xff] %v400_v57  ;;  %v404_v59 = vld [vmem:[%s1567_s0 + $0x1b0] sm:$0xff] }
  0x52   : > { %403 = vst [vmem:[%s1572_s6 + $0xd0] sm:$0xff] %v402_v58  ;;  %v406_v60 = vld [vmem:[%s1567_s0 + $0x1c0] sm:$0xff]  ;;  %v408_v61 = vld [vmem:[%s1567_s0 + $0x1d0] sm:$0xff]  ;;  %405 = vst [vmem:[%s1572_s6 + $0xd8] sm:$0xff] %v404_v59 }
  0x53   : > { %407 = vst [vmem:[%s1572_s6 + $0xe0] sm:$0xff] %v406_v60  ;;  %409 = vst [vmem:[%s1572_s6 + $0xe8] sm:$0xff] %v408_v61  ;;  %v410_v62 = vld [vmem:[%s1567_s0 + $0x1e0] sm:$0xff]  ;;  %v412_v63 = vld [vmem:[%s1567_s0 + $0x1f0] sm:$0xff] }
  0x54   : > { %411 = vst [vmem:[%s1572_s6 + $0xf0] sm:$0xff] %v410_v62  ;;  %413 = vst [vmem:[%s1572_s6 + $0xf8] sm:$0xff] %v412_v63 }
  0x55 PF: > { %p1046_p0 = scmp.ge.s32.totalorder %s1362_s22, 1  ;;  %p424_p1 = scmp.lt.s32.totalorder %s1362_s22, 19 }
  0x57   : > { %p425_p2 = pnand %p1046_p0, %p424_p1 }
  0x58   : > { %s431_s5 = sand.u32 (!%p425_p2), 1, %s1338_s16   ;;  %s438_s23 = sand.u32 (!%p425_p2), 1, %s1330_s14  }
  0x59   : > { %428 = sbr.rel (%p425_p2) target bundleno = 410 (0x19a), region = 85  ;;  %s1047_s28 = sshll.u32 (!%p425_p2), %s431_s5, 8 }
  0x5a   : > { %s1048_s7 = sshll.u32 (!%p425_p2), %s438_s23, 8  ;;  %s464_s0 = sand.u32 (!%p425_p2), 1, %s1322_s12  }
  0x5b   : > { %p470_p3 = scmp.lt.s32.totalorder (!%p425_p2), %s1350_s19, 1  ;;  %s1049_s11 = sshll.u32 (!%p425_p2), %s464_s0, 7 }
  0x5c   : > { %s1648_s6 = scalar_lea.vmem (!%p425_p2), [#allocation3], %s1047_s28  ;;  %s1650_s1 = scalar_lea.vmem (!%p425_p2), [#allocation4], %s1048_s7 }
  0x5d   : > { %s1652_s25 = scalar_lea.vmem (!%p425_p2), [#allocation5], %s1049_s11  ;;  %p1050_p4 = scmp.ne.s32.totalorder (!%p425_p2), %s1346_s18, 0 }
  0x60   : > { %s1642_s26 = scalar_select %p470_p3, %s1350_s19, 1 }
  0x61   : > { %477 = sbr.rel (%p1050_p4) target bundleno = 106 (0x6a), region = 97  ;;  %v1364_v0 = vmov (!%p1050_p4), 0.0  }
  0x62   : > { %s472_s4 = scalar_lea.vmem %s1798_s2, %s1642_s26  ;;  %478 = vst [vmem:[#allocation2] sm:$0xff] (!%p1050_p4), %v1364_v0  ;;  %479 = vst [vmem:[#allocation2 + $0x8] sm:$0xff] (!%p1050_p4), %v1364_v0 }
  0x63   : > { %480 = vst [vmem:[#allocation2 + $0x10] sm:$0xff] (!%p1050_p4), %v1364_v0  ;;  %481 = vst [vmem:[#allocation2 + $0x18] sm:$0xff] (!%p1050_p4), %v1364_v0 }
  0x64   : > { %482 = vst [vmem:[#allocation2 + $0x20] sm:$0xff] (!%p1050_p4), %v1364_v0  ;;  %483 = vst [vmem:[#allocation2 + $0x28] sm:$0xff] (!%p1050_p4), %v1364_v0 }
  0x65   : > { %484 = vst [vmem:[#allocation2 + $0x30] sm:$0xff] (!%p1050_p4), %v1364_v0  ;;  %485 = vst [vmem:[#allocation2 + $0x38] sm:$0xff] (!%p1050_p4), %v1364_v0 }
  0x66   : > { %486 = vst [vmem:[#allocation2 + $0x40] sm:$0xff] (!%p1050_p4), %v1364_v0  ;;  %487 = vst [vmem:[#allocation2 + $0x48] sm:$0xff] (!%p1050_p4), %v1364_v0 }
  0x67   : > { %488 = vst [vmem:[#allocation2 + $0x50] sm:$0xff] (!%p1050_p4), %v1364_v0  ;;  %489 = vst [vmem:[#allocation2 + $0x58] sm:$0xff] (!%p1050_p4), %v1364_v0 }
  0x68   : > { %490 = vst [vmem:[#allocation2 + $0x60] sm:$0xff] %v1364_v0  ;;  %491 = vst [vmem:[#allocation2 + $0x68] sm:$0xff] %v1364_v0 }
  0x69   : > { %492 = vst [vmem:[#allocation2 + $0x70] sm:$0xff] %v1364_v0  ;;  %493 = vst [vmem:[#allocation2 + $0x78] sm:$0xff] %v1364_v0 }
  0x6a PF: > { %v558_v1 = vld [vmem:[%s1650_s1 + $0x80] sm:$0xff]  ;;  %v559_v2 = vld [vmem:[%s1650_s1 + $0x88] sm:$0xff]  ;;  %v560_v6 = vld [vmem:[%s1650_s1 + $0x90] sm:$0xff]  ;;  %p1051_p5 = scmp.ne.s32.totalorder %s1346_s18, 8 }
  0x6b   : > { %v542_v3 = vld [vmem:[%s1650_s1] sm:$0xff]  ;;  %v1139_v4 = vpack.c.bf16 %v559_v2, %v558_v1  ;;  %v543_v5 = vld [vmem:[%s1650_s1 + $0x8] sm:$0xff]  ;;  %v561_v7 = vld [vmem:[%s1650_s1 + $0x98] sm:$0xff] }
  0x6c   : > { %v1141_v8 = vpack.c.bf16 %v543_v5, %v542_v3  ;;  %v1143_v9 = vpack.c.bf16 %v561_v7, %v560_v6  ;;  %v544_v10 = vld [vmem:[%s1650_s1 + $0x10] sm:$0xff]  ;;  %v545_v11 = vld [vmem:[%s1650_s1 + $0x18] sm:$0xff]  ;;  %v562_v12 = vld [vmem:[%s1650_s1 + $0xa0] sm:$0xff] }
  0x6d   : > { %1140 = vmatprep.subr.bf16.mxu0 %v1139_v4  ;;  %1171 = vmatprep.subr.bf16.mxu1 %v1139_v4  ;;  %v563_v13 = vld [vmem:[%s1650_s1 + $0xa8] sm:$0xff]  ;;  %v1145_v14 = vpack.c.bf16 %v545_v11, %v544_v10  ;;  %v546_v16 = vld [vmem:[%s1650_s1 + $0x20] sm:$0xff]  ;;  %v564_v18 = vld [vmem:[%s1650_s1 + $0xb0] sm:$0xff] }
  0x6e   : > { %1142 = vmatpush3.bf16.msra.mxu0 %v1141_v8  ;;  %1179 = vmatpush3.bf16.msra.mxu1 %v1141_v8  ;;  %v1147_v15 = vpack.c.bf16 %v563_v13, %v562_v12  ;;  %v547_v17 = vld [vmem:[%s1650_s1 + $0x28] sm:$0xff]  ;;  %v565_v19 = vld [vmem:[%s1650_s1 + $0xb8] sm:$0xff]  ;;  %v548_v22 = vld [vmem:[%s1650_s1 + $0x30] sm:$0xff] }
  0x6f   : > { %1144 = vmatprep.subr.bf16.mxu0 %v1143_v9  ;;  %1172 = vmatprep.subr.bf16.mxu1 %v1143_v9  ;;  %v1149_v20 = vpack.c.bf16 %v547_v17, %v546_v16  ;;  %v1151_v21 = vpack.c.bf16 %v565_v19, %v564_v18  ;;  %v549_v23 = vld [vmem:[%s1650_s1 + $0x38] sm:$0xff]  ;;  %v566_v24 = vld [vmem:[%s1650_s1 + $0xc0] sm:$0xff]  ;;  %v567_v25 = vld [vmem:[%s1650_s1 + $0xc8] sm:$0xff] }
  0x70   : > { %v511_v26 = vld [vmem:[%s1648_s6 + $0x8] sm:$0xff]  ;;  %v1153_v28 = vpack.c.bf16 %v549_v23, %v548_v22  ;;  %v1155_v29 = vpack.c.bf16 %v567_v25, %v566_v24  ;;  %v550_v30 = vld [vmem:[%s1650_s1 + $0x40] sm:$0xff]  ;;  %v568_v32 = vld [vmem:[%s1650_s1 + $0xd0] sm:$0xff] }
  0x71   : > { %638 = vmatprep.mubr.f32.mxu0 %v511_v26  ;;  %v527_v27 = vld [vmem:[%s1648_s6 + $0x88] sm:$0xff]  ;;  %v569_v33 = vld [vmem:[%s1650_s1 + $0xd8] sm:$0xff]  ;;  %v552_v36 = vld [vmem:[%s1650_s1 + $0x50] sm:$0xff] }
  0x72   : > { %1146 = vmatpush3.bf16.msra.mxu0 %v1145_v14  ;;  %1180 = vmatpush3.bf16.msra.mxu1 %v1145_v14  ;;  %v551_v31 = vld [vmem:[%s1650_s1 + $0x48] sm:$0xff]  ;;  %v1159_v35 = vpack.c.bf16 %v569_v33, %v568_v32  ;;  %v553_v37 = vld [vmem:[%s1650_s1 + $0x58] sm:$0xff]  ;;  %v570_v38 = vld [vmem:[%s1650_s1 + $0xe0] sm:$0xff] }
  0x73   : > { %1148 = vmatprep.subr.bf16.mxu0 %v1147_v15  ;;  %1173 = vmatprep.subr.bf16.mxu1 %v1147_v15  ;;  %v1157_v34 = vpack.c.bf16 %v551_v31, %v550_v30  ;;  %v571_v39 = vld [vmem:[%s1650_s1 + $0xe8] sm:$0xff]  ;;  %v1161_v40 = vpack.c.bf16 %v553_v37, %v552_v36  ;;  %v554_v42 = vld [vmem:[%s1650_s1 + $0x60] sm:$0xff]  ;;  %v572_v44 = vld [vmem:[%s1650_s1 + $0xf0] sm:$0xff] }
  0x74   : > { %678 = vmatprep.mubr.f32.mxu1 %v527_v27  ;;  %v1163_v41 = vpack.c.bf16 %v571_v39, %v570_v38  ;;  %v555_v43 = vld [vmem:[%s1650_s1 + $0x68] sm:$0xff]  ;;  %v573_v45 = vld [vmem:[%s1650_s1 + $0xf8] sm:$0xff]  ;;  %v556_v48 = vld [vmem:[%s1650_s1 + $0x70] sm:$0xff] }
  0x75   : > { %v1165_v46 = vpack.c.bf16 %v555_v43, %v554_v42  ;;  %v1167_v47 = vpack.c.bf16 %v573_v45, %v572_v44  ;;  %v557_v49 = vld [vmem:[%s1650_s1 + $0x78] sm:$0xff]  ;;  %v510_v51 = vld [vmem:[%s1648_s6] sm:$0xff]  ;;  %v512_v55 = vld [vmem:[%s1648_s6 + $0x10] sm:$0xff] }
  0x76   : > { %1150 = vmatpush3.bf16.msra.mxu0 %v1149_v20  ;;  %1181 = vmatpush3.bf16.msra.mxu1 %v1149_v20  ;;  %v1169_v50 = vpack.c.bf16 %v557_v49, %v556_v48  ;;  %v526_v52 = vld [vmem:[%s1648_s6 + $0x80] sm:$0xff]  ;;  %v513_v53 = vld [vmem:[%s1648_s6 + $0x18] sm:$0xff]  ;;  %v528_v56 = vld [vmem:[%s1648_s6 + $0x90] sm:$0xff] }
  0x77   : > { %1152 = vmatprep.subr.bf16.mxu0 %v1151_v21  ;;  %1174 = vmatprep.subr.bf16.mxu1 %v1151_v21  ;;  %v529_v54 = vld [vmem:[%s1648_s6 + $0x98] sm:$0xff]  ;;  %v515_v57 = vld [vmem:[%s1648_s6 + $0x28] sm:$0xff]  ;;  %v514_v59 = vld [vmem:[%s1648_s6 + $0x20] sm:$0xff] }
  0x78   : > { %v531_v58 = vld [vmem:[%s1648_s6 + $0xa8] sm:$0xff]  ;;  %v530_v60 = vld [vmem:[%s1648_s6 + $0xa0] sm:$0xff]  ;;  %v517_v61 = vld [vmem:[%s1648_s6 + $0x38] sm:$0xff] }
  0x79   : > { %v533_v62 = vld [vmem:[%s1648_s6 + $0xb8] sm:$0xff]  ;;  %v516_v63 = vld [vmem:[%s1648_s6 + $0x30] sm:$0xff]  ;;  %v519_v1 = vld [vmem:[%s1648_s6 + $0x48] sm:$0xff] }
  0x7a   : > { %1154 = vmatpush3.bf16.msra.mxu0 %v1153_v28  ;;  %1182 = vmatpush3.bf16.msra.mxu1 %v1153_v28  ;;  %v532_v0 = vld [vmem:[%s1648_s6 + $0xb0] sm:$0xff]  ;;  %v535_v2 = vld [vmem:[%s1648_s6 + $0xc8] sm:$0xff]  ;;  %v518_v3 = vld [vmem:[%s1648_s6 + $0x40] sm:$0xff] }
  0x7b   : > { %1156 = vmatprep.subr.bf16.mxu0 %v1155_v29  ;;  %1175 = vmatprep.subr.bf16.mxu1 %v1155_v29  ;;  %v534_v4 = vld [vmem:[%s1648_s6 + $0xc0] sm:$0xff]  ;;  %v521_v5 = vld [vmem:[%s1648_s6 + $0x58] sm:$0xff]  ;;  %v520_v7 = vld [vmem:[%s1648_s6 + $0x50] sm:$0xff] }
  0x7c   : > { %v537_v6 = vld [vmem:[%s1648_s6 + $0xd8] sm:$0xff]  ;;  %v536_v8 = vld [vmem:[%s1648_s6 + $0xd0] sm:$0xff]  ;;  %v523_v9 = vld [vmem:[%s1648_s6 + $0x68] sm:$0xff] }
  0x7d   : > { %v539_v10 = vld [vmem:[%s1648_s6 + $0xe8] sm:$0xff]  ;;  %v522_v11 = vld [vmem:[%s1648_s6 + $0x60] sm:$0xff]  ;;  %v525_v13 = vld [vmem:[%s1648_s6 + $0x78] sm:$0xff] }
  0x7e   : > { %1158 = vmatpush3.bf16.msra.mxu0 %v1157_v34  ;;  %1183 = vmatpush3.bf16.msra.mxu1 %v1157_v34  ;;  %v538_v12 = vld [vmem:[%s1648_s6 + $0xe0] sm:$0xff]  ;;  %v541_v14 = vld [vmem:[%s1648_s6 + $0xf8] sm:$0xff]  ;;  %v524_v15 = vld [vmem:[%s1648_s6 + $0x70] sm:$0xff] }
  0x7f   : > { %1160 = vmatprep.subr.bf16.mxu0 %v1159_v35  ;;  %1176 = vmatprep.subr.bf16.mxu1 %v1159_v35  ;;  %v540_v16 = vld [vmem:[%s1648_s6 + $0xf0] sm:$0xff]  ;;  %v494_v19 = vld [vmem:[#allocation2] sm:$0xff]  ;;  %v495_v29 = vld [vmem:[#allocation2 + $0x8] sm:$0xff] }
  0x80   : > { %v502_v21 = vld [vmem:[#allocation2 + $0x40] sm:$0xff]  ;;  %v503_v31 = vld [vmem:[#allocation2 + $0x48] sm:$0xff]  ;;  %v496_v39 = vld [vmem:[#allocation2 + $0x10] sm:$0xff] }
  0x81   : > { %v497_v49 = vld [vmem:[#allocation2 + $0x18] sm:$0xff] }
  0x82   : > { %1162 = vmatpush3.bf16.msra.mxu0 %v1161_v40  ;;  %1184 = vmatpush3.bf16.msra.mxu1 %v1161_v40 }
  0x83   : > { %1164 = vmatprep.subr.bf16.mxu0 %v1163_v41  ;;  %1177 = vmatprep.subr.bf16.mxu1 %v1163_v41  ;;  %v504_v41 = vld [vmem:[#allocation2 + $0x50] sm:$0xff] }
  0x86   : > { %1166 = vmatpush3.bf16.msra.mxu0 %v1165_v46  ;;  %1185 = vmatpush3.bf16.msra.mxu1 %v1165_v46 }
  0x87   : > { %1168 = vmatprep.subr.bf16.mxu0 %v1167_v47  ;;  %1178 = vmatprep.subr.bf16.mxu1 %v1167_v47 }
  0x8a   : > { %1170 = vmatpush3.bf16.msra.mxu0 %v1169_v50  ;;  %1186 = vmatpush3.bf16.msra.mxu1 %v1169_v50 }
  0x8d   : > { %639 = vmatmul.mubr.f32.vlgmr.msra.gmra.mrb[0].mxu0 %v510_v51  ;;  %679 = vmatmul.mubr.f32.vlgmr.msra.gmra.mrb[0].mxu1 %v526_v52  ;;  %v505_v51 = vld [vmem:[#allocation2 + $0x58] sm:$0xff] }
  0x8e   : > { %643 = vmatprep.mubr.f32.mxu0 %v513_v53  ;;  %683 = vmatprep.mubr.f32.mxu1 %v529_v54 }
  0x91   : > { %644 = vmatmul.mubr.f32.gmra.mrb[2].mxu0 %v512_v55  ;;  %684 = vmatmul.mubr.f32.gmra.mrb[2].mxu1 %v528_v56 }
  0x92   : > { %648 = vmatprep.mubr.f32.mxu0 %v515_v57  ;;  %688 = vmatprep.mubr.f32.mxu1 %v531_v58 }
  0x95   : > { %649 = vmatmul.mubr.f32.gmra.mrb[4].mxu0 %v514_v59  ;;  %689 = vmatmul.mubr.f32.gmra.mrb[4].mxu1 %v530_v60  ;;  %v498_v59 = vld [vmem:[#allocation2 + $0x20] sm:$0xff] }
  0x96   : > { %653 = vmatprep.mubr.f32.mxu0 %v517_v61  ;;  %693 = vmatprep.mubr.f32.mxu1 %v533_v62  ;;  %v506_v61 = vld [vmem:[#allocation2 + $0x60] sm:$0xff] }
  0x99   : > { %654 = vmatmul.mubr.f32.gmra.mrb[6].mxu0 %v516_v63  ;;  %694 = vmatmul.mubr.f32.gmra.mrb[6].mxu1 %v532_v0 }
  0x9a   : > { %658 = vmatprep.mubr.f32.mxu0 %v519_v1  ;;  %698 = vmatprep.mubr.f32.mxu1 %v535_v2 }
  0x9d   : > { %659 = vmatmul.mubr.f32.gmra.mrb[8].mxu0 %v518_v3  ;;  %699 = vmatmul.mubr.f32.gmra.mrb[8].mxu1 %v534_v4 }
  0x9e   : > { %663 = vmatprep.mubr.f32.mxu0 %v521_v5  ;;  %703 = vmatprep.mubr.f32.mxu1 %v537_v6  ;;  %v499_v5 = vld [vmem:[#allocation2 + $0x28] sm:$0xff] }
  0xa1   : > { %664 = vmatmul.mubr.f32.gmra.mrb[10].mxu0 %v520_v7  ;;  %704 = vmatmul.mubr.f32.gmra.mrb[10].mxu1 %v536_v8  ;;  %v507_v7 = vld [vmem:[#allocation2 + $0x68] sm:$0xff] }
  0xa2   : > { %668 = vmatprep.mubr.f32.mxu0 %v523_v9  ;;  %708 = vmatprep.mubr.f32.mxu1 %v539_v10 }
  0xa5   : > { %669 = vmatmul.mubr.f32.gmra.mrb[12].mxu0 %v522_v11  ;;  %709 = vmatmul.mubr.f32.gmra.mrb[12].mxu1 %v538_v12 }
  0xa6   : > { %673 = vmatprep.mubr.f32.mxu0 %v525_v13  ;;  %713 = vmatprep.mubr.f32.mxu1 %v541_v14 }
  0xa9   : > { %674 = vmatmul.mubr.f32.gmra.mrb[14].mxu0 %v524_v15  ;;  %714 = vmatmul.mubr.f32.gmra.mrb[14].mxu1 %v540_v16  ;;  %v500_v15 = vld [vmem:[#allocation2 + $0x30] sm:$0xff] }
 0x160   : > { %v1091_v17 = vpop.f32.mrb[0].mxu0  ;;  %v1115_v18 = vpop.f32.mrb[0].mxu1 }
 0x161   : > { %v1092_v20 = vpop.f32.mrb[1].mxu0  ;;  %v1116_v22 = vpop.f32.mrb[1].mxu1 }
 0x162   : > { %v1093_v23 = vadd.f32 %v1092_v20, %v1091_v17  ;;  %v1117_v24 = vadd.f32 %v1116_v22, %v1115_v18  ;;  %v508_v17 = vld [vmem:[#allocation2 + $0x70] sm:$0xff] }
 0x164   : > { %v719_v25 = vadd.f32 %v1093_v23, %v494_v19  ;;  %v727_v26 = vadd.f32 %v1117_v24, %v502_v21  ;;  %v1094_v27 = vpop.f32.mrb[2].mxu0  ;;  %v1118_v28 = vpop.f32.mrb[2].mxu1 }
 0x165   : > { %v1095_v30 = vpop.f32.mrb[3].mxu0  ;;  %v1119_v32 = vpop.f32.mrb[3].mxu1 }
 0x166   : > { %735 = vst [vmem:[#allocation2] sm:$0xff] %v719_v25  ;;  %743 = vst [vmem:[#allocation2 + $0x40] sm:$0xff] %v727_v26  ;;  %v1096_v33 = vadd.f32 %v1095_v30, %v1094_v27  ;;  %v1120_v34 = vadd.f32 %v1119_v32, %v1118_v28  ;;  %v501_v25 = vld [vmem:[#allocation2 + $0x38] sm:$0xff] }
 0x167   : > { %v509_v27 = vld [vmem:[#allocation2 + $0x78] sm:$0xff] }
 0x168   : > { %v720_v35 = vadd.f32 %v1096_v33, %v495_v29  ;;  %v728_v36 = vadd.f32 %v1120_v34, %v503_v31  ;;  %v1097_v37 = vpop.f32.mrb[4].mxu0  ;;  %v1121_v38 = vpop.f32.mrb[4].mxu1  ;;  %v1052_v34 = vld [vmem:[%s472_s4] ss:$0 sm:$0xff] (!%p1051_p5) }
 0x169   : > { %v1098_v40 = vpop.f32.mrb[5].mxu0  ;;  %v1122_v42 = vpop.f32.mrb[5].mxu1 }
 0x16a   : > { %736 = vst [vmem:[#allocation2 + $0x8] sm:$0xff] %v720_v35  ;;  %744 = vst [vmem:[#allocation2 + $0x48] sm:$0xff] %v728_v36  ;;  %v1099_v43 = vadd.f32 %v1098_v40, %v1097_v37  ;;  %v1123_v44 = vadd.f32 %v1122_v42, %v1121_v38 }
 0x16c   : > { %v721_v45 = vadd.f32 %v1099_v43, %v496_v39  ;;  %v729_v46 = vadd.f32 %v1123_v44, %v504_v41  ;;  %v1100_v47 = vpop.f32.mrb[6].mxu0  ;;  %v1124_v48 = vpop.f32.mrb[6].mxu1 }
 0x16d   : > { %v1101_v50 = vpop.f32.mrb[7].mxu0  ;;  %v1125_v52 = vpop.f32.mrb[7].mxu1  ;;  %v755_v33 = vld [vmem:[#allocation2] sm:$0xff] (!%p1051_p5) }
 0x16e   : > { %737 = vst [vmem:[#allocation2 + $0x10] sm:$0xff] %v721_v45  ;;  %745 = vst [vmem:[#allocation2 + $0x50] sm:$0xff] %v729_v46  ;;  %v1102_v53 = vadd.f32 %v1101_v50, %v1100_v47  ;;  %v1126_v54 = vadd.f32 %v1125_v52, %v1124_v48  ;;  %v778_v36 = vadd.f32 (!%p1051_p5), %v1052_v34, %v755_v33 }
 0x170   : > { %v722_v55 = vadd.f32 %v1102_v53, %v497_v49  ;;  %v730_v56 = vadd.f32 %v1126_v54, %v505_v51  ;;  %v1103_v57 = vpop.f32.mrb[8].mxu0  ;;  %v1127_v58 = vpop.f32.mrb[8].mxu1  ;;  %v794_v47 = vmax.f32 (!%p1051_p5), %v778_v36, 0.0  ;;  %v763_v51 = vld [vmem:[#allocation2 + $0x40] sm:$0xff] (!%p1051_p5) }
 0x171   : > { %v1104_v60 = vpop.f32.mrb[9].mxu0  ;;  %v1128_v62 = vpop.f32.mrb[9].mxu1  ;;  %v756_v35 = vld [vmem:[#allocation2 + $0x8] sm:$0xff] (!%p1051_p5) }
 0x172   : > { %738 = vst [vmem:[#allocation2 + $0x18] sm:$0xff] %v722_v55  ;;  %746 = vst [vmem:[#allocation2 + $0x58] sm:$0xff] %v730_v56  ;;  %v1105_v63 = vadd.f32 %v1104_v60, %v1103_v57  ;;  %v1129_v0 = vadd.f32 %v1128_v62, %v1127_v58  ;;  %v779_v37 = vadd.f32 (!%p1051_p5), %v1052_v34, %v756_v35  ;;  %v764_v52 = vld [vmem:[#allocation2 + $0x48] sm:$0xff] (!%p1051_p5) }
 0x173   : > { %810 = vst [vmem:[%s1652_s25] sm:$0xff] (!%p1051_p5), %v794_v47 }
 0x174   : > { %v723_v1 = vadd.f32 %v1105_v63, %v498_v59  ;;  %v731_v2 = vadd.f32 %v1129_v0, %v506_v61  ;;  %v1106_v3 = vpop.f32.mrb[10].mxu0  ;;  %v1130_v4 = vpop.f32.mrb[10].mxu1  ;;  %v795_v48 = vmax.f32 (!%p1051_p5), %v779_v37, 0.0  ;;  %v786_v63 = vadd.f32 (!%p1051_p5), %v1052_v34, %v763_v51 }
 0x175   : > { %v1107_v6 = vpop.f32.mrb[11].mxu0  ;;  %v1131_v8 = vpop.f32.mrb[11].mxu1  ;;  %v757_v38 = vld [vmem:[#allocation2 + $0x10] sm:$0xff] (!%p1051_p5)  ;;  %v787_v0 = vadd.f32 (!%p1051_p5), %v1052_v34, %v764_v52 }
 0x176   : > { %739 = vst [vmem:[#allocation2 + $0x20] sm:$0xff] %v723_v1  ;;  %747 = vst [vmem:[#allocation2 + $0x60] sm:$0xff] %v731_v2  ;;  %v1108_v9 = vadd.f32 %v1107_v6, %v1106_v3  ;;  %v1132_v10 = vadd.f32 %v1131_v8, %v1130_v4  ;;  %v780_v41 = vadd.f32 (!%p1051_p5), %v1052_v34, %v757_v38  ;;  %v765_v53 = vld [vmem:[#allocation2 + $0x50] sm:$0xff] (!%p1051_p5) }
 0x177   : > { %811 = vst [vmem:[%s1652_s25 + $0x8] sm:$0xff] (!%p1051_p5), %v795_v48  ;;  %v788_v4 = vadd.f32 (!%p1051_p5), %v1052_v34, %v765_v53  ;;  %v803_v8 = vmax.f32 (!%p1051_p5), %v787_v0, 0.0 }
 0x178   : > { %v724_v11 = vadd.f32 %v1108_v9, %v499_v5  ;;  %v732_v12 = vadd.f32 %v1132_v10, %v507_v7  ;;  %v1109_v13 = vpop.f32.mrb[12].mxu0  ;;  %v1133_v14 = vpop.f32.mrb[12].mxu1  ;;  %v796_v54 = vmax.f32 (!%p1051_p5), %v780_v41, 0.0  ;;  %v802_v7 = vmax.f32 (!%p1051_p5), %v786_v63, 0.0 }
 0x179   : > { %v1110_v16 = vpop.f32.mrb[13].mxu0  ;;  %v1134_v18 = vpop.f32.mrb[13].mxu1  ;;  %v758_v39 = vld [vmem:[#allocation2 + $0x18] sm:$0xff] (!%p1051_p5)  ;;  %819 = vst [vmem:[%s1652_s25 + $0x48] sm:$0xff] (!%p1051_p5), %v803_v8 }
 0x17a   : > { %740 = vst [vmem:[#allocation2 + $0x28] sm:$0xff] %v724_v11  ;;  %748 = vst [vmem:[#allocation2 + $0x68] sm:$0xff] %v732_v12  ;;  %v1111_v19 = vadd.f32 %v1110_v16, %v1109_v13  ;;  %v1135_v20 = vadd.f32 %v1134_v18, %v1133_v14  ;;  %v781_v42 = vadd.f32 (!%p1051_p5), %v1052_v34, %v758_v39  ;;  %v766_v58 = vld [vmem:[#allocation2 + $0x58] sm:$0xff] (!%p1051_p5)  ;;  %v804_v11 = vmax.f32 (!%p1051_p5), %v788_v4, 0.0 }
 0x17b   : > { %812 = vst [vmem:[%s1652_s25 + $0x10] sm:$0xff] (!%p1051_p5), %v796_v54  ;;  %v789_v5 = vadd.f32 (!%p1051_p5), %v1052_v34, %v766_v58  ;;  %818 = vst [vmem:[%s1652_s25 + $0x40] sm:$0xff] (!%p1051_p5), %v802_v7 }
 0x17c   : > { %v725_v21 = vadd.f32 %v1111_v19, %v500_v15  ;;  %v733_v22 = vadd.f32 %v1135_v20, %v508_v17  ;;  %v1112_v23 = vpop.f32.mrb[14].mxu0  ;;  %v1136_v24 = vpop.f32.mrb[14].mxu1  ;;  %754 = sbr.rel (%p1051_p5) target bundleno = 400 (0x190), region = 101  ;;  %v797_v55 = vmax.f32 (!%p1051_p5), %v781_v42, 0.0  ;;  %820 = vst [vmem:[%s1652_s25 + $0x50] sm:$0xff] (!%p1051_p5), %v804_v11 }
 0x17d   : > { %v1113_v26 = vpop.f32.mrb[15].mxu0  ;;  %v1137_v28 = vpop.f32.mrb[15].mxu1  ;;  %v759_v40 = vld [vmem:[#allocation2 + $0x20] sm:$0xff] (!%p1051_p5)  ;;  %v805_v12 = vmax.f32 (!%p1051_p5), %v789_v5, 0.0 }
 0x17e   : > { %741 = vst [vmem:[#allocation2 + $0x30] sm:$0xff] %v725_v21  ;;  %749 = vst [vmem:[#allocation2 + $0x70] sm:$0xff] %v733_v22  ;;  %v1114_v29 = vadd.f32 %v1113_v26, %v1112_v23  ;;  %v1138_v30 = vadd.f32 %v1137_v28, %v1136_v24  ;;  %v782_v43 = vadd.f32 (!%p1051_p5), %v1052_v34, %v759_v40  ;;  %v767_v59 = vld [vmem:[#allocation2 + $0x60] sm:$0xff] (!%p1051_p5) }
 0x17f   : > { %813 = vst [vmem:[%s1652_s25 + $0x18] sm:$0xff] (!%p1051_p5), %v797_v55  ;;  %v790_v6 = vadd.f32 (!%p1051_p5), %v1052_v34, %v767_v59  ;;  %821 = vst [vmem:[%s1652_s25 + $0x58] sm:$0xff] (!%p1051_p5), %v805_v12 }
 0x180   : > { %v726_v31 = vadd.f32 %v1114_v29, %v501_v25  ;;  %v734_v32 = vadd.f32 %v1138_v30, %v509_v27  ;;  %v798_v56 = vmax.f32 (!%p1051_p5), %v782_v43, 0.0 }
 0x181   : > { %v760_v44 = vld [vmem:[#allocation2 + $0x28] sm:$0xff] (!%p1051_p5)  ;;  %v806_v13 = vmax.f32 (!%p1051_p5), %v790_v6, 0.0 }
 0x182   : > { %742 = vst [vmem:[#allocation2 + $0x38] sm:$0xff] %v726_v31  ;;  %750 = vst [vmem:[#allocation2 + $0x78] sm:$0xff] %v734_v32  ;;  %v783_v49 = vadd.f32 (!%p1051_p5), %v1052_v34, %v760_v44  ;;  %v768_v60 = vld [vmem:[#allocation2 + $0x68] sm:$0xff] (!%p1051_p5) }
 0x183   : > { %814 = vst [vmem:[%s1652_s25 + $0x20] sm:$0xff] %v798_v56  ;;  %v791_v9 = vadd.f32 %v1052_v34, %v768_v60  ;;  %822 = vst [vmem:[%s1652_s25 + $0x60] sm:$0xff] %v806_v13 }
 0x184   : > { %v799_v61 = vmax.f32 %v783_v49, 0.0 }
 0x185   : > { %v761_v45 = vld [vmem:[#allocation2 + $0x30] sm:$0xff]  ;;  %v807_v15 = vmax.f32 %v791_v9, 0.0 }
 0x186   : > { %v784_v50 = vadd.f32 %v1052_v34, %v761_v45  ;;  %v769_v1 = vld [vmem:[#allocation2 + $0x70] sm:$0xff]  ;;  %815 = vst [vmem:[%s1652_s25 + $0x28] sm:$0xff] %v799_v61 }
 0x187   : > { %v792_v10 = vadd.f32 %v1052_v34, %v769_v1  ;;  %823 = vst [vmem:[%s1652_s25 + $0x68] sm:$0xff] %v807_v15 }
 0x188   : > { %v800_v62 = vmax.f32 %v784_v50, 0.0 }
 0x189   : > { %v762_v46 = vld [vmem:[#allocation2 + $0x38] sm:$0xff]  ;;  %v808_v16 = vmax.f32 %v792_v10, 0.0 }
 0x18a   : > { %v785_v57 = vadd.f32 %v1052_v34, %v762_v46  ;;  %v770_v2 = vld [vmem:[#allocation2 + $0x78] sm:$0xff]  ;;  %816 = vst [vmem:[%s1652_s25 + $0x30] sm:$0xff] %v800_v62 }
 0x18b   : > { %v793_v14 = vadd.f32 %v1052_v34, %v770_v2  ;;  %824 = vst [vmem:[%s1652_s25 + $0x70] sm:$0xff] %v808_v16 }
 0x18c   : > { %v801_v3 = vmax.f32 %v785_v57, 0.0 }
 0x18d   : > { %v809_v17 = vmax.f32 %v793_v14, 0.0 }
 0x18e   : > { %817 = vst [vmem:[%s1652_s25 + $0x38] sm:$0xff] %v801_v3 }
 0x18f   : > { %825 = vst [vmem:[%s1652_s25 + $0x78] sm:$0xff] %v809_v17 }
 0x190 PF: > { %832 = sbr.rel (!%p1479_p12) target bundleno = 410 (0x19a), region = 105  ;;  %s1054_s14 = sshll.u32 (%p1479_p12), %s1350_s19, 3  ;;  %v895_v18 = vld [vmem:[%s1652_s25] sm:$0xff] (%p1479_p12)  ;;  %v897_v19 = vld [vmem:[%s1652_s25 + $0x8] sm:$0xff] (%p1479_p12)  ;;  %v899_v20 = vld [vmem:[%s1652_s25 + $0x10] sm:$0xff] (%p1479_p12) }
 0x191   : > { %s837_s5 = scalar_lea.vmem (%p1479_p12), %s1799_s3, %s1054_s14  ;;  %v905_v23 = vld [vmem:[%s1652_s25 + $0x28] sm:$0xff] (%p1479_p12)  ;;  %v907_v24 = vld [vmem:[%s1652_s25 + $0x30] sm:$0xff] (%p1479_p12)  ;;  %v911_v26 = vld [vmem:[%s1652_s25 + $0x40] sm:$0xff] (%p1479_p12) }
 0x192   : > { %896 = vst [vmem:[%s837_s5] sm:$0xff] (%p1479_p12), %v895_v18  ;;  %898 = vst [vmem:[%s837_s5 + $0x10] sm:$0xff] (%p1479_p12), %v897_v19  ;;  %v913_v27 = vld [vmem:[%s1652_s25 + $0x48] sm:$0xff] (%p1479_p12)  ;;  %v915_v28 = vld [vmem:[%s1652_s25 + $0x50] sm:$0xff] (%p1479_p12) }
 0x193   : > { %v901_v21 = vld [vmem:[%s1652_s25 + $0x18] sm:$0xff] (%p1479_p12)  ;;  %900 = vst [vmem:[%s837_s5 + $0x20] sm:$0xff] (%p1479_p12), %v899_v20  ;;  %906 = vst [vmem:[%s837_s5 + $0x50] sm:$0xff] (%p1479_p12), %v905_v23  ;;  %v921_v31 = vld [vmem:[%s1652_s25 + $0x68] sm:$0xff] (%p1479_p12) }
 0x194   : > { %902 = vst [vmem:[%s837_s5 + $0x30] sm:$0xff] (%p1479_p12), %v901_v21  ;;  %908 = vst [vmem:[%s837_s5 + $0x60] sm:$0xff] (%p1479_p12), %v907_v24  ;;  %v917_v29 = vld [vmem:[%s1652_s25 + $0x58] sm:$0xff] (%p1479_p12)  ;;  %v923_v32 = vld [vmem:[%s1652_s25 + $0x70] sm:$0xff] (%p1479_p12) }
 0x195   : > { %v909_v25 = vld [vmem:[%s1652_s25 + $0x38] sm:$0xff] (%p1479_p12)  ;;  %912 = vst [vmem:[%s837_s5 + $0x80] sm:$0xff] (%p1479_p12), %v911_v26  ;;  %914 = vst [vmem:[%s837_s5 + $0x90] sm:$0xff] (%p1479_p12), %v913_v27 }
 0x196   : > { %910 = vst [vmem:[%s837_s5 + $0x70] sm:$0xff] (%p1479_p12), %v909_v25  ;;  %916 = vst [vmem:[%s837_s5 + $0xa0] sm:$0xff] (%p1479_p12), %v915_v28  ;;  %v925_v33 = vld [vmem:[%s1652_s25 + $0x78] sm:$0xff] (%p1479_p12) }
 0x197   : > { %v903_v22 = vld [vmem:[%s1652_s25 + $0x20] sm:$0xff]  ;;  %918 = vst [vmem:[%s837_s5 + $0xb0] sm:$0xff] %v917_v29  ;;  %922 = vst [vmem:[%s837_s5 + $0xd0] sm:$0xff] %v921_v31 }
 0x198   : > { %904 = vst [vmem:[%s837_s5 + $0x40] sm:$0xff] %v903_v22  ;;  %v919_v30 = vld [vmem:[%s1652_s25 + $0x60] sm:$0xff]  ;;  %924 = vst [vmem:[%s837_s5 + $0xe0] sm:$0xff] %v923_v32 }
 0x199   : > { %920 = vst [vmem:[%s837_s5 + $0xc0] sm:$0xff] %v919_v30  ;;  %926 = vst [vmem:[%s837_s5 + $0xf0] sm:$0xff] %v925_v33 }
 0x19a PF: > { %s13_s22 = sadd.s32 1, %s1362_s22   ;;  %s1809_s10 = sld [smem:[#allocation6_spill]] }
 0x19b   : > { %p10_p6 = scmp.ge.s32.totalorder %s13_s22, 20   ;;  %s1810_s12 = smov %s1326_s13 }
 0x19c   : > { %s1811_s13 = smov %s1477_s9  ;;  %s1812_s14 = smov %s1334_s15 }
 0x19d   : > { %s1813_s15 = smov %s1474_s8  ;;  %s1814_s16 = smov %s1342_s17 }
 0x19e   : > { %s1815_s17 = smov %s1460_s30  ;;  %s1816_s18 = smov %s1354_s20 }
 0x19f   : > { %s1817_s19 = smov %s1358_s21  ;;  %s1818_s20 = smov %s1821_s24 }
 0x1a0   : > { %s1819_s21 = smov %s1809_s10  ;;  %12 = sbr.rel (!%p10_p6) target bundleno = 9 (0x9), region = 185 }

// kernel: loss_network_forward.33
= control target key start
LH: loop header
LB: loop body
LE: loop exit
PB: predicated region body
PF: predicated region fallthrough
CT: control target
= control target key end

     0   :  { %v55_v0 = vlaneseq  ;;  %v301_v2 = vmov 1983009808   ;;  %vm219_vm0 = vcmask 1041408   ;;  %s418_s0 = inlined_call_operand.vmem [shape: f32[2,4096], index: 0, kind: input, shape index: {}]   ;;  %s419_s1 = inlined_call_operand.vmem [shape: f32[2,4096], index: 1, kind: input, shape index: {}]   ;;  %s420_s2 = inlined_call_operand.vmem [shape: f32[1,128], index: 2, kind: output, shape index: {}]  }
   0x1   :  { %v11_v1 = vld [vmem:[%s418_s0] sm:$0xff]  ;;  %v53_v3 = vunpack.c.l.s4 %v301_v2  ;;  %v12_v8 = vld [vmem:[%s418_s0 + $0x8] sm:$0xff]  ;;  %v13_v17 = vld [vmem:[%s418_s0 + $0x10] sm:$0xff] }
   0x2   :  { %v56_v4 = vshrl.u32 %v55_v0, 7  ;;  %v19_v5 = vld [vmem:[%s419_s1] sm:$0xff]  ;;  %v20_v9 = vld [vmem:[%s419_s1 + $0x8] sm:$0xff]  ;;  %v21_v18 = vld [vmem:[%s419_s1 + $0x10] sm:$0xff] }
   0x3   :  { %v54_v6 = vunpack.c.0.s8 %v53_v3  ;;  %v27_v7 = vsub.f32 %v11_v1, %v19_v5  ;;  %v28_v12 = vsub.f32 %v12_v8, %v20_v9  ;;  %v29_v20 = vsub.f32 %v13_v17, %v21_v18  ;;  %v14_v28 = vld [vmem:[%s418_s0 + $0x18] sm:$0xff]  ;;  %v15_v45 = vld [vmem:[%s418_s0 + $0x20] sm:$0xff]  ;;  %v16_v62 = vld [vmem:[%s418_s0 + $0x28] sm:$0xff] }
   0x4   :  { %v22_v29 = vld [vmem:[%s419_s1 + $0x18] sm:$0xff]  ;;  %v23_v46 = vld [vmem:[%s419_s1 + $0x20] sm:$0xff]  ;;  %v24_v63 = vld [vmem:[%s419_s1 + $0x28] sm:$0xff] }
   0x5   :  { %v35_v10 = vmul.f32 %v27_v7, %v27_v7  ;;  %v329_v11 = vsub.s32 %v54_v6, %v56_v4  ;;  %v36_v15 = vmul.f32 %v28_v12, %v28_v12  ;;  %v37_v30 = vmul.f32 %v29_v20, %v29_v20  ;;  %v25_v17 = vld [vmem:[%s419_s1 + $0x30] sm:$0xff] }
   0x6   :  { %v30_v36 = vsub.f32 %v14_v28, %v22_v29  ;;  %v31_v53 = vsub.f32 %v15_v45, %v23_v46  ;;  %v32_v6 = vsub.f32 %v16_v62, %v24_v63 }
   0x7   :  { %v51_v13 = vcombine.high %v35_v10, %v35_v10  ;;  %v58_v14 = vrot.slane %v35_v10, %v329_v11  ;;  %v68_v22 = vcombine.high %v36_v15, %v36_v15  ;;  %v75_v23 = vrot.slane %v36_v15, %v329_v11 }
   0x8   :  { %v85_v39 = vcombine.high %v37_v30, %v37_v30  ;;  %v92_v40 = vrot.slane %v37_v30, %v329_v11  ;;  %v38_v47 = vmul.f32 %v30_v36, %v30_v36  ;;  %v39_v0 = vmul.f32 %v31_v53, %v31_v53 }
   0x9   :  { %v65_v16 = vrot.slane %v51_v13, %v329_v11  ;;  %v66_v19 = vcombine.high %v58_v14, %v58_v14  ;;  %v220_v24 = vsel %vm219_vm0, %v58_v14, 0.0  ;;  %v82_v31 = vrot.slane %v68_v22, %v329_v11 }
   0xa   :  { %v83_v32 = vcombine.high %v75_v23, %v75_v23  ;;  %v227_v35 = vsel %vm219_vm0, %v75_v23, 0.0  ;;  %v99_v48 = vrot.slane %v85_v39, %v329_v11  ;;  %v100_v49 = vcombine.high %v92_v40, %v92_v40 }
   0xb   :  { %v67_v21 = vcombine.high %v65_v16, %v65_v16  ;;  %v221_v25 = vsel %vm219_vm0, %v66_v19, 0.0  ;;  %v223_v27 = vsel %vm219_vm0, %v65_v16, 0.0  ;;  %v84_v38 = vcombine.high %v82_v31, %v82_v31  ;;  %v17_v16 = vld [vmem:[%s418_s0 + $0x30] sm:$0xff] }
   0xc   :  { %v222_v26 = vadd.f32 %v221_v25, %v220_v24  ;;  %v229_v41 = vsel %vm219_vm0, %v83_v32, 0.0  ;;  %v231_v43 = vsel %vm219_vm0, %v82_v31, 0.0  ;;  %v235_v52 = vsel %vm219_vm0, %v92_v40, 0.0 }
   0xd   :  { %v225_v33 = vsel %vm219_vm0, %v67_v21, 0.0  ;;  %v233_v50 = vsel %vm219_vm0, %v84_v38, 0.0  ;;  %v101_v55 = vcombine.high %v99_v48, %v99_v48  ;;  %v102_v56 = vcombine.high %v38_v47, %v38_v47 }
   0xe   :  { %v224_v34 = vadd.f32 %v223_v27, %v222_v26  ;;  %v109_v57 = vrot.slane %v38_v47, %v329_v11  ;;  %v237_v58 = vsel %vm219_vm0, %v100_v49, 0.0  ;;  %v239_v60 = vsel %vm219_vm0, %v99_v48, 0.0 }
   0xf   :  { %v116_v1 = vrot.slane %v102_v56, %v329_v11  ;;  %v241_v3 = vsel %vm219_vm0, %v101_v55, 0.0  ;;  %v119_v9 = vcombine.high %v39_v0, %v39_v0  ;;  %v126_v10 = vrot.slane %v39_v0, %v329_v11 }
  0x10   :  { %v226_v37 = vadd.f32 %v225_v33, %v224_v34  ;;  %v117_v2 = vcombine.high %v109_v57, %v109_v57  ;;  %v243_v5 = vsel %vm219_vm0, %v109_v57, 0.0  ;;  %v40_v18 = vmul.f32 %v32_v6, %v32_v6  ;;  %v18_v33 = vld [vmem:[%s418_s0 + $0x38] sm:$0xff] }
  0x11   :  { %v118_v8 = vcombine.high %v116_v1, %v116_v1  ;;  %v247_v14 = vsel %vm219_vm0, %v116_v1, 0.0  ;;  %v133_v19 = vrot.slane %v119_v9, %v329_v11  ;;  %v134_v20 = vcombine.high %v126_v10, %v126_v10  ;;  %v26_v34 = vld [vmem:[%s419_s1 + $0x38] sm:$0xff] }
  0x12   :  { %v228_v42 = vadd.f32 %v227_v35, %v226_v37  ;;  %v245_v12 = vsel %vm219_vm0, %v117_v2, 0.0  ;;  %v251_v23 = vsel %vm219_vm0, %v126_v10, 0.0  ;;  %v33_v24 = vsub.f32 %v17_v16, %v25_v17 }
  0x13   :  { %v249_v21 = vsel %vm219_vm0, %v118_v8, 0.0  ;;  %v135_v26 = vcombine.high %v133_v19, %v133_v19  ;;  %v136_v27 = vcombine.high %v40_v18, %v40_v18  ;;  %v143_v28 = vrot.slane %v40_v18, %v329_v11 }
  0x14   :  { %v230_v44 = vadd.f32 %v229_v41, %v228_v42  ;;  %v253_v29 = vsel %vm219_vm0, %v134_v20, 0.0  ;;  %v255_v31 = vsel %vm219_vm0, %v133_v19, 0.0  ;;  %v41_v35 = vmul.f32 %v33_v24, %v33_v24 }
  0x15   :  { %v150_v36 = vrot.slane %v136_v27, %v329_v11  ;;  %v151_v37 = vcombine.high %v143_v28, %v143_v28  ;;  %v257_v38 = vsel %vm219_vm0, %v135_v26, 0.0  ;;  %v259_v40 = vsel %vm219_vm0, %v143_v28, 0.0 }
  0x16   :  { %v232_v51 = vadd.f32 %v231_v43, %v230_v44  ;;  %v34_v41 = vsub.f32 %v18_v33, %v26_v34  ;;  %v153_v44 = vcombine.high %v41_v35, %v41_v35  ;;  %v160_v45 = vrot.slane %v41_v35, %v329_v11 }
  0x17   :  { %v152_v43 = vcombine.high %v150_v36, %v150_v36  ;;  %v261_v46 = vsel %vm219_vm0, %v151_v37, 0.0  ;;  %v263_v48 = vsel %vm219_vm0, %v150_v36, 0.0 }
  0x18   :  { %v234_v54 = vadd.f32 %v233_v50, %v232_v51  ;;  %v42_v50 = vmul.f32 %v34_v41, %v34_v41  ;;  %v167_v51 = vrot.slane %v153_v44, %v329_v11  ;;  %v267_v55 = vsel %vm219_vm0, %v160_v45, 0.0 }
  0x19   :  { %v265_v53 = vsel %vm219_vm0, %v152_v43, 0.0 }
  0x1a   :  { %v236_v59 = vadd.f32 %v235_v52, %v234_v54  ;;  %v168_v52 = vcombine.high %v160_v45, %v160_v45  ;;  %v169_v57 = vcombine.high %v167_v51, %v167_v51  ;;  %v271_v62 = vsel %vm219_vm0, %v167_v51, 0.0 }
  0x1c   :  { %v238_v61 = vadd.f32 %v237_v58, %v236_v59  ;;  %v170_v58 = vcombine.high %v42_v50, %v42_v50  ;;  %v177_v59 = vrot.slane %v42_v50, %v329_v11  ;;  %v273_v2 = vsel %vm219_vm0, %v169_v57, 0.0 }
  0x1e   :  { %v240_v4 = vadd.f32 %v239_v60, %v238_v61  ;;  %v269_v60 = vsel %vm219_vm0, %v168_v52, 0.0  ;;  %v184_v0 = vrot.slane %v170_v58, %v329_v11  ;;  %v185_v1 = vcombine.high %v177_v59, %v177_v59 }
  0x20   :  { %v242_v7 = vadd.f32 %v241_v3, %v240_v4  ;;  %v275_v4 = vsel %vm219_vm0, %v177_v59, 0.0  ;;  %v186_v6 = vcombine.high %v184_v0, %v184_v0  ;;  %v279_v9 = vsel %vm219_vm0, %v184_v0, 0.0 }
  0x22   :  { %v244_v13 = vadd.f32 %v243_v5, %v242_v7  ;;  %v277_v7 = vsel %vm219_vm0, %v185_v1, 0.0 }
  0x24   :  { %v246_v15 = vadd.f32 %v245_v12, %v244_v13  ;;  %v281_v12 = vsel %vm219_vm0, %v186_v6, 0.0 }
  0x26   :  { %v248_v22 = vadd.f32 %v247_v14, %v246_v15 }
  0x28   :  { %v250_v25 = vadd.f32 %v249_v21, %v248_v22 }
  0x2a   :  { %v252_v30 = vadd.f32 %v251_v23, %v250_v25 }
  0x2c   :  { %v254_v32 = vadd.f32 %v253_v29, %v252_v30 }
  0x2e   :  { %v256_v39 = vadd.f32 %v255_v31, %v254_v32 }
  0x30   :  { %v258_v42 = vadd.f32 %v257_v38, %v256_v39 }
  0x32   :  { %v260_v47 = vadd.f32 %v259_v40, %v258_v42 }
  0x34   :  { %v262_v49 = vadd.f32 %v261_v46, %v260_v47 }
  0x36   :  { %v264_v54 = vadd.f32 %v263_v48, %v262_v49 }
  0x38   :  { %v266_v56 = vadd.f32 %v265_v53, %v264_v54 }
  0x3a   :  { %v268_v61 = vadd.f32 %v267_v55, %v266_v56 }
  0x3c   :  { %v270_v63 = vadd.f32 %v269_v60, %v268_v61 }
  0x3e   :  { %v272_v3 = vadd.f32 %v271_v62, %v270_v63 }
  0x40   :  { %v274_v5 = vadd.f32 %v273_v2, %v272_v3 }
  0x42   :  { %v276_v8 = vadd.f32 %v275_v4, %v274_v5 }
  0x44   :  { %v278_v10 = vadd.f32 %v277_v7, %v276_v8 }
  0x46   :  { %v280_v13 = vadd.f32 %v279_v9, %v278_v10 }
  0x48   :  { %v282_v14 = vadd.f32 %v281_v12, %v280_v13 }
  0x4a   :  { %283 = vadd.xlane.f32.xlu0 %v282_v14 }
  0xd7   :  { %v284_v11 = vpop.xlane.xlu0 %283 }
  0xd8   :  { %v285_v15 = vrot.slane %v284_v11, 4 }
  0xda   :  { %v286_v16 = vadd.f32 %v285_v15, %v284_v11 }
  0xdc   :  { %v287_v17 = vrot.slane %v286_v16, 2 }
  0xde   :  { %v288_v18 = vadd.f32 %v287_v17, %v286_v16 }
  0xe0   :  { %v289_v19 = vrot.slane %v288_v18, 1 }
  0xe2   :  { %v290_v20 = vadd.f32 %v289_v19, %v288_v18 }
  0xe4   :  { %298 = vpush %v290_v20 }
 0x115   :  { %s299_s0 = spop %298 }
 0x116   :  { %v292_v21 = vstv %s299_s0 }
 0x117   :  { %293 = vst [vmem:[%s420_s2] sm:$0x1] %v292_v21 }

</bundles_post_ra>
